<compile_context>
chip_gen: v5e
topology: v5e:2x2
jax: 0.10.0
libtpu: 0.0.40
codegen_flags: <defaults>
</compile_context>

<pallas_src>
import functools

import jax
import jax.numpy as jnp
from jax.experimental import pallas as pl
from jax.experimental.pallas import tpu as pltpu


_NUM_PARAM_OPS = 10  # w0, b0, w1, b1, w2, b2, w3, b3, w4, b4


# ----------------------------------------------------------------------------
# Kernel: full forward pass for one batch tile; weights single-buffered in VMEM
# scratch, loaded via manual DMA on grid step 0 and overlapped with compute.
# ----------------------------------------------------------------------------
def _mlp_kernel(*refs):
    x_ref = refs[0]
    p_hbm = refs[1:1 + _NUM_PARAM_OPS]                       # raw HBM refs (pl.ANY)
    o_ref = refs[1 + _NUM_PARAM_OPS]
    p_vmem = refs[2 + _NUM_PARAM_OPS:2 + 2 * _NUM_PARAM_OPS]  # single-buffered VMEM scratch
    sems = refs[2 + 2 * _NUM_PARAM_OPS]                       # one DMA semaphore per operand

    step = pl.program_id(0)
    f32, bf16 = jnp.float32, jnp.bfloat16

    # Kick off ALL weight/bias copies on the first grid step.  The scratch buffers persist
    # across grid iterations, so later batch tiles reuse them without any further DMA.
    @pl.when(step == 0)
    def _():
        for idx in range(_NUM_PARAM_OPS):
            pltpu.make_async_copy(p_hbm[idx], p_vmem[idx], sems.at[idx]).start()

    def wait_param(idx):
        # Just-in-time wait: layer k's matmul runs while layers k+1.. are still streaming in.
        @pl.when(step == 0)
        def _():
            pltpu.make_async_copy(p_hbm[idx], p_vmem[idx], sems.at[idx]).wait()

    # In-kernel bf16 cast of the f32 activations (VPU work, hidden under the MXU-bound body).
    h = x_ref[...].astype(bf16)

    # Layers 0..3: (Linear+folded BN) -> ReLU ; layer 4: final Linear (head, lane-padded).
    for layer in range(5):
        w_idx, b_idx = 2 * layer, 2 * layer + 1
        wait_param(w_idx)
        wait_param(b_idx)
        acc = jnp.dot(h, p_vmem[w_idx][...], preferred_element_type=f32) + p_vmem[b_idx][...]
        if layer < 4:
            # Fused bias -> ReLU -> bf16 recast: a single VPU pass per layer.
            h = jnp.maximum(acc, 0.0).astype(bf16)
        else:
            o_ref[...] = acc.astype(o_ref.dtype)


def _round_up(v, m):
    return ((v + m - 1) // m) * m


# ----------------------------------------------------------------------------
# Wrapper
# ----------------------------------------------------------------------------
@functools.partial(jax.jit, static_argnames=("num_classes", "block_b"))
def image_only_classifier_fwd(x, folded, *, num_classes, block_b=256):
    """x: (B, image_dim) float32. folded: dict from fold_and_pack(). Returns (B, num_classes) f32.

    The batch is zero-padded up to a multiple of block_b (partial batches are never dropped)
    and tiled over a 1-D grid.  Weights are loaded once (step 0) into persistent VMEM scratch.
    """
    B, image_dim = x.shape
    padded_classes = folded["w4"].shape[1]

    # >=128 rows for a healthy MXU M-stream, but don't over-pad tiny batches.
    block_b = max(128, min(block_b, _round_up(B, 128)))
    padded_b = _round_up(B, block_b)
    if padded_b != B:
        x = jnp.pad(x, ((0, padded_b - B), (0, 0)))

    params = (
        folded["w0"], folded["b0"],
        folded["w1"], folded["b1"],
        folded["w2"], folded["b2"],
        folded["w3"], folded["b3"],
        folded["w4"], folded["b4"],
    )

    in_specs = [pl.BlockSpec((block_b, image_dim), lambda i: (i, 0))]
    # Weights/biases stay in HBM (no auto-pipeline double-buffering); kernel DMAs them manually.
    in_specs += [pl.BlockSpec(memory_space=pl.ANY) for _ in params]

    scratch_shapes = [pltpu.VMEM(p.shape, p.dtype) for p in params]   # single-buffered weights
    scratch_shapes += [pltpu.SemaphoreType.DMA((len(params),))]

    out = pl.pallas_call(
        _mlp_kernel,
        out_shape=jax.ShapeDtypeStruct((padded_b, padded_classes), jnp.float32),
        grid_spec=pltpu.PrefetchScalarGridSpec(
            num_scalar_prefetch=0,
            grid=(padded_b // block_b,),
            in_specs=in_specs,
            out_specs=pl.BlockSpec((block_b, padded_classes), lambda i: (i, 0)),
            scratch_shapes=scratch_shapes,
        ),
        compiler_params=pltpu.CompilerParams(
            # "arbitrary": the step-0 weight load must execute on the core that owns every tile;
            # in the weight-load-bound regime a megacore "parallel" split would only duplicate
            # weight HBM traffic (see review).  TODO(synk): megacore variant for huge batches.
            dimension_semantics=("arbitrary",),
            # Explicit budget (v5e's scoped default is only 16 MiB).  Production H=512 needs
            # ~4.9 MiB of single-buffered bf16 weights + ~2 MiB of double-buffered x/out tiles,
            # so 32 MiB leaves ample headroom on v5e/v6e/v7x.
            vmem_limit_bytes=32 * 1024 * 1024,
        ),
    )(x, *params)

    return out[:B, :num_classes]


# ----------------------------------------------------------------------------
# Parameter construction + eval-mode BN folding (glue, runs once outside the kernel)
# ----------------------------------------------------------------------------
def _bn_scale_shift(gamma, beta, mean, var, eps=1e-5):
    scale = gamma / jnp.sqrt(var + eps)
    shift = beta - mean * scale
    return scale, shift


def fold_and_pack(raw, num_classes, lane=128):
    """Fold eval-mode BatchNorm into the preceding Linear, cast weights to bf16, and pad the
    classifier head width to a multiple of 128 lanes.  (bf16 weight folding trades a little
    precision vs PyTorch's f32 BN-after-matmul -- documented numerical contract.)"""
    def fold(w, b, bn):
        scale, shift = _bn_scale_shift(*bn)
        wf = (w * scale[None, :]).astype(jnp.bfloat16)
        bf = (b * scale + shift).reshape(1, -1).astype(jnp.float32)
        return wf, bf

    w0, b0 = fold(raw["w0"], raw["b0"], raw["bn1"])
    w1, b1 = fold(raw["w1"], raw["b1"], raw["bn2"])
    w2, b2 = fold(raw["w2"], raw["b2"], raw["bn3"])
    w3, b3 = fold(raw["w3"], raw["b3"], raw["bn4"])

    padded_classes = ((num_classes + lane - 1) // lane) * lane
    w4 = jnp.zeros((raw["w4"].shape[0], padded_classes), jnp.float32)
    w4 = w4.at[:, :num_classes].set(raw["w4"]).astype(jnp.bfloat16)
    b4 = jnp.zeros((1, padded_classes), jnp.float32)
    b4 = b4.at[:, :num_classes].set(raw["b4"].reshape(1, -1))

    return dict(w0=w0, b0=b0, w1=w1, b1=b1, w2=w2, b2=b2, w3=w3, b3=b3, w4=w4, b4=b4)


def make_raw_params(key, image_dim, hidden_dim, num_classes):
    """Deterministic synthetic parameters matching ImageOnlyClassifier's shapes (f32)."""
    ks = jax.random.split(key, 9)
    H, H2 = hidden_dim, 2 * hidden_dim

    def lin(k, fin, fout):
        kw, kb = jax.random.split(k)
        bound = 1.0 / jnp.sqrt(fin)
        w = jax.random.uniform(kw, (fin, fout), jnp.float32, -bound, bound)
        b = jax.random.uniform(kb, (fout,), jnp.float32, -bound, bound)
        return w, b

    def bn(k, f):
        k1, k2, k3, k4 = jax.random.split(k, 4)
        gamma = 1.0 + 0.1 * jax.random.normal(k1, (f,), jnp.float32)
        beta = 0.1 * jax.random.normal(k2, (f,), jnp.float32)
        mean = 0.1 * jax.random.normal(k3, (f,), jnp.float32)
        var = jax.random.uniform(k4, (f,), jnp.float32, 0.5, 1.5)
        return (gamma, beta, mean, var)

    w0, b0 = lin(ks[0], image_dim, H)      # image_proj
    bn1 = bn(ks[1], H)                     # BatchNorm1d(H)
    w1, b1 = lin(ks[2], H, H2)             # Linear(H, 2H)
    bn2 = bn(ks[3], H2)                    # BatchNorm1d(2H)
    w2, b2 = lin(ks[4], H2, H2)            # Linear(2H, 2H)
    bn3 = bn(ks[5], H2)                    # BatchNorm1d(2H)
    w3, b3 = lin(ks[6], H2, H)             # Linear(2H, H)
    bn4 = bn(ks[7], H)                     # BatchNorm1d(H)
    w4, b4 = lin(ks[8], H, num_classes)    # Linear(H, num_classes)

    return dict(w0=w0, b0=b0, bn1=bn1, w1=w1, b1=b1, bn2=bn2, w2=w2, b2=b2,
                bn3=bn3, w3=w3, b3=b3, bn4=bn4, w4=w4, b4=b4)


# ----------------------------------------------------------------------------
# Pure-JAX references for correctness checking
# ----------------------------------------------------------------------------
def reference_fwd_folded(x, f, num_classes):
    """Mirrors the kernel's math exactly (bf16 matmul inputs, f32 accumulation)."""
    bf16, f32 = jnp.bfloat16, jnp.float32
    h = jnp.dot(x.astype(bf16), f["w0"], preferred_element_type=f32) + f["b0"]
    h = jnp.maximum(h, 0.0)
    h = jnp.dot(h.astype(bf16), f["w1"], preferred_element_type=f32) + f["b1"]
    h = jnp.maximum(h, 0.0)
    h = jnp.dot(h.astype(bf16), f["w2"], preferred_element_type=f32) + f["b2"]
    h = jnp.maximum(h, 0.0)
    h = jnp.dot(h.astype(bf16), f["w3"], preferred_element_type=f32) + f["b3"]
    h = jnp.maximum(h, 0.0)
    out = jnp.dot(h.astype(bf16), f["w4"], preferred_element_type=f32) + f["b4"]
    return out[:, :num_classes]


def reference_fwd_f32(x, raw, eps=1e-5):
    """Full-precision eval-mode reference of the original PyTorch module."""
    def bn(h, p):
        g, b, m, v = p
        return (h - m) / jnp.sqrt(v + eps) * g + b

    h = x @ raw["w0"] + raw["b0"]
    h = jnp.maximum(bn(h, raw["bn1"]), 0.0)
    h = h @ raw["w1"] + raw["b1"]
    h = jnp.maximum(bn(h, raw["bn2"]), 0.0)
    h = h @ raw["w2"] + raw["b2"]
    h = jnp.maximum(bn(h, raw["bn3"]), 0.0)
    h = h @ raw["w3"] + raw["b3"]
    h = jnp.maximum(bn(h, raw["bn4"]), 0.0)
    return h @ raw["w4"] + raw["b4"]


if __name__ == "__main__":
    # Scaled-down shapes consistent with the module (defaults 768/512/3) but kept small.
    # HIDDEN_DIM=256 keeps the main layers (K/N = 256/512) aligned to the 256-wide v6e/v7x MXU
    # (review item: H=128 only half-fills it).  B=512 with block_b=256 gives 2 grid tiles, which
    # exercises the "weights loaded on step 0, reused on step 1" path.
    B, IMAGE_DIM, HIDDEN_DIM, NUM_CLASSES = 512, 256, 256, 3

    key = jax.random.PRNGKey(0)
    k_x, k_p = jax.random.split(key)
    x = jax.random.normal(k_x, (B, IMAGE_DIM), jnp.float32)

    raw = make_raw_params(k_p, IMAGE_DIM, HIDDEN_DIM, NUM_CLASSES)
    folded = fold_and_pack(raw, NUM_CLASSES)

    out = image_only_classifier_fwd(x, folded, num_classes=NUM_CLASSES, block_b=256)
    out = jax.block_until_ready(out)
    assert out.shape == (B, NUM_CLASSES), out.shape

    # Check against a reference that mirrors the kernel's bf16/f32 math.
    ref_match = reference_fwd_folded(x, folded, NUM_CLASSES)
    assert jnp.allclose(out, ref_match, atol=1e-2, rtol=1e-2), "mismatch vs folded bf16 reference"

    # Loose semantic check against the full-f32 eval-mode module (bf16 weight folding contract).
    ref_f32 = reference_fwd_f32(x, raw)
    assert jnp.allclose(out, ref_f32, atol=2.5e-1), float(jnp.max(jnp.abs(out - ref_f32)))

    # Exercise the non-multiple-of-tile batch path (padding + slice back, block_b clamps to 128).
    x_odd = x[:100]
    out_odd = jax.block_until_ready(
        image_only_classifier_fwd(x_odd, folded, num_classes=NUM_CLASSES, block_b=256))
    assert out_odd.shape == (100, NUM_CLASSES)
    assert jnp.allclose(out_odd, ref_match[:100], atol=1e-2, rtol=1e-2), "partial-batch mismatch"

    print("KERNEL_OK")
</pallas_src>

<mosaic_0001>
module attributes {stable_mosaic.version = 11 : i64} {
  func.func @_mlp_kernel(%arg0: i32, %arg1: memref<256x256xf32, #tpu.memory_space<vmem>>, %arg2: memref<256x256xbf16, #tpu.memory_space<any>>, %arg3: memref<1x256xf32, #tpu.memory_space<any>>, %arg4: memref<256x512xbf16, #tpu.memory_space<any>>, %arg5: memref<1x512xf32, #tpu.memory_space<any>>, %arg6: memref<512x512xbf16, #tpu.memory_space<any>>, %arg7: memref<1x512xf32, #tpu.memory_space<any>>, %arg8: memref<512x256xbf16, #tpu.memory_space<any>>, %arg9: memref<1x256xf32, #tpu.memory_space<any>>, %arg10: memref<256x128xbf16, #tpu.memory_space<any>>, %arg11: memref<1x128xf32, #tpu.memory_space<any>>, %arg12: memref<256x128xf32, #tpu.memory_space<vmem>>, %arg13: memref<256x256xbf16, #tpu.memory_space<vmem>>, %arg14: memref<1x256xf32, #tpu.memory_space<vmem>>, %arg15: memref<256x512xbf16, #tpu.memory_space<vmem>>, %arg16: memref<1x512xf32, #tpu.memory_space<vmem>>, %arg17: memref<512x512xbf16, #tpu.memory_space<vmem>>, %arg18: memref<1x512xf32, #tpu.memory_space<vmem>>, %arg19: memref<512x256xbf16, #tpu.memory_space<vmem>>, %arg20: memref<1x256xf32, #tpu.memory_space<vmem>>, %arg21: memref<256x128xbf16, #tpu.memory_space<vmem>>, %arg22: memref<1x128xf32, #tpu.memory_space<vmem>>, %arg23: memref<10x!tpu.dma_semaphore, #tpu.memory_space<semaphore_mem>>) attributes {dimension_semantics = [#tpu.dimension_semantics<arbitrary>], iteration_bounds = array<i64: 2>, scalar_prefetch = 0 : i64, scratch_operands = 11 : i64, tpu.core_type = #tpu.core_type<tc>, window_params = [{transform_indices = @transform_0, window_bounds = array<i64: 256, 256>}, {}, {}, {}, {}, {}, {}, {}, {}, {}, {}, {transform_indices = @transform_11, window_bounds = array<i64: 256, 128>}]} {
    %c0_i32 = arith.constant 0 : i32
    %0 = arith.cmpi eq, %arg0, %c0_i32 : i32
    %1 = arith.extui %0 : i1 to i32
    %c0_i32_0 = arith.constant 0 : i32
    %2 = arith.cmpi ne, %1, %c0_i32_0 : i32
    scf.if %2 {
      %c0_i32_52 = arith.constant 0 : i32
      %73 = tpu.memref_slice %arg23[%c0_i32_52] : memref<10x!tpu.dma_semaphore, #tpu.memory_space<semaphore_mem>> -> memref<1x!tpu.dma_semaphore, #tpu.memory_space<semaphore_mem>>
      %74 = tpu.memref_squeeze %73 : memref<1x!tpu.dma_semaphore, #tpu.memory_space<semaphore_mem>> -> memref<!tpu.dma_semaphore, #tpu.memory_space<semaphore_mem>>
      tpu.enqueue_dma source(%arg2 : memref<256x256xbf16, #tpu.memory_space<any>>) target(%arg13 : memref<256x256xbf16, #tpu.memory_space<vmem>>) target_semaphore(%74 : memref<!tpu.dma_semaphore, #tpu.memory_space<semaphore_mem>>)
      %c1_i32 = arith.constant 1 : i32
      %75 = tpu.memref_slice %arg23[%c1_i32] : memref<10x!tpu.dma_semaphore, #tpu.memory_space<semaphore_mem>> -> memref<1x!tpu.dma_semaphore, #tpu.memory_space<semaphore_mem>>
      %76 = tpu.memref_squeeze %75 : memref<1x!tpu.dma_semaphore, #tpu.memory_space<semaphore_mem>> -> memref<!tpu.dma_semaphore, #tpu.memory_space<semaphore_mem>>
      tpu.enqueue_dma source(%arg3 : memref<1x256xf32, #tpu.memory_space<any>>) target(%arg14 : memref<1x256xf32, #tpu.memory_space<vmem>>) target_semaphore(%76 : memref<!tpu.dma_semaphore, #tpu.memory_space<semaphore_mem>>)
      %c2_i32 = arith.constant 2 : i32
      %77 = tpu.memref_slice %arg23[%c2_i32] : memref<10x!tpu.dma_semaphore, #tpu.memory_space<semaphore_mem>> -> memref<1x!tpu.dma_semaphore, #tpu.memory_space<semaphore_mem>>
      %78 = tpu.memref_squeeze %77 : memref<1x!tpu.dma_semaphore, #tpu.memory_space<semaphore_mem>> -> memref<!tpu.dma_semaphore, #tpu.memory_space<semaphore_mem>>
      tpu.enqueue_dma source(%arg4 : memref<256x512xbf16, #tpu.memory_space<any>>) target(%arg15 : memref<256x512xbf16, #tpu.memory_space<vmem>>) target_semaphore(%78 : memref<!tpu.dma_semaphore, #tpu.memory_space<semaphore_mem>>)
      %c3_i32 = arith.constant 3 : i32
      %79 = tpu.memref_slice %arg23[%c3_i32] : memref<10x!tpu.dma_semaphore, #tpu.memory_space<semaphore_mem>> -> memref<1x!tpu.dma_semaphore, #tpu.memory_space<semaphore_mem>>
      %80 = tpu.memref_squeeze %79 : memref<1x!tpu.dma_semaphore, #tpu.memory_space<semaphore_mem>> -> memref<!tpu.dma_semaphore, #tpu.memory_space<semaphore_mem>>
      tpu.enqueue_dma source(%arg5 : memref<1x512xf32, #tpu.memory_space<any>>) target(%arg16 : memref<1x512xf32, #tpu.memory_space<vmem>>) target_semaphore(%80 : memref<!tpu.dma_semaphore, #tpu.memory_space<semaphore_mem>>)
      %c4_i32 = arith.constant 4 : i32
      %81 = tpu.memref_slice %arg23[%c4_i32] : memref<10x!tpu.dma_semaphore, #tpu.memory_space<semaphore_mem>> -> memref<1x!tpu.dma_semaphore, #tpu.memory_space<semaphore_mem>>
      %82 = tpu.memref_squeeze %81 : memref<1x!tpu.dma_semaphore, #tpu.memory_space<semaphore_mem>> -> memref<!tpu.dma_semaphore, #tpu.memory_space<semaphore_mem>>
      tpu.enqueue_dma source(%arg6 : memref<512x512xbf16, #tpu.memory_space<any>>) target(%arg17 : memref<512x512xbf16, #tpu.memory_space<vmem>>) target_semaphore(%82 : memref<!tpu.dma_semaphore, #tpu.memory_space<semaphore_mem>>)
      %c5_i32 = arith.constant 5 : i32
      %83 = tpu.memref_slice %arg23[%c5_i32] : memref<10x!tpu.dma_semaphore, #tpu.memory_space<semaphore_mem>> -> memref<1x!tpu.dma_semaphore, #tpu.memory_space<semaphore_mem>>
      %84 = tpu.memref_squeeze %83 : memref<1x!tpu.dma_semaphore, #tpu.memory_space<semaphore_mem>> -> memref<!tpu.dma_semaphore, #tpu.memory_space<semaphore_mem>>
      tpu.enqueue_dma source(%arg7 : memref<1x512xf32, #tpu.memory_space<any>>) target(%arg18 : memref<1x512xf32, #tpu.memory_space<vmem>>) target_semaphore(%84 : memref<!tpu.dma_semaphore, #tpu.memory_space<semaphore_mem>>)
      %c6_i32 = arith.constant 6 : i32
      %85 = tpu.memref_slice %arg23[%c6_i32] : memref<10x!tpu.dma_semaphore, #tpu.memory_space<semaphore_mem>> -> memref<1x!tpu.dma_semaphore, #tpu.memory_space<semaphore_mem>>
      %86 = tpu.memref_squeeze %85 : memref<1x!tpu.dma_semaphore, #tpu.memory_space<semaphore_mem>> -> memref<!tpu.dma_semaphore, #tpu.memory_space<semaphore_mem>>
      tpu.enqueue_dma source(%arg8 : memref<512x256xbf16, #tpu.memory_space<any>>) target(%arg19 : memref<512x256xbf16, #tpu.memory_space<vmem>>) target_semaphore(%86 : memref<!tpu.dma_semaphore, #tpu.memory_space<semaphore_mem>>)
      %c7_i32 = arith.constant 7 : i32
      %87 = tpu.memref_slice %arg23[%c7_i32] : memref<10x!tpu.dma_semaphore, #tpu.memory_space<semaphore_mem>> -> memref<1x!tpu.dma_semaphore, #tpu.memory_space<semaphore_mem>>
      %88 = tpu.memref_squeeze %87 : memref<1x!tpu.dma_semaphore, #tpu.memory_space<semaphore_mem>> -> memref<!tpu.dma_semaphore, #tpu.memory_space<semaphore_mem>>
      tpu.enqueue_dma source(%arg9 : memref<1x256xf32, #tpu.memory_space<any>>) target(%arg20 : memref<1x256xf32, #tpu.memory_space<vmem>>) target_semaphore(%88 : memref<!tpu.dma_semaphore, #tpu.memory_space<semaphore_mem>>)
      %c8_i32 = arith.constant 8 : i32
      %89 = tpu.memref_slice %arg23[%c8_i32] : memref<10x!tpu.dma_semaphore, #tpu.memory_space<semaphore_mem>> -> memref<1x!tpu.dma_semaphore, #tpu.memory_space<semaphore_mem>>
      %90 = tpu.memref_squeeze %89 : memref<1x!tpu.dma_semaphore, #tpu.memory_space<semaphore_mem>> -> memref<!tpu.dma_semaphore, #tpu.memory_space<semaphore_mem>>
      tpu.enqueue_dma source(%arg10 : memref<256x128xbf16, #tpu.memory_space<any>>) target(%arg21 : memref<256x128xbf16, #tpu.memory_space<vmem>>) target_semaphore(%90 : memref<!tpu.dma_semaphore, #tpu.memory_space<semaphore_mem>>)
      %c9_i32 = arith.constant 9 : i32
      %91 = tpu.memref_slice %arg23[%c9_i32] : memref<10x!tpu.dma_semaphore, #tpu.memory_space<semaphore_mem>> -> memref<1x!tpu.dma_semaphore, #tpu.memory_space<semaphore_mem>>
      %92 = tpu.memref_squeeze %91 : memref<1x!tpu.dma_semaphore, #tpu.memory_space<semaphore_mem>> -> memref<!tpu.dma_semaphore, #tpu.memory_space<semaphore_mem>>
      tpu.enqueue_dma source(%arg11 : memref<1x128xf32, #tpu.memory_space<any>>) target(%arg22 : memref<1x128xf32, #tpu.memory_space<vmem>>) target_semaphore(%92 : memref<!tpu.dma_semaphore, #tpu.memory_space<semaphore_mem>>)
    } else {
    }
    %c0 = arith.constant 0 : index
    %c0_1 = arith.constant 0 : index
    %3 = vector.load %arg1[%c0, %c0_1] : memref<256x256xf32, #tpu.memory_space<vmem>>, vector<256x256xf32>
    %4 = arith.truncf %3 : vector<256x256xf32> to vector<256x256xbf16>
    %c0_i32_2 = arith.constant 0 : i32
    %5 = arith.cmpi eq, %arg0, %c0_i32_2 : i32
    %6 = arith.extui %5 : i1 to i32
    %c0_i32_3 = arith.constant 0 : i32
    %7 = arith.cmpi ne, %6, %c0_i32_3 : i32
    scf.if %7 {
      %c0_i32_52 = arith.constant 0 : i32
      %73 = tpu.memref_slice %arg23[%c0_i32_52] : memref<10x!tpu.dma_semaphore, #tpu.memory_space<semaphore_mem>> -> memref<1x!tpu.dma_semaphore, #tpu.memory_space<semaphore_mem>>
      %74 = tpu.memref_squeeze %73 : memref<1x!tpu.dma_semaphore, #tpu.memory_space<semaphore_mem>> -> memref<!tpu.dma_semaphore, #tpu.memory_space<semaphore_mem>>
      tpu.wait_dma2 semaphore(%74 : memref<!tpu.dma_semaphore, #tpu.memory_space<semaphore_mem>>) src(%arg2 : memref<256x256xbf16, #tpu.memory_space<any>>) dst(%arg13 : memref<256x256xbf16, #tpu.memory_space<vmem>>)
    } else {
    }
    %c0_i32_4 = arith.constant 0 : i32
    %8 = arith.cmpi eq, %arg0, %c0_i32_4 : i32
    %9 = arith.extui %8 : i1 to i32
    %c0_i32_5 = arith.constant 0 : i32
    %10 = arith.cmpi ne, %9, %c0_i32_5 : i32
    scf.if %10 {
      %c1_i32 = arith.constant 1 : i32
      %73 = tpu.memref_slice %arg23[%c1_i32] : memref<10x!tpu.dma_semaphore, #tpu.memory_space<semaphore_mem>> -> memref<1x!tpu.dma_semaphore, #tpu.memory_space<semaphore_mem>>
      %74 = tpu.memref_squeeze %73 : memref<1x!tpu.dma_semaphore, #tpu.memory_space<semaphore_mem>> -> memref<!tpu.dma_semaphore, #tpu.memory_space<semaphore_mem>>
      tpu.wait_dma2 semaphore(%74 : memref<!tpu.dma_semaphore, #tpu.memory_space<semaphore_mem>>) src(%arg3 : memref<1x256xf32, #tpu.memory_space<any>>) dst(%arg14 : memref<1x256xf32, #tpu.memory_space<vmem>>)
    } else {
    }
    %c0_6 = arith.constant 0 : index
    %c0_7 = arith.constant 0 : index
    %11 = vector.load %arg13[%c0_6, %c0_7] : memref<256x256xbf16, #tpu.memory_space<vmem>>, vector<256x256xbf16>
    %cst = arith.constant dense<0.000000e+00> : vector<256x256xf32>
    %12 = tpu.matmul %4, %11, %cst {dimension_numbers = #tpu.dot_dimension_numbers<[1], [0], [0], [1], [0, 0, 1, 1], [], []>} : vector<256x256xbf16>, vector<256x256xbf16>, vector<256x256xf32> -> vector<256x256xf32>
    %c0_8 = arith.constant 0 : index
    %c0_9 = arith.constant 0 : index
    %13 = vector.load %arg14[%c0_8, %c0_9] : memref<1x256xf32, #tpu.memory_space<vmem>>, vector<1x256xf32>
    %14 = vector.broadcast %13 : vector<1x256xf32> to vector<256x256xf32>
    %15 = arith.addf %12, %14 : vector<256x256xf32>
    %cst_10 = arith.constant 0.000000e+00 : f32
    %16 = vector.broadcast %cst_10 : f32 to vector<256x256xf32>
    %17 = arith.maximumf %15, %16 : vector<256x256xf32>
    %18 = arith.truncf %17 : vector<256x256xf32> to vector<256x256xbf16>
    %c0_i32_11 = arith.constant 0 : i32
    %19 = arith.cmpi eq, %arg0, %c0_i32_11 : i32
    %20 = arith.extui %19 : i1 to i32
    %c0_i32_12 = arith.constant 0 : i32
    %21 = arith.cmpi ne, %20, %c0_i32_12 : i32
    scf.if %21 {
      %c2_i32 = arith.constant 2 : i32
      %73 = tpu.memref_slice %arg23[%c2_i32] : memref<10x!tpu.dma_semaphore, #tpu.memory_space<semaphore_mem>> -> memref<1x!tpu.dma_semaphore, #tpu.memory_space<semaphore_mem>>
      %74 = tpu.memref_squeeze %73 : memref<1x!tpu.dma_semaphore, #tpu.memory_space<semaphore_mem>> -> memref<!tpu.dma_semaphore, #tpu.memory_space<semaphore_mem>>
      tpu.wait_dma2 semaphore(%74 : memref<!tpu.dma_semaphore, #tpu.memory_space<semaphore_mem>>) src(%arg4 : memref<256x512xbf16, #tpu.memory_space<any>>) dst(%arg15 : memref<256x512xbf16, #tpu.memory_space<vmem>>)
    } else {
    }
    %c0_i32_13 = arith.constant 0 : i32
    %22 = arith.cmpi eq, %arg0, %c0_i32_13 : i32
    %23 = arith.extui %22 : i1 to i32
    %c0_i32_14 = arith.constant 0 : i32
    %24 = arith.cmpi ne, %23, %c0_i32_14 : i32
    scf.if %24 {
      %c3_i32 = arith.constant 3 : i32
      %73 = tpu.memref_slice %arg23[%c3_i32] : memref<10x!tpu.dma_semaphore, #tpu.memory_space<semaphore_mem>> -> memref<1x!tpu.dma_semaphore, #tpu.memory_space<semaphore_mem>>
      %74 = tpu.memref_squeeze %73 : memref<1x!tpu.dma_semaphore, #tpu.memory_space<semaphore_mem>> -> memref<!tpu.dma_semaphore, #tpu.memory_space<semaphore_mem>>
      tpu.wait_dma2 semaphore(%74 : memref<!tpu.dma_semaphore, #tpu.memory_space<semaphore_mem>>) src(%arg5 : memref<1x512xf32, #tpu.memory_space<any>>) dst(%arg16 : memref<1x512xf32, #tpu.memory_space<vmem>>)
    } else {
    }
    %c0_15 = arith.constant 0 : index
    %c0_16 = arith.constant 0 : index
    %25 = vector.load %arg15[%c0_15, %c0_16] : memref<256x512xbf16, #tpu.memory_space<vmem>>, vector<256x512xbf16>
    %cst_17 = arith.constant dense<0.000000e+00> : vector<256x512xf32>
    %26 = tpu.matmul %18, %25, %cst_17 {dimension_numbers = #tpu.dot_dimension_numbers<[1], [0], [0], [1], [0, 0, 1, 1], [], []>} : vector<256x256xbf16>, vector<256x512xbf16>, vector<256x512xf32> -> vector<256x512xf32>
    %c0_18 = arith.constant 0 : index
    %c0_19 = arith.constant 0 : index
    %27 = vector.load %arg16[%c0_18, %c0_19] : memref<1x512xf32, #tpu.memory_space<vmem>>, vector<1x512xf32>
    %28 = vector.broadcast %27 : vector<1x512xf32> to vector<256x512xf32>
    %29 = arith.addf %26, %28 : vector<256x512xf32>
    %cst_20 = arith.constant 0.000000e+00 : f32
    %30 = vector.broadcast %cst_20 : f32 to vector<256x512xf32>
    %31 = arith.maximumf %29, %30 : vector<256x512xf32>
    %32 = arith.truncf %31 : vector<256x512xf32> to vector<256x512xbf16>
    %c0_i32_21 = arith.constant 0 : i32
    %33 = arith.cmpi eq, %arg0, %c0_i32_21 : i32
    %34 = arith.extui %33 : i1 to i32
    %c0_i32_22 = arith.constant 0 : i32
    %35 = arith.cmpi ne, %34, %c0_i32_22 : i32
    scf.if %35 {
      %c4_i32 = arith.constant 4 : i32
      %73 = tpu.memref_slice %arg23[%c4_i32] : memref<10x!tpu.dma_semaphore, #tpu.memory_space<semaphore_mem>> -> memref<1x!tpu.dma_semaphore, #tpu.memory_space<semaphore_mem>>
      %74 = tpu.memref_squeeze %73 : memref<1x!tpu.dma_semaphore, #tpu.memory_space<semaphore_mem>> -> memref<!tpu.dma_semaphore, #tpu.memory_space<semaphore_mem>>
      tpu.wait_dma2 semaphore(%74 : memref<!tpu.dma_semaphore, #tpu.memory_space<semaphore_mem>>) src(%arg6 : memref<512x512xbf16, #tpu.memory_space<any>>) dst(%arg17 : memref<512x512xbf16, #tpu.memory_space<vmem>>)
    } else {
    }
    %c0_i32_23 = arith.constant 0 : i32
    %36 = arith.cmpi eq, %arg0, %c0_i32_23 : i32
    %37 = arith.extui %36 : i1 to i32
    %c0_i32_24 = arith.constant 0 : i32
    %38 = arith.cmpi ne, %37, %c0_i32_24 : i32
    scf.if %38 {
      %c5_i32 = arith.constant 5 : i32
      %73 = tpu.memref_slice %arg23[%c5_i32] : memref<10x!tpu.dma_semaphore, #tpu.memory_space<semaphore_mem>> -> memref<1x!tpu.dma_semaphore, #tpu.memory_space<semaphore_mem>>
      %74 = tpu.memref_squeeze %73 : memref<1x!tpu.dma_semaphore, #tpu.memory_space<semaphore_mem>> -> memref<!tpu.dma_semaphore, #tpu.memory_space<semaphore_mem>>
      tpu.wait_dma2 semaphore(%74 : memref<!tpu.dma_semaphore, #tpu.memory_space<semaphore_mem>>) src(%arg7 : memref<1x512xf32, #tpu.memory_space<any>>) dst(%arg18 : memref<1x512xf32, #tpu.memory_space<vmem>>)
    } else {
    }
    %c0_25 = arith.constant 0 : index
    %c0_26 = arith.constant 0 : index
    %39 = vector.load %arg17[%c0_25, %c0_26] : memref<512x512xbf16, #tpu.memory_space<vmem>>, vector<512x512xbf16>
    %cst_27 = arith.constant dense<0.000000e+00> : vector<256x512xf32>
    %40 = tpu.matmul %32, %39, %cst_27 {dimension_numbers = #tpu.dot_dimension_numbers<[1], [0], [0], [1], [0, 0, 1, 1], [], []>} : vector<256x512xbf16>, vector<512x512xbf16>, vector<256x512xf32> -> vector<256x512xf32>
    %c0_28 = arith.constant 0 : index
    %c0_29 = arith.constant 0 : index
    %41 = vector.load %arg18[%c0_28, %c0_29] : memref<1x512xf32, #tpu.memory_space<vmem>>, vector<1x512xf32>
    %42 = vector.broadcast %41 : vector<1x512xf32> to vector<256x512xf32>
    %43 = arith.addf %40, %42 : vector<256x512xf32>
    %cst_30 = arith.constant 0.000000e+00 : f32
    %44 = vector.broadcast %cst_30 : f32 to vector<256x512xf32>
    %45 = arith.maximumf %43, %44 : vector<256x512xf32>
    %46 = arith.truncf %45 : vector<256x512xf32> to vector<256x512xbf16>
    %c0_i32_31 = arith.constant 0 : i32
    %47 = arith.cmpi eq, %arg0, %c0_i32_31 : i32
    %48 = arith.extui %47 : i1 to i32
    %c0_i32_32 = arith.constant 0 : i32
    %49 = arith.cmpi ne, %48, %c0_i32_32 : i32
    scf.if %49 {
      %c6_i32 = arith.constant 6 : i32
      %73 = tpu.memref_slice %arg23[%c6_i32] : memref<10x!tpu.dma_semaphore, #tpu.memory_space<semaphore_mem>> -> memref<1x!tpu.dma_semaphore, #tpu.memory_space<semaphore_mem>>
      %74 = tpu.memref_squeeze %73 : memref<1x!tpu.dma_semaphore, #tpu.memory_space<semaphore_mem>> -> memref<!tpu.dma_semaphore, #tpu.memory_space<semaphore_mem>>
      tpu.wait_dma2 semaphore(%74 : memref<!tpu.dma_semaphore, #tpu.memory_space<semaphore_mem>>) src(%arg8 : memref<512x256xbf16, #tpu.memory_space<any>>) dst(%arg19 : memref<512x256xbf16, #tpu.memory_space<vmem>>)
    } else {
    }
    %c0_i32_33 = arith.constant 0 : i32
    %50 = arith.cmpi eq, %arg0, %c0_i32_33 : i32
    %51 = arith.extui %50 : i1 to i32
    %c0_i32_34 = arith.constant 0 : i32
    %52 = arith.cmpi ne, %51, %c0_i32_34 : i32
    scf.if %52 {
      %c7_i32 = arith.constant 7 : i32
      %73 = tpu.memref_slice %arg23[%c7_i32] : memref<10x!tpu.dma_semaphore, #tpu.memory_space<semaphore_mem>> -> memref<1x!tpu.dma_semaphore, #tpu.memory_space<semaphore_mem>>
      %74 = tpu.memref_squeeze %73 : memref<1x!tpu.dma_semaphore, #tpu.memory_space<semaphore_mem>> -> memref<!tpu.dma_semaphore, #tpu.memory_space<semaphore_mem>>
      tpu.wait_dma2 semaphore(%74 : memref<!tpu.dma_semaphore, #tpu.memory_space<semaphore_mem>>) src(%arg9 : memref<1x256xf32, #tpu.memory_space<any>>) dst(%arg20 : memref<1x256xf32, #tpu.memory_space<vmem>>)
    } else {
    }
    %c0_35 = arith.constant 0 : index
    %c0_36 = arith.constant 0 : index
    %53 = vector.load %arg19[%c0_35, %c0_36] : memref<512x256xbf16, #tpu.memory_space<vmem>>, vector<512x256xbf16>
    %cst_37 = arith.constant dense<0.000000e+00> : vector<256x256xf32>
    %54 = tpu.matmul %46, %53, %cst_37 {dimension_numbers = #tpu.dot_dimension_numbers<[1], [0], [0], [1], [0, 0, 1, 1], [], []>} : vector<256x512xbf16>, vector<512x256xbf16>, vector<256x256xf32> -> vector<256x256xf32>
    %c0_38 = arith.constant 0 : index
    %c0_39 = arith.constant 0 : index
    %55 = vector.load %arg20[%c0_38, %c0_39] : memref<1x256xf32, #tpu.memory_space<vmem>>, vector<1x256xf32>
    %56 = vector.broadcast %55 : vector<1x256xf32> to vector<256x256xf32>
    %57 = arith.addf %54, %56 : vector<256x256xf32>
    %cst_40 = arith.constant 0.000000e+00 : f32
    %58 = vector.broadcast %cst_40 : f32 to vector<256x256xf32>
    %59 = arith.maximumf %57, %58 : vector<256x256xf32>
    %60 = arith.truncf %59 : vector<256x256xf32> to vector<256x256xbf16>
    %c0_i32_41 = arith.constant 0 : i32
    %61 = arith.cmpi eq, %arg0, %c0_i32_41 : i32
    %62 = arith.extui %61 : i1 to i32
    %c0_i32_42 = arith.constant 0 : i32
    %63 = arith.cmpi ne, %62, %c0_i32_42 : i32
    scf.if %63 {
      %c8_i32 = arith.constant 8 : i32
      %73 = tpu.memref_slice %arg23[%c8_i32] : memref<10x!tpu.dma_semaphore, #tpu.memory_space<semaphore_mem>> -> memref<1x!tpu.dma_semaphore, #tpu.memory_space<semaphore_mem>>
      %74 = tpu.memref_squeeze %73 : memref<1x!tpu.dma_semaphore, #tpu.memory_space<semaphore_mem>> -> memref<!tpu.dma_semaphore, #tpu.memory_space<semaphore_mem>>
      tpu.wait_dma2 semaphore(%74 : memref<!tpu.dma_semaphore, #tpu.memory_space<semaphore_mem>>) src(%arg10 : memref<256x128xbf16, #tpu.memory_space<any>>) dst(%arg21 : memref<256x128xbf16, #tpu.memory_space<vmem>>)
    } else {
    }
    %c0_i32_43 = arith.constant 0 : i32
    %64 = arith.cmpi eq, %arg0, %c0_i32_43 : i32
    %65 = arith.extui %64 : i1 to i32
    %c0_i32_44 = arith.constant 0 : i32
    %66 = arith.cmpi ne, %65, %c0_i32_44 : i32
    scf.if %66 {
      %c9_i32 = arith.constant 9 : i32
      %73 = tpu.memref_slice %arg23[%c9_i32] : memref<10x!tpu.dma_semaphore, #tpu.memory_space<semaphore_mem>> -> memref<1x!tpu.dma_semaphore, #tpu.memory_space<semaphore_mem>>
      %74 = tpu.memref_squeeze %73 : memref<1x!tpu.dma_semaphore, #tpu.memory_space<semaphore_mem>> -> memref<!tpu.dma_semaphore, #tpu.memory_space<semaphore_mem>>
      tpu.wait_dma2 semaphore(%74 : memref<!tpu.dma_semaphore, #tpu.memory_space<semaphore_mem>>) src(%arg11 : memref<1x128xf32, #tpu.memory_space<any>>) dst(%arg22 : memref<1x128xf32, #tpu.memory_space<vmem>>)
    } else {
    }
    %c0_45 = arith.constant 0 : index
    %c0_46 = arith.constant 0 : index
    %67 = vector.load %arg21[%c0_45, %c0_46] : memref<256x128xbf16, #tpu.memory_space<vmem>>, vector<256x128xbf16>
    %cst_47 = arith.constant dense<0.000000e+00> : vector<256x128xf32>
    %68 = tpu.matmul %60, %67, %cst_47 {dimension_numbers = #tpu.dot_dimension_numbers<[1], [0], [0], [1], [0, 0, 1, 1], [], []>} : vector<256x256xbf16>, vector<256x128xbf16>, vector<256x128xf32> -> vector<256x128xf32>
    %c0_48 = arith.constant 0 : index
    %c0_49 = arith.constant 0 : index
    %69 = vector.load %arg22[%c0_48, %c0_49] : memref<1x128xf32, #tpu.memory_space<vmem>>, vector<1x128xf32>
    %70 = vector.broadcast %69 : vector<1x128xf32> to vector<256x128xf32>
    %71 = arith.addf %68, %70 : vector<256x128xf32>
    %c0_50 = arith.constant 0 : index
    %c0_51 = arith.constant 0 : index
    %72 = vector.load %arg12[%c0_50, %c0_51] : memref<256x128xf32, #tpu.memory_space<vmem>>, vector<256x128xf32>
    tpu.vector_store %arg12[%c0_50, %c0_51], %71 {strides = array<i32>} : memref<256x128xf32, #tpu.memory_space<vmem>>, vector<256x128xf32>,
    return
  }
  func.func @transform_0(%arg0: i32) -> (i32, i32) {
    %c0_i32 = arith.constant 0 : i32
    %c0_i32_0 = arith.constant 0 : i32
    return %arg0, %c0_i32 : i32, i32
  }
  func.func @transform_11(%arg0: i32) -> (i32, i32) {
    %c0_i32 = arith.constant 0 : i32
    %c0_i32_0 = arith.constant 0 : i32
    return %arg0, %c0_i32 : i32, i32
  }
}

</mosaic_0001>

<bundles_post_ra>
// kernel: image_only_classifier_fwd.1
= control target key start
LH: loop header
LB: loop body
LE: loop exit
PB: predicated region body
PF: predicated region fallthrough
CT: control target
= control target key end

     0   :  { %s10309_s0 = inlined_call_operand.hbm [shape: f32[512,256], index: 0, kind: input, shape index: {}]   ;;  %s10310_s1 = inlined_call_operand.hbm [shape: bf16[256,256], index: 1, kind: input, shape index: {}]   ;;  %s10311_s2 = inlined_call_operand.hbm [shape: f32[1,256], index: 2, kind: input, shape index: {}]   ;;  %s10312_s3 = inlined_call_operand.hbm [shape: bf16[256,512], index: 3, kind: input, shape index: {}]   ;;  %s10313_s4 = inlined_call_operand.hbm [shape: f32[1,512], index: 4, kind: input, shape index: {}]   ;;  %s10314_s5 = inlined_call_operand.hbm [shape: bf16[512,512], index: 5, kind: input, shape index: {}]   ;;  %s10315_s6 = inlined_call_operand.hbm [shape: f32[1,512], index: 6, kind: input, shape index: {}]   ;;  %s10316_s7 = inlined_call_operand.hbm [shape: bf16[512,256], index: 7, kind: input, shape index: {}]   ;;  %s10317_s8 = inlined_call_operand.vmem [shape: f32[1,256], index: 8, kind: input, shape index: {}]   ;;  %s10318_s9 = inlined_call_operand.hbm [shape: bf16[256,128], index: 9, kind: input, shape index: {}]   ;;  %s10319_s10 = inlined_call_operand.vmem [shape: f32[1,128], index: 10, kind: input, shape index: {}]   ;;  %s10320_s11 = inlined_call_operand.vmem [shape: f32[512,128], index: 11, kind: output, shape index: {}]  }
   0x1   :  { %10413 = sst [smem:[#allocation110_spill]] %s10309_s0 }
   0x2   :  { %16 = vsyncpa [#allocation14], 0 }
   0x3   :  { %18 = vsyncpa [#allocation14 + $0x1], 0  ;;  %s8525_s17 = smov 0   ;;  %s8527_s18 = smov 0  }
   0x4   :  { %s8529_s19 = smov 0   ;;  %s8531_s20 = smov 0  }
   0x5 LB: > { %10414 = sst [smem:[#allocation46_spill]] %s8449_s19  ;;  %s8544_s21 = sadd.s32 4294967295, %s8453_s20   ;;  %s8453_s20 = sphi %s8531_s20, %s10675_s20   ;;  %s8449_s19 = sphi %s8529_s19, %s10672_s19   ;;  %s8445_s18 = sphi %s8527_s18, %s10674_s18   ;;  %s8441_s17 = sphi %s8525_s17, %s10673_s17  }
   0x6   : > { %s8547_s22 = sadd.s32 1, %s8453_s20   ;;  %s31_s24 = sadd.s32 1, %s8449_s19 }
   0x7   : > { %s28_s23 = ssub.s32 %s8453_s20, %s8547_s22  ;;  %p38_p1 = scmp.ne.s32.totalorder %s8449_s19, %s8445_s18 }
   0x8   : > { %p29_p0 = scmp.eq.s32.totalorder %s28_s23, 0  ;;  %p39_p2 = scmp.eq.s32.totalorder %s8453_s20, 0 }
   0x9   : > { %p44_p3 = scmp.ne.s32.totalorder %s8445_s18, %s8441_s17  ;;  %p45_p5 = scmp.eq.s32.totalorder %s8544_s21, 0 }
   0xa   : > { %s8557_s25 = scalar_select %p29_p0, %s8449_s19, %s31_s24  }
   0xb   : > { %p8559_p4 = por %p39_p2, %p38_p1  ;;  %p8107_p6 = scmp.lt.s32.totalorder %s8453_s20, 2 }
   0xc   : > { %10415 = sst [smem:[#allocation47_spill]] %s8557_s25  ;;  %p8567_p7 = por %p45_p5, %p44_p3 }
   0xd   : > { %s94_s28 = sand.u32 1, %s8449_s19   ;;  %s7765_s30 = sshll.u32 %s8453_s20, 9 }
   0xe   : > { %s6522_s29 = sshll.u32 %s94_s28, 9  ;;  %s10418_s0 = sld [smem:[#allocation110_spill]] }
   0xf   : > { %s98_s15 = scalar_lea.vmem [#allocation13], %s6522_s29  ;;  %p8578_p8 = pnand %p8107_p6, %p8559_p4 }
  0x10   : > { %s107_s16 = sshll.u32 %s98_s15, 4  ;;  %p6526_p9 = scmp.ge.s32.totalorder %s8453_s20, 1  ;;  %s108_s16 = int_to_ptr.vmem [resolvable:$true] %s107_s16 }
  0x11   : > { %s95_s24 = scalar_lea.sflag [#allocation14], %s94_s28  ;;  %p8161_p11 = pneg %p8578_p8 }
  0x14   : > { %s104_s14 = scalar_lea.hbm %s10418_s0, %s7765_s30  ;;  %s8164_s12 = scalar_lea.hbm %s10418_s0, 1024 }
  0x15   : > { %s105_s17 = sshll.u32 %s104_s14, 4  ;;  %s106_s17 = int_to_ptr.hbm [resolvable:$true] %s105_s17 }
  0x16   : > { %s8157_s25 = sshra.s32 %s106_s17, 4  ;;  %s8158_s25 = int_to_ptr.hbm [resolvable:$true] %s8157_s25 }
  0x17   : > { %s8159_s19 = scalar_lea.hbm %s8158_s25, 512  ;;  %p8165_p0 = scmp.lt.s32.totalorder %s8158_s25, %s10418_s0 }
  0x18   : > { %p8160_p10 = scmp.ne.s32.totalorder %s8158_s25, %s8159_s19  ;;  %p8166_p1 = scmp.lt.s32.totalorder %s8164_s12, %s8159_s19 }
  0x1a   : > { %p8162_p12 = pnand %p8161_p11, %p8160_p10  ;;  %p8167_p2 = por %p8166_p1, %p8165_p0 }
  0x1c   : > { %p8163_p13 = pneg %p8162_p12 }
  0x1e   : > { %p8168_p3 = pnand %p8167_p2, %p8163_p13 }
  0x20   : > { %8171 = shalt.err (!%p8168_p3)
}
  0x21   : > { %s8455_s28 = smov 256   ;;  %s8456_s14 = smov 16  }
  0x22   : > { %8106 = dma.hbm_to_vmem [thread:$0]  (!%p8578_p8), %s106_s17, 8192, %s108_s16, %s95_s24, %s8455_s28, %s8455_s28, %s8456_s14  }
  0x23   : > { %p115_p4 = scmp.lt.s32.totalorder %s8453_s20, 3 }
  0x25   : > { %p116_p6 = pnand %p6526_p9, %p115_p4 }
  0x27   : > { %119 = sbr.rel (%p116_p6) target bundleno = 3625 (0xe29), region = 24 }
  0x2c   : > { %s121_s15 = sand.u32 1, %s8445_s18  }
  0x2d   : > { %s6527_s29 = sshll.u32 %s121_s15, 9  ;;  %s122_s25 = scalar_lea.sflag [#allocation14], %s121_s15 }
  0x2e   : > { %s8597_s19 = scalar_lea.vmem [#allocation13], %s6527_s29 }
  0x2f   : > { %8396 = dma.done.wait (%p8567_p7), %s122_s25, 8192  }
  0x30   : > { %8398 = vsyncadd (%p8567_p7), %s122_s25, 4294959104  ;;  %s6528_s30 = sshll.u32 %s8544_s21, 5  ;;  %p6530_p8 = scmp.ne.s32.totalorder %s8544_s21, 0 }
  0x31   : > { %p147_p10 = scmp.lt.s32.totalorder %s6528_s30, 63  ;;  %s163_s26 = sshll.u32 (!%p6530_p8), %s10310_s1, 4  ;;  %s164_s26 = int_to_ptr.hbm [resolvable:$true] %s163_s26 }
  0x32   : > { %155 = sbr.rel (%p6530_p8) target bundleno = 74 (0x4a), region = 32  ;;  %s8457_s28 = smov (!%p6530_p8), [#allocation2]  }
  0x33   : > { %s10677_s30 = smov (!%p147_p10, %s6528_s30), 63  ;;  %s165_s14 = sshll.u32 (!%p6530_p8), %s8457_s28, 4  ;;  %s166_s14 = int_to_ptr.vmem [resolvable:$true] %s165_s14 }
  0x34   : > { %s6529_s16 = sshll.u32 %s10677_s30, 3  ;;  %s177_s25 = sshll.u32 (!%p6530_p8), %s10311_s2, 4  ;;  %s178_s25 = int_to_ptr.hbm [resolvable:$true] %s177_s25 }
  0x35   : > { %s8607_s23 = scalar_lea.vmem %s10320_s11, %s6529_s16  ;;  %s8458_s30 = smov (!%p6530_p8), [#allocation3]  }
  0x36   : > { %168 = dma.hbm_to_vmem [thread:$0]  (!%p6530_p8), %s164_s26, 4096, %s166_s14, [#allocation12] }
  0x37   : > { %v268_v0 = vld [vmem:[%s10317_s8] sm:$0x3]  ;;  %s179_s16 = sshll.u32 %s8458_s30, 4  ;;  %s191_s24 = sshll.u32 %s10312_s3, 4  ;;  %s180_s16 = int_to_ptr.vmem [resolvable:$true] %s179_s16  ;;  %s192_s24 = int_to_ptr.hbm [resolvable:$true] %s191_s24 }
  0x38   : > { %269 = vst [vmem:[#allocation9] sm:$0x3] %v268_v0  ;;  %182 = dma.hbm_to_vmem [thread:$0]  %s178_s25, 32, %s180_s16, [#allocation12 + $0x1] }
  0x39   : > { %s205_s27 = sshll.u32 %s10313_s4, 4  ;;  %s8459_s28 = smov [#allocation4]   ;;  %s206_s27 = int_to_ptr.hbm [resolvable:$true] %s205_s27 }
  0x3a   : > { %s193_s0 = sshll.u32 %s8459_s28, 4  ;;  %s8460_s26 = smov [#allocation5]   ;;  %s194_s0 = int_to_ptr.vmem [resolvable:$true] %s193_s0 }
  0x3b   : > { %196 = dma.hbm_to_vmem [thread:$0]  %s192_s24, 8192, %s194_s0, [#allocation12 + $0x2] }
  0x3c   : > { %s207_s14 = sshll.u32 %s8460_s26, 4  ;;  %s219_s30 = sshll.u32 %s10314_s5, 4  ;;  %s208_s14 = int_to_ptr.vmem [resolvable:$true] %s207_s14  ;;  %s220_s30 = int_to_ptr.hbm [resolvable:$true] %s219_s30 }
  0x3d   : > { %210 = dma.hbm_to_vmem [thread:$0]  %s206_s27, 64, %s208_s14, [#allocation12 + $0x3] }
  0x3e   : > { %s233_s16 = sshll.u32 %s10315_s6, 4  ;;  %s8461_s17 = smov [#allocation6]   ;;  %s234_s16 = int_to_ptr.hbm [resolvable:$true] %s233_s16 }
  0x3f   : > { %s221_s12 = sshll.u32 %s8461_s17, 4  ;;  %s8462_s13 = smov [#allocation7]   ;;  %s222_s12 = int_to_ptr.vmem [resolvable:$true] %s221_s12 }
  0x40   : > { %224 = dma.hbm_to_vmem [thread:$0]  %s220_s30, 16384, %s222_s12, [#allocation12 + $0x4] }
  0x41   : > { %s235_s0 = sshll.u32 %s8462_s13, 4  ;;  %s247_s26 = sshll.u32 %s10316_s7, 4  ;;  %s236_s0 = int_to_ptr.vmem [resolvable:$true] %s235_s0  ;;  %s248_s26 = int_to_ptr.hbm [resolvable:$true] %s247_s26 }
  0x42   : > { %238 = dma.hbm_to_vmem [thread:$0]  %s234_s16, 64, %s236_s0, [#allocation12 + $0x5] }
  0x43   : > { %s8463_s15 = smov [#allocation8]  }
  0x44   : > { %s249_s27 = sshll.u32 %s8463_s15, 4  ;;  %s250_s27 = int_to_ptr.vmem [resolvable:$true] %s249_s27 }
  0x45   : > { %252 = dma.hbm_to_vmem [thread:$0]  %s248_s26, 8192, %s250_s27, [#allocation12 + $0x6] }
  0x46   : > { %287 = vsyncadd [#allocation12 + $0x7], 32  ;;  %s296_s20 = sshll.u32 %s10318_s9, 4  ;;  %v317_v1 = vld [vmem:[%s10319_s10] sm:$0x1]  ;;  %s8464_s17 = smov [#allocation10]   ;;  %s297_s20 = int_to_ptr.hbm [resolvable:$true] %s296_s20 }
  0x47   : > { %s298_s12 = sshll.u32 %s8464_s17, 4  ;;  %318 = vst [vmem:[#allocation11] sm:$0x1] %v317_v1  ;;  %s299_s12 = int_to_ptr.vmem [resolvable:$true] %s298_s12 }
  0x48   : > { %301 = dma.hbm_to_vmem [thread:$0]  %s297_s20, 2048, %s299_s12, [#allocation12 + $0x8] }
  0x49   : > { %336 = vsyncadd [#allocation12 + $0x9], 16 }
  0x4a PF: > { %v337_v2 = vld [vmem:[%s8597_s19] sm:$0xff]  ;;  %v338_v3 = vld [vmem:[%s8597_s19 + $0x8] sm:$0xff]  ;;  %v339_v4 = vld [vmem:[%s8597_s19 + $0x10] sm:$0xff] }
  0x4b   : > { %v340_v5 = vld [vmem:[%s8597_s19 + $0x18] sm:$0xff]  ;;  %v341_v6 = vld [vmem:[%s8597_s19 + $0x20] sm:$0xff]  ;;  %v342_v7 = vld [vmem:[%s8597_s19 + $0x28] sm:$0xff]  ;;  %v8646_v8 = vpack.c.bf16 %v339_v4, %v337_v2 }
  0x4c   : > { %v343_v9 = vld [vmem:[%s8597_s19 + $0x30] sm:$0xff]  ;;  %v344_v10 = vld [vmem:[%s8597_s19 + $0x38] sm:$0xff]  ;;  %v345_v11 = vld [vmem:[%s8597_s19 + $0x40] sm:$0xff]  ;;  %v8651_v12 = vpack.c.bf16 %v340_v5, %v338_v3 }
  0x4d   : > { %v346_v13 = vld [vmem:[%s8597_s19 + $0x48] sm:$0xff]  ;;  %v347_v14 = vld [vmem:[%s8597_s19 + $0x50] sm:$0xff]  ;;  %v348_v15 = vld [vmem:[%s8597_s19 + $0x58] sm:$0xff]  ;;  %v8656_v16 = vpack.c.bf16 %v343_v9, %v341_v6  ;;  %v8658_v17 = vpack.c.bf16 %v344_v10, %v342_v7 }
  0x4e   : > { %v349_v18 = vld [vmem:[%s8597_s19 + $0x60] sm:$0xff]  ;;  %v350_v19 = vld [vmem:[%s8597_s19 + $0x68] sm:$0xff]  ;;  %v351_v20 = vld [vmem:[%s8597_s19 + $0x70] sm:$0xff]  ;;  %v8663_v21 = vpack.c.bf16 %v347_v14, %v345_v11  ;;  %v8665_v22 = vpack.c.bf16 %v348_v15, %v346_v13 }
  0x4f   : > { %v352_v23 = vld [vmem:[%s8597_s19 + $0x78] sm:$0xff]  ;;  %v353_v24 = vld [vmem:[%s8597_s19 + $0x80] sm:$0xff]  ;;  %v354_v25 = vld [vmem:[%s8597_s19 + $0x88] sm:$0xff]  ;;  %v8670_v26 = vpack.c.bf16 %v351_v20, %v349_v18 }
  0x50   : > { %v355_v27 = vld [vmem:[%s8597_s19 + $0x90] sm:$0xff]  ;;  %v356_v28 = vld [vmem:[%s8597_s19 + $0x98] sm:$0xff]  ;;  %v357_v29 = vld [vmem:[%s8597_s19 + $0xa0] sm:$0xff]  ;;  %v8675_v30 = vpack.c.bf16 %v352_v23, %v350_v19 }
  0x51   : > { %v358_v31 = vld [vmem:[%s8597_s19 + $0xa8] sm:$0xff]  ;;  %v359_v32 = vld [vmem:[%s8597_s19 + $0xb0] sm:$0xff]  ;;  %v360_v33 = vld [vmem:[%s8597_s19 + $0xb8] sm:$0xff]  ;;  %v8680_v34 = vpack.c.bf16 %v355_v27, %v353_v24  ;;  %v8682_v35 = vpack.c.bf16 %v356_v28, %v354_v25 }
  0x52   : > { %v361_v36 = vld [vmem:[%s8597_s19 + $0xc0] sm:$0xff]  ;;  %v362_v37 = vld [vmem:[%s8597_s19 + $0xc8] sm:$0xff]  ;;  %v363_v38 = vld [vmem:[%s8597_s19 + $0xd0] sm:$0xff]  ;;  %v8687_v39 = vpack.c.bf16 %v359_v32, %v357_v29  ;;  %v8689_v40 = vpack.c.bf16 %v360_v33, %v358_v31 }
  0x53   : > { %v364_v41 = vld [vmem:[%s8597_s19 + $0xd8] sm:$0xff]  ;;  %v365_v42 = vld [vmem:[%s8597_s19 + $0xe0] sm:$0xff]  ;;  %v366_v43 = vld [vmem:[%s8597_s19 + $0xe8] sm:$0xff]  ;;  %v8694_v44 = vpack.c.bf16 %v363_v38, %v361_v36 }
  0x54   : > { %v367_v45 = vld [vmem:[%s8597_s19 + $0xf0] sm:$0xff]  ;;  %v368_v46 = vld [vmem:[%s8597_s19 + $0xf8] sm:$0xff]  ;;  %v369_v47 = vld [vmem:[%s8597_s19 + $0x100] sm:$0xff]  ;;  %v8699_v48 = vpack.c.bf16 %v364_v41, %v362_v37 }
  0x55   : > { %v370_v49 = vld [vmem:[%s8597_s19 + $0x108] sm:$0xff]  ;;  %v371_v50 = vld [vmem:[%s8597_s19 + $0x110] sm:$0xff]  ;;  %v372_v51 = vld [vmem:[%s8597_s19 + $0x118] sm:$0xff]  ;;  %v8704_v52 = vpack.c.bf16 %v367_v45, %v365_v42  ;;  %v8706_v53 = vpack.c.bf16 %v368_v46, %v366_v43 }
  0x56   : > { %v373_v54 = vld [vmem:[%s8597_s19 + $0x120] sm:$0xff]  ;;  %v374_v55 = vld [vmem:[%s8597_s19 + $0x128] sm:$0xff]  ;;  %v375_v56 = vld [vmem:[%s8597_s19 + $0x130] sm:$0xff]  ;;  %v8711_v57 = vpack.c.bf16 %v371_v50, %v369_v47  ;;  %v8713_v58 = vpack.c.bf16 %v372_v51, %v370_v49 }
  0x57   : > { %v376_v59 = vld [vmem:[%s8597_s19 + $0x138] sm:$0xff]  ;;  %v377_v60 = vld [vmem:[%s8597_s19 + $0x140] sm:$0xff]  ;;  %v378_v61 = vld [vmem:[%s8597_s19 + $0x148] sm:$0xff]  ;;  %v8718_v62 = vpack.c.bf16 %v375_v56, %v373_v54 }
  0x58   : > { %v379_v63 = vld [vmem:[%s8597_s19 + $0x150] sm:$0xff]  ;;  %v380_v0 = vld [vmem:[%s8597_s19 + $0x158] sm:$0xff]  ;;  %v381_v1 = vld [vmem:[%s8597_s19 + $0x160] sm:$0xff]  ;;  %v8723_v2 = vpack.c.bf16 %v376_v59, %v374_v55 }
  0x59   : > { %v382_v3 = vld [vmem:[%s8597_s19 + $0x168] sm:$0xff]  ;;  %v383_v4 = vld [vmem:[%s8597_s19 + $0x170] sm:$0xff]  ;;  %v384_v5 = vld [vmem:[%s8597_s19 + $0x178] sm:$0xff]  ;;  %v8728_v6 = vpack.c.bf16 %v379_v63, %v377_v60  ;;  %v8730_v7 = vpack.c.bf16 %v380_v0, %v378_v61 }
  0x5a   : > { %v385_v9 = vld [vmem:[%s8597_s19 + $0x180] sm:$0xff]  ;;  %v386_v10 = vld [vmem:[%s8597_s19 + $0x188] sm:$0xff]  ;;  %v387_v11 = vld [vmem:[%s8597_s19 + $0x190] sm:$0xff]  ;;  %v8735_v13 = vpack.c.bf16 %v383_v4, %v381_v1  ;;  %v8737_v14 = vpack.c.bf16 %v384_v5, %v382_v3 }
  0x5b   : > { %v388_v15 = vld [vmem:[%s8597_s19 + $0x198] sm:$0xff]  ;;  %v389_v18 = vld [vmem:[%s8597_s19 + $0x1a0] sm:$0xff]  ;;  %v390_v19 = vld [vmem:[%s8597_s19 + $0x1a8] sm:$0xff]  ;;  %v8742_v20 = vpack.c.bf16 %v387_v11, %v385_v9 }
  0x5c   : > { %v391_v23 = vld [vmem:[%s8597_s19 + $0x1b0] sm:$0xff]  ;;  %v392_v24 = vld [vmem:[%s8597_s19 + $0x1b8] sm:$0xff]  ;;  %v393_v25 = vld [vmem:[%s8597_s19 + $0x1c0] sm:$0xff]  ;;  %v8747_v27 = vpack.c.bf16 %v388_v15, %v386_v10 }
  0x5d   : > { %v394_v28 = vld [vmem:[%s8597_s19 + $0x1c8] sm:$0xff]  ;;  %v395_v29 = vld [vmem:[%s8597_s19 + $0x1d0] sm:$0xff]  ;;  %v396_v31 = vld [vmem:[%s8597_s19 + $0x1d8] sm:$0xff]  ;;  %v8752_v32 = vpack.c.bf16 %v391_v23, %v389_v18  ;;  %v8754_v33 = vpack.c.bf16 %v392_v24, %v390_v19 }
  0x5e   : > { %v397_v36 = vld [vmem:[%s8597_s19 + $0x1e0] sm:$0xff]  ;;  %v398_v37 = vld [vmem:[%s8597_s19 + $0x1e8] sm:$0xff]  ;;  %v399_v38 = vld [vmem:[%s8597_s19 + $0x1f0] sm:$0xff]  ;;  %v8759_v41 = vpack.c.bf16 %v395_v29, %v393_v25  ;;  %v8761_v42 = vpack.c.bf16 %v396_v31, %v394_v28 }
  0x5f   : > { %v400_v43 = vld [vmem:[%s8597_s19 + $0x1f8] sm:$0xff]  ;;  %v8764_v45 = vpack.c.bf16 %v399_v38, %v397_v36 }
  0x60   : > { %v8766_v46 = vpack.c.bf16 %v400_v43, %v398_v37 }
  0x61   : > { %8400 = dma.done.wait (%p45_p5), [#allocation12], 4096 }
  0x62   : > { %8402 = vsyncadd (%p45_p5), [#allocation12], 4294963200 }
  0x63   : > { %8404 = dma.done.wait (%p45_p5), [#allocation12 + $0x1], 32 }
  0x64   : > { %8406 = vsyncadd (%p45_p5), [#allocation12 + $0x1], 4294967264  ;;  %v6590_v47 = vld [vmem:[#allocation2 + $0x70] sm:$0xf]  ;;  %v7781_v49 = vld [vmem:[#allocation2 + $0x74] sm:$0xf0] }
  0x65   : > { %v6654_v50 = vld [vmem:[#allocation2 + $0xf0] sm:$0xf]  ;;  %v6591_v51 = vor.u32 %v7781_v49, %v6590_v47  ;;  %v7797_v54 = vld [vmem:[#allocation2 + $0xf4] sm:$0xf0]  ;;  %v6582_v55 = vld [vmem:[#allocation2 + $0x60] sm:$0xf] }
  0x66   : > { %v7779_v56 = vld [vmem:[#allocation2 + $0x64] sm:$0xf0]  ;;  %v6655_v59 = vor.u32 %v7797_v54, %v6654_v50  ;;  %v6646_v60 = vld [vmem:[#allocation2 + $0xe0] sm:$0xf]  ;;  %v6574_v1 = vld [vmem:[#allocation2 + $0x50] sm:$0xf] }
  0x67   : > { %v7795_v61 = vld [vmem:[#allocation2 + $0xe4] sm:$0xf0]  ;;  %8070 = vmatpush.bf16.msra.mxu2 %v6591_v51  ;;  %v6583_v63 = vor.u32 %v7779_v56, %v6582_v55  ;;  %642 = vmatpush.bf16.msra.mxu0 %v6591_v51  ;;  %v7777_v3 = vld [vmem:[#allocation2 + $0x54] sm:$0xf0]  ;;  %v6638_v4 = vld [vmem:[#allocation2 + $0xd0] sm:$0xf] }
  0x68   : > { %8078 = vmatpush.bf16.msra.mxu3 %v6655_v59  ;;  %v6647_v0 = vor.u32 %v7795_v61, %v6646_v60  ;;  %731 = vmatpush.bf16.msra.mxu1 %v6655_v59  ;;  %v7793_v5 = vld [vmem:[#allocation2 + $0xd4] sm:$0xf0]  ;;  %v6575_v9 = vor.u32 %v7777_v3, %v6574_v1  ;;  %v6566_v11 = vld [vmem:[#allocation2 + $0x40] sm:$0xf]  ;;  %v7775_v15 = vld [vmem:[#allocation2 + $0x44] sm:$0xf0] }
  0x69   : > { %v6639_v10 = vor.u32 %v7793_v5, %v6638_v4  ;;  %v6630_v18 = vld [vmem:[#allocation2 + $0xc0] sm:$0xf]  ;;  %v7791_v19 = vld [vmem:[#allocation2 + $0xc4] sm:$0xf0]  ;;  %v6567_v23 = vor.u32 %v7775_v15, %v6566_v11  ;;  %v6558_v25 = vld [vmem:[#allocation2 + $0x30] sm:$0xf] }
  0x6a   : > { %v6631_v24 = vor.u32 %v7791_v19, %v6630_v18  ;;  %v7773_v28 = vld [vmem:[#allocation2 + $0x34] sm:$0xf0]  ;;  %v6622_v29 = vld [vmem:[#allocation2 + $0xb0] sm:$0xf]  ;;  %v6550_v38 = vld [vmem:[#allocation2 + $0x20] sm:$0xf] }
  0x6b   : > { %8071 = vmatpush.bf16.msra.mxu2 %v6583_v63  ;;  %643 = vmatpush.bf16.msra.mxu0 %v6583_v63  ;;  %v7789_v31 = vld [vmem:[#allocation2 + $0xb4] sm:$0xf0]  ;;  %v6559_v36 = vor.u32 %v7773_v28, %v6558_v25  ;;  %v7771_v43 = vld [vmem:[#allocation2 + $0x24] sm:$0xf0]  ;;  %v6614_v47 = vld [vmem:[#allocation2 + $0xa0] sm:$0xf] }
  0x6c   : > { %8079 = vmatpush.bf16.msra.mxu3 %v6647_v0  ;;  %732 = vmatpush.bf16.msra.mxu1 %v6647_v0  ;;  %v6623_v37 = vor.u32 %v7789_v31, %v6622_v29  ;;  %v7787_v49 = vld [vmem:[#allocation2 + $0xa4] sm:$0xf0]  ;;  %v6551_v50 = vor.u32 %v7771_v43, %v6550_v38  ;;  %v6542_v54 = vld [vmem:[#allocation2 + $0x10] sm:$0xf]  ;;  %v7769_v55 = vld [vmem:[#allocation2 + $0x14] sm:$0xf0] }
  0x6d   : > { %v6615_v51 = vor.u32 %v7787_v49, %v6614_v47  ;;  %v6606_v56 = vld [vmem:[#allocation2 + $0x90] sm:$0xf]  ;;  %v7785_v59 = vld [vmem:[#allocation2 + $0x94] sm:$0xf0]  ;;  %v6543_v60 = vor.u32 %v7769_v55, %v6542_v54  ;;  %v6534_v63 = vld [vmem:[#allocation2] sm:$0xf] }
  0x6e   : > { %v6607_v61 = vor.u32 %v7785_v59, %v6606_v56  ;;  %v7767_v0 = vld [vmem:[#allocation2 + $0x4] sm:$0xf0]  ;;  %v6598_v1 = vld [vmem:[#allocation2 + $0x80] sm:$0xf]  ;;  %v7780_v4 = vld [vmem:[#allocation2 + $0x74] sm:$0xf] }
  0x6f   : > { %8072 = vmatpush.bf16.msra.mxu2 %v6575_v9  ;;  %644 = vmatpush.bf16.msra.mxu0 %v6575_v9  ;;  %v7783_v3 = vld [vmem:[#allocation2 + $0x84] sm:$0xf0]  ;;  %v6592_v5 = vld [vmem:[#allocation2 + $0x78] sm:$0xf0]  ;;  %v7796_v9 = vld [vmem:[#allocation2 + $0xf4] sm:$0xf]  ;;  %v6535_v11 = vor.u32 %v7767_v0, %v6534_v63 }
  0x70   : > { %8080 = vmatpush.bf16.msra.mxu3 %v6639_v10  ;;  %733 = vmatpush.bf16.msra.mxu1 %v6639_v10  ;;  %v6656_v10 = vld [vmem:[#allocation2 + $0xf8] sm:$0xf0]  ;;  %v6599_v15 = vor.u32 %v7783_v3, %v6598_v1  ;;  %v6595_v18 = vor.u32 %v7780_v4, %v6592_v5  ;;  %v7794_v25 = vld [vmem:[#allocation2 + $0xe4] sm:$0xf]  ;;  %v6648_v28 = vld [vmem:[#allocation2 + $0xe8] sm:$0xf0] }
  0x71   : > { %v6659_v19 = vor.u32 %v7796_v9, %v6656_v10  ;;  %v6651_v31 = vor.u32 %v7794_v25, %v6648_v28  ;;  %v7792_v38 = vld [vmem:[#allocation2 + $0xd4] sm:$0xf]  ;;  %v6640_v47 = vld [vmem:[#allocation2 + $0xd8] sm:$0xf0]  ;;  %v7790_v54 = vld [vmem:[#allocation2 + $0xc4] sm:$0xf] }
  0x72   : > { %v6643_v49 = vor.u32 %v7792_v38, %v6640_v47  ;;  %v6632_v56 = vld [vmem:[#allocation2 + $0xc8] sm:$0xf0]  ;;  %v7788_v63 = vld [vmem:[#allocation2 + $0xb4] sm:$0xf]  ;;  %v6624_v1 = vld [vmem:[#allocation2 + $0xb8] sm:$0xf0] }
  0x73   : > { %8073 = vmatpush.bf16.msra.mxu2 %v6567_v23  ;;  %645 = vmatpush.bf16.msra.mxu0 %v6567_v23  ;;  %v7778_v23 = vld [vmem:[#allocation2 + $0x64] sm:$0xf]  ;;  %v6635_v59 = vor.u32 %v7790_v54, %v6632_v56  ;;  %v6627_v3 = vor.u32 %v7788_v63, %v6624_v1  ;;  %v6552_v5 = vld [vmem:[#allocation2 + $0x28] sm:$0xf0]  ;;  %v6608_v25 = vld [vmem:[#allocation2 + $0x98] sm:$0xf0] }
  0x74   : > { %8081 = vmatpush.bf16.msra.mxu3 %v6631_v24  ;;  %734 = vmatpush.bf16.msra.mxu1 %v6631_v24  ;;  %v6584_v24 = vld [vmem:[#allocation2 + $0x68] sm:$0xf0]  ;;  %v7770_v4 = vld [vmem:[#allocation2 + $0x24] sm:$0xf]  ;;  %v8808_v47 = vld [vmem:[#allocation3] sm:$0x3] }
  0x75   : > { %v6587_v29 = vor.u32 %v7778_v23, %v6584_v24  ;;  %v7786_v9 = vld [vmem:[#allocation2 + $0xa4] sm:$0xf]  ;;  %v6555_v10 = vor.u32 %v7770_v4, %v6552_v5  ;;  %v7784_v23 = vld [vmem:[#allocation2 + $0x94] sm:$0xf]  ;;  %v6600_v38 = vld [vmem:[#allocation2 + $0x88] sm:$0xf0] }
  0x76   : > { %v6611_v28 = vor.u32 %v7784_v23, %v6608_v25 }
  0x77   : > { %8074 = vmatpush.bf16.msra.mxu2 %v6559_v36  ;;  %646 = vmatpush.bf16.msra.mxu0 %v6559_v36  ;;  %v7776_v36 = vld [vmem:[#allocation2 + $0x54] sm:$0xf] }
  0x78   : > { %8082 = vmatpush.bf16.msra.mxu3 %v6623_v37  ;;  %735 = vmatpush.bf16.msra.mxu1 %v6623_v37  ;;  %v6576_v37 = vld [vmem:[#allocation2 + $0x58] sm:$0xf0] }
  0x79   : > { %v6579_v43 = vor.u32 %v7776_v36, %v6576_v37  ;;  %v7782_v36 = vld [vmem:[#allocation2 + $0x84] sm:$0xf] }
  0x7b   : > { %8075 = vmatpush.bf16.msra.mxu2 %v6551_v50  ;;  %647 = vmatpush.bf16.msra.mxu0 %v6551_v50  ;;  %v7774_v50 = vld [vmem:[#allocation2 + $0x44] sm:$0xf] }
  0x7c   : > { %8083 = vmatpush.bf16.msra.mxu3 %v6615_v51  ;;  %736 = vmatpush.bf16.msra.mxu1 %v6615_v51  ;;  %v6568_v51 = vld [vmem:[#allocation2 + $0x48] sm:$0xf0] }
  0x7d   : > { %v6571_v55 = vor.u32 %v7774_v50, %v6568_v51 }
  0x7f   : > { %8076 = vmatpush.bf16.msra.mxu2 %v6543_v60  ;;  %648 = vmatpush.bf16.msra.mxu0 %v6543_v60  ;;  %v7772_v60 = vld [vmem:[#allocation2 + $0x34] sm:$0xf] }
  0x80   : > { %8084 = vmatpush.bf16.msra.mxu3 %v6607_v61  ;;  %737 = vmatpush.bf16.msra.mxu1 %v6607_v61  ;;  %v6560_v61 = vld [vmem:[#allocation2 + $0x38] sm:$0xf0] }
  0x81   : > { %v6563_v0 = vor.u32 %v7772_v60, %v6560_v61 }
  0x83   : > { %8077 = vmatpush.bf16.msra.mxu2 %v6535_v11  ;;  %649 = vmatpush.bf16.msra.mxu0 %v6535_v11  ;;  %v6616_v11 = vld [vmem:[#allocation2 + $0xa8] sm:$0xf0] }
  0x84   : > { %8085 = vmatpush.bf16.msra.mxu3 %v6599_v15  ;;  %738 = vmatpush.bf16.msra.mxu1 %v6599_v15  ;;  %v6619_v15 = vor.u32 %v7786_v9, %v6616_v11 }
  0x86   : > { %690 = vmatmul.bf16.vlgmr.msra.gmra.mxu2 %v8711_v57  ;;  %650 = vmatmul.bf16.vlgmr.msra.gmra.mxu0 %v8646_v8 }
  0x87   : > { %820 = vmatpush.bf16.msrb.mxu2 %v6595_v18  ;;  %779 = vmatmul.bf16.vlgmr.msra.gmra.mxu3 %v8713_v58  ;;  %v7768_v18 = vld [vmem:[#allocation2 + $0x14] sm:$0xf] }
  0x88   : > { %909 = vmatpush.bf16.msrb.mxu3 %v6659_v19  ;;  %739 = vmatmul.bf16.vlgmr.msra.gmra.mxu1 %v8651_v12  ;;  %v6544_v19 = vld [vmem:[#allocation2 + $0x18] sm:$0xf0] }
  0x89   : > { %v6547_v24 = vor.u32 %v7768_v18, %v6544_v19 }
  0x8b   : > { %821 = vmatpush.bf16.msrb.mxu2 %v6587_v29  ;;  %v7766_v29 = vld [vmem:[#allocation2 + $0x4] sm:$0xf] }
  0x8c   : > { %910 = vmatpush.bf16.msrb.mxu3 %v6651_v31  ;;  %v6536_v31 = vld [vmem:[#allocation2 + $0x8] sm:$0xf0] }
  0x8d   : > { %v6539_v37 = vor.u32 %v7766_v29, %v6536_v31 }
  0x8f   : > { %822 = vmatpush.bf16.msrb.mxu2 %v6579_v43  ;;  %v6603_v43 = vor.u32 %v7782_v36, %v6600_v38 }
  0x90   : > { %911 = vmatpush.bf16.msrb.mxu3 %v6643_v49  ;;  %v8812_v49 = vperm.slane %v8808_v47, 0 }
  0x93   : > { %823 = vmatpush.bf16.msrb.mxu2 %v6571_v55 }
  0x94   : > { %912 = vmatpush.bf16.msrb.mxu3 %v6635_v59 }
  0x96   : > { %695 = vmatmul.bf16.gmra.mxu2 %v8718_v62  ;;  %655 = vmatmul.bf16.gmra.mxu0 %v8656_v16 }
  0x97   : > { %784 = vmatmul.bf16.gmra.mxu3 %v8723_v2  ;;  %824 = vmatpush.bf16.msrb.mxu2 %v6563_v0 }
  0x98   : > { %744 = vmatmul.bf16.gmra.mxu1 %v8658_v17  ;;  %913 = vmatpush.bf16.msrb.mxu3 %v6627_v3 }
  0x9b   : > { %825 = vmatpush.bf16.msrb.mxu2 %v6555_v10 }
  0x9c   : > { %914 = vmatpush.bf16.msrb.mxu3 %v6619_v15 }
  0x9f   : > { %826 = vmatpush.bf16.msrb.mxu2 %v6547_v24 }
  0xa0   : > { %915 = vmatpush.bf16.msrb.mxu3 %v6611_v28 }
  0xa3   : > { %827 = vmatpush.bf16.msrb.mxu2 %v6539_v37 }
  0xa4   : > { %916 = vmatpush.bf16.msrb.mxu3 %v6603_v43 }
  0xa6   : > { %700 = vmatmul.bf16.gmra.mxu2 %v8728_v6  ;;  %660 = vmatmul.bf16.gmra.mxu0 %v8663_v21 }
  0xa7   : > { %789 = vmatmul.bf16.gmra.mxu3 %v8730_v7 }
  0xa8   : > { %749 = vmatmul.bf16.gmra.mxu1 %v8665_v22 }
  0xb6   : > { %705 = vmatmul.bf16.gmra.mxu2 %v8735_v13  ;;  %665 = vmatmul.bf16.gmra.mxu0 %v8670_v26 }
  0xb7   : > { %794 = vmatmul.bf16.gmra.mxu3 %v8737_v14 }
  0xb8   : > { %754 = vmatmul.bf16.gmra.mxu1 %v8675_v30 }
  0xc6   : > { %710 = vmatmul.bf16.gmra.mxu2 %v8742_v20  ;;  %670 = vmatmul.bf16.gmra.mxu0 %v8680_v34 }
  0xc7   : > { %799 = vmatmul.bf16.gmra.mxu3 %v8747_v27 }
  0xc8   : > { %759 = vmatmul.bf16.gmra.mxu1 %v8682_v35 }
  0xd6   : > { %715 = vmatmul.bf16.gmra.mxu2 %v8752_v32  ;;  %675 = vmatmul.bf16.gmra.mxu0 %v8687_v39 }
  0xd7   : > { %804 = vmatmul.bf16.gmra.mxu3 %v8754_v33 }
  0xd8   : > { %764 = vmatmul.bf16.gmra.mxu1 %v8689_v40 }
  0xe6   : > { %720 = vmatmul.bf16.gmra.mxu2 %v8759_v41  ;;  %680 = vmatmul.bf16.gmra.mxu0 %v8694_v44 }
  0xe7   : > { %809 = vmatmul.bf16.gmra.mxu3 %v8761_v42 }
  0xe8   : > { %769 = vmatmul.bf16.gmra.mxu1 %v8699_v48 }
  0xf6   : > { %725 = vmatmul.bf16.gmra.mxu2 %v8764_v45  ;;  %685 = vmatmul.bf16.gmra.mxu0 %v8704_v52 }
  0xf7   : > { %814 = vmatmul.bf16.gmra.mxu3 %v8766_v46 }
  0xf8   : > { %774 = vmatmul.bf16.gmra.mxu1 %v8706_v53 }
 0x106   : > { %828 = vmatmul.bf16.vlgmr.msrb.gmra.mxu2 %v8646_v8 }
 0x107   : > { %917 = vmatmul.bf16.vlgmr.msrb.gmra.mxu3 %v8651_v12 }
 0x109   : > { %v691_v50 = vpop.f32.mrf.mxu2 }
 0x10a   : > { %v692_v51 = vadd.f32 %v691_v50, %v8812_v49  ;;  %v780_v54 = vpop.f32.mrf.mxu3 }
 0x10c   : > { %v781_v55 = vadd.f32 %v780_v54, %v692_v51 }
 0x10e   : > { %v1030_v63 = vmax.f32 %v781_v55, 0.0 }
 0x111   : > { %v693_v56 = vpop.f32.mrf.mxu2 }
 0x112   : > { %v694_v59 = vadd.f32 %v693_v56, %v8812_v49  ;;  %v782_v60 = vpop.f32.mrf.mxu3 }
 0x114   : > { %v783_v61 = vadd.f32 %v782_v60, %v694_v59 }
 0x116   : > { %v1032_v0 = vmax.f32 %v783_v61, 0.0  ;;  %833 = vmatmul.bf16.gmra.mxu2 %v8656_v16 }
 0x117   : > { %922 = vmatmul.bf16.gmra.mxu3 %v8658_v17 }
 0x118   : > { %v8819_v8 = vpack.c.bf16 %v1032_v0, %v1030_v63 }
 0x119   : > { %v696_v1 = vpop.f32.mrf.mxu2 }
 0x11a   : > { %v697_v12 = vadd.f32 %v696_v1, %v8812_v49  ;;  %v785_v3 = vpop.f32.mrf.mxu3 }
 0x11c   : > { %v786_v4 = vadd.f32 %v785_v3, %v697_v12 }
 0x11e   : > { %v1034_v15 = vmax.f32 %v786_v4, 0.0 }
 0x121   : > { %v698_v5 = vpop.f32.mrf.mxu2 }
 0x122   : > { %v699_v9 = vadd.f32 %v698_v5, %v8812_v49  ;;  %v787_v10 = vpop.f32.mrf.mxu3 }
 0x124   : > { %v788_v11 = vadd.f32 %v787_v10, %v699_v9 }
 0x126   : > { %v1036_v18 = vmax.f32 %v788_v11, 0.0  ;;  %838 = vmatmul.bf16.gmra.mxu2 %v8663_v21 }
 0x127   : > { %927 = vmatmul.bf16.gmra.mxu3 %v8665_v22 }
 0x128   : > { %v8825_v16 = vpack.c.bf16 %v1036_v18, %v1034_v15 }
 0x129   : > { %v701_v17 = vpop.f32.mrf.mxu2 }
 0x12a   : > { %v702_v19 = vadd.f32 %v701_v17, %v8812_v49  ;;  %v790_v23 = vpop.f32.mrf.mxu3 }
 0x12c   : > { %v791_v24 = vadd.f32 %v790_v23, %v702_v19 }
 0x12e   : > { %v1038_v36 = vmax.f32 %v791_v24, 0.0 }
 0x131   : > { %v703_v25 = vpop.f32.mrf.mxu2 }
 0x132   : > { %v704_v28 = vadd.f32 %v703_v25, %v8812_v49  ;;  %v792_v29 = vpop.f32.mrf.mxu3 }
 0x134   : > { %v793_v31 = vadd.f32 %v792_v29, %v704_v28 }
 0x136   : > { %v1040_v37 = vmax.f32 %v793_v31, 0.0  ;;  %843 = vmatmul.bf16.gmra.mxu2 %v8670_v26 }
 0x137   : > { %932 = vmatmul.bf16.gmra.mxu3 %v8675_v30 }
 0x138   : > { %v8831_v21 = vpack.c.bf16 %v1040_v37, %v1038_v36 }
 0x139   : > { %v706_v22 = vpop.f32.mrf.mxu2 }
 0x13a   : > { %v707_v38 = vadd.f32 %v706_v22, %v8812_v49  ;;  %v795_v43 = vpop.f32.mrf.mxu3 }
 0x13c   : > { %v796_v50 = vadd.f32 %v795_v43, %v707_v38 }
 0x13e   : > { %v1042_v59 = vmax.f32 %v796_v50, 0.0 }
 0x141   : > { %v708_v51 = vpop.f32.mrf.mxu2 }
 0x142   : > { %v709_v54 = vadd.f32 %v708_v51, %v8812_v49  ;;  %v797_v55 = vpop.f32.mrf.mxu3 }
 0x144   : > { %v798_v56 = vadd.f32 %v797_v55, %v709_v54 }
 0x146   : > { %v1044_v60 = vmax.f32 %v798_v56, 0.0  ;;  %848 = vmatmul.bf16.gmra.mxu2 %v8680_v34 }
 0x147   : > { %937 = vmatmul.bf16.gmra.mxu3 %v8682_v35 }
 0x148   : > { %v8837_v26 = vpack.c.bf16 %v1044_v60, %v1042_v59 }
 0x149   : > { %v711_v30 = vpop.f32.mrf.mxu2 }
 0x14a   : > { %v712_v61 = vadd.f32 %v711_v30, %v8812_v49  ;;  %v800_v63 = vpop.f32.mrf.mxu3 }
 0x14c   : > { %v801_v0 = vadd.f32 %v800_v63, %v712_v61 }
 0x14e   : > { %v1046_v5 = vmax.f32 %v801_v0, 0.0 }
 0x151   : > { %v713_v1 = vpop.f32.mrf.mxu2 }
 0x152   : > { %v714_v12 = vadd.f32 %v713_v1, %v8812_v49  ;;  %v802_v3 = vpop.f32.mrf.mxu3 }
 0x154   : > { %v803_v4 = vadd.f32 %v802_v3, %v714_v12 }
 0x156   : > { %v1048_v9 = vmax.f32 %v803_v4, 0.0  ;;  %853 = vmatmul.bf16.gmra.mxu2 %v8687_v39 }
 0x157   : > { %942 = vmatmul.bf16.gmra.mxu3 %v8689_v40 }
 0x158   : > { %v8843_v34 = vpack.c.bf16 %v1048_v9, %v1046_v5 }
 0x159   : > { %v716_v35 = vpop.f32.mrf.mxu2 }
 0x15a   : > { %v717_v10 = vadd.f32 %v716_v35, %v8812_v49  ;;  %v805_v11 = vpop.f32.mrf.mxu3 }
 0x15c   : > { %v806_v15 = vadd.f32 %v805_v11, %v717_v10 }
 0x15e   : > { %v1050_v24 = vmax.f32 %v806_v15, 0.0 }
 0x161   : > { %v718_v18 = vpop.f32.mrf.mxu2 }
 0x162   : > { %v719_v17 = vadd.f32 %v718_v18, %v8812_v49  ;;  %v807_v19 = vpop.f32.mrf.mxu3 }
 0x164   : > { %v808_v23 = vadd.f32 %v807_v19, %v719_v17 }
 0x166   : > { %v1052_v25 = vmax.f32 %v808_v23, 0.0  ;;  %858 = vmatmul.bf16.gmra.mxu2 %v8694_v44 }
 0x167   : > { %947 = vmatmul.bf16.gmra.mxu3 %v8699_v48 }
 0x168   : > { %v8849_v39 = vpack.c.bf16 %v1052_v25, %v1050_v24 }
 0x169   : > { %v721_v40 = vpop.f32.mrf.mxu2 }
 0x16a   : > { %v722_v28 = vadd.f32 %v721_v40, %v8812_v49  ;;  %v810_v29 = vpop.f32.mrf.mxu3 }
 0x16c   : > { %v811_v31 = vadd.f32 %v810_v29, %v722_v28 }
 0x16e   : > { %v1054_v43 = vmax.f32 %v811_v31, 0.0 }
 0x171   : > { %v723_v36 = vpop.f32.mrf.mxu2 }
 0x172   : > { %v724_v37 = vadd.f32 %v723_v36, %v8812_v49  ;;  %v812_v22 = vpop.f32.mrf.mxu3 }
 0x174   : > { %v813_v38 = vadd.f32 %v812_v22, %v724_v37 }
 0x176   : > { %v1056_v50 = vmax.f32 %v813_v38, 0.0  ;;  %863 = vmatmul.bf16.gmra.mxu2 %v8704_v52  ;;  %v8861_v52 = vperm.slane %v8808_v47, 1 }
 0x177   : > { %952 = vmatmul.bf16.gmra.mxu3 %v8706_v53 }
 0x178   : > { %v8855_v44 = vpack.c.bf16 %v1056_v50, %v1054_v43 }
 0x179   : > { %v726_v48 = vpop.f32.mrf.mxu2 }
 0x17a   : > { %v727_v51 = vadd.f32 %v726_v48, %v8812_v49  ;;  %v815_v54 = vpop.f32.mrf.mxu3 }
 0x17c   : > { %v816_v55 = vadd.f32 %v815_v54, %v727_v51 }
 0x17e   : > { %v1058_v61 = vmax.f32 %v816_v55, 0.0 }
 0x181   : > { %v728_v56 = vpop.f32.mrf.mxu2 }
 0x182   : > { %v729_v59 = vadd.f32 %v728_v56, %v8812_v49  ;;  %v817_v60 = vpop.f32.mrf.mxu3 }
 0x184   : > { %v818_v30 = vadd.f32 %v817_v60, %v729_v59 }
 0x186   : > { %v1060_v63 = vmax.f32 %v818_v30, 0.0  ;;  %868 = vmatmul.bf16.gmra.mxu2 %v8711_v57 }
 0x187   : > { %957 = vmatmul.bf16.gmra.mxu3 %v8713_v58 }
 0x188   : > { %v8864_v53 = vpack.c.bf16 %v1060_v63, %v1058_v61 }
 0x189   : > { %v829_v0 = vpop.f32.mrf.mxu2 }
 0x18a   : > { %v830_v1 = vadd.f32 %v829_v0, %v8861_v52  ;;  %v918_v12 = vpop.f32.mrf.mxu3 }
 0x18c   : > { %v919_v3 = vadd.f32 %v918_v12, %v830_v1 }
 0x18e   : > { %v999_v10 = vmax.f32 %v919_v3, 0.0 }
 0x191   : > { %v831_v4 = vpop.f32.mrf.mxu2 }
 0x192   : > { %v832_v5 = vadd.f32 %v831_v4, %v8861_v52  ;;  %v920_v9 = vpop.f32.mrf.mxu3 }
 0x194   : > { %v921_v35 = vadd.f32 %v920_v9, %v832_v5 }
 0x196   : > { %v1001_v11 = vmax.f32 %v921_v35, 0.0  ;;  %873 = vmatmul.bf16.gmra.mxu2 %v8718_v62 }
 0x197   : > { %962 = vmatmul.bf16.gmra.mxu3 %v8723_v2 }
 0x198   : > { %v8870_v57 = vpack.c.bf16 %v1001_v11, %v999_v10 }
 0x199   : > { %v834_v58 = vpop.f32.mrf.mxu2 }
 0x19a   : > { %v835_v47 = vadd.f32 %v834_v58, %v8861_v52  ;;  %v923_v15 = vpop.f32.mrf.mxu3 }
 0x19c   : > { %v924_v18 = vadd.f32 %v923_v15, %v835_v47  ;;  %v651_v47 = vpop.f32.mrf.mxu0 }
 0x19e   : > { %v1003_v25 = vmax.f32 %v924_v18, 0.0 }
 0x1a1   : > { %v836_v17 = vpop.f32.mrf.mxu2 }
 0x1a2   : > { %v837_v19 = vadd.f32 %v836_v17, %v8861_v52  ;;  %v925_v23 = vpop.f32.mrf.mxu3 }
 0x1a4   : > { %v926_v24 = vadd.f32 %v925_v23, %v837_v19  ;;  %v652_v23 = vadd.f32 %v651_v47, %v8812_v49 }
 0x1a6   : > { %v1005_v40 = vmax.f32 %v926_v24, 0.0  ;;  %878 = vmatmul.bf16.gmra.mxu2 %v8728_v6  ;;  %v740_v24 = vpop.f32.mrf.mxu1 }
 0x1a7   : > { %967 = vmatmul.bf16.gmra.mxu3 %v8730_v7 }
 0x1a8   : > { %v8876_v62 = vpack.c.bf16 %v1005_v40, %v1003_v25  ;;  %v741_v40 = vadd.f32 %v740_v24, %v652_v23 }
 0x1a9   : > { %v839_v2 = vpop.f32.mrf.mxu2 }
 0x1aa   : > { %v840_v28 = vadd.f32 %v839_v2, %v8861_v52  ;;  %v928_v29 = vpop.f32.mrf.mxu3  ;;  %v653_v2 = vpop.f32.mrf.mxu0 }
 0x1ac   : > { %v929_v31 = vadd.f32 %v928_v29, %v840_v28  ;;  %v654_v29 = vadd.f32 %v653_v2, %v8812_v49 }
 0x1ae   : > { %v1007_v43 = vmax.f32 %v929_v31, 0.0 }
 0x1b1   : > { %v841_v36 = vpop.f32.mrf.mxu2 }
 0x1b2   : > { %v842_v37 = vadd.f32 %v841_v36, %v8861_v52  ;;  %v930_v22 = vpop.f32.mrf.mxu3 }
 0x1b4   : > { %v931_v38 = vadd.f32 %v930_v22, %v842_v37  ;;  %v742_v22 = vpop.f32.mrf.mxu1 }
 0x1b6   : > { %v1009_v50 = vmax.f32 %v931_v38, 0.0  ;;  %883 = vmatmul.bf16.gmra.mxu2 %v8735_v13  ;;  %v998_v38 = vmax.f32 %v741_v40, 0.0 }
 0x1b7   : > { %972 = vmatmul.bf16.gmra.mxu3 %v8737_v14 }
 0x1b8   : > { %v8882_v6 = vpack.c.bf16 %v1009_v50, %v1007_v43  ;;  %v743_v43 = vadd.f32 %v742_v22, %v654_v29 }
 0x1b9   : > { %v844_v7 = vpop.f32.mrf.mxu2 }
 0x1ba   : > { %v845_v48 = vadd.f32 %v844_v7, %v8861_v52  ;;  %v933_v51 = vpop.f32.mrf.mxu3  ;;  %v1000_v50 = vmax.f32 %v743_v43, 0.0  ;;  %v656_v7 = vpop.f32.mrf.mxu0 }
 0x1bc   : > { %v934_v54 = vadd.f32 %v933_v51, %v845_v48 }
 0x1be   : > { %v1011_v30 = vmax.f32 %v934_v54, 0.0 }
 0x1c1   : > { %v846_v55 = vpop.f32.mrf.mxu2 }
 0x1c2   : > { %v847_v56 = vadd.f32 %v846_v55, %v8861_v52  ;;  %v935_v59 = vpop.f32.mrf.mxu3  ;;  %v657_v55 = vadd.f32 %v656_v7, %v8812_v49 }
 0x1c4   : > { %v936_v60 = vadd.f32 %v935_v59, %v847_v56  ;;  %v745_v56 = vpop.f32.mrf.mxu1 }
 0x1c6   : > { %v1013_v61 = vmax.f32 %v936_v60, 0.0  ;;  %888 = vmatmul.bf16.gmra.mxu2 %v8742_v20 }
 0x1c7   : > { %977 = vmatmul.bf16.gmra.mxu3 %v8747_v27 }
 0x1c8   : > { %v8888_v13 = vpack.c.bf16 %v1013_v61, %v1011_v30  ;;  %v746_v61 = vadd.f32 %v745_v56, %v657_v55 }
 0x1c9   : > { %v849_v14 = vpop.f32.mrf.mxu2 }
 0x1ca   : > { %v850_v63 = vadd.f32 %v849_v14, %v8861_v52  ;;  %v938_v0 = vpop.f32.mrf.mxu3  ;;  %v658_v14 = vpop.f32.mrf.mxu0 }
 0x1cc   : > { %v939_v1 = vadd.f32 %v938_v0, %v850_v63  ;;  %v659_v0 = vadd.f32 %v658_v14, %v8812_v49 }
 0x1ce   : > { %v1015_v9 = vmax.f32 %v939_v1, 0.0 }
 0x1d1   : > { %v851_v12 = vpop.f32.mrf.mxu2 }
 0x1d2   : > { %v852_v3 = vadd.f32 %v851_v12, %v8861_v52  ;;  %v940_v4 = vpop.f32.mrf.mxu3 }
 0x1d4   : > { %v941_v5 = vadd.f32 %v940_v4, %v852_v3  ;;  %v747_v4 = vpop.f32.mrf.mxu1 }
 0x1d6   : > { %v1017_v35 = vmax.f32 %v941_v5, 0.0  ;;  %893 = vmatmul.bf16.gmra.mxu2 %v8752_v32  ;;  %v1002_v5 = vmax.f32 %v746_v61, 0.0 }
 0x1d7   : > { %982 = vmatmul.bf16.gmra.mxu3 %v8754_v33 }
 0x1d8   : > { %v8894_v20 = vpack.c.bf16 %v1017_v35, %v1015_v9  ;;  %v748_v9 = vadd.f32 %v747_v4, %v659_v0 }
 0x1d9   : > { %v854_v27 = vpop.f32.mrf.mxu2 }
 0x1da   : > { %v855_v10 = vadd.f32 %v854_v27, %v8861_v52  ;;  %v943_v11 = vpop.f32.mrf.mxu3  ;;  %v1004_v35 = vmax.f32 %v748_v9, 0.0  ;;  %v661_v27 = vpop.f32.mrf.mxu0 }
 0x1db   : > { %v662_v47 = vadd.f32 %v661_v27, %v8812_v49 }
 0x1dc   : > { %v944_v58 = vadd.f32 %v943_v11, %v855_v10 }
 0x1de   : > { %v1019_v25 = vmax.f32 %v944_v58, 0.0 }
 0x1e1   : > { %v856_v15 = vpop.f32.mrf.mxu2 }
 0x1e2   : > { %v857_v18 = vadd.f32 %v856_v15, %v8861_v52  ;;  %v945_v17 = vpop.f32.mrf.mxu3  ;;  %v750_v15 = vpop.f32.mrf.mxu1 }
 0x1e3   : > { %v751_v23 = vadd.f32 %v750_v15, %v662_v47  ;;  %v663_v24 = vpop.f32.mrf.mxu0 }
 0x1e4   : > { %v946_v19 = vadd.f32 %v945_v17, %v857_v18 }
 0x1e6   : > { %v1021_v32 = vmax.f32 %v946_v19, 0.0  ;;  %898 = vmatmul.bf16.gmra.mxu2 %v8759_v41  ;;  %v8905_v41 = vpack.c.bf16 %v1000_v50, %v998_v38 }
 0x1e7   : > { %987 = vmatmul.bf16.gmra.mxu3 %v8761_v42 }
 0x1e8   : > { %v8901_v33 = vpack.c.bf16 %v1021_v32, %v1019_v25  ;;  %v664_v32 = vadd.f32 %v663_v24, %v8812_v49 }
 0x1e9   : > { %v859_v28 = vpop.f32.mrf.mxu2 }
 0x1ea   : > { %v860_v31 = vadd.f32 %v859_v28, %v8861_v52  ;;  %v948_v36 = vpop.f32.mrf.mxu3  ;;  %v752_v29 = vpop.f32.mrf.mxu1 }
 0x1eb   : > { %v666_v22 = vpop.f32.mrf.mxu0 }
 0x1ec   : > { %v949_v37 = vadd.f32 %v948_v36, %v860_v31  ;;  %v1006_v31 = vmax.f32 %v751_v23, 0.0  ;;  %v753_v36 = vadd.f32 %v752_v29, %v664_v32 }
 0x1ee   : > { %v1023_v59 = vmax.f32 %v949_v37, 0.0  ;;  %v1008_v37 = vmax.f32 %v753_v36, 0.0 }
 0x1f0   : > { %v8923_v43 = vpack.c.bf16 %v1008_v37, %v1006_v31 }
 0x1f1   : > { %v861_v48 = vpop.f32.mrf.mxu2 }
 0x1f2   : > { %v862_v42 = vadd.f32 %v861_v48, %v8861_v52  ;;  %v950_v51 = vpop.f32.mrf.mxu3 }
 0x1f4   : > { %v951_v54 = vadd.f32 %v950_v51, %v862_v42  ;;  %v667_v42 = vadd.f32 %v666_v22, %v8812_v49  ;;  %v755_v51 = vpop.f32.mrf.mxu1 }
 0x1f6   : > { %v1025_v60 = vmax.f32 %v951_v54, 0.0  ;;  %903 = vmatmul.bf16.gmra.mxu2 %v8764_v45  ;;  %v8915_v45 = vpack.c.bf16 %v1004_v35, %v1002_v5 }
 0x1f7   : > { %992 = vmatmul.bf16.gmra.mxu3 %v8766_v46 }
 0x1f8   : > { %v8911_v30 = vpack.c.bf16 %v1025_v60, %v1023_v59  ;;  %v756_v59 = vadd.f32 %v755_v51, %v667_v42  ;;  %v668_v60 = vpop.f32.mrf.mxu0 }
 0x1f9   : > { %v864_v63 = vpop.f32.mrf.mxu2  ;;  %v669_v14 = vadd.f32 %v668_v60, %v8812_v49 }
 0x1fa   : > { %v865_v1 = vadd.f32 %v864_v63, %v8861_v52  ;;  %v953_v12 = vpop.f32.mrf.mxu3 }
 0x1fc   : > { %v954_v3 = vadd.f32 %v953_v12, %v865_v1  ;;  %v757_v12 = vpop.f32.mrf.mxu1 }
 0x1fd   : > { %v758_v4 = vadd.f32 %v757_v12, %v669_v14 }
 0x1fe   : > { %v1027_v18 = vmax.f32 %v954_v3, 0.0  ;;  %v1010_v3 = vmax.f32 %v756_v59, 0.0 }
 0x1ff   : > { %v1012_v5 = vmax.f32 %v758_v4, 0.0 }
 0x200   : > { %v671_v9 = vpop.f32.mrf.mxu0 }
 0x201   : > { %v866_v10 = vpop.f32.mrf.mxu2  ;;  %v8931_v27 = vpack.c.bf16 %v1012_v5, %v1010_v3  ;;  %v672_v47 = vadd.f32 %v671_v9, %v8812_v49 }
 0x202   : > { %v867_v46 = vadd.f32 %v866_v10, %v8861_v52  ;;  %v955_v11 = vpop.f32.mrf.mxu3 }
 0x204   : > { %v956_v58 = vadd.f32 %v955_v11, %v867_v46 }
 0x206   : > { %v1029_v17 = vmax.f32 %v956_v58, 0.0  ;;  %v760_v58 = vpop.f32.mrf.mxu1 }
 0x208   : > { %v8919_v19 = vpack.c.bf16 %v1029_v17, %v1027_v18  ;;  %v673_v23 = vpop.f32.mrf.mxu0 }
 0x209   : > { %v869_v25 = vpop.f32.mrf.mxu2  ;;  %v674_v32 = vadd.f32 %v673_v23, %v8812_v49 }
 0x20a   : > { %v870_v40 = vadd.f32 %v869_v25, %v8861_v52  ;;  %v958_v2 = vpop.f32.mrf.mxu3  ;;  %v761_v25 = vadd.f32 %v760_v58, %v672_v47 }
 0x20c   : > { %v959_v28 = vadd.f32 %v958_v2, %v870_v40  ;;  %v1014_v31 = vmax.f32 %v761_v25, 0.0 }
 0x20e   : > { %v1031_v54 = vmax.f32 %v959_v28, 0.0  ;;  %v762_v29 = vpop.f32.mrf.mxu1 }
 0x20f   : > { %v763_v36 = vadd.f32 %v762_v29, %v674_v32 }
 0x210   : > { %v676_v22 = vpop.f32.mrf.mxu0 }
 0x211   : > { %v871_v38 = vpop.f32.mrf.mxu2  ;;  %v1016_v37 = vmax.f32 %v763_v36, 0.0 }
 0x212   : > { %v872_v50 = vadd.f32 %v871_v38, %v8861_v52  ;;  %v960_v7 = vpop.f32.mrf.mxu3 }
 0x214   : > { %v961_v48 = vadd.f32 %v960_v7, %v872_v50  ;;  %v8939_v50 = vpack.c.bf16 %v1016_v37, %v1014_v31 }
 0x216   : > { %v1033_v55 = vmax.f32 %v961_v48, 0.0  ;;  %v765_v51 = vpop.f32.mrf.mxu1 }
 0x218   : > { %v8927_v56 = vpack.c.bf16 %v1033_v55, %v1031_v54  ;;  %v677_v54 = vadd.f32 %v676_v22, %v8812_v49 }
 0x219   : > { %v874_v61 = vpop.f32.mrf.mxu2 }
 0x21a   : > { %v875_v63 = vadd.f32 %v874_v61, %v8861_v52  ;;  %v963_v0 = vpop.f32.mrf.mxu3  ;;  %v678_v61 = vpop.f32.mrf.mxu0 }
 0x21c   : > { %v964_v1 = vadd.f32 %v963_v0, %v875_v63  ;;  %v766_v63 = vadd.f32 %v765_v51, %v677_v54  ;;  %v679_v0 = vadd.f32 %v678_v61, %v8812_v49 }
 0x21e   : > { %v1035_v15 = vmax.f32 %v964_v1, 0.0  ;;  %v767_v4 = vpop.f32.mrf.mxu1  ;;  %v1018_v5 = vmax.f32 %v766_v63, 0.0 }
 0x21f   : > { %v768_v9 = vadd.f32 %v767_v4, %v679_v0 }
 0x221   : > { %v876_v35 = vpop.f32.mrf.mxu2 }
 0x222   : > { %v877_v10 = vadd.f32 %v876_v35, %v8861_v52  ;;  %v965_v46 = vpop.f32.mrf.mxu3  ;;  %v1020_v35 = vmax.f32 %v768_v9, 0.0 }
 0x224   : > { %v966_v11 = vadd.f32 %v965_v46, %v877_v10  ;;  %v681_v10 = vpop.f32.mrf.mxu0 }
 0x225   : > { %v682_v23 = vadd.f32 %v681_v10, %v8812_v49 }
 0x226   : > { %v1037_v18 = vmax.f32 %v966_v11, 0.0  ;;  %v8947_v11 = vpack.c.bf16 %v1020_v35, %v1018_v5 }
 0x228   : > { %v8935_v17 = vpack.c.bf16 %v1037_v18, %v1035_v15  ;;  %v770_v18 = vpop.f32.mrf.mxu1 }
 0x229   : > { %v879_v24 = vpop.f32.mrf.mxu2 }
 0x22a   : > { %v880_v40 = vadd.f32 %v879_v24, %v8861_v52  ;;  %v968_v2 = vpop.f32.mrf.mxu3 }
 0x22c   : > { %v969_v28 = vadd.f32 %v968_v2, %v880_v40  ;;  %v683_v40 = vpop.f32.mrf.mxu0 }
 0x22d   : > { %v684_v29 = vadd.f32 %v683_v40, %v8812_v49 }
 0x22e   : > { %v1039_v55 = vmax.f32 %v969_v28, 0.0  ;;  %v771_v28 = vadd.f32 %v770_v18, %v682_v23 }
 0x230   : > { %v772_v36 = vpop.f32.mrf.mxu1  ;;  %v1022_v37 = vmax.f32 %v771_v28, 0.0 }
 0x231   : > { %v881_v38 = vpop.f32.mrf.mxu2  ;;  %v773_v22 = vadd.f32 %v772_v36, %v684_v29 }
 0x232   : > { %v882_v7 = vadd.f32 %v881_v38, %v8861_v52  ;;  %v970_v48 = vpop.f32.mrf.mxu3 }
 0x234   : > { %v971_v42 = vadd.f32 %v970_v48, %v882_v7  ;;  %v1024_v7 = vmax.f32 %v773_v22, 0.0  ;;  %v686_v48 = vpop.f32.mrf.mxu0 }
 0x235   : > { %v687_v63 = vadd.f32 %v686_v48, %v8812_v49 }
 0x236   : > { %v1041_v59 = vmax.f32 %v971_v42, 0.0  ;;  %v8955_v51 = vpack.c.bf16 %v1024_v7, %v1022_v37 }
 0x238   : > { %v8943_v60 = vpack.c.bf16 %v1041_v59, %v1039_v55 }
 0x239   : > { %v884_v14 = vpop.f32.mrf.mxu2 }
 0x23a   : > { %v885_v1 = vadd.f32 %v884_v14, %v8861_v52  ;;  %v973_v12 = vpop.f32.mrf.mxu3  ;;  %v775_v14 = vpop.f32.mrf.mxu1 }
 0x23b   : > { %v776_v5 = vadd.f32 %v775_v14, %v687_v63 }
 0x23c   : > { %v974_v3 = vadd.f32 %v973_v12, %v885_v1 }
 0x23e   : > { %v1043_v24 = vmax.f32 %v974_v3, 0.0  ;;  %v688_v3 = vpop.f32.mrf.mxu0 }
 0x23f   : > { %v689_v9 = vadd.f32 %v688_v3, %v8812_v49 }
 0x241   : > { %v886_v46 = vpop.f32.mrf.mxu2 }
 0x242   : > { %v887_v58 = vadd.f32 %v886_v46, %v8861_v52  ;;  %v975_v47 = vpop.f32.mrf.mxu3  ;;  %v777_v10 = vpop.f32.mrf.mxu1  ;;  %v1026_v46 = vmax.f32 %v776_v5, 0.0 }
 0x244   : > { %v976_v15 = vadd.f32 %v975_v47, %v887_v58  ;;  %v778_v58 = vadd.f32 %v777_v10, %v689_v9 }
 0x246   : > { %v1045_v25 = vmax.f32 %v976_v15, 0.0  ;;  %v1028_v15 = vmax.f32 %v778_v58, 0.0 }
 0x248   : > { %v8951_v32 = vpack.c.bf16 %v1045_v25, %v1043_v24  ;;  %v8963_v23 = vpack.c.bf16 %v1028_v15, %v1026_v46 }
 0x249   : > { %v889_v2 = vpop.f32.mrf.mxu2 }
 0x24a   : > { %v978_v31 = vpop.f32.mrf.mxu3  ;;  %v890_v38 = vadd.f32 %v889_v2, %v8861_v52 }
 0x24c   : > { %v979_v54 = vadd.f32 %v978_v31, %v890_v38 }
 0x24e   : > { %v1047_v0 = vmax.f32 %v979_v54, 0.0 }
 0x251   : > { %v891_v42 = vpop.f32.mrf.mxu2 }
 0x252   : > { %v892_v55 = vadd.f32 %v891_v42, %v8861_v52  ;;  %v980_v59 = vpop.f32.mrf.mxu3 }
 0x254   : > { %v981_v61 = vadd.f32 %v980_v59, %v892_v55 }
 0x256   : > { %v1049_v1 = vmax.f32 %v981_v61, 0.0 }
 0x258   : > { %v8959_v12 = vpack.c.bf16 %v1049_v1, %v1047_v0 }
 0x259   : > { %v894_v4 = vpop.f32.mrf.mxu2 }
 0x25a   : > { %v983_v35 = vpop.f32.mrf.mxu3  ;;  %v895_v47 = vadd.f32 %v894_v4, %v8861_v52 }
 0x25c   : > { %v984_v24 = vadd.f32 %v983_v35, %v895_v47 }
 0x25e   : > { %v1051_v28 = vmax.f32 %v984_v24, 0.0 }
 0x261   : > { %v896_v18 = vpop.f32.mrf.mxu2 }
 0x262   : > { %v897_v25 = vadd.f32 %v896_v18, %v8861_v52  ;;  %v985_v40 = vpop.f32.mrf.mxu3 }
 0x264   : > { %v986_v2 = vadd.f32 %v985_v40, %v897_v25 }
 0x266   : > { %v1053_v29 = vmax.f32 %v986_v2, 0.0 }
 0x268   : > { %v8966_v31 = vpack.c.bf16 %v1053_v29, %v1051_v28 }
 0x269   : > { %v899_v49 = vpop.f32.mrf.mxu2 }
 0x26a   : > { %v988_v36 = vpop.f32.mrf.mxu3  ;;  %v900_v37 = vadd.f32 %v899_v49, %v8861_v52 }
 0x26c   : > { %v989_v38 = vadd.f32 %v988_v36, %v900_v37 }
 0x26e   : > { %v1055_v54 = vmax.f32 %v989_v38, 0.0 }
 0x271   : > { %v901_v22 = vpop.f32.mrf.mxu2 }
 0x272   : > { %v902_v7 = vadd.f32 %v901_v22, %v8861_v52  ;;  %v990_v48 = vpop.f32.mrf.mxu3 }
 0x274   : > { %v991_v42 = vadd.f32 %v990_v48, %v902_v7 }
 0x276   : > { %v1057_v55 = vmax.f32 %v991_v42, 0.0 }
 0x278   : > { %v8970_v59 = vpack.c.bf16 %v1057_v55, %v1055_v54 }
 0x279   : > { %v904_v61 = vpop.f32.mrf.mxu2 }
 0x27a   : > { %v993_v14 = vpop.f32.mrf.mxu3  ;;  %v905_v63 = vadd.f32 %v904_v61, %v8861_v52 }
 0x27c   : > { %v994_v1 = vadd.f32 %v993_v14, %v905_v63 }
 0x27e   : > { %v1059_v9 = vmax.f32 %v994_v1, 0.0 }
 0x281   : > { %v906_v0 = vpop.f32.mrf.mxu2 }
 0x282   : > { %v907_v3 = vadd.f32 %v906_v0, %v8861_v52  ;;  %v995_v4 = vpop.f32.mrf.mxu3 }
 0x284   : > { %v996_v5 = vadd.f32 %v995_v4, %v907_v3 }
 0x286   : > { %v1061_v35 = vmax.f32 %v996_v5, 0.0 }
 0x288   : > { %v8974_v10 = vpack.c.bf16 %v1061_v35, %v1059_v9 }
 0x289   : > { %8408 = dma.done.wait (%p45_p5), [#allocation12 + $0x2], 8192 }
 0x28a   : > { %8410 = vsyncadd (%p45_p5), [#allocation12 + $0x2], 4294959104 }
 0x28b   : > { %8412 = dma.done.wait (%p45_p5), [#allocation12 + $0x3], 64 }
 0x28c   : > { %8414 = vsyncadd (%p45_p5), [#allocation12 + $0x3], 4294967232  ;;  %v6775_v46 = vld [vmem:[#allocation4 + $0xe0] sm:$0xf]  ;;  %v7828_v58 = vld [vmem:[#allocation4 + $0xec] sm:$0xf0] }
 0x28d   : > { %v6903_v52 = vld [vmem:[#allocation4 + $0x1e0] sm:$0xf]  ;;  %v6776_v47 = vor.u32 %v7828_v58, %v6775_v46  ;;  %v7860_v15 = vld [vmem:[#allocation4 + $0x1ec] sm:$0xf0]  ;;  %v7826_v18 = vld [vmem:[#allocation4 + $0xe4] sm:$0xf] }
 0x28e   : > { %v6777_v24 = vld [vmem:[#allocation4 + $0xf0] sm:$0xf0]  ;;  %v6904_v25 = vor.u32 %v7860_v15, %v6903_v52  ;;  %v7858_v2 = vld [vmem:[#allocation4 + $0x1e4] sm:$0xf]  ;;  %v6759_v29 = vld [vmem:[#allocation4 + $0xc0] sm:$0xf] }
 0x28f   : > { %v6780_v40 = vor.u32 %v7826_v18, %v6777_v24  ;;  %v6905_v28 = vld [vmem:[#allocation4 + $0x1f0] sm:$0xf0]  ;;  %1500 = vmatpush.bf16.msrb.mxu0 %v6776_v47  ;;  %v7824_v36 = vld [vmem:[#allocation4 + $0xcc] sm:$0xf0]  ;;  %v6887_v37 = vld [vmem:[#allocation4 + $0x1c0] sm:$0xf] }
 0x290   : > { %v6908_v49 = vor.u32 %v7858_v2, %v6905_v28  ;;  %v7856_v22 = vld [vmem:[#allocation4 + $0x1cc] sm:$0xf0]  ;;  %1589 = vmatpush.bf16.msrb.mxu1 %v6904_v25  ;;  %v6760_v38 = vor.u32 %v7824_v36, %v6759_v29  ;;  %v7822_v48 = vld [vmem:[#allocation4 + $0xc4] sm:$0xf]  ;;  %v6761_v42 = vld [vmem:[#allocation4 + $0xd0] sm:$0xf0] }
 0x291   : > { %1678 = vmatpush.bf16.msra.mxu2 %v6780_v40  ;;  %v6888_v7 = vor.u32 %v7856_v22, %v6887_v37  ;;  %v7854_v54 = vld [vmem:[#allocation4 + $0x1c4] sm:$0xf]  ;;  %v6764_v55 = vor.u32 %v7822_v48, %v6761_v42  ;;  %v6889_v61 = vld [vmem:[#allocation4 + $0x1d0] sm:$0xf0]  ;;  %v6743_v14 = vld [vmem:[#allocation4 + $0xa0] sm:$0xf] }
 0x292   : > { %1767 = vmatpush.bf16.msra.mxu3 %v6908_v49  ;;  %v7820_v63 = vld [vmem:[#allocation4 + $0xac] sm:$0xf0]  ;;  %v6892_v0 = vor.u32 %v7854_v54, %v6889_v61  ;;  %v6871_v1 = vld [vmem:[#allocation4 + $0x1a0] sm:$0xf]  ;;  %v7818_v4 = vld [vmem:[#allocation4 + $0xa4] sm:$0xf] }
 0x293   : > { %v7852_v3 = vld [vmem:[#allocation4 + $0x1ac] sm:$0xf0]  ;;  %1501 = vmatpush.bf16.msrb.mxu0 %v6760_v38  ;;  %v6744_v5 = vor.u32 %v7820_v63, %v6743_v14  ;;  %v6745_v9 = vld [vmem:[#allocation4 + $0xb0] sm:$0xf0]  ;;  %v7850_v35 = vld [vmem:[#allocation4 + $0x1a4] sm:$0xf] }
 0x294   : > { %v6873_v46 = vld [vmem:[#allocation4 + $0x1b0] sm:$0xf0]  ;;  %1590 = vmatpush.bf16.msrb.mxu1 %v6888_v7  ;;  %v6872_v58 = vor.u32 %v7852_v3, %v6871_v1  ;;  %v6748_v52 = vor.u32 %v7818_v4, %v6745_v9  ;;  %v6727_v47 = vld [vmem:[#allocation4 + $0x80] sm:$0xf]  ;;  %v7816_v15 = vld [vmem:[#allocation4 + $0x8c] sm:$0xf0] }
 0x295   : > { %1679 = vmatpush.bf16.msra.mxu2 %v6764_v55  ;;  %v6855_v18 = vld [vmem:[#allocation4 + $0x180] sm:$0xf]  ;;  %v6876_v24 = vor.u32 %v7850_v35, %v6873_v46  ;;  %v7848_v25 = vld [vmem:[#allocation4 + $0x18c] sm:$0xf0]  ;;  %v7814_v40 = vld [vmem:[#allocation4 + $0x84] sm:$0xf]  ;;  %v6728_v49 = vor.u32 %v7816_v15, %v6727_v47 }
 0x296   : > { %1768 = vmatpush.bf16.msra.mxu3 %v6892_v0  ;;  %v6729_v2 = vld [vmem:[#allocation4 + $0x90] sm:$0xf0]  ;;  %v7846_v28 = vld [vmem:[#allocation4 + $0x184] sm:$0xf]  ;;  %v6856_v36 = vor.u32 %v7848_v25, %v6855_v18  ;;  %v6711_v22 = vld [vmem:[#allocation4 + $0x60] sm:$0xf] }
 0x297   : > { %v6857_v29 = vld [vmem:[#allocation4 + $0x190] sm:$0xf0]  ;;  %1502 = vmatpush.bf16.msrb.mxu0 %v6744_v5  ;;  %v6732_v37 = vor.u32 %v7814_v40, %v6729_v2  ;;  %v7812_v38 = vld [vmem:[#allocation4 + $0x6c] sm:$0xf0]  ;;  %v6839_v7 = vld [vmem:[#allocation4 + $0x160] sm:$0xf] }
 0x298   : > { %1591 = vmatpush.bf16.msrb.mxu1 %v6872_v58  ;;  %v6860_v48 = vor.u32 %v7846_v28, %v6857_v29  ;;  %v7844_v42 = vld [vmem:[#allocation4 + $0x16c] sm:$0xf0]  ;;  %v7810_v54 = vld [vmem:[#allocation4 + $0x64] sm:$0xf]  ;;  %v6713_v55 = vld [vmem:[#allocation4 + $0x70] sm:$0xf0]  ;;  %v6712_v63 = vor.u32 %v7812_v38, %v6711_v22 }
 0x299   : > { %1680 = vmatpush.bf16.msra.mxu2 %v6748_v52  ;;  %v7842_v61 = vld [vmem:[#allocation4 + $0x164] sm:$0xf]  ;;  %v6841_v14 = vld [vmem:[#allocation4 + $0x170] sm:$0xf0]  ;;  %v6840_v0 = vor.u32 %v7844_v42, %v6839_v7  ;;  %v6716_v1 = vor.u32 %v7810_v54, %v6713_v55  ;;  %v6695_v3 = vld [vmem:[#allocation4 + $0x40] sm:$0xf] }
 0x29a   : > { %1769 = vmatpush.bf16.msra.mxu3 %v6876_v24  ;;  %v7808_v4 = vld [vmem:[#allocation4 + $0x4c] sm:$0xf0]  ;;  %v6823_v5 = vld [vmem:[#allocation4 + $0x140] sm:$0xf]  ;;  %v6844_v9 = vor.u32 %v7842_v61, %v6841_v14  ;;  %v7806_v46 = vld [vmem:[#allocation4 + $0x44] sm:$0xf] }
 0x29b   : > { %1503 = vmatpush.bf16.msrb.mxu0 %v6728_v49  ;;  %v7840_v35 = vld [vmem:[#allocation4 + $0x14c] sm:$0xf0]  ;;  %v6697_v58 = vld [vmem:[#allocation4 + $0x50] sm:$0xf0]  ;;  %v7838_v52 = vld [vmem:[#allocation4 + $0x144] sm:$0xf]  ;;  %v6696_v15 = vor.u32 %v7808_v4, %v6695_v3 }
 0x29c   : > { %1592 = vmatpush.bf16.msrb.mxu1 %v6856_v36  ;;  %v6825_v47 = vld [vmem:[#allocation4 + $0x150] sm:$0xf0]  ;;  %v6824_v18 = vor.u32 %v7840_v35, %v6823_v5  ;;  %v6700_v24 = vor.u32 %v7806_v46, %v6697_v58  ;;  %v6679_v25 = vld [vmem:[#allocation4 + $0x20] sm:$0xf]  ;;  %v7804_v40 = vld [vmem:[#allocation4 + $0x2c] sm:$0xf0] }
 0x29d   : > { %1681 = vmatpush.bf16.msra.mxu2 %v6732_v37  ;;  %v6807_v2 = vld [vmem:[#allocation4 + $0x120] sm:$0xf]  ;;  %v6828_v28 = vor.u32 %v7838_v52, %v6825_v47  ;;  %v7836_v29 = vld [vmem:[#allocation4 + $0x12c] sm:$0xf0]  ;;  %v7802_v49 = vld [vmem:[#allocation4 + $0x24] sm:$0xf]  ;;  %v6680_v38 = vor.u32 %v7804_v40, %v6679_v25 }
 0x29e   : > { %1770 = vmatpush.bf16.msra.mxu3 %v6860_v48  ;;  %v6681_v36 = vld [vmem:[#allocation4 + $0x30] sm:$0xf0]  ;;  %v7834_v37 = vld [vmem:[#allocation4 + $0x124] sm:$0xf]  ;;  %v6663_v7 = vld [vmem:[#allocation4] sm:$0xf]  ;;  %v6808_v48 = vor.u32 %v7836_v29, %v6807_v2 }
 0x29f   : > { %1504 = vmatpush.bf16.msrb.mxu0 %v6712_v63  ;;  %v6809_v22 = vld [vmem:[#allocation4 + $0x130] sm:$0xf0]  ;;  %v6684_v42 = vor.u32 %v7802_v49, %v6681_v36  ;;  %v7800_v54 = vld [vmem:[#allocation4 + $0xc] sm:$0xf0]  ;;  %v6791_v55 = vld [vmem:[#allocation4 + $0x100] sm:$0xf] }
 0x2a0   : > { %1593 = vmatpush.bf16.msrb.mxu1 %v6840_v0  ;;  %v7832_v61 = vld [vmem:[#allocation4 + $0x10c] sm:$0xf0]  ;;  %v6812_v14 = vor.u32 %v7834_v37, %v6809_v22  ;;  %v7798_v63 = vld [vmem:[#allocation4 + $0x4] sm:$0xf]  ;;  %v6665_v0 = vld [vmem:[#allocation4 + $0x10] sm:$0xf0] }
 0x2a1   : > { %1682 = vmatpush.bf16.msra.mxu2 %v6716_v1  ;;  %v7830_v1 = vld [vmem:[#allocation4 + $0x104] sm:$0xf]  ;;  %v6793_v3 = vld [vmem:[#allocation4 + $0x110] sm:$0xf0]  ;;  %v7827_v4 = vld [vmem:[#allocation4 + $0xec] sm:$0xf]  ;;  %v6792_v58 = vor.u32 %v7832_v61, %v6791_v55  ;;  %v6668_v52 = vor.u32 %v7798_v63, %v6665_v0 }
 0x2a2   : > { %1771 = vmatpush.bf16.msra.mxu3 %v6844_v9  ;;  %v6785_v5 = vld [vmem:[#allocation4 + $0xf8] sm:$0xf0]  ;;  %v6664_v9 = vor.u32 %v7800_v54, %v6663_v7  ;;  %v7859_v35 = vld [vmem:[#allocation4 + $0x1ec] sm:$0xf]  ;;  %v6796_v47 = vor.u32 %v7830_v1, %v6793_v3  ;;  %v6911_v40 = vld [vmem:[#allocation4 + $0x1e8] sm:$0xf] }
 0x2a3   : > { %1505 = vmatpush.bf16.msrb.mxu0 %v6696_v15  ;;  %v6913_v46 = vld [vmem:[#allocation4 + $0x1f8] sm:$0xf0]  ;;  %v6788_v15 = vor.u32 %v7827_v4, %v6785_v5  ;;  %v7861_v2 = vld [vmem:[#allocation4 + $0x1f4] sm:$0xf0]  ;;  %v7823_v49 = vld [vmem:[#allocation4 + $0xcc] sm:$0xf] }
 0x2a4   : > { %1594 = vmatpush.bf16.msrb.mxu1 %v6824_v18  ;;  %v6783_v18 = vld [vmem:[#allocation4 + $0xe8] sm:$0xf]  ;;  %v6916_v25 = vor.u32 %v7859_v35, %v6913_v46  ;;  %v6912_v29 = vor.u32 %v7861_v2, %v6911_v40  ;;  %v6769_v36 = vld [vmem:[#allocation4 + $0xd8] sm:$0xf0]  ;;  %v7855_v37 = vld [vmem:[#allocation4 + $0x1cc] sm:$0xf] }
 0x2a5   : > { %1683 = vmatpush.bf16.msra.mxu2 %v6700_v24  ;;  %v7829_v24 = vld [vmem:[#allocation4 + $0xf4] sm:$0xf0]  ;;  %v6772_v22 = vor.u32 %v7823_v49, %v6769_v36  ;;  %v6767_v7 = vld [vmem:[#allocation4 + $0xc8] sm:$0xf]  ;;  %v7819_v63 = vld [vmem:[#allocation4 + $0xac] sm:$0xf] }
 0x2a6   : > { %1772 = vmatpush.bf16.msra.mxu3 %v6828_v28  ;;  %v6784_v28 = vor.u32 %v7829_v24, %v6783_v18  ;;  %v6895_v55 = vld [vmem:[#allocation4 + $0x1c8] sm:$0xf]  ;;  %v7857_v61 = vld [vmem:[#allocation4 + $0x1d4] sm:$0xf0]  ;;  %v6753_v0 = vld [vmem:[#allocation4 + $0xb8] sm:$0xf0] }
 0x2a7   : > { %1506 = vmatpush.bf16.msrb.mxu0 %v6680_v38  ;;  %v6897_v38 = vld [vmem:[#allocation4 + $0x1d8] sm:$0xf0]  ;;  %v7851_v1 = vld [vmem:[#allocation4 + $0x1ac] sm:$0xf]  ;;  %v6756_v3 = vor.u32 %v7819_v63, %v6753_v0  ;;  %v6751_v5 = vld [vmem:[#allocation4 + $0xa8] sm:$0xf] }
 0x2a8   : > { %1595 = vmatpush.bf16.msrb.mxu1 %v6808_v48  ;;  %v7825_v48 = vld [vmem:[#allocation4 + $0xd4] sm:$0xf0]  ;;  %v6881_v4 = vld [vmem:[#allocation4 + $0x1b8] sm:$0xf0]  ;;  %v7847_v24 = vld [vmem:[#allocation4 + $0x18c] sm:$0xf] }
 0x2a9   : > { %1684 = vmatpush.bf16.msra.mxu2 %v6684_v42  ;;  %v6900_v42 = vor.u32 %v7855_v37, %v6897_v38  ;;  %v6768_v54 = vor.u32 %v7825_v48, %v6767_v7  ;;  %v6884_v35 = vor.u32 %v7851_v1, %v6881_v4  ;;  %v6737_v18 = vld [vmem:[#allocation4 + $0x98] sm:$0xf0]  ;;  %v6735_v2 = vld [vmem:[#allocation4 + $0x88] sm:$0xf]  ;;  %v7849_v37 = vld [vmem:[#allocation4 + $0x194] sm:$0xf0] }
 0x2aa   : > { %1773 = vmatpush.bf16.msra.mxu3 %v6812_v14  ;;  %v6896_v14 = vor.u32 %v7857_v61, %v6895_v55  ;;  %v6865_v40 = vld [vmem:[#allocation4 + $0x198] sm:$0xf0]  ;;  %v6863_v36 = vld [vmem:[#allocation4 + $0x188] sm:$0xf]  ;;  %v7811_v38 = vld [vmem:[#allocation4 + $0x6c] sm:$0xf] }
 0x2ab   : > { %1507 = vmatpush.bf16.msrb.mxu0 %v6664_v9  ;;  %v7821_v9 = vld [vmem:[#allocation4 + $0xb4] sm:$0xf0]  ;;  %v6721_v7 = vld [vmem:[#allocation4 + $0x78] sm:$0xf0]  ;;  %v7843_v48 = vld [vmem:[#allocation4 + $0x16c] sm:$0xf] }
 0x2ac   : > { %1596 = vmatpush.bf16.msrb.mxu1 %v6792_v58  ;;  %v6752_v46 = vor.u32 %v7821_v9, %v6751_v5  ;;  %v6879_v58 = vld [vmem:[#allocation4 + $0x1a8] sm:$0xf]  ;;  %v7845_v1 = vld [vmem:[#allocation4 + $0x174] sm:$0xf0]  ;;  %v9016_v4 = vld [vmem:[#allocation5] sm:$0xf] }
 0x2ad   : > { %1685 = vmatpush.bf16.msra.mxu2 %v6668_v52  ;;  %v7853_v52 = vld [vmem:[#allocation4 + $0x1b4] sm:$0xf0]  ;;  %v6719_v61 = vld [vmem:[#allocation4 + $0x68] sm:$0xf]  ;;  %v9019_v5 = vperm.slane %v9016_v4, 0 }
 0x2ae   : > { %1774 = vmatpush.bf16.msra.mxu3 %v6796_v47  ;;  %1508 = vmatmul.bf16.vlgmr.msrb.gmra.mxu0 %v8905_v41  ;;  %v6880_v47 = vor.u32 %v7853_v52, %v6879_v58  ;;  %v6847_v63 = vld [vmem:[#allocation4 + $0x168] sm:$0xf]  ;;  %v9026_v52 = vperm.slane %v9016_v4, 1 }
 0x2af   : > { %1597 = vmatmul.bf16.vlgmr.msrb.gmra.mxu1 %v8870_v57  ;;  %1856 = vmatpush.bf16.msra.mxu0 %v6784_v28  ;;  %v7817_v28 = vld [vmem:[#allocation4 + $0x94] sm:$0xf0] }
 0x2b0   : > { %1686 = vmatmul.bf16.vlgmr.msra.gmra.mxu2 %v8905_v41  ;;  %1945 = vmatpush.bf16.msra.mxu1 %v6912_v29  ;;  %v6868_v29 = vor.u32 %v7847_v24, %v6865_v40  ;;  %v6736_v49 = vor.u32 %v7817_v28, %v6735_v2  ;;  %v6833_v40 = vld [vmem:[#allocation4 + $0x158] sm:$0xf0] }
 0x2b1   : > { %2034 = vmatpush.bf16.msrb.mxu2 %v6788_v15  ;;  %1775 = vmatmul.bf16.vlgmr.msra.gmra.mxu3 %v8870_v57  ;;  %v7815_v15 = vld [vmem:[#allocation4 + $0x8c] sm:$0xf] }
 0x2b2   : > { %2123 = vmatpush.bf16.msrb.mxu3 %v6916_v25  ;;  %v6740_v25 = vor.u32 %v7815_v15, %v6737_v18  ;;  %v6705_v15 = vld [vmem:[#allocation4 + $0x58] sm:$0xf0]  ;;  %v7839_v18 = vld [vmem:[#allocation4 + $0x14c] sm:$0xf] }
 0x2b3   : > { %1857 = vmatpush.bf16.msra.mxu0 %v6768_v54  ;;  %v6849_v54 = vld [vmem:[#allocation4 + $0x178] sm:$0xf0] }
 0x2b4   : > { %1946 = vmatpush.bf16.msra.mxu1 %v6896_v14  ;;  %v6852_v55 = vor.u32 %v7843_v48, %v6849_v54  ;;  %v7813_v14 = vld [vmem:[#allocation4 + $0x74] sm:$0xf0] }
 0x2b5   : > { %2035 = vmatpush.bf16.msrb.mxu2 %v6772_v22  ;;  %v6864_v22 = vor.u32 %v7849_v37, %v6863_v36  ;;  %v6720_v0 = vor.u32 %v7813_v14, %v6719_v61  ;;  %v7809_v61 = vld [vmem:[#allocation4 + $0x54] sm:$0xf0]  ;;  %v6831_v14 = vld [vmem:[#allocation4 + $0x148] sm:$0xf] }
 0x2b6   : > { %2124 = vmatpush.bf16.msrb.mxu3 %v6900_v42  ;;  %v6724_v42 = vor.u32 %v7811_v38, %v6721_v7 }
 0x2b7   : > { %1858 = vmatpush.bf16.msra.mxu0 %v6752_v46 }
 0x2b8   : > { %1947 = vmatpush.bf16.msra.mxu1 %v6880_v47  ;;  %v7807_v47 = vld [vmem:[#allocation4 + $0x4c] sm:$0xf] }
 0x2b9   : > { %2036 = vmatpush.bf16.msrb.mxu2 %v6756_v3  ;;  %v6848_v3 = vor.u32 %v7845_v1, %v6847_v63 }
 0x2ba   : > { %2125 = vmatpush.bf16.msrb.mxu3 %v6884_v35 }
 0x2bb   : > { %1859 = vmatpush.bf16.msra.mxu0 %v6736_v49  ;;  %v6836_v49 = vor.u32 %v7839_v18, %v6833_v40 }
 0x2bc   : > { %1948 = vmatpush.bf16.msra.mxu1 %v6864_v22 }
 0x2bd   : > { %2037 = vmatpush.bf16.msrb.mxu2 %v6740_v25  ;;  %v6708_v25 = vor.u32 %v7807_v47, %v6705_v15 }
 0x2be   : > { %1513 = vmatmul.bf16.gmra.mxu0 %v8915_v45  ;;  %2126 = vmatpush.bf16.msrb.mxu3 %v6868_v29 }
 0x2bf   : > { %1602 = vmatmul.bf16.gmra.mxu1 %v8876_v62  ;;  %1860 = vmatpush.bf16.msra.mxu0 %v6720_v0 }
 0x2c0   : > { %1691 = vmatmul.bf16.gmra.mxu2 %v8915_v45  ;;  %1949 = vmatpush.bf16.msra.mxu1 %v6848_v3 }
 0x2c1   : > { %1780 = vmatmul.bf16.gmra.mxu3 %v8876_v62  ;;  %2038 = vmatpush.bf16.msrb.mxu2 %v6724_v42 }
 0x2c2   : > { %2127 = vmatpush.bf16.msrb.mxu3 %v6852_v55  ;;  %v6703_v55 = vld [vmem:[#allocation4 + $0x48] sm:$0xf] }
 0x2c3   : > { %v6704_v3 = vor.u32 %v7809_v61, %v6703_v55 }
 0x2c5   : > { %2039 = vmatpush.bf16.msrb.mxu2 %v6708_v25  ;;  %1861 = vmatpush.bf16.msra.mxu0 %v6704_v3 }
 0x2c6   : > { %2128 = vmatpush.bf16.msrb.mxu3 %v6836_v49 }
 0x2ce   : > { %1518 = vmatmul.bf16.gmra.mxu0 %v8923_v43 }
 0x2cf   : > { %1607 = vmatmul.bf16.gmra.mxu1 %v8882_v6 }
 0x2d0   : > { %1696 = vmatmul.bf16.gmra.mxu2 %v8923_v43 }
 0x2d1   : > { %1785 = vmatmul.bf16.gmra.mxu3 %v8882_v6 }
 0x2de   : > { %1523 = vmatmul.bf16.gmra.mxu0 %v8931_v27 }
 0x2df   : > { %1612 = vmatmul.bf16.gmra.mxu1 %v8888_v13 }
 0x2e0   : > { %1701 = vmatmul.bf16.gmra.mxu2 %v8931_v27 }
 0x2e1   : > { %1790 = vmatmul.bf16.gmra.mxu3 %v8888_v13 }
 0x2ee   : > { %1528 = vmatmul.bf16.gmra.mxu0 %v8939_v50 }
 0x2ef   : > { %1617 = vmatmul.bf16.gmra.mxu1 %v8894_v20 }
 0x2f0   : > { %1706 = vmatmul.bf16.gmra.mxu2 %v8939_v50 }
 0x2f1   : > { %1795 = vmatmul.bf16.gmra.mxu3 %v8894_v20 }
 0x2fe   : > { %1533 = vmatmul.bf16.gmra.mxu0 %v8947_v11 }
 0x2ff   : > { %1622 = vmatmul.bf16.gmra.mxu1 %v8901_v33 }
 0x300   : > { %1711 = vmatmul.bf16.gmra.mxu2 %v8947_v11 }
 0x301   : > { %1800 = vmatmul.bf16.gmra.mxu3 %v8901_v33 }
 0x30e   : > { %1538 = vmatmul.bf16.gmra.mxu0 %v8955_v51 }
 0x30f   : > { %1627 = vmatmul.bf16.gmra.mxu1 %v8911_v30 }
 0x310   : > { %1716 = vmatmul.bf16.gmra.mxu2 %v8955_v51 }
 0x311   : > { %1805 = vmatmul.bf16.gmra.mxu3 %v8911_v30 }
 0x31e   : > { %1543 = vmatmul.bf16.gmra.mxu0 %v8963_v23 }
 0x31f   : > { %1632 = vmatmul.bf16.gmra.mxu1 %v8919_v19 }
 0x320   : > { %1721 = vmatmul.bf16.gmra.mxu2 %v8963_v23 }
 0x321   : > { %1810 = vmatmul.bf16.gmra.mxu3 %v8919_v19 }
 0x32b   : > { %v1509_v9 = vpop.f32.mrf.mxu0 }
 0x32c   : > { %v1510_v35 = vadd.f32 %v1509_v9, %v9019_v5  ;;  %v1598_v46 = vpop.f32.mrf.mxu1  ;;  %v7841_v9 = vld [vmem:[#allocation4 + $0x154] sm:$0xf0] }
 0x32d   : > { %v6832_v47 = vor.u32 %v7841_v9, %v6831_v14 }
 0x32e   : > { %v1599_v58 = vadd.f32 %v1598_v46, %v1510_v35  ;;  %1548 = vmatmul.bf16.gmra.mxu0 %v8819_v8 }
 0x32f   : > { %1637 = vmatmul.bf16.gmra.mxu1 %v8927_v56 }
 0x330   : > { %1726 = vmatmul.bf16.gmra.mxu2 %v8819_v8  ;;  %v2212_v7 = vmax.f32 %v1599_v58, 0.0  ;;  %1950 = vmatpush.bf16.msra.mxu1 %v6832_v47  ;;  %v7803_v47 = vld [vmem:[#allocation4 + $0x2c] sm:$0xf] }
 0x331   : > { %1815 = vmatmul.bf16.gmra.mxu3 %v8927_v56 }
 0x333   : > { %v1687_v24 = vpop.f32.mrf.mxu2  ;;  %v1511_v29 = vpop.f32.mrf.mxu0 }
 0x334   : > { %v1688_v2 = vadd.f32 %v1687_v24, %v9026_v52  ;;  %v1776_v28 = vpop.f32.mrf.mxu3  ;;  %v1512_v36 = vadd.f32 %v1511_v29, %v9019_v5  ;;  %v1600_v37 = vpop.f32.mrf.mxu1 }
 0x336   : > { %v1777_v22 = vadd.f32 %v1776_v28, %v1688_v2  ;;  %v1601_v38 = vadd.f32 %v1600_v37, %v1512_v36 }
 0x338   : > { %v2216_v48 = vmax.f32 %v1601_v38, 0.0  ;;  %v2213_v18 = vmax.f32 %v1777_v22, 0.0 }
 0x33a   : > { %v9031_v42 = vpack.c.bf16 %v2216_v48, %v2212_v7 }
 0x33b   : > { %v1689_v54 = vpop.f32.mrf.mxu2  ;;  %v1514_v1 = vpop.f32.mrf.mxu0 }
 0x33c   : > { %10420 = vst [vmem:[#allocation48_spill] sm:$0xff] %v9031_v42  ;;  %v1690_v63 = vadd.f32 %v1689_v54, %v9026_v52  ;;  %v1778_v0 = vpop.f32.mrf.mxu3  ;;  %v1515_v35 = vadd.f32 %v1514_v1, %v9019_v5  ;;  %v1603_v46 = vpop.f32.mrf.mxu1 }
 0x33e   : > { %v1779_v15 = vadd.f32 %v1778_v0, %v1690_v63  ;;  %v1604_v58 = vadd.f32 %v1603_v46, %v1515_v35  ;;  %1553 = vmatmul.bf16.gmra.mxu0 %v8825_v16 }
 0x33f   : > { %1642 = vmatmul.bf16.gmra.mxu1 %v8935_v17 }
 0x340   : > { %v2217_v24 = vmax.f32 %v1779_v15, 0.0  ;;  %1731 = vmatmul.bf16.gmra.mxu2 %v8825_v16  ;;  %v2220_v22 = vmax.f32 %v1604_v58, 0.0  ;;  %v6689_v15 = vld [vmem:[#allocation4 + $0x38] sm:$0xf0]  ;;  %v7835_v58 = vld [vmem:[#allocation4 + $0x12c] sm:$0xf] }
 0x341   : > { %1820 = vmatmul.bf16.gmra.mxu3 %v8935_v17 }
 0x342   : > { %v9039_v25 = vpack.c.bf16 %v2217_v24, %v2213_v18  ;;  %v6692_v24 = vor.u32 %v7803_v47, %v6689_v15  ;;  %v7837_v15 = vld [vmem:[#allocation4 + $0x134] sm:$0xf0] }
 0x343   : > { %v1692_v40 = vpop.f32.mrf.mxu2  ;;  %v1516_v29 = vpop.f32.mrf.mxu0 }
 0x344   : > { %10421 = vst [vmem:[#allocation49_spill] sm:$0xff] %v9039_v25  ;;  %v1693_v2 = vadd.f32 %v1692_v40, %v9026_v52  ;;  %v1781_v28 = vpop.f32.mrf.mxu3  ;;  %v1517_v49 = vadd.f32 %v1516_v29, %v9019_v5  ;;  %v1605_v36 = vpop.f32.mrf.mxu1  ;;  %v6817_v40 = vld [vmem:[#allocation4 + $0x138] sm:$0xf0]  ;;  %2040 = vmatpush.bf16.msrb.mxu2 %v6692_v24 }
 0x346   : > { %v1782_v37 = vadd.f32 %v1781_v28, %v1693_v2  ;;  %v1606_v38 = vadd.f32 %v1605_v36, %v1517_v49  ;;  %v6820_v49 = vor.u32 %v7835_v58, %v6817_v40 }
 0x348   : > { %v2224_v7 = vmax.f32 %v1606_v38, 0.0  ;;  %v2221_v9 = vmax.f32 %v1782_v37, 0.0  ;;  %2129 = vmatpush.bf16.msrb.mxu3 %v6820_v49 }
 0x34a   : > { %v9043_v48 = vpack.c.bf16 %v2224_v7, %v2220_v22 }
 0x34b   : > { %v1694_v54 = vpop.f32.mrf.mxu2  ;;  %v1519_v14 = vpop.f32.mrf.mxu0 }
 0x34c   : > { %v1695_v55 = vadd.f32 %v1694_v54, %v9026_v52  ;;  %v1783_v61 = vpop.f32.mrf.mxu3  ;;  %v1520_v63 = vadd.f32 %v1519_v14, %v9019_v5  ;;  %v1608_v0 = vpop.f32.mrf.mxu1  ;;  %v6687_v14 = vld [vmem:[#allocation4 + $0x28] sm:$0xf] }
 0x34e   : > { %v1784_v1 = vadd.f32 %v1783_v61, %v1695_v55  ;;  %v1609_v3 = vadd.f32 %v1608_v0, %v1520_v63  ;;  %1558 = vmatmul.bf16.gmra.mxu0 %v8831_v21  ;;  %v7805_v63 = vld [vmem:[#allocation4 + $0x34] sm:$0xf0]  ;;  %v6815_v0 = vld [vmem:[#allocation4 + $0x128] sm:$0xf] }
 0x34f   : > { %1647 = vmatmul.bf16.gmra.mxu1 %v8943_v60  ;;  %v6688_v47 = vor.u32 %v7805_v63, %v6687_v14  ;;  %v6816_v24 = vor.u32 %v7837_v15, %v6815_v0 }
 0x350   : > { %v2225_v35 = vmax.f32 %v1784_v1, 0.0  ;;  %1736 = vmatmul.bf16.gmra.mxu2 %v8831_v21  ;;  %v2228_v7 = vmax.f32 %v1609_v3, 0.0 }
 0x351   : > { %1825 = vmatmul.bf16.gmra.mxu3 %v8943_v60  ;;  %1862 = vmatpush.bf16.msra.mxu0 %v6688_v47 }
 0x352   : > { %v9051_v46 = vpack.c.bf16 %v2225_v35, %v2221_v9  ;;  %1951 = vmatpush.bf16.msra.mxu1 %v6816_v24 }
 0x353   : > { %v1697_v18 = vpop.f32.mrf.mxu2  ;;  %v1521_v29 = vpop.f32.mrf.mxu0 }
 0x354   : > { %v1698_v2 = vadd.f32 %v1697_v18, %v9026_v52  ;;  %v1786_v28 = vpop.f32.mrf.mxu3  ;;  %v1522_v36 = vadd.f32 %v1521_v29, %v9019_v5  ;;  %v1610_v37 = vpop.f32.mrf.mxu1 }
 0x356   : > { %v1787_v38 = vadd.f32 %v1786_v28, %v1698_v2  ;;  %v1611_v22 = vadd.f32 %v1610_v37, %v1522_v36 }
 0x358   : > { %v2232_v54 = vmax.f32 %v1611_v22, 0.0  ;;  %v2229_v2 = vmax.f32 %v1787_v38, 0.0 }
 0x35a   : > { %v9055_v55 = vpack.c.bf16 %v2232_v54, %v2228_v7 }
 0x35b   : > { %v1699_v61 = vpop.f32.mrf.mxu2  ;;  %v1524_v35 = vpop.f32.mrf.mxu0 }
 0x35c   : > { %v1700_v1 = vadd.f32 %v1699_v61, %v9026_v52  ;;  %v1788_v9 = vpop.f32.mrf.mxu3  ;;  %v1525_v58 = vadd.f32 %v1524_v35, %v9019_v5  ;;  %v1613_v18 = vpop.f32.mrf.mxu1 }
 0x35e   : > { %v1789_v40 = vadd.f32 %v1788_v9, %v1700_v1  ;;  %v1614_v3 = vadd.f32 %v1613_v18, %v1525_v58  ;;  %1563 = vmatmul.bf16.gmra.mxu0 %v8837_v26 }
 0x35f   : > { %1652 = vmatmul.bf16.gmra.mxu1 %v8951_v32 }
 0x360   : > { %v2233_v28 = vmax.f32 %v1789_v40, 0.0  ;;  %1741 = vmatmul.bf16.gmra.mxu2 %v8837_v26  ;;  %v2236_v38 = vmax.f32 %v1614_v3, 0.0 }
 0x361   : > { %1830 = vmatmul.bf16.gmra.mxu3 %v8951_v32 }
 0x362   : > { %v9063_v29 = vpack.c.bf16 %v2233_v28, %v2229_v2  ;;  %v7799_v28 = vld [vmem:[#allocation4 + $0xc] sm:$0xf] }
 0x363   : > { %v1702_v49 = vpop.f32.mrf.mxu2  ;;  %v1526_v22 = vpop.f32.mrf.mxu0 }
 0x364   : > { %v1703_v36 = vadd.f32 %v1702_v49, %v9026_v52  ;;  %v1791_v37 = vpop.f32.mrf.mxu3  ;;  %v1527_v7 = vadd.f32 %v1526_v22, %v9019_v5  ;;  %v1615_v54 = vpop.f32.mrf.mxu1  ;;  %v6673_v49 = vld [vmem:[#allocation4 + $0x18] sm:$0xf0] }
 0x365   : > { %v6676_v22 = vor.u32 %v7799_v28, %v6673_v49  ;;  %v6799_v28 = vld [vmem:[#allocation4 + $0x108] sm:$0xf] }
 0x366   : > { %v1792_v61 = vadd.f32 %v1791_v37, %v1703_v36  ;;  %v1616_v14 = vadd.f32 %v1615_v54, %v1527_v7  ;;  %v7831_v36 = vld [vmem:[#allocation4 + $0x10c] sm:$0xf]  ;;  %v6801_v7 = vld [vmem:[#allocation4 + $0x118] sm:$0xf0] }
 0x367   : > { %2041 = vmatpush.bf16.msrb.mxu2 %v6676_v22 }
 0x368   : > { %v2240_v63 = vmax.f32 %v1616_v14, 0.0  ;;  %v2237_v40 = vmax.f32 %v1792_v61, 0.0  ;;  %v6804_v61 = vor.u32 %v7831_v36, %v6801_v7  ;;  %v7833_v7 = vld [vmem:[#allocation4 + $0x114] sm:$0xf0] }
 0x36a   : > { %v9067_v0 = vpack.c.bf16 %v2240_v63, %v2236_v38  ;;  %2130 = vmatpush.bf16.msrb.mxu3 %v6804_v61 }
 0x36b   : > { %v1704_v1 = vpop.f32.mrf.mxu2  ;;  %v1529_v47 = vpop.f32.mrf.mxu0 }
 0x36c   : > { %v1705_v9 = vadd.f32 %v1704_v1, %v9026_v52  ;;  %v1793_v35 = vpop.f32.mrf.mxu3  ;;  %v1530_v15 = vadd.f32 %v1529_v47, %v9019_v5  ;;  %v1618_v58 = vpop.f32.mrf.mxu1 }
 0x36e   : > { %v1794_v18 = vadd.f32 %v1793_v35, %v1705_v9  ;;  %v1619_v24 = vadd.f32 %v1618_v58, %v1530_v15  ;;  %1568 = vmatmul.bf16.gmra.mxu0 %v8843_v34 }
 0x36f   : > { %1657 = vmatmul.bf16.gmra.mxu1 %v8959_v12 }
 0x370   : > { %v2241_v2 = vmax.f32 %v1794_v18, 0.0  ;;  %1746 = vmatmul.bf16.gmra.mxu2 %v8843_v34  ;;  %v2244_v47 = vmax.f32 %v1619_v24, 0.0 }
 0x371   : > { %1835 = vmatmul.bf16.gmra.mxu3 %v8959_v12 }
 0x372   : > { %v9075_v3 = vpack.c.bf16 %v2241_v2, %v2237_v40  ;;  %v6671_v40 = vld [vmem:[#allocation4 + $0x8] sm:$0xf]  ;;  %v7801_v2 = vld [vmem:[#allocation4 + $0x14] sm:$0xf0] }
 0x373   : > { %v1707_v37 = vpop.f32.mrf.mxu2  ;;  %v1531_v38 = vpop.f32.mrf.mxu0  ;;  %v6672_v36 = vor.u32 %v7801_v2, %v6671_v40 }
 0x374   : > { %10422 = vst [vmem:[#allocation50_spill] sm:$0xff] %v9075_v3  ;;  %v1708_v54 = vadd.f32 %v1707_v37, %v9026_v52  ;;  %v1796_v14 = vpop.f32.mrf.mxu3  ;;  %v1532_v63 = vadd.f32 %v1531_v38, %v9019_v5  ;;  %v1620_v1 = vpop.f32.mrf.mxu1 }
 0x375   : > { %1863 = vmatpush.bf16.msra.mxu0 %v6672_v36 }
 0x376   : > { %v1797_v9 = vadd.f32 %v1796_v14, %v1708_v54  ;;  %v1621_v35 = vadd.f32 %v1620_v1, %v1532_v63  ;;  %v6800_v54 = vor.u32 %v7833_v7, %v6799_v28 }
 0x378   : > { %v2248_v15 = vmax.f32 %v1621_v35, 0.0  ;;  %1952 = vmatpush.bf16.msra.mxu1 %v6800_v54  ;;  %v2245_v61 = vmax.f32 %v1797_v9, 0.0 }
 0x37a   : > { %v9079_v58 = vpack.c.bf16 %v2248_v15, %v2244_v47 }
 0x37b   : > { %v1709_v18 = vpop.f32.mrf.mxu2  ;;  %v1534_v3 = vpop.f32.mrf.mxu0 }
 0x37c   : > { %v1710_v49 = vadd.f32 %v1709_v18, %v9026_v52  ;;  %v1798_v37 = vpop.f32.mrf.mxu3  ;;  %v1535_v38 = vadd.f32 %v1534_v3, %v9019_v5  ;;  %v1623_v22 = vpop.f32.mrf.mxu1 }
 0x37e   : > { %v1799_v14 = vadd.f32 %v1798_v37, %v1710_v49  ;;  %v1624_v24 = vadd.f32 %v1623_v22, %v1535_v38  ;;  %1573 = vmatmul.bf16.gmra.mxu0 %v8849_v39 }
 0x37f   : > { %1662 = vmatmul.bf16.gmra.mxu1 %v8966_v31 }
 0x380   : > { %v2249_v63 = vmax.f32 %v1799_v14, 0.0  ;;  %1751 = vmatmul.bf16.gmra.mxu2 %v8849_v39  ;;  %v2252_v9 = vmax.f32 %v1624_v24, 0.0 }
 0x381   : > { %1840 = vmatmul.bf16.gmra.mxu3 %v8966_v31 }
 0x382   : > { %v9087_v1 = vpack.c.bf16 %v2249_v63, %v2245_v61 }
 0x383   : > { %v1712_v35 = vpop.f32.mrf.mxu2  ;;  %v1536_v15 = vpop.f32.mrf.mxu0 }
 0x384   : > { %v1713_v3 = vadd.f32 %v1712_v35, %v9026_v52  ;;  %v1801_v47 = vpop.f32.mrf.mxu3  ;;  %v1537_v18 = vadd.f32 %v1536_v15, %v9019_v5  ;;  %v1625_v40 = vpop.f32.mrf.mxu1 }
 0x386   : > { %v1802_v2 = vadd.f32 %v1801_v47, %v1713_v3  ;;  %v1626_v28 = vadd.f32 %v1625_v40, %v1537_v18 }
 0x388   : > { %v2256_v49 = vmax.f32 %v1626_v28, 0.0  ;;  %v2253_v35 = vmax.f32 %v1802_v2, 0.0 }
 0x38a   : > { %v9091_v37 = vpack.c.bf16 %v2256_v49, %v2252_v9 }
 0x38b   : > { %v1714_v36 = vpop.f32.mrf.mxu2  ;;  %v1539_v22 = vpop.f32.mrf.mxu0 }
 0x38c   : > { %10423 = vst [vmem:[#allocation51_spill] sm:$0xff] %v9091_v37  ;;  %v1715_v7 = vadd.f32 %v1714_v36, %v9026_v52  ;;  %v1803_v38 = vpop.f32.mrf.mxu3  ;;  %v1540_v54 = vadd.f32 %v1539_v22, %v9019_v5  ;;  %v1628_v14 = vpop.f32.mrf.mxu1 }
 0x38e   : > { %v1804_v61 = vadd.f32 %v1803_v38, %v1715_v7  ;;  %v1629_v63 = vadd.f32 %v1628_v14, %v1540_v54  ;;  %1578 = vmatmul.bf16.gmra.mxu0 %v8855_v44 }
 0x38f   : > { %1667 = vmatmul.bf16.gmra.mxu1 %v8970_v59 }
 0x390   : > { %v2257_v15 = vmax.f32 %v1804_v61, 0.0  ;;  %1756 = vmatmul.bf16.gmra.mxu2 %v8855_v44  ;;  %v2260_v2 = vmax.f32 %v1629_v63, 0.0 }
 0x391   : > { %1845 = vmatmul.bf16.gmra.mxu3 %v8970_v59 }
 0x392   : > { %v9099_v24 = vpack.c.bf16 %v2257_v15, %v2253_v35 }
 0x393   : > { %v1717_v3 = vpop.f32.mrf.mxu2  ;;  %v1541_v40 = vpop.f32.mrf.mxu0 }
 0x394   : > { %10424 = vst [vmem:[#allocation52_spill] sm:$0xff] %v9099_v24  ;;  %v1718_v47 = vadd.f32 %v1717_v3, %v9026_v52  ;;  %v1806_v18 = vpop.f32.mrf.mxu3  ;;  %v1542_v28 = vadd.f32 %v1541_v40, %v9019_v5  ;;  %v1630_v9 = vpop.f32.mrf.mxu1 }
 0x396   : > { %v1807_v49 = vadd.f32 %v1806_v18, %v1718_v47  ;;  %v1631_v36 = vadd.f32 %v1630_v9, %v1542_v28 }
 0x398   : > { %v2264_v7 = vmax.f32 %v1631_v36, 0.0  ;;  %v2261_v40 = vmax.f32 %v1807_v49, 0.0 }
 0x39a   : > { %v9103_v38 = vpack.c.bf16 %v2264_v7, %v2260_v2 }
 0x39b   : > { %v1719_v22 = vpop.f32.mrf.mxu2  ;;  %v1544_v61 = vpop.f32.mrf.mxu0 }
 0x39c   : > { %10425 = vst [vmem:[#allocation53_spill] sm:$0xff] %v9103_v38  ;;  %v1720_v54 = vadd.f32 %v1719_v22, %v9026_v52  ;;  %v1808_v14 = vpop.f32.mrf.mxu3  ;;  %v1545_v35 = vadd.f32 %v1544_v61, %v9019_v5  ;;  %v1633_v15 = vpop.f32.mrf.mxu1 }
 0x39e   : > { %v1809_v3 = vadd.f32 %v1808_v14, %v1720_v54  ;;  %v1634_v24 = vadd.f32 %v1633_v15, %v1545_v35  ;;  %1583 = vmatmul.bf16.gmra.mxu0 %v8864_v53 }
 0x39f   : > { %1672 = vmatmul.bf16.gmra.mxu1 %v8974_v10 }
 0x3a0   : > { %v2265_v37 = vmax.f32 %v1809_v3, 0.0  ;;  %1761 = vmatmul.bf16.gmra.mxu2 %v8864_v53  ;;  %v2268_v49 = vmax.f32 %v1634_v24, 0.0 }
 0x3a1   : > { %1850 = vmatmul.bf16.gmra.mxu3 %v8974_v10 }
 0x3a2   : > { %v9111_v63 = vpack.c.bf16 %v2265_v37, %v2261_v40 }
 0x3a3   : > { %v1722_v47 = vpop.f32.mrf.mxu2  ;;  %v1546_v9 = vpop.f32.mrf.mxu0 }
 0x3a4   : > { %10426 = vst [vmem:[#allocation54_spill] sm:$0xff] %v9111_v63  ;;  %v1723_v18 = vadd.f32 %v1722_v47, %v9026_v52  ;;  %v1811_v28 = vpop.f32.mrf.mxu3  ;;  %v1547_v36 = vadd.f32 %v1546_v9, %v9019_v5  ;;  %v1635_v2 = vpop.f32.mrf.mxu1 }
 0x3a6   : > { %v1812_v7 = vadd.f32 %v1811_v28, %v1723_v18  ;;  %v1636_v22 = vadd.f32 %v1635_v2, %v1547_v36 }
 0x3a8   : > { %v2272_v54 = vmax.f32 %v1636_v22, 0.0  ;;  %v2269_v9 = vmax.f32 %v1812_v7, 0.0 }
 0x3aa   : > { %v9115_v14 = vpack.c.bf16 %v2272_v54, %v2268_v49 }
 0x3ab   : > { %v1724_v61 = vpop.f32.mrf.mxu2  ;;  %v1549_v37 = vpop.f32.mrf.mxu0 }
 0x3ac   : > { %v1725_v35 = vadd.f32 %v1724_v61, %v9026_v52  ;;  %v1813_v15 = vpop.f32.mrf.mxu3  ;;  %v1550_v3 = vadd.f32 %v1549_v37, %v9019_v5  ;;  %v1638_v40 = vpop.f32.mrf.mxu1 }
 0x3ae   : > { %v1814_v47 = vadd.f32 %v1813_v15, %v1725_v35  ;;  %v1639_v63 = vadd.f32 %v1638_v40, %v1550_v3  ;;  %1864 = vmatmul.bf16.vlgmr.msra.gmra.mxu0 %v8905_v41 }
 0x3af   : > { %1953 = vmatmul.bf16.vlgmr.msra.gmra.mxu1 %v8870_v57 }
 0x3b0   : > { %v2273_v38 = vmax.f32 %v1814_v47, 0.0  ;;  %2042 = vmatmul.bf16.vlgmr.msrb.gmra.mxu2 %v8905_v41  ;;  %v2276_v7 = vmax.f32 %v1639_v63, 0.0 }
 0x3b1   : > { %2131 = vmatmul.bf16.vlgmr.msrb.gmra.mxu3 %v8870_v57 }
 0x3b2   : > { %v9123_v24 = vpack.c.bf16 %v2273_v38, %v2269_v9 }
 0x3b3   : > { %v1727_v18 = vpop.f32.mrf.mxu2  ;;  %v1551_v2 = vpop.f32.mrf.mxu0 }
 0x3b4   : > { %v1728_v28 = vadd.f32 %v1727_v18, %v9026_v52  ;;  %v1816_v36 = vpop.f32.mrf.mxu3  ;;  %v1552_v22 = vadd.f32 %v1551_v2, %v9019_v5  ;;  %v1640_v49 = vpop.f32.mrf.mxu1 }
 0x3b6   : > { %v1817_v54 = vadd.f32 %v1816_v36, %v1728_v28  ;;  %v1641_v61 = vadd.f32 %v1640_v49, %v1552_v22 }
 0x3b8   : > { %v2280_v35 = vmax.f32 %v1641_v61, 0.0  ;;  %v2277_v18 = vmax.f32 %v1817_v54, 0.0 }
 0x3ba   : > { %v9127_v15 = vpack.c.bf16 %v2280_v35, %v2276_v7 }
 0x3bb   : > { %v1729_v37 = vpop.f32.mrf.mxu2  ;;  %v1554_v38 = vpop.f32.mrf.mxu0 }
 0x3bc   : > { %v1730_v41 = vadd.f32 %v1729_v37, %v9026_v52  ;;  %v1818_v57 = vpop.f32.mrf.mxu3  ;;  %v1555_v3 = vadd.f32 %v1554_v38, %v9019_v5  ;;  %v1643_v40 = vpop.f32.mrf.mxu1 }
 0x3be   : > { %v1819_v47 = vadd.f32 %v1818_v57, %v1730_v41  ;;  %v1644_v9 = vadd.f32 %v1643_v40, %v1555_v3  ;;  %1869 = vmatmul.bf16.gmra.mxu0 %v8915_v45 }
 0x3bf   : > { %1958 = vmatmul.bf16.gmra.mxu1 %v8876_v62 }
 0x3c0   : > { %v2281_v2 = vmax.f32 %v1819_v47, 0.0  ;;  %2047 = vmatmul.bf16.gmra.mxu2 %v8915_v45  ;;  %v2284_v54 = vmax.f32 %v1644_v9, 0.0 }
 0x3c1   : > { %2136 = vmatmul.bf16.gmra.mxu3 %v8876_v62 }
 0x3c2   : > { %v9135_v63 = vpack.c.bf16 %v2281_v2, %v2277_v18 }
 0x3c3   : > { %v1732_v28 = vpop.f32.mrf.mxu2  ;;  %v1556_v49 = vpop.f32.mrf.mxu0 }
 0x3c4   : > { %v1733_v36 = vadd.f32 %v1732_v28, %v9026_v52  ;;  %v1821_v22 = vpop.f32.mrf.mxu3  ;;  %v1557_v61 = vadd.f32 %v1556_v49, %v9019_v5  ;;  %v1645_v7 = vpop.f32.mrf.mxu1 }
 0x3c6   : > { %v1822_v35 = vadd.f32 %v1821_v22, %v1733_v36  ;;  %v1646_v37 = vadd.f32 %v1645_v7, %v1557_v61 }
 0x3c8   : > { %v2288_v41 = vmax.f32 %v1646_v37, 0.0  ;;  %v2285_v28 = vmax.f32 %v1822_v35, 0.0 }
 0x3ca   : > { %v9139_v57 = vpack.c.bf16 %v2288_v41, %v2284_v54 }
 0x3cb   : > { %v1734_v38 = vpop.f32.mrf.mxu2  ;;  %v1559_v3 = vpop.f32.mrf.mxu0 }
 0x3cc   : > { %v1735_v45 = vadd.f32 %v1734_v38, %v9026_v52  ;;  %v1823_v62 = vpop.f32.mrf.mxu3  ;;  %v1560_v40 = vadd.f32 %v1559_v3, %v9019_v5  ;;  %v1648_v47 = vpop.f32.mrf.mxu1 }
 0x3ce   : > { %v1824_v18 = vadd.f32 %v1823_v62, %v1735_v45  ;;  %v1649_v2 = vadd.f32 %v1648_v47, %v1560_v40  ;;  %1874 = vmatmul.bf16.gmra.mxu0 %v8923_v43 }
 0x3cf   : > { %1963 = vmatmul.bf16.gmra.mxu1 %v8882_v6 }
 0x3d0   : > { %v2289_v49 = vmax.f32 %v1824_v18, 0.0  ;;  %2052 = vmatmul.bf16.gmra.mxu2 %v8923_v43  ;;  %v2292_v35 = vmax.f32 %v1649_v2, 0.0 }
 0x3d1   : > { %2141 = vmatmul.bf16.gmra.mxu3 %v8882_v6 }
 0x3d2   : > { %v9147_v9 = vpack.c.bf16 %v2289_v49, %v2285_v28 }
 0x3d3   : > { %v1737_v36 = vpop.f32.mrf.mxu2  ;;  %v1561_v7 = vpop.f32.mrf.mxu0 }
 0x3d4   : > { %v1738_v22 = vadd.f32 %v1737_v36, %v9026_v52  ;;  %v1826_v61 = vpop.f32.mrf.mxu3  ;;  %v1562_v37 = vadd.f32 %v1561_v7, %v9019_v5  ;;  %v1650_v54 = vpop.f32.mrf.mxu1 }
 0x3d6   : > { %v1827_v41 = vadd.f32 %v1826_v61, %v1738_v22  ;;  %v1651_v38 = vadd.f32 %v1650_v54, %v1562_v37 }
 0x3d8   : > { %v2296_v45 = vmax.f32 %v1651_v38, 0.0  ;;  %v2293_v36 = vmax.f32 %v1827_v41, 0.0 }
 0x3da   : > { %v9151_v62 = vpack.c.bf16 %v2296_v45, %v2292_v35 }
 0x3db   : > { %v1739_v3 = vpop.f32.mrf.mxu2  ;;  %v1564_v40 = vpop.f32.mrf.mxu0 }
 0x3dc   : > { %v1740_v43 = vadd.f32 %v1739_v3, %v9026_v52  ;;  %v1828_v6 = vpop.f32.mrf.mxu3  ;;  %v1565_v47 = vadd.f32 %v1564_v40, %v9019_v5  ;;  %v1653_v18 = vpop.f32.mrf.mxu1 }
 0x3de   : > { %v1829_v28 = vadd.f32 %v1828_v6, %v1740_v43  ;;  %v1654_v49 = vadd.f32 %v1653_v18, %v1565_v47  ;;  %1879 = vmatmul.bf16.gmra.mxu0 %v8931_v27 }
 0x3df   : > { %1968 = vmatmul.bf16.gmra.mxu1 %v8888_v13 }
 0x3e0   : > { %v2297_v7 = vmax.f32 %v1829_v28, 0.0  ;;  %2057 = vmatmul.bf16.gmra.mxu2 %v8931_v27  ;;  %v2300_v41 = vmax.f32 %v1654_v49, 0.0 }
 0x3e1   : > { %2146 = vmatmul.bf16.gmra.mxu3 %v8888_v13 }
 0x3e2   : > { %v9159_v2 = vpack.c.bf16 %v2297_v7, %v2293_v36 }
 0x3e3   : > { %v1742_v22 = vpop.f32.mrf.mxu2  ;;  %v1566_v54 = vpop.f32.mrf.mxu0 }
 0x3e4   : > { %v1743_v61 = vadd.f32 %v1742_v22, %v9026_v52  ;;  %v1831_v37 = vpop.f32.mrf.mxu3  ;;  %v1567_v38 = vadd.f32 %v1566_v54, %v9019_v5  ;;  %v1655_v35 = vpop.f32.mrf.mxu1 }
 0x3e6   : > { %v1832_v45 = vadd.f32 %v1831_v37, %v1743_v61  ;;  %v1656_v3 = vadd.f32 %v1655_v35, %v1567_v38 }
 0x3e8   : > { %v2304_v43 = vmax.f32 %v1656_v3, 0.0  ;;  %v2301_v22 = vmax.f32 %v1832_v45, 0.0 }
 0x3ea   : > { %v9163_v6 = vpack.c.bf16 %v2304_v43, %v2300_v41 }
 0x3eb   : > { %v1744_v40 = vpop.f32.mrf.mxu2  ;;  %v1569_v47 = vpop.f32.mrf.mxu0 }
 0x3ec   : > { %10427 = vst [vmem:[#allocation55_spill] sm:$0xff] %v9163_v6  ;;  %v1745_v27 = vadd.f32 %v1744_v40, %v9026_v52  ;;  %v1833_v13 = vpop.f32.mrf.mxu3  ;;  %v1570_v18 = vadd.f32 %v1569_v47, %v9019_v5  ;;  %v1658_v28 = vpop.f32.mrf.mxu1 }
 0x3ee   : > { %v1834_v36 = vadd.f32 %v1833_v13, %v1745_v27  ;;  %v1659_v7 = vadd.f32 %v1658_v28, %v1570_v18  ;;  %1884 = vmatmul.bf16.gmra.mxu0 %v8939_v50 }
 0x3ef   : > { %1973 = vmatmul.bf16.gmra.mxu1 %v8894_v20 }
 0x3f0   : > { %v2305_v54 = vmax.f32 %v1834_v36, 0.0  ;;  %2062 = vmatmul.bf16.gmra.mxu2 %v8939_v50  ;;  %v2308_v45 = vmax.f32 %v1659_v7, 0.0 }
 0x3f1   : > { %2151 = vmatmul.bf16.gmra.mxu3 %v8894_v20 }
 0x3f2   : > { %v9171_v49 = vpack.c.bf16 %v2305_v54, %v2301_v22 }
 0x3f3   : > { %v1747_v61 = vpop.f32.mrf.mxu2  ;;  %v1571_v35 = vpop.f32.mrf.mxu0 }
 0x3f4   : > { %10428 = vst [vmem:[#allocation56_spill] sm:$0xff] %v9171_v49  ;;  %v1748_v37 = vadd.f32 %v1747_v61, %v9026_v52  ;;  %v1836_v38 = vpop.f32.mrf.mxu3  ;;  %v1572_v3 = vadd.f32 %v1571_v35, %v9019_v5  ;;  %v1660_v41 = vpop.f32.mrf.mxu1 }
 0x3f6   : > { %v1837_v43 = vadd.f32 %v1836_v38, %v1748_v37  ;;  %v1661_v40 = vadd.f32 %v1660_v41, %v1572_v3 }
 0x3f8   : > { %v2312_v27 = vmax.f32 %v1661_v40, 0.0  ;;  %v2309_v61 = vmax.f32 %v1837_v43, 0.0 }
 0x3fa   : > { %v9175_v13 = vpack.c.bf16 %v2312_v27, %v2308_v45 }
 0x3fb   : > { %v1749_v47 = vpop.f32.mrf.mxu2  ;;  %v1574_v18 = vpop.f32.mrf.mxu0 }
 0x3fc   : > { %10429 = vst [vmem:[#allocation57_spill] sm:$0xff] %v9175_v13  ;;  %v1750_v50 = vadd.f32 %v1749_v47, %v9026_v52  ;;  %v1838_v20 = vpop.f32.mrf.mxu3  ;;  %v1575_v28 = vadd.f32 %v1574_v18, %v9019_v5  ;;  %v1663_v36 = vpop.f32.mrf.mxu1 }
 0x3fe   : > { %v1839_v22 = vadd.f32 %v1838_v20, %v1750_v50  ;;  %v1664_v54 = vadd.f32 %v1663_v36, %v1575_v28  ;;  %1889 = vmatmul.bf16.gmra.mxu0 %v8947_v11 }
 0x3ff   : > { %1978 = vmatmul.bf16.gmra.mxu1 %v8901_v33 }
 0x400   : > { %v2313_v35 = vmax.f32 %v1839_v22, 0.0  ;;  %2067 = vmatmul.bf16.gmra.mxu2 %v8947_v11  ;;  %v2316_v43 = vmax.f32 %v1664_v54, 0.0 }
 0x401   : > { %2156 = vmatmul.bf16.gmra.mxu3 %v8901_v33 }
 0x402   : > { %v9183_v7 = vpack.c.bf16 %v2313_v35, %v2309_v61 }
 0x403   : > { %v1752_v37 = vpop.f32.mrf.mxu2  ;;  %v1576_v41 = vpop.f32.mrf.mxu0 }
 0x404   : > { %10430 = vst [vmem:[#allocation58_spill] sm:$0xff] %v9183_v7  ;;  %v1753_v38 = vadd.f32 %v1752_v37, %v9026_v52  ;;  %v1841_v3 = vpop.f32.mrf.mxu3  ;;  %v1577_v40 = vadd.f32 %v1576_v41, %v9019_v5  ;;  %v1665_v45 = vpop.f32.mrf.mxu1 }
 0x406   : > { %v1842_v27 = vadd.f32 %v1841_v3, %v1753_v38  ;;  %v1666_v47 = vadd.f32 %v1665_v45, %v1577_v40 }
 0x408   : > { %v2320_v50 = vmax.f32 %v1666_v47, 0.0  ;;  %v2317_v37 = vmax.f32 %v1842_v27, 0.0 }
 0x40a   : > { %v9187_v20 = vpack.c.bf16 %v2320_v50, %v2316_v43 }
 0x40b   : > { %v1754_v18 = vpop.f32.mrf.mxu2  ;;  %v1579_v28 = vpop.f32.mrf.mxu0 }
 0x40c   : > { %10431 = vst [vmem:[#allocation59_spill] sm:$0xff] %v9187_v20  ;;  %v1755_v11 = vadd.f32 %v1754_v18, %v9026_v52  ;;  %v1843_v33 = vpop.f32.mrf.mxu3  ;;  %v1580_v36 = vadd.f32 %v1579_v28, %v9019_v5  ;;  %v1668_v22 = vpop.f32.mrf.mxu1 }
 0x40e   : > { %v1844_v61 = vadd.f32 %v1843_v33, %v1755_v11  ;;  %v1669_v35 = vadd.f32 %v1668_v22, %v1580_v36  ;;  %1894 = vmatmul.bf16.gmra.mxu0 %v8955_v51 }
 0x40f   : > { %1983 = vmatmul.bf16.gmra.mxu1 %v8911_v30 }
 0x410   : > { %v2321_v41 = vmax.f32 %v1844_v61, 0.0  ;;  %2072 = vmatmul.bf16.gmra.mxu2 %v8955_v51  ;;  %v2324_v27 = vmax.f32 %v1669_v35, 0.0 }
 0x411   : > { %2161 = vmatmul.bf16.gmra.mxu3 %v8911_v30 }
 0x412   : > { %v9195_v54 = vpack.c.bf16 %v2321_v41, %v2317_v37 }
 0x413   : > { %v1757_v38 = vpop.f32.mrf.mxu2  ;;  %v1581_v45 = vpop.f32.mrf.mxu0 }
 0x414   : > { %10432 = vst [vmem:[#allocation60_spill] sm:$0xff] %v9195_v54  ;;  %v1758_v3 = vadd.f32 %v1757_v38, %v9026_v52  ;;  %v1846_v40 = vpop.f32.mrf.mxu3  ;;  %v1582_v47 = vadd.f32 %v1581_v45, %v9019_v5  ;;  %v1670_v43 = vpop.f32.mrf.mxu1 }
 0x416   : > { %v1847_v50 = vadd.f32 %v1846_v40, %v1758_v3  ;;  %v1671_v18 = vadd.f32 %v1670_v43, %v1582_v47 }
 0x418   : > { %v2328_v11 = vmax.f32 %v1671_v18, 0.0  ;;  %v2325_v38 = vmax.f32 %v1847_v50, 0.0 }
 0x41a   : > { %v9199_v33 = vpack.c.bf16 %v2328_v11, %v2324_v27 }
 0x41b   : > { %v1759_v28 = vpop.f32.mrf.mxu2  ;;  %v1584_v36 = vpop.f32.mrf.mxu0 }
 0x41c   : > { %10433 = vst [vmem:[#allocation61_spill] sm:$0xff] %v9199_v33  ;;  %v1760_v51 = vadd.f32 %v1759_v28, %v9026_v52  ;;  %v1848_v30 = vpop.f32.mrf.mxu3  ;;  %v1585_v22 = vadd.f32 %v1584_v36, %v9019_v5  ;;  %v1673_v61 = vpop.f32.mrf.mxu1 }
 0x41e   : > { %v1849_v37 = vadd.f32 %v1848_v30, %v1760_v51  ;;  %v1674_v41 = vadd.f32 %v1673_v61, %v1585_v22  ;;  %1899 = vmatmul.bf16.gmra.mxu0 %v8963_v23  ;;  %v9212_v30 = vperm.slane %v9016_v4, 2 }
 0x41f   : > { %1988 = vmatmul.bf16.gmra.mxu1 %v8919_v19 }
 0x420   : > { %v2329_v45 = vmax.f32 %v1849_v37, 0.0  ;;  %2077 = vmatmul.bf16.gmra.mxu2 %v8963_v23  ;;  %v2332_v50 = vmax.f32 %v1674_v41, 0.0 }
 0x421   : > { %2166 = vmatmul.bf16.gmra.mxu3 %v8919_v19 }
 0x422   : > { %v9207_v35 = vpack.c.bf16 %v2329_v45, %v2325_v38 }
 0x423   : > { %v1762_v3 = vpop.f32.mrf.mxu2  ;;  %v1586_v43 = vpop.f32.mrf.mxu0 }
 0x424   : > { %10434 = vst [vmem:[#allocation62_spill] sm:$0xff] %v9207_v35  ;;  %v1763_v40 = vadd.f32 %v1762_v3, %v9026_v52  ;;  %v1851_v47 = vpop.f32.mrf.mxu3  ;;  %v1587_v18 = vadd.f32 %v1586_v43, %v9019_v5  ;;  %v1675_v27 = vpop.f32.mrf.mxu1 }
 0x426   : > { %v1852_v11 = vadd.f32 %v1851_v47, %v1763_v40  ;;  %v1676_v28 = vadd.f32 %v1675_v27, %v1587_v18  ;;  %v9222_v40 = vperm.slane %v9016_v4, 3 }
 0x428   : > { %v2336_v51 = vmax.f32 %v1676_v28, 0.0  ;;  %v2333_v3 = vmax.f32 %v1852_v11, 0.0 }
 0x42a   : > { %v9214_v23 = vpack.c.bf16 %v2336_v51, %v2332_v50 }
 0x42b   : > { %v1764_v19 = vpop.f32.mrf.mxu2  ;;  %v1865_v61 = vpop.f32.mrf.mxu0 }
 0x42c   : > { %10435 = vst [vmem:[#allocation63_spill] sm:$0xff] %v9214_v23  ;;  %v1765_v36 = vadd.f32 %v1764_v19, %v9026_v52  ;;  %v1853_v22 = vpop.f32.mrf.mxu3  ;;  %v1866_v37 = vadd.f32 %v1865_v61, %v9212_v30  ;;  %v1954_v38 = vpop.f32.mrf.mxu1 }
 0x42e   : > { %v1854_v45 = vadd.f32 %v1853_v22, %v1765_v36  ;;  %v1955_v5 = vadd.f32 %v1954_v38, %v1866_v37  ;;  %1904 = vmatmul.bf16.gmra.mxu0 %v8819_v8 }
 0x42f   : > { %1993 = vmatmul.bf16.gmra.mxu1 %v8927_v56 }
 0x430   : > { %v2337_v41 = vmax.f32 %v1854_v45, 0.0  ;;  %2082 = vmatmul.bf16.gmra.mxu2 %v8819_v8  ;;  %v2214_v19 = vmax.f32 %v1955_v5, 0.0 }
 0x431   : > { %2171 = vmatmul.bf16.gmra.mxu3 %v8927_v56 }
 0x432   : > { %v9225_v52 = vpack.c.bf16 %v2337_v41, %v2333_v3 }
 0x433   : > { %v2043_v47 = vpop.f32.mrf.mxu2  ;;  %v1867_v27 = vpop.f32.mrf.mxu0 }
 0x434   : > { %10436 = vst [vmem:[#allocation64_spill] sm:$0xff] %v9225_v52  ;;  %v2044_v43 = vadd.f32 %v2043_v47, %v9222_v40  ;;  %v2132_v18 = vpop.f32.mrf.mxu3  ;;  %v1868_v28 = vadd.f32 %v1867_v27, %v9212_v30  ;;  %v1956_v11 = vpop.f32.mrf.mxu1 }
 0x436   : > { %v2133_v50 = vadd.f32 %v2132_v18, %v2044_v43  ;;  %v1957_v51 = vadd.f32 %v1956_v11, %v1868_v28 }
 0x438   : > { %v2218_v36 = vmax.f32 %v1957_v51, 0.0  ;;  %v2215_v41 = vmax.f32 %v2133_v50, 0.0 }
 0x43a   : > { %v9229_v8 = vpack.c.bf16 %v2218_v36, %v2214_v19 }
 0x43b   : > { %v2045_v4 = vpop.f32.mrf.mxu2  ;;  %v1870_v61 = vpop.f32.mrf.mxu0 }
 0x43c   : > { %10437 = vst [vmem:[#allocation65_spill] sm:$0xff] %v9229_v8  ;;  %v2046_v22 = vadd.f32 %v2045_v4, %v9222_v40  ;;  %v2134_v56 = vpop.f32.mrf.mxu3  ;;  %v1871_v37 = vadd.f32 %v1870_v61, %v9212_v30  ;;  %v1959_v38 = vpop.f32.mrf.mxu1 }
 0x43e   : > { %v2135_v45 = vadd.f32 %v2134_v56, %v2046_v22  ;;  %v1960_v3 = vadd.f32 %v1959_v38, %v1871_v37  ;;  %1909 = vmatmul.bf16.gmra.mxu0 %v8825_v16 }
 0x43f   : > { %1998 = vmatmul.bf16.gmra.mxu1 %v8935_v17 }
 0x440   : > { %v2219_v47 = vmax.f32 %v2135_v45, 0.0  ;;  %2087 = vmatmul.bf16.gmra.mxu2 %v8825_v16  ;;  %v2222_v50 = vmax.f32 %v1960_v3, 0.0 }
 0x441   : > { %2176 = vmatmul.bf16.gmra.mxu3 %v8935_v17 }
 0x442   : > { %v9237_v5 = vpack.c.bf16 %v2219_v47, %v2215_v41 }
 0x443   : > { %v2048_v43 = vpop.f32.mrf.mxu2  ;;  %v1872_v28 = vpop.f32.mrf.mxu0 }
 0x444   : > { %10438 = vst [vmem:[#allocation66_spill] sm:$0xff] %v9237_v5  ;;  %v2049_v18 = vadd.f32 %v2048_v43, %v9222_v40  ;;  %v2137_v27 = vpop.f32.mrf.mxu3  ;;  %v1873_v11 = vadd.f32 %v1872_v28, %v9212_v30  ;;  %v1961_v51 = vpop.f32.mrf.mxu1 }
 0x446   : > { %v2138_v19 = vadd.f32 %v2137_v27, %v2049_v18  ;;  %v1962_v36 = vadd.f32 %v1961_v51, %v1873_v11 }
 0x448   : > { %v2226_v4 = vmax.f32 %v1962_v36, 0.0  ;;  %v2223_v47 = vmax.f32 %v2138_v19, 0.0 }
 0x44a   : > { %v9241_v22 = vpack.c.bf16 %v2226_v4, %v2222_v50 }
 0x44b   : > { %v2050_v56 = vpop.f32.mrf.mxu2  ;;  %v1875_v61 = vpop.f32.mrf.mxu0 }
 0x44c   : > { %v2051_v16 = vadd.f32 %v2050_v56, %v9222_v40  ;;  %v2139_v17 = vpop.f32.mrf.mxu3  ;;  %v1876_v37 = vadd.f32 %v1875_v61, %v9212_v30  ;;  %v1964_v38 = vpop.f32.mrf.mxu1 }
 0x44e   : > { %v2140_v45 = vadd.f32 %v2139_v17, %v2051_v16  ;;  %v1965_v41 = vadd.f32 %v1964_v38, %v1876_v37  ;;  %1914 = vmatmul.bf16.gmra.mxu0 %v8831_v21 }
 0x44f   : > { %2003 = vmatmul.bf16.gmra.mxu1 %v8943_v60 }
 0x450   : > { %v2227_v43 = vmax.f32 %v2140_v45, 0.0  ;;  %2092 = vmatmul.bf16.gmra.mxu2 %v8831_v21  ;;  %v2230_v19 = vmax.f32 %v1965_v41, 0.0 }
 0x451   : > { %2181 = vmatmul.bf16.gmra.mxu3 %v8943_v60 }
 0x452   : > { %v9249_v3 = vpack.c.bf16 %v2227_v43, %v2223_v47 }
 0x453   : > { %v2053_v18 = vpop.f32.mrf.mxu2  ;;  %v1877_v11 = vpop.f32.mrf.mxu0 }
 0x454   : > { %v2054_v27 = vadd.f32 %v2053_v18, %v9222_v40  ;;  %v2142_v28 = vpop.f32.mrf.mxu3  ;;  %v1878_v51 = vadd.f32 %v1877_v11, %v9212_v30  ;;  %v1966_v36 = vpop.f32.mrf.mxu1 }
 0x456   : > { %v2143_v50 = vadd.f32 %v2142_v28, %v2054_v27  ;;  %v1967_v4 = vadd.f32 %v1966_v36, %v1878_v51 }
 0x458   : > { %v2234_v56 = vmax.f32 %v1967_v4, 0.0  ;;  %v2231_v43 = vmax.f32 %v2143_v50, 0.0 }
 0x45a   : > { %v9253_v16 = vpack.c.bf16 %v2234_v56, %v2230_v19 }
 0x45b   : > { %v2055_v17 = vpop.f32.mrf.mxu2  ;;  %v1880_v61 = vpop.f32.mrf.mxu0 }
 0x45c   : > { %v2056_v21 = vadd.f32 %v2055_v17, %v9222_v40  ;;  %v2144_v60 = vpop.f32.mrf.mxu3  ;;  %v1881_v37 = vadd.f32 %v1880_v61, %v9212_v30  ;;  %v1969_v38 = vpop.f32.mrf.mxu1 }
 0x45e   : > { %v2145_v45 = vadd.f32 %v2144_v60, %v2056_v21  ;;  %v1970_v47 = vadd.f32 %v1969_v38, %v1881_v37  ;;  %1919 = vmatmul.bf16.gmra.mxu0 %v8837_v26 }
 0x45f   : > { %2008 = vmatmul.bf16.gmra.mxu1 %v8951_v32 }
 0x460   : > { %v2235_v18 = vmax.f32 %v2145_v45, 0.0  ;;  %2097 = vmatmul.bf16.gmra.mxu2 %v8837_v26  ;;  %v2238_v50 = vmax.f32 %v1970_v47, 0.0 }
 0x461   : > { %2186 = vmatmul.bf16.gmra.mxu3 %v8951_v32 }
 0x462   : > { %v9261_v41 = vpack.c.bf16 %v2235_v18, %v2231_v43 }
 0x463   : > { %v2058_v27 = vpop.f32.mrf.mxu2  ;;  %v1882_v51 = vpop.f32.mrf.mxu0 }
 0x464   : > { %v2059_v28 = vadd.f32 %v2058_v27, %v9222_v40  ;;  %v2147_v11 = vpop.f32.mrf.mxu3  ;;  %v1883_v36 = vadd.f32 %v1882_v51, %v9212_v30  ;;  %v1971_v4 = vpop.f32.mrf.mxu1 }
 0x466   : > { %v2148_v19 = vadd.f32 %v2147_v11, %v2059_v28  ;;  %v1972_v56 = vadd.f32 %v1971_v4, %v1883_v36 }
 0x468   : > { %v2242_v17 = vmax.f32 %v1972_v56, 0.0  ;;  %v2239_v18 = vmax.f32 %v2148_v19, 0.0 }
 0x46a   : > { %v9265_v21 = vpack.c.bf16 %v2242_v17, %v2238_v50 }
 0x46b   : > { %v2060_v60 = vpop.f32.mrf.mxu2  ;;  %v1885_v61 = vpop.f32.mrf.mxu0 }
 0x46c   : > { %v2061_v26 = vadd.f32 %v2060_v60, %v9222_v40  ;;  %v2149_v32 = vpop.f32.mrf.mxu3  ;;  %v1886_v37 = vadd.f32 %v1885_v61, %v9212_v30  ;;  %v1974_v38 = vpop.f32.mrf.mxu1 }
 0x46e   : > { %v2150_v45 = vadd.f32 %v2149_v32, %v2061_v26  ;;  %v1975_v43 = vadd.f32 %v1974_v38, %v1886_v37  ;;  %1924 = vmatmul.bf16.gmra.mxu0 %v8843_v34 }
 0x46f   : > { %2013 = vmatmul.bf16.gmra.mxu1 %v8959_v12 }
 0x470   : > { %v2243_v27 = vmax.f32 %v2150_v45, 0.0  ;;  %2102 = vmatmul.bf16.gmra.mxu2 %v8843_v34  ;;  %v2246_v19 = vmax.f32 %v1975_v43, 0.0 }
 0x471   : > { %2191 = vmatmul.bf16.gmra.mxu3 %v8959_v12 }
 0x472   : > { %v9273_v47 = vpack.c.bf16 %v2243_v27, %v2239_v18 }
 0x473   : > { %v2063_v28 = vpop.f32.mrf.mxu2  ;;  %v1887_v36 = vpop.f32.mrf.mxu0 }
 0x474   : > { %v2064_v11 = vadd.f32 %v2063_v28, %v9222_v40  ;;  %v2152_v51 = vpop.f32.mrf.mxu3  ;;  %v1888_v4 = vadd.f32 %v1887_v36, %v9212_v30  ;;  %v1976_v56 = vpop.f32.mrf.mxu1 }
 0x476   : > { %v2153_v50 = vadd.f32 %v2152_v51, %v2064_v11  ;;  %v1977_v17 = vadd.f32 %v1976_v56, %v1888_v4 }
 0x478   : > { %v2250_v60 = vmax.f32 %v1977_v17, 0.0  ;;  %v2247_v27 = vmax.f32 %v2153_v50, 0.0 }
 0x47a   : > { %v9277_v26 = vpack.c.bf16 %v2250_v60, %v2246_v19 }
 0x47b   : > { %v2065_v32 = vpop.f32.mrf.mxu2  ;;  %v1890_v61 = vpop.f32.mrf.mxu0 }
 0x47c   : > { %v2066_v34 = vadd.f32 %v2065_v32, %v9222_v40  ;;  %v2154_v12 = vpop.f32.mrf.mxu3  ;;  %v1891_v37 = vadd.f32 %v1890_v61, %v9212_v30  ;;  %v1979_v38 = vpop.f32.mrf.mxu1 }
 0x47e   : > { %v2155_v45 = vadd.f32 %v2154_v12, %v2066_v34  ;;  %v1980_v18 = vadd.f32 %v1979_v38, %v1891_v37  ;;  %1929 = vmatmul.bf16.gmra.mxu0 %v8849_v39 }
 0x47f   : > { %2018 = vmatmul.bf16.gmra.mxu1 %v8966_v31 }
 0x480   : > { %v2251_v28 = vmax.f32 %v2155_v45, 0.0  ;;  %2107 = vmatmul.bf16.gmra.mxu2 %v8849_v39  ;;  %v2254_v50 = vmax.f32 %v1980_v18, 0.0 }
 0x481   : > { %2196 = vmatmul.bf16.gmra.mxu3 %v8966_v31 }
 0x482   : > { %v9285_v43 = vpack.c.bf16 %v2251_v28, %v2247_v27 }
 0x483   : > { %v2068_v11 = vpop.f32.mrf.mxu2  ;;  %v1892_v4 = vpop.f32.mrf.mxu0 }
 0x484   : > { %v2069_v51 = vadd.f32 %v2068_v11, %v9222_v40  ;;  %v2157_v36 = vpop.f32.mrf.mxu3  ;;  %v1893_v56 = vadd.f32 %v1892_v4, %v9212_v30  ;;  %v1981_v17 = vpop.f32.mrf.mxu1 }
 0x486   : > { %v2158_v19 = vadd.f32 %v2157_v36, %v2069_v51  ;;  %v1982_v60 = vadd.f32 %v1981_v17, %v1893_v56 }
 0x488   : > { %v2258_v32 = vmax.f32 %v1982_v60, 0.0  ;;  %v2255_v28 = vmax.f32 %v2158_v19, 0.0 }
 0x48a   : > { %v9289_v34 = vpack.c.bf16 %v2258_v32, %v2254_v50 }
 0x48b   : > { %v2070_v12 = vpop.f32.mrf.mxu2  ;;  %v1895_v61 = vpop.f32.mrf.mxu0 }
 0x48c   : > { %v2071_v39 = vadd.f32 %v2070_v12, %v9222_v40  ;;  %v2159_v31 = vpop.f32.mrf.mxu3  ;;  %v1896_v37 = vadd.f32 %v1895_v61, %v9212_v30  ;;  %v1984_v38 = vpop.f32.mrf.mxu1 }
 0x48e   : > { %v2160_v45 = vadd.f32 %v2159_v31, %v2071_v39  ;;  %v1985_v27 = vadd.f32 %v1984_v38, %v1896_v37  ;;  %1934 = vmatmul.bf16.gmra.mxu0 %v8855_v44 }
 0x48f   : > { %2023 = vmatmul.bf16.gmra.mxu1 %v8970_v59 }
 0x490   : > { %v2259_v11 = vmax.f32 %v2160_v45, 0.0  ;;  %2112 = vmatmul.bf16.gmra.mxu2 %v8855_v44  ;;  %v2262_v19 = vmax.f32 %v1985_v27, 0.0 }
 0x491   : > { %2201 = vmatmul.bf16.gmra.mxu3 %v8970_v59 }
 0x492   : > { %v9297_v18 = vpack.c.bf16 %v2259_v11, %v2255_v28 }
 0x493   : > { %v2073_v51 = vpop.f32.mrf.mxu2  ;;  %v1897_v56 = vpop.f32.mrf.mxu0 }
 0x494   : > { %v2074_v36 = vadd.f32 %v2073_v51, %v9222_v40  ;;  %v2162_v4 = vpop.f32.mrf.mxu3  ;;  %v1898_v17 = vadd.f32 %v1897_v56, %v9212_v30  ;;  %v1986_v60 = vpop.f32.mrf.mxu1 }
 0x496   : > { %v2163_v50 = vadd.f32 %v2162_v4, %v2074_v36  ;;  %v1987_v32 = vadd.f32 %v1986_v60, %v1898_v17 }
 0x498   : > { %v2266_v12 = vmax.f32 %v1987_v32, 0.0  ;;  %v2263_v11 = vmax.f32 %v2163_v50, 0.0 }
 0x49a   : > { %v9301_v39 = vpack.c.bf16 %v2266_v12, %v2262_v19 }
 0x49b   : > { %v2075_v31 = vpop.f32.mrf.mxu2  ;;  %v1900_v61 = vpop.f32.mrf.mxu0 }
 0x49c   : > { %v2076_v44 = vadd.f32 %v2075_v31, %v9222_v40  ;;  %v2164_v59 = vpop.f32.mrf.mxu3  ;;  %v1901_v37 = vadd.f32 %v1900_v61, %v9212_v30  ;;  %v1989_v38 = vpop.f32.mrf.mxu1 }
 0x49e   : > { %v2165_v45 = vadd.f32 %v2164_v59, %v2076_v44  ;;  %v1990_v28 = vadd.f32 %v1989_v38, %v1901_v37  ;;  %1939 = vmatmul.bf16.gmra.mxu0 %v8864_v53 }
 0x49f   : > { %2028 = vmatmul.bf16.gmra.mxu1 %v8974_v10 }
 0x4a0   : > { %v2267_v51 = vmax.f32 %v2165_v45, 0.0  ;;  %2117 = vmatmul.bf16.gmra.mxu2 %v8864_v53  ;;  %v2270_v50 = vmax.f32 %v1990_v28, 0.0 }
 0x4a1   : > { %2206 = vmatmul.bf16.gmra.mxu3 %v8974_v10 }
 0x4a2   : > { %v9309_v27 = vpack.c.bf16 %v2267_v51, %v2263_v11 }
 0x4a3   : > { %v2078_v36 = vpop.f32.mrf.mxu2  ;;  %v1902_v17 = vpop.f32.mrf.mxu0 }
 0x4a4   : > { %v2079_v4 = vadd.f32 %v2078_v36, %v9222_v40  ;;  %v2167_v56 = vpop.f32.mrf.mxu3  ;;  %v1903_v60 = vadd.f32 %v1902_v17, %v9212_v30  ;;  %v1991_v32 = vpop.f32.mrf.mxu1 }
 0x4a6   : > { %v2168_v19 = vadd.f32 %v2167_v56, %v2079_v4  ;;  %v1992_v12 = vadd.f32 %v1991_v32, %v1903_v60 }
 0x4a8   : > { %v2274_v31 = vmax.f32 %v1992_v12, 0.0  ;;  %v2271_v51 = vmax.f32 %v2168_v19, 0.0 }
 0x4aa   : > { %v9313_v44 = vpack.c.bf16 %v2274_v31, %v2270_v50 }
 0x4ab   : > { %v2080_v59 = vpop.f32.mrf.mxu2  ;;  %v1905_v61 = vpop.f32.mrf.mxu0 }
 0x4ac   : > { %v2081_v53 = vadd.f32 %v2080_v59, %v9222_v40  ;;  %v2169_v10 = vpop.f32.mrf.mxu3  ;;  %v1906_v37 = vadd.f32 %v1905_v61, %v9212_v30  ;;  %v1994_v38 = vpop.f32.mrf.mxu1 }
 0x4ae   : > { %v2170_v45 = vadd.f32 %v2169_v10, %v2081_v53  ;;  %v1995_v11 = vadd.f32 %v1994_v38, %v1906_v37 }
 0x4b0   : > { %v2275_v36 = vmax.f32 %v2170_v45, 0.0  ;;  %v2278_v59 = vmax.f32 %v1995_v11, 0.0 }
 0x4b2   : > { %v9317_v17 = vpack.c.bf16 %v2275_v36, %v2271_v51 }
 0x4b3   : > { %v2083_v4 = vpop.f32.mrf.mxu2  ;;  %v1907_v60 = vpop.f32.mrf.mxu0 }
 0x4b4   : > { %v2084_v28 = vadd.f32 %v2083_v4, %v9222_v40  ;;  %v2172_v56 = vpop.f32.mrf.mxu3  ;;  %v1908_v32 = vadd.f32 %v1907_v60, %v9212_v30  ;;  %v1996_v12 = vpop.f32.mrf.mxu1 }
 0x4b6   : > { %v2173_v50 = vadd.f32 %v2172_v56, %v2084_v28  ;;  %v1997_v31 = vadd.f32 %v1996_v12, %v1908_v32 }
 0x4b8   : > { %v2282_v52 = vmax.f32 %v1997_v31, 0.0  ;;  %v2279_v4 = vmax.f32 %v2173_v50, 0.0 }
 0x4ba   : > { %v9321_v61 = vpack.c.bf16 %v2282_v52, %v2278_v59 }
 0x4bb   : > { %v2085_v53 = vpop.f32.mrf.mxu2  ;;  %v1910_v37 = vpop.f32.mrf.mxu0 }
 0x4bc   : > { %10439 = vst [vmem:[#allocation67_spill] sm:$0xff] %v9321_v61  ;;  %v2086_v19 = vadd.f32 %v2085_v53, %v9222_v40  ;;  %v2174_v10 = vpop.f32.mrf.mxu3  ;;  %v1911_v38 = vadd.f32 %v1910_v37, %v9212_v30  ;;  %v1999_v45 = vpop.f32.mrf.mxu1 }
 0x4be   : > { %v2175_v51 = vadd.f32 %v2174_v10, %v2086_v19  ;;  %v2000_v36 = vadd.f32 %v1999_v45, %v1911_v38 }
 0x4c0   : > { %v2283_v23 = vmax.f32 %v2175_v51, 0.0  ;;  %v2286_v53 = vmax.f32 %v2000_v36, 0.0 }
 0x4c2   : > { %v9325_v60 = vpack.c.bf16 %v2283_v23, %v2279_v4 }
 0x4c3   : > { %v2088_v28 = vpop.f32.mrf.mxu2  ;;  %v1912_v52 = vpop.f32.mrf.mxu0 }
 0x4c4   : > { %10440 = vst [vmem:[#allocation68_spill] sm:$0xff] %v9325_v60  ;;  %v2089_v11 = vadd.f32 %v2088_v28, %v9222_v40  ;;  %v2177_v56 = vpop.f32.mrf.mxu3  ;;  %v1913_v32 = vadd.f32 %v1912_v52, %v9212_v30  ;;  %v2001_v12 = vpop.f32.mrf.mxu1 }
 0x4c6   : > { %v2178_v31 = vadd.f32 %v2177_v56, %v2089_v11  ;;  %v2002_v59 = vadd.f32 %v2001_v12, %v1913_v32 }
 0x4c8   : > { %v2290_v35 = vmax.f32 %v2002_v59, 0.0  ;;  %v2287_v28 = vmax.f32 %v2178_v31, 0.0 }
 0x4ca   : > { %v9329_v37 = vpack.c.bf16 %v2290_v35, %v2286_v53 }
 0x4cb   : > { %v2090_v19 = vpop.f32.mrf.mxu2  ;;  %v1915_v23 = vpop.f32.mrf.mxu0 }
 0x4cc   : > { %v2091_v50 = vadd.f32 %v2090_v19, %v9222_v40  ;;  %v2179_v10 = vpop.f32.mrf.mxu3  ;;  %v1916_v38 = vadd.f32 %v1915_v23, %v9212_v30  ;;  %v2004_v45 = vpop.f32.mrf.mxu1 }
 0x4ce   : > { %v2180_v51 = vadd.f32 %v2179_v10, %v2091_v50  ;;  %v2005_v4 = vadd.f32 %v2004_v45, %v1916_v38 }
 0x4d0   : > { %v2291_v33 = vmax.f32 %v2180_v51, 0.0  ;;  %v2294_v19 = vmax.f32 %v2005_v4, 0.0 }
 0x4d2   : > { %v9333_v52 = vpack.c.bf16 %v2291_v33, %v2287_v28 }
 0x4d3   : > { %v2093_v11 = vpop.f32.mrf.mxu2  ;;  %v1917_v35 = vpop.f32.mrf.mxu0 }
 0x4d4   : > { %v2094_v36 = vadd.f32 %v2093_v11, %v9222_v40  ;;  %v2182_v56 = vpop.f32.mrf.mxu3  ;;  %v1918_v32 = vadd.f32 %v1917_v35, %v9212_v30  ;;  %v2006_v12 = vpop.f32.mrf.mxu1 }
 0x4d6   : > { %v2183_v59 = vadd.f32 %v2182_v56, %v2094_v36  ;;  %v2007_v53 = vadd.f32 %v2006_v12, %v1918_v32 }
 0x4d8   : > { %v2298_v54 = vmax.f32 %v2007_v53, 0.0  ;;  %v2295_v11 = vmax.f32 %v2183_v59, 0.0 }
 0x4da   : > { %v9337_v23 = vpack.c.bf16 %v2298_v54, %v2294_v19 }
 0x4db   : > { %v2095_v50 = vpop.f32.mrf.mxu2  ;;  %v1920_v33 = vpop.f32.mrf.mxu0 }
 0x4dc   : > { %10441 = vst [vmem:[#allocation69_spill] sm:$0xff] %v9337_v23  ;;  %v2096_v31 = vadd.f32 %v2095_v50, %v9222_v40  ;;  %v2184_v10 = vpop.f32.mrf.mxu3  ;;  %v1921_v38 = vadd.f32 %v1920_v33, %v9212_v30  ;;  %v2009_v45 = vpop.f32.mrf.mxu1 }
 0x4de   : > { %v2185_v51 = vadd.f32 %v2184_v10, %v2096_v31  ;;  %v2010_v28 = vadd.f32 %v2009_v45, %v1921_v38 }
 0x4e0   : > { %v2299_v20 = vmax.f32 %v2185_v51, 0.0  ;;  %v2302_v50 = vmax.f32 %v2010_v28, 0.0 }
 0x4e2   : > { %v9341_v35 = vpack.c.bf16 %v2299_v20, %v2295_v11 }
 0x4e3   : > { %v2098_v36 = vpop.f32.mrf.mxu2  ;;  %v1922_v54 = vpop.f32.mrf.mxu0 }
 0x4e4   : > { %10442 = vst [vmem:[#allocation70_spill] sm:$0xff] %v9341_v35  ;;  %v2099_v4 = vadd.f32 %v2098_v36, %v9222_v40  ;;  %v2187_v56 = vpop.f32.mrf.mxu3  ;;  %v1923_v32 = vadd.f32 %v1922_v54, %v9212_v30  ;;  %v2011_v12 = vpop.f32.mrf.mxu1 }
 0x4e6   : > { %v2188_v53 = vadd.f32 %v2187_v56, %v2099_v4  ;;  %v2012_v19 = vadd.f32 %v2011_v12, %v1923_v32 }
 0x4e8   : > { %v2306_v7 = vmax.f32 %v2012_v19, 0.0  ;;  %v2303_v51 = vmax.f32 %v2188_v53, 0.0 }
 0x4ea   : > { %v9345_v33 = vpack.c.bf16 %v2306_v7, %v2302_v50 }
 0x4eb   : > { %v2100_v31 = vpop.f32.mrf.mxu2  ;;  %v1925_v20 = vpop.f32.mrf.mxu0 }
 0x4ec   : > { %10443 = vst [vmem:[#allocation71_spill] sm:$0xff] %v9345_v33  ;;  %v2101_v59 = vadd.f32 %v2100_v31, %v9222_v40  ;;  %v2189_v10 = vpop.f32.mrf.mxu3  ;;  %v2014_v38 = vpop.f32.mrf.mxu1  ;;  %v1926_v36 = vadd.f32 %v1925_v20, %v9212_v30 }
 0x4ee   : > { %v2190_v45 = vadd.f32 %v2189_v10, %v2101_v59  ;;  %v2015_v28 = vadd.f32 %v2014_v38, %v1926_v36 }
 0x4f0   : > { %v2307_v11 = vmax.f32 %v2190_v45, 0.0  ;;  %v2310_v50 = vmax.f32 %v2015_v28, 0.0 }
 0x4f2   : > { %v9349_v13 = vpack.c.bf16 %v2307_v11, %v2303_v51 }
 0x4f3   : > { %v2103_v54 = vpop.f32.mrf.mxu2  ;;  %v1927_v56 = vpop.f32.mrf.mxu0 }
 0x4f4   : > { %10444 = vst [vmem:[#allocation72_spill] sm:$0xff] %v9349_v13  ;;  %v2192_v4 = vpop.f32.mrf.mxu3  ;;  %v1928_v7 = vadd.f32 %v1927_v56, %v9212_v30  ;;  %v2016_v32 = vpop.f32.mrf.mxu1  ;;  %v2104_v19 = vadd.f32 %v2103_v54, %v9222_v40 }
 0x4f6   : > { %v2017_v12 = vadd.f32 %v2016_v32, %v1928_v7  ;;  %v2193_v59 = vadd.f32 %v2192_v4, %v2104_v19 }
 0x4f8   : > { %v2314_v31 = vmax.f32 %v2017_v12, 0.0  ;;  %v2311_v13 = vmax.f32 %v2193_v59, 0.0 }
 0x4fa   : > { %v9353_v33 = vpack.c.bf16 %v2314_v31, %v2310_v50 }
 0x4fb   : > { %v2105_v53 = vpop.f32.mrf.mxu2  ;;  %v1930_v45 = vpop.f32.mrf.mxu0 }
 0x4fc   : > { %10445 = vst [vmem:[#allocation73_spill] sm:$0xff] %v9353_v33  ;;  %v2106_v10 = vadd.f32 %v2105_v53, %v9222_v40  ;;  %v2194_v20 = vpop.f32.mrf.mxu3  ;;  %v2019_v51 = vpop.f32.mrf.mxu1  ;;  %v1931_v36 = vadd.f32 %v1930_v45, %v9212_v30 }
 0x4fe   : > { %v2195_v11 = vadd.f32 %v2194_v20, %v2106_v10  ;;  %v2020_v32 = vadd.f32 %v2019_v51, %v1931_v36 }
 0x500   : > { %v2315_v38 = vmax.f32 %v2195_v11, 0.0  ;;  %v2318_v31 = vmax.f32 %v2020_v32, 0.0 }
 0x502   : > { %v9357_v56 = vpack.c.bf16 %v2315_v38, %v2311_v13 }
 0x503   : > { %v2108_v7 = vpop.f32.mrf.mxu2  ;;  %v1932_v28 = vpop.f32.mrf.mxu0 }
 0x504   : > { %10446 = vst [vmem:[#allocation74_spill] sm:$0xff] %v9357_v56  ;;  %v2197_v54 = vpop.f32.mrf.mxu3  ;;  %v1933_v12 = vadd.f32 %v1932_v28, %v9212_v30  ;;  %v2021_v50 = vpop.f32.mrf.mxu1  ;;  %v2109_v19 = vadd.f32 %v2108_v7, %v9222_v40 }
 0x506   : > { %v2022_v4 = vadd.f32 %v2021_v50, %v1933_v12  ;;  %v2198_v10 = vadd.f32 %v2197_v54, %v2109_v19 }
 0x508   : > { %v2322_v53 = vmax.f32 %v2022_v4, 0.0  ;;  %v2319_v56 = vmax.f32 %v2198_v10, 0.0 }
 0x50a   : > { %v9361_v33 = vpack.c.bf16 %v2322_v53, %v2318_v31 }
 0x50b   : > { %v2110_v59 = vpop.f32.mrf.mxu2  ;;  %v1935_v45 = vpop.f32.mrf.mxu0 }
 0x50c   : > { %10447 = vst [vmem:[#allocation75_spill] sm:$0xff] %v9361_v33  ;;  %v2111_v20 = vadd.f32 %v2110_v59, %v9222_v40  ;;  %v2199_v13 = vpop.f32.mrf.mxu3  ;;  %v2024_v11 = vpop.f32.mrf.mxu1  ;;  %v1936_v36 = vadd.f32 %v1935_v45, %v9212_v30 }
 0x50e   : > { %v2200_v38 = vadd.f32 %v2199_v13, %v2111_v20  ;;  %v2025_v50 = vadd.f32 %v2024_v11, %v1936_v36 }
 0x510   : > { %v2323_v51 = vmax.f32 %v2200_v38, 0.0  ;;  %v2326_v53 = vmax.f32 %v2025_v50, 0.0 }
 0x512   : > { %v9365_v28 = vpack.c.bf16 %v2323_v51, %v2319_v56 }
 0x513   : > { %v2113_v12 = vpop.f32.mrf.mxu2  ;;  %v1937_v32 = vpop.f32.mrf.mxu0 }
 0x514   : > { %10448 = vst [vmem:[#allocation76_spill] sm:$0xff] %v9365_v28  ;;  %v2202_v7 = vpop.f32.mrf.mxu3  ;;  %v1938_v4 = vadd.f32 %v1937_v32, %v9212_v30  ;;  %v2026_v31 = vpop.f32.mrf.mxu1  ;;  %v2114_v19 = vadd.f32 %v2113_v12, %v9222_v40 }
 0x516   : > { %v2027_v54 = vadd.f32 %v2026_v31, %v1938_v4  ;;  %v2203_v20 = vadd.f32 %v2202_v7, %v2114_v19 }
 0x518   : > { %v2330_v59 = vmax.f32 %v2027_v54, 0.0  ;;  %v2327_v28 = vmax.f32 %v2203_v20, 0.0 }
 0x51a   : > { %v9369_v33 = vpack.c.bf16 %v2330_v59, %v2326_v53 }
 0x51b   : > { %v2115_v10 = vpop.f32.mrf.mxu2  ;;  %v1940_v45 = vpop.f32.mrf.mxu0 }
 0x51c   : > { %10449 = vst [vmem:[#allocation77_spill] sm:$0xff] %v9369_v33  ;;  %v2116_v13 = vadd.f32 %v2115_v10, %v9222_v40  ;;  %v2204_v56 = vpop.f32.mrf.mxu3  ;;  %v2029_v38 = vpop.f32.mrf.mxu1  ;;  %v1941_v36 = vadd.f32 %v1940_v45, %v9212_v30 }
 0x51e   : > { %v2205_v51 = vadd.f32 %v2204_v56, %v2116_v13  ;;  %v2030_v31 = vadd.f32 %v2029_v38, %v1941_v36 }
 0x520   : > { %v2331_v11 = vmax.f32 %v2205_v51, 0.0  ;;  %v2334_v59 = vmax.f32 %v2030_v31, 0.0 }
 0x522   : > { %v9373_v32 = vpack.c.bf16 %v2331_v11, %v2327_v28 }
 0x523   : > { %v2118_v4 = vpop.f32.mrf.mxu2  ;;  %v1942_v50 = vpop.f32.mrf.mxu0 }
 0x524   : > { %10450 = vst [vmem:[#allocation78_spill] sm:$0xff] %v9373_v32  ;;  %v2207_v12 = vpop.f32.mrf.mxu3  ;;  %v1943_v54 = vadd.f32 %v1942_v50, %v9212_v30  ;;  %v2031_v7 = vpop.f32.mrf.mxu1  ;;  %v2119_v53 = vadd.f32 %v2118_v4, %v9222_v40 }
 0x526   : > { %v2032_v19 = vadd.f32 %v2031_v7, %v1943_v54  ;;  %v2208_v56 = vadd.f32 %v2207_v12, %v2119_v53 }
 0x528   : > { %v2338_v10 = vmax.f32 %v2032_v19, 0.0  ;;  %v2335_v11 = vmax.f32 %v2208_v56, 0.0 }
 0x52a   : > { %v9377_v13 = vpack.c.bf16 %v2338_v10, %v2334_v59 }
 0x52b   : > { %v2120_v20 = vpop.f32.mrf.mxu2 }
 0x52c   : > { %10451 = vst [vmem:[#allocation79_spill] sm:$0xff] %v9377_v13  ;;  %v2121_v28 = vadd.f32 %v2120_v20, %v9222_v40  ;;  %v2209_v45 = vpop.f32.mrf.mxu3 }
 0x52e   : > { %v2210_v51 = vadd.f32 %v2209_v45, %v2121_v28 }
 0x530   : > { %v2339_v32 = vmax.f32 %v2210_v51, 0.0 }
 0x532   : > { %v9380_v38 = vpack.c.bf16 %v2339_v32, %v2335_v11 }
 0x534   : > { %10452 = vst [vmem:[#allocation80_spill] sm:$0xff] %v9380_v38 }
 0x535   : > { %8416 = dma.done.wait (%p45_p5), [#allocation12 + $0x4], 16384 }
 0x536   : > { %8418 = vsyncadd (%p45_p5), [#allocation12 + $0x4], 4294950912 }
 0x537   : > { %8420 = dma.done.wait (%p45_p5), [#allocation12 + $0x5], 64 }
 0x538   : > { %8422 = vsyncadd (%p45_p5), [#allocation12 + $0x5], 4294967232  ;;  %v7032_v30 = vld [vmem:[#allocation6 + $0xe0] sm:$0xf]  ;;  %v7892_v36 = vld [vmem:[#allocation6 + $0xec] sm:$0xf0] }
 0x539   : > { %v7160_v40 = vld [vmem:[#allocation6 + $0x1e0] sm:$0xf]  ;;  %v7033_v4 = vor.u32 %v7892_v36, %v7032_v30  ;;  %v7924_v12 = vld [vmem:[#allocation6 + $0x1ec] sm:$0xf0] }
 0x53a   : > { %v7288_v50 = vld [vmem:[#allocation6 + $0x2e0] sm:$0xf]  ;;  %v7956_v31 = vld [vmem:[#allocation6 + $0x2ec] sm:$0xf0]  ;;  %v7161_v32 = vor.u32 %v7924_v12, %v7160_v40 }
 0x53b   : > { %v7289_v54 = vor.u32 %v7956_v31, %v7288_v50  ;;  %v7416_v7 = vld [vmem:[#allocation6 + $0x3e0] sm:$0xf]  ;;  %v7988_v19 = vld [vmem:[#allocation6 + $0x3ec] sm:$0xf0]  ;;  %3194 = vmatpush.bf16.msrb.mxu0 %v7033_v4 }
 0x53c   : > { %v7016_v53 = vld [vmem:[#allocation6 + $0xc0] sm:$0xf]  ;;  %v7417_v59 = vor.u32 %v7988_v19, %v7416_v7  ;;  %v7888_v10 = vld [vmem:[#allocation6 + $0xcc] sm:$0xf0]  ;;  %3283 = vmatpush.bf16.msrb.mxu1 %v7161_v32 }
 0x53d   : > { %v7144_v20 = vld [vmem:[#allocation6 + $0x1c0] sm:$0xf]  ;;  %v7920_v56 = vld [vmem:[#allocation6 + $0x1cc] sm:$0xf0]  ;;  %3372 = vmatpush.bf16.msra.mxu2 %v7289_v54  ;;  %v7017_v28 = vor.u32 %v7888_v10, %v7016_v53 }
 0x53e   : > { %v7145_v45 = vor.u32 %v7920_v56, %v7144_v20  ;;  %v7272_v51 = vld [vmem:[#allocation6 + $0x2c0] sm:$0xf]  ;;  %v7952_v11 = vld [vmem:[#allocation6 + $0x2cc] sm:$0xf0]  ;;  %3461 = vmatpush.bf16.msra.mxu3 %v7417_v59 }
 0x53f   : > { %v7400_v30 = vld [vmem:[#allocation6 + $0x3c0] sm:$0xf]  ;;  %v7273_v36 = vor.u32 %v7952_v11, %v7272_v51  ;;  %v7984_v38 = vld [vmem:[#allocation6 + $0x3cc] sm:$0xf0]  ;;  %3195 = vmatpush.bf16.msrb.mxu0 %v7017_v28 }
 0x540   : > { %v7000_v40 = vld [vmem:[#allocation6 + $0xa0] sm:$0xf]  ;;  %v7884_v12 = vld [vmem:[#allocation6 + $0xac] sm:$0xf0]  ;;  %v7401_v50 = vor.u32 %v7984_v38, %v7400_v30  ;;  %3284 = vmatpush.bf16.msrb.mxu1 %v7145_v45 }
 0x541   : > { %v7128_v31 = vld [vmem:[#allocation6 + $0x1a0] sm:$0xf]  ;;  %v7916_v13 = vld [vmem:[#allocation6 + $0x1ac] sm:$0xf0]  ;;  %v7001_v7 = vor.u32 %v7884_v12, %v7000_v40  ;;  %3373 = vmatpush.bf16.msra.mxu2 %v7273_v36 }
 0x542   : > { %v7256_v4 = vld [vmem:[#allocation6 + $0x2a0] sm:$0xf]  ;;  %v7948_v19 = vld [vmem:[#allocation6 + $0x2ac] sm:$0xf0]  ;;  %v7129_v54 = vor.u32 %v7916_v13, %v7128_v31  ;;  %3462 = vmatpush.bf16.msra.mxu3 %v7401_v50 }
 0x543   : > { %v7384_v33 = vld [vmem:[#allocation6 + $0x3a0] sm:$0xf]  ;;  %v7980_v32 = vld [vmem:[#allocation6 + $0x3ac] sm:$0xf0]  ;;  %v7257_v53 = vor.u32 %v7948_v19, %v7256_v4  ;;  %3196 = vmatpush.bf16.msrb.mxu0 %v7001_v7 }
 0x544   : > { %v6984_v10 = vld [vmem:[#allocation6 + $0x80] sm:$0xf]  ;;  %v7880_v20 = vld [vmem:[#allocation6 + $0x8c] sm:$0xf0]  ;;  %v7385_v56 = vor.u32 %v7980_v32, %v7384_v33  ;;  %3285 = vmatpush.bf16.msrb.mxu1 %v7129_v54 }
 0x545   : > { %v7112_v59 = vld [vmem:[#allocation6 + $0x180] sm:$0xf]  ;;  %v7912_v51 = vld [vmem:[#allocation6 + $0x18c] sm:$0xf0]  ;;  %v6985_v28 = vor.u32 %v7880_v20, %v6984_v10  ;;  %3374 = vmatpush.bf16.msra.mxu2 %v7257_v53 }
 0x546   : > { %v7240_v11 = vld [vmem:[#allocation6 + $0x280] sm:$0xf]  ;;  %v7944_v38 = vld [vmem:[#allocation6 + $0x28c] sm:$0xf0]  ;;  %v7113_v40 = vor.u32 %v7912_v51, %v7112_v59  ;;  %3463 = vmatpush.bf16.msra.mxu3 %v7385_v56 }
 0x547   : > { %v7368_v30 = vld [vmem:[#allocation6 + $0x380] sm:$0xf]  ;;  %v7976_v49 = vld [vmem:[#allocation6 + $0x38c] sm:$0xf0]  ;;  %v7241_v12 = vor.u32 %v7944_v38, %v7240_v11  ;;  %3197 = vmatpush.bf16.msrb.mxu0 %v6985_v28 }
 0x548   : > { %v6968_v45 = vld [vmem:[#allocation6 + $0x60] sm:$0xf]  ;;  %v7876_v36 = vld [vmem:[#allocation6 + $0x6c] sm:$0xf0]  ;;  %v7369_v31 = vor.u32 %v7976_v49, %v7368_v30  ;;  %3286 = vmatpush.bf16.msrb.mxu1 %v7113_v40 }
 0x549   : > { %v7096_v13 = vld [vmem:[#allocation6 + $0x160] sm:$0xf]  ;;  %v7908_v4 = vld [vmem:[#allocation6 + $0x16c] sm:$0xf0]  ;;  %v6969_v6 = vor.u32 %v7876_v36, %v6968_v45  ;;  %3375 = vmatpush.bf16.msra.mxu2 %v7241_v12 }
 0x54a   : > { %v7224_v19 = vld [vmem:[#allocation6 + $0x260] sm:$0xf]  ;;  %v7940_v50 = vld [vmem:[#allocation6 + $0x26c] sm:$0xf0]  ;;  %v7097_v7 = vor.u32 %v7908_v4, %v7096_v13  ;;  %3464 = vmatpush.bf16.msra.mxu3 %v7369_v31 }
 0x54b   : > { %v7352_v33 = vld [vmem:[#allocation6 + $0x360] sm:$0xf]  ;;  %v7972_v32 = vld [vmem:[#allocation6 + $0x36c] sm:$0xf0]  ;;  %v7225_v10 = vor.u32 %v7940_v50, %v7224_v19  ;;  %3198 = vmatpush.bf16.msrb.mxu0 %v6969_v6 }
 0x54c   : > { %v6952_v54 = vld [vmem:[#allocation6 + $0x40] sm:$0xf]  ;;  %v7872_v53 = vld [vmem:[#allocation6 + $0x4c] sm:$0xf0]  ;;  %v7353_v59 = vor.u32 %v7972_v32, %v7352_v33  ;;  %3287 = vmatpush.bf16.msrb.mxu1 %v7097_v7 }
 0x54d   : > { %v7080_v20 = vld [vmem:[#allocation6 + $0x140] sm:$0xf]  ;;  %v7904_v51 = vld [vmem:[#allocation6 + $0x14c] sm:$0xf0]  ;;  %v6953_v30 = vor.u32 %v7872_v53, %v6952_v54  ;;  %3376 = vmatpush.bf16.msra.mxu2 %v7225_v10 }
 0x54e   : > { %v7208_v11 = vld [vmem:[#allocation6 + $0x240] sm:$0xf]  ;;  %v7936_v56 = vld [vmem:[#allocation6 + $0x24c] sm:$0xf0]  ;;  %v7081_v28 = vor.u32 %v7904_v51, %v7080_v20  ;;  %3465 = vmatpush.bf16.msra.mxu3 %v7353_v59 }
 0x54f   : > { %v7336_v49 = vld [vmem:[#allocation6 + $0x340] sm:$0xf]  ;;  %v7968_v38 = vld [vmem:[#allocation6 + $0x34c] sm:$0xf0]  ;;  %v7209_v45 = vor.u32 %v7936_v56, %v7208_v11  ;;  %3199 = vmatpush.bf16.msrb.mxu0 %v6953_v30  ;;  %v7986_v30 = vld [vmem:[#allocation6 + $0x3e4] sm:$0xf] }
 0x550   : > { %v6936_v40 = vld [vmem:[#allocation6 + $0x20] sm:$0xf]  ;;  %v7868_v12 = vld [vmem:[#allocation6 + $0x2c] sm:$0xf0]  ;;  %v7337_v13 = vor.u32 %v7968_v38, %v7336_v49  ;;  %3288 = vmatpush.bf16.msrb.mxu1 %v7081_v28  ;;  %v7954_v49 = vld [vmem:[#allocation6 + $0x2e4] sm:$0xf] }
 0x551   : > { %v7064_v36 = vld [vmem:[#allocation6 + $0x120] sm:$0xf]  ;;  %v7900_v4 = vld [vmem:[#allocation6 + $0x12c] sm:$0xf0]  ;;  %v6937_v32 = vor.u32 %v7868_v12, %v6936_v40  ;;  %3377 = vmatpush.bf16.msra.mxu2 %v7209_v45  ;;  %v7290_v38 = vld [vmem:[#allocation6 + $0x2f0] sm:$0xf0] }
 0x552   : > { %v7192_v19 = vld [vmem:[#allocation6 + $0x220] sm:$0xf]  ;;  %v7932_v31 = vld [vmem:[#allocation6 + $0x22c] sm:$0xf0]  ;;  %v7065_v6 = vor.u32 %v7900_v4, %v7064_v36  ;;  %3466 = vmatpush.bf16.msra.mxu3 %v7337_v13  ;;  %v7418_v40 = vld [vmem:[#allocation6 + $0x3f0] sm:$0xf0]  ;;  %v7293_v36 = vor.u32 %v7954_v49, %v7290_v38 }
 0x553   : > { %v7320_v50 = vld [vmem:[#allocation6 + $0x320] sm:$0xf]  ;;  %v7964_v33 = vld [vmem:[#allocation6 + $0x32c] sm:$0xf0]  ;;  %v7193_v7 = vor.u32 %v7932_v31, %v7192_v19  ;;  %3200 = vmatpush.bf16.msrb.mxu0 %v6937_v32  ;;  %v7890_v4 = vld [vmem:[#allocation6 + $0xe4] sm:$0xf]  ;;  %v7421_v19 = vor.u32 %v7986_v30, %v7418_v40 }
 0x554   : > { %v6920_v35 = vld [vmem:[#allocation6] sm:$0xf]  ;;  %v7864_v10 = vld [vmem:[#allocation6 + $0xc] sm:$0xf0]  ;;  %v7321_v20 = vor.u32 %v7964_v33, %v7320_v50  ;;  %3289 = vmatpush.bf16.msrb.mxu1 %v7065_v6  ;;  %v7034_v13 = vld [vmem:[#allocation6 + $0xf0] sm:$0xf0] }
 0x555   : > { %v7048_v54 = vld [vmem:[#allocation6 + $0x100] sm:$0xf]  ;;  %v7896_v53 = vld [vmem:[#allocation6 + $0x10c] sm:$0xf0]  ;;  %v6921_v23 = vor.u32 %v7864_v10, %v6920_v35  ;;  %3378 = vmatpush.bf16.msra.mxu2 %v7193_v7  ;;  %v7922_v31 = vld [vmem:[#allocation6 + $0x1e4] sm:$0xf]  ;;  %v7037_v33 = vor.u32 %v7890_v4, %v7034_v13 }
 0x556   : > { %v7176_v51 = vld [vmem:[#allocation6 + $0x200] sm:$0xf]  ;;  %v7928_v59 = vld [vmem:[#allocation6 + $0x20c] sm:$0xf0]  ;;  %v7049_v28 = vor.u32 %v7896_v53, %v7048_v54  ;;  %3467 = vmatpush.bf16.msra.mxu3 %v7321_v20  ;;  %v7162_v50 = vld [vmem:[#allocation6 + $0x1f0] sm:$0xf0] }
 0x557   : > { %v7304_v11 = vld [vmem:[#allocation6 + $0x300] sm:$0xf]  ;;  %v7960_v56 = vld [vmem:[#allocation6 + $0x30c] sm:$0xf0]  ;;  %v7177_v45 = vor.u32 %v7928_v59, %v7176_v51  ;;  %3201 = vmatpush.bf16.msrb.mxu0 %v6921_v23  ;;  %v7165_v35 = vor.u32 %v7922_v31, %v7162_v50  ;;  %v7950_v32 = vld [vmem:[#allocation6 + $0x2c4] sm:$0xf] }
 0x558   : > { %v7305_v12 = vor.u32 %v7960_v56, %v7304_v11  ;;  %3290 = vmatpush.bf16.msrb.mxu1 %v7049_v28  ;;  %v7274_v6 = vld [vmem:[#allocation6 + $0x2d0] sm:$0xf0]  ;;  %v7886_v7 = vld [vmem:[#allocation6 + $0xc4] sm:$0xf] }
 0x559   : > { %3379 = vmatpush.bf16.msra.mxu2 %v7177_v45  ;;  %v7277_v23 = vor.u32 %v7950_v32, %v7274_v6  ;;  %v7018_v10 = vld [vmem:[#allocation6 + $0xd0] sm:$0xf0]  ;;  %v7982_v54 = vld [vmem:[#allocation6 + $0x3c4] sm:$0xf] }
 0x55a   : > { %3468 = vmatpush.bf16.msra.mxu3 %v7305_v12  ;;  %3202 = vmatmul.bf16.vlgmr.msrb.gmra.mxu0 %v9031_v42  ;;  %v7402_v53 = vld [vmem:[#allocation6 + $0x3d0] sm:$0xf0]  ;;  %v7021_v20 = vor.u32 %v7886_v7, %v7018_v10  ;;  %v7918_v59 = vld [vmem:[#allocation6 + $0x1c4] sm:$0xf] }
 0x55b   : > { %3291 = vmatmul.bf16.vlgmr.msrb.gmra.mxu1 %v9039_v25  ;;  %3550 = vmatpush.bf16.msra.mxu0 %v7037_v33  ;;  %v7405_v51 = vor.u32 %v7982_v54, %v7402_v53  ;;  %v7146_v11 = vld [vmem:[#allocation6 + $0x1d0] sm:$0xf0]  ;;  %v7946_v49 = vld [vmem:[#allocation6 + $0x2a4] sm:$0xf] }
 0x55c   : > { %3380 = vmatmul.bf16.vlgmr.msra.gmra.mxu2 %v9229_v8  ;;  %3639 = vmatpush.bf16.msra.mxu1 %v7165_v35  ;;  %v7149_v56 = vor.u32 %v7918_v59, %v7146_v11  ;;  %v7258_v38 = vld [vmem:[#allocation6 + $0x2b0] sm:$0xf0]  ;;  %v7882_v30 = vld [vmem:[#allocation6 + $0xa4] sm:$0xf] }
 0x55d   : > { %3728 = vmatpush.bf16.msrb.mxu2 %v7293_v36  ;;  %3469 = vmatmul.bf16.vlgmr.msra.gmra.mxu3 %v9237_v5  ;;  %v7261_v40 = vor.u32 %v7946_v49, %v7258_v38  ;;  %v7002_v28 = vld [vmem:[#allocation6 + $0xb0] sm:$0xf0]  ;;  %v7978_v45 = vld [vmem:[#allocation6 + $0x3a4] sm:$0xf] }
 0x55e   : > { %3817 = vmatpush.bf16.msrb.mxu3 %v7421_v19  ;;  %v7386_v12 = vld [vmem:[#allocation6 + $0x3b0] sm:$0xf0]  ;;  %v7005_v36 = vor.u32 %v7882_v30, %v7002_v28  ;;  %v7914_v13 = vld [vmem:[#allocation6 + $0x1a4] sm:$0xf] }
 0x55f   : > { %3551 = vmatpush.bf16.msra.mxu0 %v7021_v20  ;;  %v7389_v4 = vor.u32 %v7978_v45, %v7386_v12  ;;  %v7130_v19 = vld [vmem:[#allocation6 + $0x1b0] sm:$0xf0]  ;;  %v7942_v33 = vld [vmem:[#allocation6 + $0x284] sm:$0xf] }
 0x560   : > { %3640 = vmatpush.bf16.msra.mxu1 %v7149_v56  ;;  %v7133_v31 = vor.u32 %v7914_v13, %v7130_v19  ;;  %v10453_v50 = vld [vmem:[#allocation50_spill] sm:$0xff]  ;;  %v7878_v32 = vld [vmem:[#allocation6 + $0x84] sm:$0xf]  ;;  %v10456_v49 = vld [vmem:[#allocation53_spill] sm:$0xff] }
 0x561   : > { %3729 = vmatpush.bf16.msrb.mxu2 %v7277_v23  ;;  %v7242_v35 = vld [vmem:[#allocation6 + $0x290] sm:$0xf0]  ;;  %v7974_v23 = vld [vmem:[#allocation6 + $0x384] sm:$0xf] }
 0x562   : > { %3818 = vmatpush.bf16.msrb.mxu3 %v7405_v51  ;;  %v7245_v6 = vor.u32 %v7942_v33, %v7242_v35  ;;  %v6986_v7 = vld [vmem:[#allocation6 + $0x90] sm:$0xf0]  ;;  %v7910_v20 = vld [vmem:[#allocation6 + $0x184] sm:$0xf] }
 0x563   : > { %3552 = vmatpush.bf16.msra.mxu0 %v7005_v36  ;;  %v7370_v10 = vld [vmem:[#allocation6 + $0x390] sm:$0xf0]  ;;  %v6989_v54 = vor.u32 %v7878_v32, %v6986_v7  ;;  %v10454_v11 = vld [vmem:[#allocation51_spill] sm:$0xff]  ;;  %v10455_v56 = vld [vmem:[#allocation52_spill] sm:$0xff] }
 0x564   : > { %3641 = vmatpush.bf16.msra.mxu1 %v7133_v31  ;;  %v7373_v53 = vor.u32 %v7974_v23, %v7370_v10  ;;  %v7114_v51 = vld [vmem:[#allocation6 + $0x190] sm:$0xf0]  ;;  %v7938_v30 = vld [vmem:[#allocation6 + $0x264] sm:$0xf]  ;;  %v9422_v32 = vld [vmem:[#allocation7] sm:$0xf] }
 0x565   : > { %3730 = vmatpush.bf16.msrb.mxu2 %v7261_v40  ;;  %v7117_v59 = vor.u32 %v7910_v20, %v7114_v51  ;;  %v10457_v38 = vld [vmem:[#allocation54_spill] sm:$0xff]  ;;  %v7874_v28 = vld [vmem:[#allocation6 + $0x64] sm:$0xf] }
 0x566   : > { %3819 = vmatpush.bf16.msrb.mxu3 %v7389_v4  ;;  %v7226_v40 = vld [vmem:[#allocation6 + $0x270] sm:$0xf0]  ;;  %v7970_v36 = vld [vmem:[#allocation6 + $0x364] sm:$0xf] }
 0x567   : > { %3553 = vmatpush.bf16.msra.mxu0 %v6989_v54  ;;  %v7229_v45 = vor.u32 %v7938_v30, %v7226_v40  ;;  %v6970_v12 = vld [vmem:[#allocation6 + $0x70] sm:$0xf0]  ;;  %v7906_v31 = vld [vmem:[#allocation6 + $0x164] sm:$0xf] }
 0x568   : > { %3642 = vmatpush.bf16.msra.mxu1 %v7117_v59  ;;  %v7354_v4 = vld [vmem:[#allocation6 + $0x370] sm:$0xf0]  ;;  %v6973_v13 = vor.u32 %v7874_v28, %v6970_v12  ;;  %v7870_v51 = vld [vmem:[#allocation6 + $0x44] sm:$0xf] }
 0x569   : > { %3731 = vmatpush.bf16.msrb.mxu2 %v7245_v6  ;;  %v7357_v19 = vor.u32 %v7970_v36, %v7354_v4  ;;  %v7098_v33 = vld [vmem:[#allocation6 + $0x170] sm:$0xf0]  ;;  %v9425_v6 = vperm.slane %v9422_v32, 0  ;;  %v7966_v28 = vld [vmem:[#allocation6 + $0x344] sm:$0xf] }
 0x56a   : > { %3207 = vmatmul.bf16.gmra.mxu0 %v9043_v48  ;;  %3820 = vmatpush.bf16.msrb.mxu3 %v7373_v53  ;;  %v7101_v35 = vor.u32 %v7906_v31, %v7098_v33  ;;  %v7934_v53 = vld [vmem:[#allocation6 + $0x244] sm:$0xf]  ;;  %v7210_v20 = vld [vmem:[#allocation6 + $0x250] sm:$0xf0] }
 0x56b   : > { %3296 = vmatmul.bf16.gmra.mxu1 %v9051_v46  ;;  %3554 = vmatpush.bf16.msra.mxu0 %v6973_v13  ;;  %v7213_v30 = vor.u32 %v7934_v53, %v7210_v20  ;;  %v6954_v40 = vld [vmem:[#allocation6 + $0x50] sm:$0xf0] }
 0x56c   : > { %3385 = vmatmul.bf16.gmra.mxu2 %v9241_v22  ;;  %3643 = vmatpush.bf16.msra.mxu1 %v7101_v35  ;;  %v6957_v13 = vor.u32 %v7870_v51, %v6954_v40 }
 0x56d   : > { %3474 = vmatmul.bf16.gmra.mxu3 %v9249_v3  ;;  %3732 = vmatpush.bf16.msrb.mxu2 %v7229_v45  ;;  %v7338_v45 = vld [vmem:[#allocation6 + $0x350] sm:$0xf0] }
 0x56e   : > { %3821 = vmatpush.bf16.msrb.mxu3 %v7357_v19  ;;  %v7341_v19 = vor.u32 %v7966_v28, %v7338_v45 }
 0x56f   : > { %3555 = vmatpush.bf16.msra.mxu0 %v6957_v13 }
 0x571   : > { %3733 = vmatpush.bf16.msrb.mxu2 %v7213_v30 }
 0x572   : > { %3822 = vmatpush.bf16.msrb.mxu3 %v7341_v19 }
 0x57a   : > { %3212 = vmatmul.bf16.gmra.mxu0 %v9055_v55 }
 0x57b   : > { %3301 = vmatmul.bf16.gmra.mxu1 %v9063_v29 }
 0x57c   : > { %3390 = vmatmul.bf16.gmra.mxu2 %v9253_v16 }
 0x57d   : > { %3479 = vmatmul.bf16.gmra.mxu3 %v9261_v41 }
 0x58a   : > { %3217 = vmatmul.bf16.gmra.mxu0 %v9067_v0 }
 0x58b   : > { %3306 = vmatmul.bf16.gmra.mxu1 %v10453_v50 }
 0x58c   : > { %3395 = vmatmul.bf16.gmra.mxu2 %v9265_v21 }
 0x58d   : > { %3484 = vmatmul.bf16.gmra.mxu3 %v9273_v47 }
 0x59a   : > { %3222 = vmatmul.bf16.gmra.mxu0 %v9079_v58 }
 0x59b   : > { %3311 = vmatmul.bf16.gmra.mxu1 %v9087_v1 }
 0x59c   : > { %3400 = vmatmul.bf16.gmra.mxu2 %v9277_v26 }
 0x59d   : > { %3489 = vmatmul.bf16.gmra.mxu3 %v9285_v43 }
 0x5aa   : > { %3227 = vmatmul.bf16.gmra.mxu0 %v10454_v11 }
 0x5ab   : > { %3316 = vmatmul.bf16.gmra.mxu1 %v10455_v56 }
 0x5ac   : > { %3405 = vmatmul.bf16.gmra.mxu2 %v9289_v34 }
 0x5ad   : > { %3494 = vmatmul.bf16.gmra.mxu3 %v9297_v18 }
 0x5ba   : > { %3232 = vmatmul.bf16.gmra.mxu0 %v10456_v49 }
 0x5bb   : > { %3321 = vmatmul.bf16.gmra.mxu1 %v10457_v38 }
 0x5bc   : > { %3410 = vmatmul.bf16.gmra.mxu2 %v9301_v39 }
 0x5bd   : > { %3499 = vmatmul.bf16.gmra.mxu3 %v9309_v27 }
 0x5ca   : > { %3237 = vmatmul.bf16.gmra.mxu0 %v9115_v14 }
 0x5cb   : > { %3326 = vmatmul.bf16.gmra.mxu1 %v9123_v24 }
 0x5cc   : > { %3415 = vmatmul.bf16.gmra.mxu2 %v9313_v44 }
 0x5cd   : > { %3504 = vmatmul.bf16.gmra.mxu3 %v9317_v17 }
 0x5d7   : > { %v3203_v7 = vpop.f32.mrf.mxu0 }
 0x5d8   : > { %v3204_v23 = vadd.f32 %v3203_v7, %v9425_v6  ;;  %v3292_v10 = vpop.f32.mrf.mxu1 }
 0x5da   : > { %v3293_v54 = vadd.f32 %v3292_v10, %v3204_v23  ;;  %3242 = vmatmul.bf16.gmra.mxu0 %v9127_v15  ;;  %v7902_v23 = vld [vmem:[#allocation6 + $0x144] sm:$0xf]  ;;  %v7082_v10 = vld [vmem:[#allocation6 + $0x150] sm:$0xf0] }
 0x5db   : > { %3331 = vmatmul.bf16.gmra.mxu1 %v9135_v63 }
 0x5dc   : > { %3420 = vmatmul.bf16.gmra.mxu2 %v9321_v61 }
 0x5dd   : > { %3509 = vmatmul.bf16.gmra.mxu3 %v9325_v60  ;;  %v7085_v60 = vor.u32 %v7902_v23, %v7082_v10 }
 0x5df   : > { %v3381_v59 = vpop.f32.mrf.mxu2  ;;  %v3205_v4 = vpop.f32.mrf.mxu0  ;;  %3644 = vmatpush.bf16.msra.mxu1 %v7085_v60 }
 0x5e0   : > { %v3382_v12 = vadd.f32 %v3381_v59, %v3293_v54  ;;  %v3470_v36 = vpop.f32.mrf.mxu3  ;;  %v3206_v31 = vadd.f32 %v3205_v4, %v9425_v6  ;;  %v3294_v33 = vpop.f32.mrf.mxu1 }
 0x5e2   : > { %v3471_v35 = vadd.f32 %v3470_v36, %v3382_v12  ;;  %v3295_v7 = vadd.f32 %v3294_v33, %v3206_v31 }
 0x5e4   : > { %v4618_v30 = vmax.f32 %v3471_v35, 0.0 }
 0x5e7   : > { %v3383_v53 = vpop.f32.mrf.mxu2  ;;  %v3208_v54 = vpop.f32.mrf.mxu0 }
 0x5e8   : > { %v3384_v20 = vadd.f32 %v3383_v53, %v3295_v7  ;;  %v3472_v61 = vpop.f32.mrf.mxu3  ;;  %v3209_v59 = vadd.f32 %v3208_v54, %v9425_v6  ;;  %v3297_v51 = vpop.f32.mrf.mxu1 }
 0x5ea   : > { %v3473_v40 = vadd.f32 %v3472_v61, %v3384_v20  ;;  %v3298_v28 = vadd.f32 %v3297_v51, %v3209_v59  ;;  %3247 = vmatmul.bf16.gmra.mxu0 %v9139_v57 }
 0x5eb   : > { %3336 = vmatmul.bf16.gmra.mxu1 %v9147_v9 }
 0x5ec   : > { %v4622_v45 = vmax.f32 %v3473_v40, 0.0  ;;  %3425 = vmatmul.bf16.gmra.mxu2 %v9329_v37 }
 0x5ed   : > { %3514 = vmatmul.bf16.gmra.mxu3 %v9333_v52 }
 0x5ee   : > { %v9438_v12 = vpack.c.bf16 %v4622_v45, %v4618_v30  ;;  %v10460_v30 = vld [vmem:[#allocation70_spill] sm:$0xff] }
 0x5ef   : > { %v3386_v60 = vpop.f32.mrf.mxu2  ;;  %v3210_v13 = vpop.f32.mrf.mxu0 }
 0x5f0   : > { %10458 = vst [vmem:[#allocation50_spill] sm:$0xff] %v9438_v12  ;;  %v3387_v36 = vadd.f32 %v3386_v60, %v3298_v28  ;;  %v3475_v4 = vpop.f32.mrf.mxu3  ;;  %v3211_v19 = vadd.f32 %v3210_v13, %v9425_v6  ;;  %v3299_v61 = vpop.f32.mrf.mxu1  ;;  %v10459_v28 = vld [vmem:[#allocation69_spill] sm:$0xff]  ;;  %v7930_v60 = vld [vmem:[#allocation6 + $0x224] sm:$0xf] }
 0x5f2   : > { %v3476_v31 = vadd.f32 %v3475_v4, %v3387_v36  ;;  %v3300_v33 = vadd.f32 %v3299_v61, %v3211_v19  ;;  %v7194_v36 = vld [vmem:[#allocation6 + $0x230] sm:$0xf0]  ;;  %v7866_v4 = vld [vmem:[#allocation6 + $0x24] sm:$0xf] }
 0x5f3   : > { %v7197_v19 = vor.u32 %v7930_v60, %v7194_v36  ;;  %v6938_v61 = vld [vmem:[#allocation6 + $0x30] sm:$0xf0] }
 0x5f4   : > { %v4626_v51 = vmax.f32 %v3476_v31, 0.0 }
 0x5f5   : > { %3734 = vmatpush.bf16.msrb.mxu2 %v7197_v19 }
 0x5f7   : > { %v3388_v7 = vpop.f32.mrf.mxu2  ;;  %v3213_v10 = vpop.f32.mrf.mxu0 }
 0x5f8   : > { %v3389_v35 = vadd.f32 %v3388_v7, %v3300_v33  ;;  %v3477_v23 = vpop.f32.mrf.mxu3  ;;  %v3214_v53 = vadd.f32 %v3213_v10, %v9425_v6  ;;  %v3302_v20 = vpop.f32.mrf.mxu1  ;;  %v7962_v33 = vld [vmem:[#allocation6 + $0x324] sm:$0xf]  ;;  %v7322_v7 = vld [vmem:[#allocation6 + $0x330] sm:$0xf0]  ;;  %v6941_v10 = vor.u32 %v7866_v4, %v6938_v61 }
 0x5fa   : > { %v3478_v54 = vadd.f32 %v3477_v23, %v3389_v35  ;;  %v3303_v59 = vadd.f32 %v3302_v20, %v3214_v53  ;;  %3252 = vmatmul.bf16.gmra.mxu0 %v9151_v62  ;;  %v7325_v53 = vor.u32 %v7962_v33, %v7322_v7  ;;  %v10462_v7 = vld [vmem:[#allocation55_spill] sm:$0xff] }
 0x5fb   : > { %3341 = vmatmul.bf16.gmra.mxu1 %v9159_v2  ;;  %3556 = vmatpush.bf16.msra.mxu0 %v6941_v10  ;;  %v10465_v10 = vld [vmem:[#allocation72_spill] sm:$0xff] }
 0x5fc   : > { %v4630_v40 = vmax.f32 %v3478_v54, 0.0  ;;  %3430 = vmatmul.bf16.gmra.mxu2 %v10459_v28  ;;  %3823 = vmatpush.bf16.msrb.mxu3 %v7325_v53 }
 0x5fd   : > { %3519 = vmatmul.bf16.gmra.mxu3 %v10460_v30 }
 0x5fe   : > { %v9446_v45 = vpack.c.bf16 %v4630_v40, %v4626_v51  ;;  %v7898_v40 = vld [vmem:[#allocation6 + $0x124] sm:$0xf] }
 0x5ff   : > { %v3391_v13 = vpop.f32.mrf.mxu2  ;;  %v3215_v31 = vpop.f32.mrf.mxu0 }
 0x600   : > { %10461 = vst [vmem:[#allocation51_spill] sm:$0xff] %v9446_v45  ;;  %v3392_v35 = vadd.f32 %v3391_v13, %v3303_v59  ;;  %v3480_v23 = vpop.f32.mrf.mxu3  ;;  %v3216_v20 = vadd.f32 %v3215_v31, %v9425_v6  ;;  %v3304_v54 = vpop.f32.mrf.mxu1  ;;  %v7066_v45 = vld [vmem:[#allocation6 + $0x130] sm:$0xf0]  ;;  %v10464_v31 = vld [vmem:[#allocation71_spill] sm:$0xff] }
 0x601   : > { %v7069_v30 = vor.u32 %v7898_v40, %v7066_v45 }
 0x602   : > { %v3481_v12 = vadd.f32 %v3480_v23, %v3392_v35  ;;  %v3305_v51 = vadd.f32 %v3304_v54, %v3216_v20  ;;  %v10463_v23 = vld [vmem:[#allocation56_spill] sm:$0xff] }
 0x603   : > { %3645 = vmatpush.bf16.msra.mxu1 %v7069_v30 }
 0x604   : > { %v4634_v19 = vmax.f32 %v3481_v12, 0.0 }
 0x607   : > { %v3393_v60 = vpop.f32.mrf.mxu2  ;;  %v3218_v59 = vpop.f32.mrf.mxu0 }
 0x608   : > { %v3394_v36 = vadd.f32 %v3393_v60, %v3305_v51  ;;  %v3482_v28 = vpop.f32.mrf.mxu3  ;;  %v3219_v13 = vadd.f32 %v3218_v59, %v9425_v6  ;;  %v3307_v4 = vpop.f32.mrf.mxu1 }
 0x60a   : > { %v3483_v61 = vadd.f32 %v3482_v28, %v3394_v36  ;;  %v3308_v33 = vadd.f32 %v3307_v4, %v3219_v13  ;;  %3257 = vmatmul.bf16.gmra.mxu0 %v10462_v7 }
 0x60b   : > { %3346 = vmatmul.bf16.gmra.mxu1 %v10463_v23 }
 0x60c   : > { %v4638_v35 = vmax.f32 %v3483_v61, 0.0  ;;  %3435 = vmatmul.bf16.gmra.mxu2 %v10464_v31 }
 0x60d   : > { %3524 = vmatmul.bf16.gmra.mxu3 %v10465_v10 }
 0x60e   : > { %v9454_v45 = vpack.c.bf16 %v4638_v35, %v4634_v19  ;;  %v10467_v19 = vld [vmem:[#allocation57_spill] sm:$0xff] }
 0x60f   : > { %v3396_v30 = vpop.f32.mrf.mxu2  ;;  %v3220_v54 = vpop.f32.mrf.mxu0 }
 0x610   : > { %10466 = vst [vmem:[#allocation52_spill] sm:$0xff] %v9454_v45  ;;  %v3397_v53 = vadd.f32 %v3396_v30, %v3308_v33  ;;  %v3485_v20 = vpop.f32.mrf.mxu3  ;;  %v3221_v51 = vadd.f32 %v3220_v54, %v9425_v6  ;;  %v3309_v28 = vpop.f32.mrf.mxu1  ;;  %v10468_v30 = vld [vmem:[#allocation58_spill] sm:$0xff]  ;;  %v10469_v45 = vld [vmem:[#allocation73_spill] sm:$0xff] }
 0x611   : > { %v10470_v54 = vld [vmem:[#allocation74_spill] sm:$0xff] }
 0x612   : > { %v3486_v40 = vadd.f32 %v3485_v20, %v3397_v53  ;;  %v3310_v60 = vadd.f32 %v3309_v28, %v3221_v51  ;;  %v7926_v20 = vld [vmem:[#allocation6 + $0x204] sm:$0xf]  ;;  %v7178_v51 = vld [vmem:[#allocation6 + $0x210] sm:$0xf0] }
 0x613   : > { %v7862_v28 = vld [vmem:[#allocation6 + $0x4] sm:$0xf] }
 0x614   : > { %v4642_v35 = vmax.f32 %v3486_v40, 0.0 }
 0x617   : > { %v3398_v36 = vpop.f32.mrf.mxu2  ;;  %v3223_v13 = vpop.f32.mrf.mxu0 }
 0x618   : > { %v3399_v12 = vadd.f32 %v3398_v36, %v3310_v60  ;;  %v3487_v59 = vpop.f32.mrf.mxu3  ;;  %v3224_v4 = vadd.f32 %v3223_v13, %v9425_v6  ;;  %v3312_v61 = vpop.f32.mrf.mxu1  ;;  %v7181_v36 = vor.u32 %v7926_v20, %v7178_v51  ;;  %v6922_v13 = vld [vmem:[#allocation6 + $0x10] sm:$0xf0] }
 0x61a   : > { %v3488_v31 = vadd.f32 %v3487_v59, %v3399_v12  ;;  %v3313_v10 = vadd.f32 %v3312_v61, %v3224_v4  ;;  %3262 = vmatmul.bf16.gmra.mxu0 %v10467_v19  ;;  %v7958_v12 = vld [vmem:[#allocation6 + $0x304] sm:$0xf]  ;;  %v7306_v59 = vld [vmem:[#allocation6 + $0x310] sm:$0xf0]  ;;  %3735 = vmatpush.bf16.msrb.mxu2 %v7181_v36 }
 0x61b   : > { %3351 = vmatmul.bf16.gmra.mxu1 %v10468_v30  ;;  %v7309_v19 = vor.u32 %v7958_v12, %v7306_v59  ;;  %v10472_v59 = vld [vmem:[#allocation59_spill] sm:$0xff] }
 0x61c   : > { %v4646_v33 = vmax.f32 %v3488_v31, 0.0  ;;  %3440 = vmatmul.bf16.gmra.mxu2 %v10469_v45  ;;  %v6925_v31 = vor.u32 %v7862_v28, %v6922_v13 }
 0x61d   : > { %3529 = vmatmul.bf16.gmra.mxu3 %v10470_v54 }
 0x61e   : > { %v9462_v53 = vpack.c.bf16 %v4646_v33, %v4642_v35  ;;  %3557 = vmatpush.bf16.msra.mxu0 %v6925_v31  ;;  %3824 = vmatpush.bf16.msrb.mxu3 %v7309_v19  ;;  %v7894_v33 = vld [vmem:[#allocation6 + $0x104] sm:$0xf] }
 0x61f   : > { %v3401_v60 = vpop.f32.mrf.mxu2  ;;  %v3225_v40 = vpop.f32.mrf.mxu0  ;;  %v10475_v19 = vld [vmem:[#allocation76_spill] sm:$0xff] }
 0x620   : > { %10471 = vst [vmem:[#allocation53_spill] sm:$0xff] %v9462_v53  ;;  %v3402_v4 = vadd.f32 %v3401_v60, %v3313_v10  ;;  %v3490_v61 = vpop.f32.mrf.mxu3  ;;  %v3226_v30 = vadd.f32 %v3225_v40, %v9425_v6  ;;  %v3314_v45 = vpop.f32.mrf.mxu1  ;;  %v7050_v53 = vld [vmem:[#allocation6 + $0x110] sm:$0xf0] }
 0x621   : > { %v7053_v23 = vor.u32 %v7894_v33, %v7050_v53 }
 0x622   : > { %v3491_v54 = vadd.f32 %v3490_v61, %v3402_v4  ;;  %v3315_v35 = vadd.f32 %v3314_v45, %v3226_v30  ;;  %v10473_v61 = vld [vmem:[#allocation60_spill] sm:$0xff]  ;;  %v10474_v45 = vld [vmem:[#allocation75_spill] sm:$0xff] }
 0x623   : > { %3646 = vmatpush.bf16.msra.mxu1 %v7053_v23 }
 0x624   : > { %v4650_v36 = vmax.f32 %v3491_v54, 0.0 }
 0x627   : > { %v3403_v20 = vpop.f32.mrf.mxu2  ;;  %v3228_v10 = vpop.f32.mrf.mxu0 }
 0x628   : > { %v3404_v51 = vadd.f32 %v3403_v20, %v3315_v35  ;;  %v3492_v7 = vpop.f32.mrf.mxu3  ;;  %v3229_v60 = vadd.f32 %v3228_v10, %v9425_v6  ;;  %v3317_v28 = vpop.f32.mrf.mxu1 }
 0x62a   : > { %v3493_v13 = vadd.f32 %v3492_v7, %v3404_v51  ;;  %v3318_v12 = vadd.f32 %v3317_v28, %v3229_v60  ;;  %3267 = vmatmul.bf16.gmra.mxu0 %v10472_v59 }
 0x62b   : > { %3356 = vmatmul.bf16.gmra.mxu1 %v10473_v61 }
 0x62c   : > { %v4654_v4 = vmax.f32 %v3493_v13, 0.0  ;;  %3445 = vmatmul.bf16.gmra.mxu2 %v10474_v45 }
 0x62d   : > { %3534 = vmatmul.bf16.gmra.mxu3 %v10475_v19 }
 0x62e   : > { %v9470_v30 = vpack.c.bf16 %v4654_v4, %v4650_v36  ;;  %v10477_v36 = vld [vmem:[#allocation61_spill] sm:$0xff] }
 0x62f   : > { %v3406_v23 = vpop.f32.mrf.mxu2  ;;  %v3230_v31 = vpop.f32.mrf.mxu0 }
 0x630   : > { %10476 = vst [vmem:[#allocation54_spill] sm:$0xff] %v9470_v30  ;;  %v3407_v53 = vadd.f32 %v3406_v23, %v3318_v12  ;;  %v3495_v40 = vpop.f32.mrf.mxu3  ;;  %v3231_v35 = vadd.f32 %v3230_v31, %v9425_v6  ;;  %v3319_v7 = vpop.f32.mrf.mxu1  ;;  %v10478_v23 = vld [vmem:[#allocation62_spill] sm:$0xff]  ;;  %v10479_v30 = vld [vmem:[#allocation77_spill] sm:$0xff] }
 0x631   : > { %v10480_v31 = vld [vmem:[#allocation78_spill] sm:$0xff] }
 0x632   : > { %v3496_v33 = vadd.f32 %v3495_v40, %v3407_v53  ;;  %v3320_v20 = vadd.f32 %v3319_v7, %v3231_v35  ;;  %v7296_v40 = vld [vmem:[#allocation6 + $0x2e8] sm:$0xf]  ;;  %v7957_v35 = vld [vmem:[#allocation6 + $0x2f4] sm:$0xf0] }
 0x633   : > { %v7040_v7 = vld [vmem:[#allocation6 + $0xe8] sm:$0xf] }
 0x634   : > { %v4658_v4 = vmax.f32 %v3496_v33, 0.0 }
 0x637   : > { %v3408_v51 = vpop.f32.mrf.mxu2  ;;  %v3233_v60 = vpop.f32.mrf.mxu0 }
 0x638   : > { %v3409_v54 = vadd.f32 %v3408_v51, %v3320_v20  ;;  %v3497_v10 = vpop.f32.mrf.mxu3  ;;  %v3234_v28 = vadd.f32 %v3233_v60, %v9425_v6  ;;  %v3322_v13 = vpop.f32.mrf.mxu1  ;;  %v7297_v51 = vor.u32 %v7957_v35, %v7296_v40  ;;  %v7893_v60 = vld [vmem:[#allocation6 + $0xf4] sm:$0xf0] }
 0x63a   : > { %v3498_v45 = vadd.f32 %v3497_v10, %v3409_v54  ;;  %v3323_v19 = vadd.f32 %v3322_v13, %v3234_v28  ;;  %3272 = vmatmul.bf16.gmra.mxu0 %v10477_v36  ;;  %v7424_v54 = vld [vmem:[#allocation6 + $0x3e8] sm:$0xf]  ;;  %v7989_v10 = vld [vmem:[#allocation6 + $0x3f4] sm:$0xf0]  ;;  %4084 = vmatpush.bf16.msra.mxu2 %v7297_v51 }
 0x63b   : > { %3361 = vmatmul.bf16.gmra.mxu1 %v10478_v23  ;;  %v7425_v36 = vor.u32 %v7989_v10, %v7424_v54  ;;  %v10482_v10 = vld [vmem:[#allocation63_spill] sm:$0xff] }
 0x63c   : > { %v4662_v12 = vmax.f32 %v3498_v45, 0.0  ;;  %3450 = vmatmul.bf16.gmra.mxu2 %v10479_v30  ;;  %v7041_v45 = vor.u32 %v7893_v60, %v7040_v7 }
 0x63d   : > { %3539 = vmatmul.bf16.gmra.mxu3 %v10480_v31 }
 0x63e   : > { %v9478_v53 = vpack.c.bf16 %v4662_v12, %v4658_v4  ;;  %3906 = vmatpush.bf16.msrb.mxu0 %v7041_v45  ;;  %4173 = vmatpush.bf16.msra.mxu3 %v7425_v36  ;;  %v7168_v12 = vld [vmem:[#allocation6 + $0x1e8] sm:$0xf] }
 0x63f   : > { %v3411_v20 = vpop.f32.mrf.mxu2  ;;  %v3235_v33 = vpop.f32.mrf.mxu0  ;;  %v10485_v36 = vld [vmem:[#allocation80_spill] sm:$0xff] }
 0x640   : > { %10481 = vst [vmem:[#allocation81_spill] sm:$0xff] %v9478_v53  ;;  %v3412_v28 = vadd.f32 %v3411_v20, %v3323_v19  ;;  %v3500_v13 = vpop.f32.mrf.mxu3  ;;  %v3236_v23 = vadd.f32 %v3235_v33, %v9425_v6  ;;  %v3324_v30 = vpop.f32.mrf.mxu1  ;;  %v7925_v53 = vld [vmem:[#allocation6 + $0x1f4] sm:$0xf0] }
 0x641   : > { %v7169_v61 = vor.u32 %v7925_v53, %v7168_v12 }
 0x642   : > { %v3501_v31 = vadd.f32 %v3500_v13, %v3412_v28  ;;  %v3325_v4 = vadd.f32 %v3324_v30, %v3236_v23  ;;  %v10483_v13 = vld [vmem:[#allocation64_spill] sm:$0xff]  ;;  %v10484_v30 = vld [vmem:[#allocation79_spill] sm:$0xff] }
 0x643   : > { %3995 = vmatpush.bf16.msrb.mxu1 %v7169_v61 }
 0x644   : > { %v4666_v51 = vmax.f32 %v3501_v31, 0.0 }
 0x647   : > { %v3413_v40 = vpop.f32.mrf.mxu2  ;;  %v3238_v19 = vpop.f32.mrf.mxu0 }
 0x648   : > { %v3414_v35 = vadd.f32 %v3413_v40, %v3325_v4  ;;  %v3502_v59 = vpop.f32.mrf.mxu3  ;;  %v3239_v20 = vadd.f32 %v3238_v19, %v9425_v6  ;;  %v3327_v7 = vpop.f32.mrf.mxu1 }
 0x64a   : > { %v3503_v60 = vadd.f32 %v3502_v59, %v3414_v35  ;;  %v3328_v54 = vadd.f32 %v3327_v7, %v3239_v20  ;;  %3277 = vmatmul.bf16.gmra.mxu0 %v10482_v10 }
 0x64b   : > { %3366 = vmatmul.bf16.gmra.mxu1 %v10483_v13 }
 0x64c   : > { %v4670_v28 = vmax.f32 %v3503_v60, 0.0  ;;  %3455 = vmatmul.bf16.gmra.mxu2 %v10484_v30 }
 0x64d   : > { %3544 = vmatmul.bf16.gmra.mxu3 %v10485_v36 }
 0x64e   : > { %v9486_v23 = vpack.c.bf16 %v4670_v28, %v4666_v51 }
 0x64f   : > { %v3416_v61 = vpop.f32.mrf.mxu2  ;;  %v3240_v45 = vpop.f32.mrf.mxu0 }
 0x650   : > { %10486 = vst [vmem:[#allocation63_spill] sm:$0xff] %v9486_v23  ;;  %v3417_v53 = vadd.f32 %v3416_v61, %v3328_v54  ;;  %v3505_v33 = vpop.f32.mrf.mxu3  ;;  %v3241_v4 = vadd.f32 %v3240_v45, %v9425_v6  ;;  %v3329_v59 = vpop.f32.mrf.mxu1  ;;  %v7280_v61 = vld [vmem:[#allocation6 + $0x2c8] sm:$0xf] }
 0x652   : > { %v3506_v12 = vadd.f32 %v3505_v33, %v3417_v53  ;;  %v3330_v40 = vadd.f32 %v3329_v59, %v3241_v4  ;;  %v7953_v53 = vld [vmem:[#allocation6 + $0x2d4] sm:$0xf0]  ;;  %v7024_v33 = vld [vmem:[#allocation6 + $0xc8] sm:$0xf] }
 0x653   : > { %v7281_v4 = vor.u32 %v7953_v53, %v7280_v61  ;;  %v7889_v59 = vld [vmem:[#allocation6 + $0xd4] sm:$0xf0] }
 0x654   : > { %v4674_v51 = vmax.f32 %v3506_v12, 0.0 }
 0x655   : > { %4085 = vmatpush.bf16.msra.mxu2 %v7281_v4 }
 0x657   : > { %v3418_v35 = vpop.f32.mrf.mxu2  ;;  %v3243_v20 = vpop.f32.mrf.mxu0 }
 0x658   : > { %v3419_v31 = vadd.f32 %v3418_v35, %v3330_v40  ;;  %v3507_v19 = vpop.f32.mrf.mxu3  ;;  %v3244_v7 = vadd.f32 %v3243_v20, %v9425_v6  ;;  %v3332_v60 = vpop.f32.mrf.mxu1  ;;  %v7408_v40 = vld [vmem:[#allocation6 + $0x3c8] sm:$0xf]  ;;  %v7985_v35 = vld [vmem:[#allocation6 + $0x3d4] sm:$0xf0] }
 0x659   : > { %v7409_v20 = vor.u32 %v7985_v35, %v7408_v40 }
 0x65a   : > { %v3508_v30 = vadd.f32 %v3507_v19, %v3419_v31  ;;  %v3333_v36 = vadd.f32 %v3332_v60, %v3244_v7  ;;  %3558 = vmatmul.bf16.vlgmr.msra.gmra.mxu0 %v9031_v42 }
 0x65b   : > { %3647 = vmatmul.bf16.vlgmr.msra.gmra.mxu1 %v9039_v25  ;;  %4174 = vmatpush.bf16.msra.mxu3 %v7409_v20 }
 0x65c   : > { %v4678_v54 = vmax.f32 %v3508_v30, 0.0  ;;  %3736 = vmatmul.bf16.vlgmr.msrb.gmra.mxu2 %v9229_v8  ;;  %v7025_v30 = vor.u32 %v7889_v59, %v7024_v33 }
 0x65d   : > { %3825 = vmatmul.bf16.vlgmr.msrb.gmra.mxu3 %v9237_v5 }
 0x65e   : > { %v9494_v28 = vpack.c.bf16 %v4678_v54, %v4674_v51  ;;  %3907 = vmatpush.bf16.msrb.mxu0 %v7025_v30  ;;  %v7152_v54 = vld [vmem:[#allocation6 + $0x1c8] sm:$0xf] }
 0x65f   : > { %v3421_v45 = vpop.f32.mrf.mxu2  ;;  %v3245_v12 = vpop.f32.mrf.mxu0 }
 0x660   : > { %10487 = vst [vmem:[#allocation64_spill] sm:$0xff] %v9494_v28  ;;  %v3422_v31 = vadd.f32 %v3421_v45, %v3333_v36  ;;  %v3510_v19 = vpop.f32.mrf.mxu3  ;;  %v3246_v7 = vadd.f32 %v3245_v12, %v9425_v6  ;;  %v3334_v60 = vpop.f32.mrf.mxu1  ;;  %v7921_v28 = vld [vmem:[#allocation6 + $0x1d4] sm:$0xf0] }
 0x661   : > { %v7153_v5 = vor.u32 %v7921_v28, %v7152_v54 }
 0x662   : > { %v3511_v23 = vadd.f32 %v3510_v19, %v3422_v31  ;;  %v3335_v51 = vadd.f32 %v3334_v60, %v3246_v7 }
 0x663   : > { %3996 = vmatpush.bf16.msrb.mxu1 %v7153_v5 }
 0x664   : > { %v4682_v4 = vmax.f32 %v3511_v23, 0.0 }
 0x667   : > { %v3423_v61 = vpop.f32.mrf.mxu2  ;;  %v3248_v36 = vpop.f32.mrf.mxu0 }
 0x668   : > { %v3424_v53 = vadd.f32 %v3423_v61, %v3335_v51  ;;  %v3512_v8 = vpop.f32.mrf.mxu3  ;;  %v3249_v45 = vadd.f32 %v3248_v36, %v9425_v6  ;;  %v3337_v33 = vpop.f32.mrf.mxu1 }
 0x66a   : > { %v3513_v59 = vadd.f32 %v3512_v8, %v3424_v53  ;;  %v3338_v40 = vadd.f32 %v3337_v33, %v3249_v45  ;;  %3563 = vmatmul.bf16.gmra.mxu0 %v9043_v48 }
 0x66b   : > { %3652 = vmatmul.bf16.gmra.mxu1 %v9051_v46 }
 0x66c   : > { %v4686_v35 = vmax.f32 %v3513_v59, 0.0  ;;  %3741 = vmatmul.bf16.gmra.mxu2 %v9241_v22 }
 0x66d   : > { %3830 = vmatmul.bf16.gmra.mxu3 %v9249_v3 }
 0x66e   : > { %v9502_v28 = vpack.c.bf16 %v4686_v35, %v4682_v4  ;;  %v7264_v4 = vld [vmem:[#allocation6 + $0x2a8] sm:$0xf]  ;;  %v7949_v35 = vld [vmem:[#allocation6 + $0x2b4] sm:$0xf0] }
 0x66f   : > { %v3426_v5 = vpop.f32.mrf.mxu2  ;;  %v3250_v12 = vpop.f32.mrf.mxu0 }
 0x670   : > { %10488 = vst [vmem:[#allocation82_spill] sm:$0xff] %v9502_v28  ;;  %v3427_v31 = vadd.f32 %v3426_v5, %v3338_v40  ;;  %v3515_v19 = vpop.f32.mrf.mxu3  ;;  %v3251_v30 = vadd.f32 %v3250_v12, %v9425_v6  ;;  %v3339_v8 = vpop.f32.mrf.mxu1  ;;  %v7008_v5 = vld [vmem:[#allocation6 + $0xa8] sm:$0xf]  ;;  %v7885_v12 = vld [vmem:[#allocation6 + $0xb4] sm:$0xf0] }
 0x672   : > { %v3516_v20 = vadd.f32 %v3515_v19, %v3427_v31  ;;  %v3340_v7 = vadd.f32 %v3339_v8, %v3251_v30  ;;  %v7265_v19 = vor.u32 %v7949_v35, %v7264_v4  ;;  %v7392_v30 = vld [vmem:[#allocation6 + $0x3a8] sm:$0xf]  ;;  %v7981_v8 = vld [vmem:[#allocation6 + $0x3b4] sm:$0xf0] }
 0x674   : > { %v4690_v33 = vmax.f32 %v3516_v20, 0.0  ;;  %4086 = vmatpush.bf16.msra.mxu2 %v7265_v19 }
 0x677   : > { %v3428_v60 = vpop.f32.mrf.mxu2  ;;  %v3253_v54 = vpop.f32.mrf.mxu0 }
 0x678   : > { %v3429_v23 = vadd.f32 %v3428_v60, %v3340_v7  ;;  %v3517_v51 = vpop.f32.mrf.mxu3  ;;  %v3254_v61 = vadd.f32 %v3253_v54, %v9425_v6  ;;  %v3342_v53 = vpop.f32.mrf.mxu1 }
 0x67a   : > { %v3518_v36 = vadd.f32 %v3517_v51, %v3429_v23  ;;  %v3343_v45 = vadd.f32 %v3342_v53, %v3254_v61  ;;  %3568 = vmatmul.bf16.gmra.mxu0 %v9055_v55  ;;  %v7009_v23 = vor.u32 %v7885_v12, %v7008_v5  ;;  %v7393_v51 = vor.u32 %v7981_v8, %v7392_v30 }
 0x67b   : > { %3657 = vmatmul.bf16.gmra.mxu1 %v9063_v29 }
 0x67c   : > { %v4694_v59 = vmax.f32 %v3518_v36, 0.0  ;;  %3746 = vmatmul.bf16.gmra.mxu2 %v9253_v16  ;;  %3908 = vmatpush.bf16.msrb.mxu0 %v7009_v23 }
 0x67d   : > { %3835 = vmatmul.bf16.gmra.mxu3 %v9261_v41 }
 0x67e   : > { %v9510_v40 = vpack.c.bf16 %v4694_v59, %v4690_v33  ;;  %4175 = vmatpush.bf16.msra.mxu3 %v7393_v51  ;;  %v7136_v33 = vld [vmem:[#allocation6 + $0x1a8] sm:$0xf]  ;;  %v7917_v59 = vld [vmem:[#allocation6 + $0x1b4] sm:$0xf0] }
 0x67f   : > { %v3431_v31 = vpop.f32.mrf.mxu2  ;;  %v3255_v20 = vpop.f32.mrf.mxu0 }
 0x680   : > { %10489 = vst [vmem:[#allocation83_spill] sm:$0xff] %v9510_v40  ;;  %v3432_v7 = vadd.f32 %v3431_v31, %v3343_v45  ;;  %v3520_v60 = vpop.f32.mrf.mxu3  ;;  %v3256_v54 = vadd.f32 %v3255_v20, %v9425_v6  ;;  %v3344_v61 = vpop.f32.mrf.mxu1  ;;  %v7137_v40 = vor.u32 %v7917_v59, %v7136_v33 }
 0x682   : > { %v3521_v53 = vadd.f32 %v3520_v60, %v3432_v7  ;;  %v3345_v36 = vadd.f32 %v3344_v61, %v3256_v54  ;;  %3997 = vmatpush.bf16.msrb.mxu1 %v7137_v40 }
 0x684   : > { %v4698_v19 = vmax.f32 %v3521_v53, 0.0 }
 0x687   : > { %v3433_v4 = vpop.f32.mrf.mxu2  ;;  %v3258_v45 = vpop.f32.mrf.mxu0 }
 0x688   : > { %v3434_v35 = vadd.f32 %v3433_v4, %v3345_v36  ;;  %v3522_v28 = vpop.f32.mrf.mxu3  ;;  %v3259_v31 = vadd.f32 %v3258_v45, %v9425_v6  ;;  %v3347_v5 = vpop.f32.mrf.mxu1 }
 0x68a   : > { %v3523_v12 = vadd.f32 %v3522_v28, %v3434_v35  ;;  %v3348_v30 = vadd.f32 %v3347_v5, %v3259_v31  ;;  %3573 = vmatmul.bf16.gmra.mxu0 %v9067_v0 }
 0x68b   : > { %3662 = vmatmul.bf16.gmra.mxu1 %v10453_v50 }
 0x68c   : > { %v4702_v8 = vmax.f32 %v3523_v12, 0.0  ;;  %3751 = vmatmul.bf16.gmra.mxu2 %v9265_v21 }
 0x68d   : > { %3840 = vmatmul.bf16.gmra.mxu3 %v9273_v47 }
 0x68e   : > { %v9518_v7 = vpack.c.bf16 %v4702_v8, %v4698_v19  ;;  %v7248_v19 = vld [vmem:[#allocation6 + $0x288] sm:$0xf]  ;;  %v7945_v8 = vld [vmem:[#allocation6 + $0x294] sm:$0xf0] }
 0x68f   : > { %v3436_v40 = vpop.f32.mrf.mxu2  ;;  %v3260_v23 = vpop.f32.mrf.mxu0 }
 0x690   : > { %10490 = vst [vmem:[#allocation84_spill] sm:$0xff] %v9518_v7  ;;  %v3437_v60 = vadd.f32 %v3436_v40, %v3348_v30  ;;  %v3525_v20 = vpop.f32.mrf.mxu3  ;;  %v3261_v51 = vadd.f32 %v3260_v23, %v9425_v6  ;;  %v3349_v28 = vpop.f32.mrf.mxu1  ;;  %v6992_v40 = vld [vmem:[#allocation6 + $0x88] sm:$0xf]  ;;  %v7881_v23 = vld [vmem:[#allocation6 + $0x94] sm:$0xf0] }
 0x692   : > { %v3526_v54 = vadd.f32 %v3525_v20, %v3437_v60  ;;  %v3350_v61 = vadd.f32 %v3349_v28, %v3261_v51  ;;  %v7249_v20 = vor.u32 %v7945_v8, %v7248_v19  ;;  %v7376_v51 = vld [vmem:[#allocation6 + $0x388] sm:$0xf]  ;;  %v7977_v28 = vld [vmem:[#allocation6 + $0x394] sm:$0xf0] }
 0x694   : > { %v4706_v5 = vmax.f32 %v3526_v54, 0.0  ;;  %4087 = vmatpush.bf16.msra.mxu2 %v7249_v20 }
 0x697   : > { %v3438_v36 = vpop.f32.mrf.mxu2  ;;  %v3263_v59 = vpop.f32.mrf.mxu0 }
 0x698   : > { %v3439_v53 = vadd.f32 %v3438_v36, %v3350_v61  ;;  %v3527_v33 = vpop.f32.mrf.mxu3  ;;  %v3264_v4 = vadd.f32 %v3263_v59, %v9425_v6  ;;  %v3352_v35 = vpop.f32.mrf.mxu1 }
 0x69a   : > { %v3528_v45 = vadd.f32 %v3527_v33, %v3439_v53  ;;  %v3353_v31 = vadd.f32 %v3352_v35, %v3264_v4  ;;  %3578 = vmatmul.bf16.gmra.mxu0 %v9079_v58  ;;  %v6993_v53 = vor.u32 %v7881_v23, %v6992_v40  ;;  %v7377_v33 = vor.u32 %v7977_v28, %v7376_v51 }
 0x69b   : > { %3667 = vmatmul.bf16.gmra.mxu1 %v9087_v1 }
 0x69c   : > { %v4710_v12 = vmax.f32 %v3528_v45, 0.0  ;;  %3756 = vmatmul.bf16.gmra.mxu2 %v9277_v26  ;;  %3909 = vmatpush.bf16.msrb.mxu0 %v6993_v53 }
 0x69d   : > { %3845 = vmatmul.bf16.gmra.mxu3 %v9285_v43 }
 0x69e   : > { %v9526_v30 = vpack.c.bf16 %v4710_v12, %v4706_v5  ;;  %4176 = vmatpush.bf16.msra.mxu3 %v7377_v33  ;;  %v7120_v5 = vld [vmem:[#allocation6 + $0x188] sm:$0xf]  ;;  %v7913_v12 = vld [vmem:[#allocation6 + $0x194] sm:$0xf0] }
 0x69f   : > { %v3441_v60 = vpop.f32.mrf.mxu2  ;;  %v3265_v54 = vpop.f32.mrf.mxu0 }
 0x6a0   : > { %10491 = vst [vmem:[#allocation85_spill] sm:$0xff] %v9526_v30  ;;  %v3442_v61 = vadd.f32 %v3441_v60, %v3353_v31  ;;  %v3530_v36 = vpop.f32.mrf.mxu3  ;;  %v3266_v59 = vadd.f32 %v3265_v54, %v9425_v6  ;;  %v3354_v4 = vpop.f32.mrf.mxu1  ;;  %v7121_v30 = vor.u32 %v7913_v12, %v7120_v5 }
 0x6a2   : > { %v3531_v35 = vadd.f32 %v3530_v36, %v3442_v61  ;;  %v3355_v45 = vadd.f32 %v3354_v4, %v3266_v59  ;;  %3998 = vmatpush.bf16.msrb.mxu1 %v7121_v30 }
 0x6a4   : > { %v4714_v20 = vmax.f32 %v3531_v35, 0.0 }
 0x6a7   : > { %v3443_v19 = vpop.f32.mrf.mxu2  ;;  %v3268_v31 = vpop.f32.mrf.mxu0 }
 0x6a8   : > { %v3444_v8 = vadd.f32 %v3443_v19, %v3355_v45  ;;  %v3532_v7 = vpop.f32.mrf.mxu3  ;;  %v3269_v60 = vadd.f32 %v3268_v31, %v9425_v6  ;;  %v3357_v40 = vpop.f32.mrf.mxu1 }
 0x6aa   : > { %v3533_v23 = vadd.f32 %v3532_v7, %v3444_v8  ;;  %v3358_v51 = vadd.f32 %v3357_v40, %v3269_v60  ;;  %3583 = vmatmul.bf16.gmra.mxu0 %v10454_v11 }
 0x6ab   : > { %3672 = vmatmul.bf16.gmra.mxu1 %v10455_v56 }
 0x6ac   : > { %v4718_v28 = vmax.f32 %v3533_v23, 0.0  ;;  %3761 = vmatmul.bf16.gmra.mxu2 %v9289_v34 }
 0x6ad   : > { %3850 = vmatmul.bf16.gmra.mxu3 %v9297_v18 }
 0x6ae   : > { %v9534_v61 = vpack.c.bf16 %v4718_v28, %v4714_v20  ;;  %v7232_v20 = vld [vmem:[#allocation6 + $0x268] sm:$0xf]  ;;  %v7941_v28 = vld [vmem:[#allocation6 + $0x274] sm:$0xf0] }
 0x6af   : > { %v3446_v30 = vpop.f32.mrf.mxu2  ;;  %v3270_v53 = vpop.f32.mrf.mxu0 }
 0x6b0   : > { %10492 = vst [vmem:[#allocation86_spill] sm:$0xff] %v9534_v61  ;;  %v3447_v36 = vadd.f32 %v3446_v30, %v3358_v51  ;;  %v3535_v54 = vpop.f32.mrf.mxu3  ;;  %v3271_v33 = vadd.f32 %v3270_v53, %v9425_v6  ;;  %v3359_v7 = vpop.f32.mrf.mxu1  ;;  %v6976_v30 = vld [vmem:[#allocation6 + $0x68] sm:$0xf]  ;;  %v7877_v53 = vld [vmem:[#allocation6 + $0x74] sm:$0xf0] }
 0x6b2   : > { %v3536_v59 = vadd.f32 %v3535_v54, %v3447_v36  ;;  %v3360_v4 = vadd.f32 %v3359_v7, %v3271_v33  ;;  %v7233_v54 = vor.u32 %v7941_v28, %v7232_v20  ;;  %v7360_v33 = vld [vmem:[#allocation6 + $0x368] sm:$0xf]  ;;  %v7973_v7 = vld [vmem:[#allocation6 + $0x374] sm:$0xf0] }
 0x6b4   : > { %v4722_v40 = vmax.f32 %v3536_v59, 0.0  ;;  %4088 = vmatpush.bf16.msra.mxu2 %v7233_v54 }
 0x6b7   : > { %v3448_v45 = vpop.f32.mrf.mxu2  ;;  %v3273_v12 = vpop.f32.mrf.mxu0 }
 0x6b8   : > { %v3449_v35 = vadd.f32 %v3448_v45, %v3360_v4  ;;  %v3537_v5 = vpop.f32.mrf.mxu3  ;;  %v3274_v19 = vadd.f32 %v3273_v12, %v9425_v6  ;;  %v3362_v8 = vpop.f32.mrf.mxu1 }
 0x6ba   : > { %v3538_v31 = vadd.f32 %v3537_v5, %v3449_v35  ;;  %v3363_v60 = vadd.f32 %v3362_v8, %v3274_v19  ;;  %3588 = vmatmul.bf16.gmra.mxu0 %v10456_v49  ;;  %v6977_v35 = vor.u32 %v7877_v53, %v6976_v30  ;;  %v7361_v5 = vor.u32 %v7973_v7, %v7360_v33 }
 0x6bb   : > { %3677 = vmatmul.bf16.gmra.mxu1 %v10457_v38 }
 0x6bc   : > { %v4726_v23 = vmax.f32 %v3538_v31, 0.0  ;;  %3766 = vmatmul.bf16.gmra.mxu2 %v9301_v39  ;;  %3910 = vmatpush.bf16.msrb.mxu0 %v6977_v35 }
 0x6bd   : > { %3855 = vmatmul.bf16.gmra.mxu3 %v9309_v27 }
 0x6be   : > { %v9542_v51 = vpack.c.bf16 %v4726_v23, %v4722_v40  ;;  %4177 = vmatpush.bf16.msra.mxu3 %v7361_v5  ;;  %v7104_v40 = vld [vmem:[#allocation6 + $0x168] sm:$0xf]  ;;  %v7909_v23 = vld [vmem:[#allocation6 + $0x174] sm:$0xf0] }
 0x6bf   : > { %v3451_v36 = vpop.f32.mrf.mxu2  ;;  %v3275_v59 = vpop.f32.mrf.mxu0 }
 0x6c0   : > { %10493 = vst [vmem:[#allocation87_spill] sm:$0xff] %v9542_v51  ;;  %v3452_v4 = vadd.f32 %v3451_v36, %v3363_v60  ;;  %v3540_v45 = vpop.f32.mrf.mxu3  ;;  %v3276_v12 = vadd.f32 %v3275_v59, %v9425_v6  ;;  %v3364_v19 = vpop.f32.mrf.mxu1  ;;  %v7105_v51 = vor.u32 %v7909_v23, %v7104_v40 }
 0x6c2   : > { %v3541_v8 = vadd.f32 %v3540_v45, %v3452_v4  ;;  %v3365_v31 = vadd.f32 %v3364_v19, %v3276_v12  ;;  %3999 = vmatpush.bf16.msrb.mxu1 %v7105_v51 }
 0x6c4   : > { %v4730_v54 = vmax.f32 %v3541_v8, 0.0  ;;  %v9554_v8 = vperm.slane %v9422_v32, 1 }
 0x6c7   : > { %v3453_v20 = vpop.f32.mrf.mxu2  ;;  %v3278_v60 = vpop.f32.mrf.mxu0 }
 0x6c8   : > { %v3454_v28 = vadd.f32 %v3453_v20, %v3365_v31  ;;  %v3542_v61 = vpop.f32.mrf.mxu3  ;;  %v3279_v36 = vadd.f32 %v3278_v60, %v9425_v6  ;;  %v3367_v30 = vpop.f32.mrf.mxu1 }
 0x6ca   : > { %v3543_v53 = vadd.f32 %v3542_v61, %v3454_v28  ;;  %v3368_v33 = vadd.f32 %v3367_v30, %v3279_v36  ;;  %3593 = vmatmul.bf16.gmra.mxu0 %v9115_v14 }
 0x6cb   : > { %3682 = vmatmul.bf16.gmra.mxu1 %v9123_v24 }
 0x6cc   : > { %v4734_v7 = vmax.f32 %v3543_v53, 0.0  ;;  %3771 = vmatmul.bf16.gmra.mxu2 %v9313_v44 }
 0x6cd   : > { %3860 = vmatmul.bf16.gmra.mxu3 %v9317_v17 }
 0x6ce   : > { %v9550_v4 = vpack.c.bf16 %v4734_v7, %v4730_v54  ;;  %v10496_v54 = vld [vmem:[#allocation68_spill] sm:$0xff] }
 0x6cf   : > { %v3456_v51 = vpop.f32.mrf.mxu2  ;;  %v3280_v35 = vpop.f32.mrf.mxu0  ;;  %v7216_v7 = vld [vmem:[#allocation6 + $0x248] sm:$0xf] }
 0x6d0   : > { %10494 = vst [vmem:[#allocation88_spill] sm:$0xff] %v9550_v4  ;;  %v3457_v45 = vadd.f32 %v3456_v51, %v3368_v33  ;;  %v3545_v59 = vpop.f32.mrf.mxu3  ;;  %v3281_v5 = vadd.f32 %v3280_v35, %v9425_v6  ;;  %v3369_v61 = vpop.f32.mrf.mxu1  ;;  %v10495_v6 = vld [vmem:[#allocation67_spill] sm:$0xff]  ;;  %v7937_v51 = vld [vmem:[#allocation6 + $0x254] sm:$0xf0] }
 0x6d1   : > { %v7217_v35 = vor.u32 %v7937_v51, %v7216_v7 }
 0x6d2   : > { %v3546_v12 = vadd.f32 %v3545_v59, %v3457_v45  ;;  %v3370_v19 = vadd.f32 %v3369_v61, %v3281_v5  ;;  %v6960_v45 = vld [vmem:[#allocation6 + $0x48] sm:$0xf]  ;;  %v7873_v5 = vld [vmem:[#allocation6 + $0x54] sm:$0xf0] }
 0x6d3   : > { %v7344_v61 = vld [vmem:[#allocation6 + $0x348] sm:$0xf]  ;;  %4089 = vmatpush.bf16.msra.mxu2 %v7217_v35 }
 0x6d4   : > { %v4738_v53 = vmax.f32 %v3546_v12, 0.0 }
 0x6d7   : > { %v3458_v31 = vpop.f32.mrf.mxu2  ;;  %v3559_v20 = vpop.f32.mrf.mxu0 }
 0x6d8   : > { %v3459_v40 = vadd.f32 %v3458_v31, %v3370_v19  ;;  %v3547_v23 = vpop.f32.mrf.mxu3  ;;  %v3560_v28 = vadd.f32 %v3559_v20, %v9554_v8  ;;  %v3648_v60 = vpop.f32.mrf.mxu1  ;;  %v7969_v19 = vld [vmem:[#allocation6 + $0x354] sm:$0xf0] }
 0x6d9   : > { %v7345_v20 = vor.u32 %v7969_v19, %v7344_v61 }
 0x6da   : > { %v3548_v36 = vadd.f32 %v3547_v23, %v3459_v40  ;;  %v3649_v30 = vadd.f32 %v3648_v60, %v3560_v28  ;;  %3598 = vmatmul.bf16.gmra.mxu0 %v9127_v15  ;;  %v6961_v23 = vor.u32 %v7873_v5, %v6960_v45 }
 0x6db   : > { %3687 = vmatmul.bf16.gmra.mxu1 %v9135_v63  ;;  %4178 = vmatpush.bf16.msra.mxu3 %v7345_v20 }
 0x6dc   : > { %v4742_v33 = vmax.f32 %v3548_v36, 0.0  ;;  %3776 = vmatmul.bf16.gmra.mxu2 %v10495_v6  ;;  %3911 = vmatpush.bf16.msrb.mxu0 %v6961_v23 }
 0x6dd   : > { %3865 = vmatmul.bf16.gmra.mxu3 %v10496_v54 }
 0x6de   : > { %v9561_v32 = vpack.c.bf16 %v4742_v33, %v4738_v53  ;;  %v7088_v33 = vld [vmem:[#allocation6 + $0x148] sm:$0xf] }
 0x6df   : > { %v3737_v59 = vpop.f32.mrf.mxu2  ;;  %v3561_v12 = vpop.f32.mrf.mxu0 }
 0x6e0   : > { %10497 = vst [vmem:[#allocation89_spill] sm:$0xff] %v9561_v32  ;;  %v3738_v31 = vadd.f32 %v3737_v59, %v3649_v30  ;;  %v3826_v40 = vpop.f32.mrf.mxu3  ;;  %v3562_v28 = vadd.f32 %v3561_v12, %v9554_v8  ;;  %v3650_v60 = vpop.f32.mrf.mxu1  ;;  %v7905_v32 = vld [vmem:[#allocation6 + $0x154] sm:$0xf0] }
 0x6e1   : > { %v7089_v4 = vor.u32 %v7905_v32, %v7088_v33 }
 0x6e2   : > { %v3827_v36 = vadd.f32 %v3826_v40, %v3738_v31  ;;  %v3651_v53 = vadd.f32 %v3650_v60, %v3562_v28 }
 0x6e3   : > { %4000 = vmatpush.bf16.msrb.mxu1 %v7089_v4 }
 0x6e4   : > { %v4619_v35 = vmax.f32 %v3827_v36, 0.0 }
 0x6e7   : > { %v3739_v7 = vpop.f32.mrf.mxu2  ;;  %v3564_v30 = vpop.f32.mrf.mxu0 }
 0x6e8   : > { %v3740_v51 = vadd.f32 %v3739_v7, %v3651_v53  ;;  %v3828_v54 = vpop.f32.mrf.mxu3  ;;  %v3565_v59 = vadd.f32 %v3564_v30, %v9554_v8  ;;  %v3653_v45 = vpop.f32.mrf.mxu1 }
 0x6ea   : > { %v3829_v5 = vadd.f32 %v3828_v54, %v3740_v51  ;;  %v3654_v61 = vadd.f32 %v3653_v45, %v3565_v59  ;;  %3603 = vmatmul.bf16.gmra.mxu0 %v9139_v57 }
 0x6eb   : > { %3692 = vmatmul.bf16.gmra.mxu1 %v9147_v9 }
 0x6ec   : > { %v4623_v19 = vmax.f32 %v3829_v5, 0.0  ;;  %3781 = vmatmul.bf16.gmra.mxu2 %v9329_v37 }
 0x6ed   : > { %3870 = vmatmul.bf16.gmra.mxu3 %v9333_v52 }
 0x6ee   : > { %v9569_v32 = vpack.c.bf16 %v4623_v19, %v4619_v35  ;;  %v10500_v35 = vld [vmem:[#allocation70_spill] sm:$0xff] }
 0x6ef   : > { %v3742_v4 = vpop.f32.mrf.mxu2  ;;  %v3566_v12 = vpop.f32.mrf.mxu0 }
 0x6f0   : > { %10498 = vst [vmem:[#allocation90_spill] sm:$0xff] %v9569_v32  ;;  %v3743_v31 = vadd.f32 %v3742_v4, %v3654_v61  ;;  %v3831_v40 = vpop.f32.mrf.mxu3  ;;  %v3567_v23 = vadd.f32 %v3566_v12, %v9554_v8  ;;  %v3655_v54 = vpop.f32.mrf.mxu1  ;;  %v10499_v61 = vld [vmem:[#allocation69_spill] sm:$0xff]  ;;  %v7200_v4 = vld [vmem:[#allocation6 + $0x228] sm:$0xf] }
 0x6f2   : > { %v3832_v20 = vadd.f32 %v3831_v40, %v3743_v31  ;;  %v3656_v28 = vadd.f32 %v3655_v54, %v3567_v23  ;;  %v7933_v31 = vld [vmem:[#allocation6 + $0x234] sm:$0xf0]  ;;  %v6944_v40 = vld [vmem:[#allocation6 + $0x28] sm:$0xf] }
 0x6f3   : > { %v7201_v23 = vor.u32 %v7933_v31, %v7200_v4  ;;  %v7869_v54 = vld [vmem:[#allocation6 + $0x34] sm:$0xf0] }
 0x6f4   : > { %v4627_v45 = vmax.f32 %v3832_v20, 0.0 }
 0x6f5   : > { %4090 = vmatpush.bf16.msra.mxu2 %v7201_v23 }
 0x6f7   : > { %v3744_v60 = vpop.f32.mrf.mxu2  ;;  %v3569_v33 = vpop.f32.mrf.mxu0 }
 0x6f8   : > { %v3745_v36 = vadd.f32 %v3744_v60, %v3656_v28  ;;  %v3833_v53 = vpop.f32.mrf.mxu3  ;;  %v3570_v7 = vadd.f32 %v3569_v33, %v9554_v8  ;;  %v3658_v51 = vpop.f32.mrf.mxu1  ;;  %v7328_v28 = vld [vmem:[#allocation6 + $0x328] sm:$0xf]  ;;  %v7965_v60 = vld [vmem:[#allocation6 + $0x334] sm:$0xf0]  ;;  %v6945_v33 = vor.u32 %v7869_v54, %v6944_v40 }
 0x6fa   : > { %v3834_v30 = vadd.f32 %v3833_v53, %v3745_v36  ;;  %v3659_v59 = vadd.f32 %v3658_v51, %v3570_v7  ;;  %3608 = vmatmul.bf16.gmra.mxu0 %v9151_v62  ;;  %v7329_v7 = vor.u32 %v7965_v60, %v7328_v28  ;;  %v10502_v60 = vld [vmem:[#allocation55_spill] sm:$0xff] }
 0x6fb   : > { %3697 = vmatmul.bf16.gmra.mxu1 %v9159_v2  ;;  %3912 = vmatpush.bf16.msrb.mxu0 %v6945_v33  ;;  %v10505_v33 = vld [vmem:[#allocation72_spill] sm:$0xff] }
 0x6fc   : > { %v4631_v5 = vmax.f32 %v3834_v30, 0.0  ;;  %3786 = vmatmul.bf16.gmra.mxu2 %v10499_v61  ;;  %4179 = vmatpush.bf16.msra.mxu3 %v7329_v7 }
 0x6fd   : > { %3875 = vmatmul.bf16.gmra.mxu3 %v10500_v35 }
 0x6fe   : > { %v9577_v19 = vpack.c.bf16 %v4631_v5, %v4627_v45  ;;  %v7072_v5 = vld [vmem:[#allocation6 + $0x128] sm:$0xf] }
 0x6ff   : > { %v3747_v12 = vpop.f32.mrf.mxu2  ;;  %v3571_v20 = vpop.f32.mrf.mxu0 }
 0x700   : > { %10501 = vst [vmem:[#allocation91_spill] sm:$0xff] %v9577_v19  ;;  %v3748_v36 = vadd.f32 %v3747_v12, %v3659_v59  ;;  %v3836_v53 = vpop.f32.mrf.mxu3  ;;  %v3572_v51 = vadd.f32 %v3571_v20, %v9554_v8  ;;  %v3660_v30 = vpop.f32.mrf.mxu1  ;;  %v7901_v19 = vld [vmem:[#allocation6 + $0x134] sm:$0xf0]  ;;  %v10504_v20 = vld [vmem:[#allocation71_spill] sm:$0xff] }
 0x701   : > { %v7073_v35 = vor.u32 %v7901_v19, %v7072_v5 }
 0x702   : > { %v3837_v32 = vadd.f32 %v3836_v53, %v3748_v36  ;;  %v3661_v45 = vadd.f32 %v3660_v30, %v3572_v51  ;;  %v10503_v53 = vld [vmem:[#allocation56_spill] sm:$0xff] }
 0x703   : > { %4001 = vmatpush.bf16.msrb.mxu1 %v7073_v35 }
 0x704   : > { %v4635_v23 = vmax.f32 %v3837_v32, 0.0 }
 0x707   : > { %v3749_v4 = vpop.f32.mrf.mxu2  ;;  %v3574_v59 = vpop.f32.mrf.mxu0 }
 0x708   : > { %v3750_v31 = vadd.f32 %v3749_v4, %v3661_v45  ;;  %v3838_v61 = vpop.f32.mrf.mxu3  ;;  %v3575_v12 = vadd.f32 %v3574_v59, %v9554_v8  ;;  %v3663_v40 = vpop.f32.mrf.mxu1 }
 0x70a   : > { %v3839_v54 = vadd.f32 %v3838_v61, %v3750_v31  ;;  %v3664_v28 = vadd.f32 %v3663_v40, %v3575_v12  ;;  %3613 = vmatmul.bf16.gmra.mxu0 %v10502_v60 }
 0x70b   : > { %3702 = vmatmul.bf16.gmra.mxu1 %v10503_v53 }
 0x70c   : > { %v4639_v36 = vmax.f32 %v3839_v54, 0.0  ;;  %3791 = vmatmul.bf16.gmra.mxu2 %v10504_v20 }
 0x70d   : > { %3880 = vmatmul.bf16.gmra.mxu3 %v10505_v33 }
 0x70e   : > { %v9585_v19 = vpack.c.bf16 %v4639_v36, %v4635_v23  ;;  %v10507_v23 = vld [vmem:[#allocation57_spill] sm:$0xff] }
 0x70f   : > { %v3752_v35 = vpop.f32.mrf.mxu2  ;;  %v3576_v30 = vpop.f32.mrf.mxu0 }
 0x710   : > { %10506 = vst [vmem:[#allocation92_spill] sm:$0xff] %v9585_v19  ;;  %v3753_v7 = vadd.f32 %v3752_v35, %v3664_v28  ;;  %v3841_v51 = vpop.f32.mrf.mxu3  ;;  %v3577_v45 = vadd.f32 %v3576_v30, %v9554_v8  ;;  %v3665_v61 = vpop.f32.mrf.mxu1  ;;  %v10508_v35 = vld [vmem:[#allocation58_spill] sm:$0xff]  ;;  %v10509_v19 = vld [vmem:[#allocation73_spill] sm:$0xff] }
 0x711   : > { %v10510_v30 = vld [vmem:[#allocation74_spill] sm:$0xff] }
 0x712   : > { %v3842_v5 = vadd.f32 %v3841_v51, %v3753_v7  ;;  %v3666_v4 = vadd.f32 %v3665_v61, %v3577_v45  ;;  %v7184_v51 = vld [vmem:[#allocation6 + $0x208] sm:$0xf]  ;;  %v7929_v45 = vld [vmem:[#allocation6 + $0x214] sm:$0xf0] }
 0x713   : > { %v6928_v61 = vld [vmem:[#allocation6 + $0x8] sm:$0xf] }
 0x714   : > { %v4643_v36 = vmax.f32 %v3842_v5, 0.0 }
 0x717   : > { %v3754_v31 = vpop.f32.mrf.mxu2  ;;  %v3579_v12 = vpop.f32.mrf.mxu0 }
 0x718   : > { %v3755_v32 = vadd.f32 %v3754_v31, %v3666_v4  ;;  %v3843_v59 = vpop.f32.mrf.mxu3  ;;  %v3580_v40 = vadd.f32 %v3579_v12, %v9554_v8  ;;  %v3668_v54 = vpop.f32.mrf.mxu1  ;;  %v7185_v31 = vor.u32 %v7929_v45, %v7184_v51  ;;  %v7865_v12 = vld [vmem:[#allocation6 + $0x14] sm:$0xf0] }
 0x71a   : > { %v3844_v20 = vadd.f32 %v3843_v59, %v3755_v32  ;;  %v3669_v33 = vadd.f32 %v3668_v54, %v3580_v40  ;;  %3618 = vmatmul.bf16.gmra.mxu0 %v10507_v23  ;;  %v7312_v32 = vld [vmem:[#allocation6 + $0x308] sm:$0xf]  ;;  %v7961_v59 = vld [vmem:[#allocation6 + $0x314] sm:$0xf0]  ;;  %4091 = vmatpush.bf16.msra.mxu2 %v7185_v31 }
 0x71b   : > { %3707 = vmatmul.bf16.gmra.mxu1 %v10508_v35  ;;  %v7313_v23 = vor.u32 %v7961_v59, %v7312_v32  ;;  %v10512_v59 = vld [vmem:[#allocation59_spill] sm:$0xff] }
 0x71c   : > { %v4647_v28 = vmax.f32 %v3844_v20, 0.0  ;;  %3796 = vmatmul.bf16.gmra.mxu2 %v10509_v19  ;;  %v6929_v20 = vor.u32 %v7865_v12, %v6928_v61 }
 0x71d   : > { %3885 = vmatmul.bf16.gmra.mxu3 %v10510_v30 }
 0x71e   : > { %v9593_v7 = vpack.c.bf16 %v4647_v28, %v4643_v36  ;;  %3913 = vmatpush.bf16.msrb.mxu0 %v6929_v20  ;;  %4180 = vmatpush.bf16.msra.mxu3 %v7313_v23  ;;  %v7056_v28 = vld [vmem:[#allocation6 + $0x108] sm:$0xf] }
 0x71f   : > { %v3757_v4 = vpop.f32.mrf.mxu2  ;;  %v3581_v5 = vpop.f32.mrf.mxu0  ;;  %v10515_v23 = vld [vmem:[#allocation76_spill] sm:$0xff] }
 0x720   : > { %10511 = vst [vmem:[#allocation93_spill] sm:$0xff] %v9593_v7  ;;  %v3758_v40 = vadd.f32 %v3757_v4, %v3669_v33  ;;  %v3846_v54 = vpop.f32.mrf.mxu3  ;;  %v3582_v35 = vadd.f32 %v3581_v5, %v9554_v8  ;;  %v3670_v19 = vpop.f32.mrf.mxu1  ;;  %v7897_v7 = vld [vmem:[#allocation6 + $0x114] sm:$0xf0] }
 0x721   : > { %v7057_v53 = vor.u32 %v7897_v7, %v7056_v28 }
 0x722   : > { %v3847_v30 = vadd.f32 %v3846_v54, %v3758_v40  ;;  %v3671_v36 = vadd.f32 %v3670_v19, %v3582_v35  ;;  %v10513_v54 = vld [vmem:[#allocation60_spill] sm:$0xff]  ;;  %v10514_v19 = vld [vmem:[#allocation75_spill] sm:$0xff] }
 0x723   : > { %4002 = vmatpush.bf16.msrb.mxu1 %v7057_v53 }
 0x724   : > { %v4651_v31 = vmax.f32 %v3847_v30, 0.0 }
 0x727   : > { %v3759_v51 = vpop.f32.mrf.mxu2  ;;  %v3584_v33 = vpop.f32.mrf.mxu0 }
 0x728   : > { %v3760_v45 = vadd.f32 %v3759_v51, %v3671_v36  ;;  %v3848_v60 = vpop.f32.mrf.mxu3  ;;  %v3585_v4 = vadd.f32 %v3584_v33, %v9554_v8  ;;  %v3673_v61 = vpop.f32.mrf.mxu1 }
 0x72a   : > { %v3849_v12 = vadd.f32 %v3848_v60, %v3760_v45  ;;  %v3674_v32 = vadd.f32 %v3673_v61, %v3585_v4  ;;  %3623 = vmatmul.bf16.gmra.mxu0 %v10512_v59 }
 0x72b   : > { %3712 = vmatmul.bf16.gmra.mxu1 %v10513_v54 }
 0x72c   : > { %v4655_v40 = vmax.f32 %v3849_v12, 0.0  ;;  %3801 = vmatmul.bf16.gmra.mxu2 %v10514_v19 }
 0x72d   : > { %3890 = vmatmul.bf16.gmra.mxu3 %v10515_v23 }
 0x72e   : > { %v9601_v35 = vpack.c.bf16 %v4655_v40, %v4651_v31  ;;  %v10517_v31 = vld [vmem:[#allocation61_spill] sm:$0xff] }
 0x72f   : > { %v3762_v53 = vpop.f32.mrf.mxu2  ;;  %v3586_v20 = vpop.f32.mrf.mxu0 }
 0x730   : > { %10516 = vst [vmem:[#allocation94_spill] sm:$0xff] %v9601_v35  ;;  %v3763_v7 = vadd.f32 %v3762_v53, %v3674_v32  ;;  %v3851_v5 = vpop.f32.mrf.mxu3  ;;  %v3587_v36 = vadd.f32 %v3586_v20, %v9554_v8  ;;  %v3675_v60 = vpop.f32.mrf.mxu1  ;;  %v10518_v53 = vld [vmem:[#allocation62_spill] sm:$0xff]  ;;  %v10519_v35 = vld [vmem:[#allocation77_spill] sm:$0xff] }
 0x731   : > { %v10520_v20 = vld [vmem:[#allocation78_spill] sm:$0xff] }
 0x732   : > { %v3852_v28 = vadd.f32 %v3851_v5, %v3763_v7  ;;  %v3676_v51 = vadd.f32 %v3675_v60, %v3587_v36  ;;  %v7955_v5 = vld [vmem:[#allocation6 + $0x2ec] sm:$0xf]  ;;  %v7298_v36 = vld [vmem:[#allocation6 + $0x2f8] sm:$0xf0] }
 0x733   : > { %v7891_v60 = vld [vmem:[#allocation6 + $0xec] sm:$0xf] }
 0x734   : > { %v4659_v40 = vmax.f32 %v3852_v28, 0.0 }
 0x737   : > { %v3764_v45 = vpop.f32.mrf.mxu2  ;;  %v3589_v4 = vpop.f32.mrf.mxu0 }
 0x738   : > { %v3765_v30 = vadd.f32 %v3764_v45, %v3676_v51  ;;  %v3853_v33 = vpop.f32.mrf.mxu3  ;;  %v3590_v61 = vadd.f32 %v3589_v4, %v9554_v8  ;;  %v3678_v12 = vpop.f32.mrf.mxu1  ;;  %v7301_v45 = vor.u32 %v7955_v5, %v7298_v36  ;;  %v7042_v4 = vld [vmem:[#allocation6 + $0xf8] sm:$0xf0] }
 0x73a   : > { %v3854_v19 = vadd.f32 %v3853_v33, %v3765_v30  ;;  %v3679_v23 = vadd.f32 %v3678_v12, %v3590_v61  ;;  %3628 = vmatmul.bf16.gmra.mxu0 %v10517_v31  ;;  %v7987_v30 = vld [vmem:[#allocation6 + $0x3ec] sm:$0xf]  ;;  %v7426_v33 = vld [vmem:[#allocation6 + $0x3f8] sm:$0xf0]  ;;  %4440 = vmatpush.bf16.msrb.mxu2 %v7301_v45 }
 0x73b   : > { %3717 = vmatmul.bf16.gmra.mxu1 %v10518_v53  ;;  %v7429_v31 = vor.u32 %v7987_v30, %v7426_v33 }
 0x73c   : > { %v4663_v32 = vmax.f32 %v3854_v19, 0.0  ;;  %3806 = vmatmul.bf16.gmra.mxu2 %v10519_v35  ;;  %v7045_v19 = vor.u32 %v7891_v60, %v7042_v4 }
 0x73d   : > { %3895 = vmatmul.bf16.gmra.mxu3 %v10520_v20 }
 0x73e   : > { %v9609_v7 = vpack.c.bf16 %v4663_v32, %v4659_v40  ;;  %4262 = vmatpush.bf16.msra.mxu0 %v7045_v19  ;;  %4529 = vmatpush.bf16.msrb.mxu3 %v7429_v31  ;;  %v7923_v32 = vld [vmem:[#allocation6 + $0x1ec] sm:$0xf] }
 0x73f   : > { %v3767_v51 = vpop.f32.mrf.mxu2  ;;  %v3591_v28 = vpop.f32.mrf.mxu0  ;;  %v10523_v31 = vld [vmem:[#allocation80_spill] sm:$0xff] }
 0x740   : > { %10521 = vst [vmem:[#allocation95_spill] sm:$0xff] %v9609_v7  ;;  %v3768_v61 = vadd.f32 %v3767_v51, %v3679_v23  ;;  %v3856_v12 = vpop.f32.mrf.mxu3  ;;  %v3592_v53 = vadd.f32 %v3591_v28, %v9554_v8  ;;  %v3680_v35 = vpop.f32.mrf.mxu1  ;;  %v7170_v7 = vld [vmem:[#allocation6 + $0x1f8] sm:$0xf0] }
 0x741   : > { %v7173_v54 = vor.u32 %v7923_v32, %v7170_v7 }
 0x742   : > { %v3857_v20 = vadd.f32 %v3856_v12, %v3768_v61  ;;  %v3681_v40 = vadd.f32 %v3680_v35, %v3592_v53  ;;  %v10522_v35 = vld [vmem:[#allocation79_spill] sm:$0xff] }
 0x743   : > { %4351 = vmatpush.bf16.msra.mxu1 %v7173_v54 }
 0x744   : > { %v4667_v45 = vmax.f32 %v3857_v20, 0.0 }
 0x747   : > { %v3769_v5 = vpop.f32.mrf.mxu2  ;;  %v3594_v23 = vpop.f32.mrf.mxu0 }
 0x748   : > { %v3770_v36 = vadd.f32 %v3769_v5, %v3681_v40  ;;  %v3858_v59 = vpop.f32.mrf.mxu3  ;;  %v3595_v51 = vadd.f32 %v3594_v23, %v9554_v8  ;;  %v3683_v60 = vpop.f32.mrf.mxu1 }
 0x74a   : > { %v3859_v4 = vadd.f32 %v3858_v59, %v3770_v36  ;;  %v3684_v30 = vadd.f32 %v3683_v60, %v3595_v51  ;;  %3633 = vmatmul.bf16.gmra.mxu0 %v10482_v10 }
 0x74b   : > { %3722 = vmatmul.bf16.gmra.mxu1 %v10483_v13 }
 0x74c   : > { %v4671_v33 = vmax.f32 %v3859_v4, 0.0  ;;  %3811 = vmatmul.bf16.gmra.mxu2 %v10522_v35 }
 0x74d   : > { %3900 = vmatmul.bf16.gmra.mxu3 %v10523_v31 }
 0x74e   : > { %v9617_v53 = vpack.c.bf16 %v4671_v33, %v4667_v45  ;;  %v10525_v33 = vld [vmem:[#allocation65_spill] sm:$0xff] }
 0x74f   : > { %v3772_v54 = vpop.f32.mrf.mxu2  ;;  %v3596_v12 = vpop.f32.mrf.mxu0 }
 0x750   : > { %10524 = vst [vmem:[#allocation79_spill] sm:$0xff] %v9617_v53  ;;  %v3773_v7 = vadd.f32 %v3772_v54, %v3684_v30  ;;  %v3861_v61 = vpop.f32.mrf.mxu3  ;;  %v3597_v28 = vadd.f32 %v3596_v12, %v9554_v8  ;;  %v3685_v59 = vpop.f32.mrf.mxu1  ;;  %v10526_v54 = vld [vmem:[#allocation66_spill] sm:$0xff] }
 0x751   : > { %v7282_v12 = vld [vmem:[#allocation6 + $0x2d8] sm:$0xf0] }
 0x752   : > { %v3862_v19 = vadd.f32 %v3861_v61, %v3773_v7  ;;  %v3686_v40 = vadd.f32 %v3685_v59, %v3597_v28  ;;  %v7951_v61 = vld [vmem:[#allocation6 + $0x2cc] sm:$0xf] }
 0x753   : > { %v7887_v28 = vld [vmem:[#allocation6 + $0xcc] sm:$0xf] }
 0x754   : > { %v4675_v45 = vmax.f32 %v3862_v19, 0.0 }
 0x757   : > { %v3774_v32 = vpop.f32.mrf.mxu2  ;;  %v3599_v36 = vpop.f32.mrf.mxu0 }
 0x758   : > { %v3775_v20 = vadd.f32 %v3774_v32, %v3686_v40  ;;  %v3863_v5 = vpop.f32.mrf.mxu3  ;;  %v3600_v23 = vadd.f32 %v3599_v36, %v9554_v8  ;;  %v3688_v51 = vpop.f32.mrf.mxu1  ;;  %v7285_v40 = vor.u32 %v7951_v61, %v7282_v12  ;;  %v7026_v32 = vld [vmem:[#allocation6 + $0xd8] sm:$0xf0] }
 0x75a   : > { %v3864_v60 = vadd.f32 %v3863_v5, %v3775_v20  ;;  %v3689_v4 = vadd.f32 %v3688_v51, %v3600_v23  ;;  %3914 = vmatmul.bf16.vlgmr.msrb.gmra.mxu0 %v9031_v42  ;;  %v7983_v20 = vld [vmem:[#allocation6 + $0x3cc] sm:$0xf]  ;;  %v7410_v5 = vld [vmem:[#allocation6 + $0x3d8] sm:$0xf0]  ;;  %v7029_v51 = vor.u32 %v7887_v28, %v7026_v32  ;;  %4441 = vmatpush.bf16.msrb.mxu2 %v7285_v40 }
 0x75b   : > { %4003 = vmatmul.bf16.vlgmr.msrb.gmra.mxu1 %v9039_v25 }
 0x75c   : > { %v4679_v30 = vmax.f32 %v3864_v60, 0.0  ;;  %4092 = vmatmul.bf16.vlgmr.msra.gmra.mxu2 %v10525_v33  ;;  %v7413_v60 = vor.u32 %v7983_v20, %v7410_v5  ;;  %4263 = vmatpush.bf16.msra.mxu0 %v7029_v51 }
 0x75d   : > { %4181 = vmatmul.bf16.vlgmr.msra.gmra.mxu3 %v10526_v54 }
 0x75e   : > { %v9625_v7 = vpack.c.bf16 %v4679_v30, %v4675_v45  ;;  %4530 = vmatpush.bf16.msrb.mxu3 %v7413_v60  ;;  %v7919_v30 = vld [vmem:[#allocation6 + $0x1cc] sm:$0xf] }
 0x75f   : > { %v3777_v59 = vpop.f32.mrf.mxu2  ;;  %v3601_v19 = vpop.f32.mrf.mxu0 }
 0x760   : > { %10527 = vst [vmem:[#allocation80_spill] sm:$0xff] %v9625_v7  ;;  %v3778_v36 = vadd.f32 %v3777_v59, %v3689_v4  ;;  %v3866_v23 = vpop.f32.mrf.mxu3  ;;  %v3602_v53 = vadd.f32 %v3601_v19, %v9554_v8  ;;  %v3690_v33 = vpop.f32.mrf.mxu1  ;;  %v7154_v7 = vld [vmem:[#allocation6 + $0x1d8] sm:$0xf0] }
 0x761   : > { %v7157_v25 = vor.u32 %v7919_v30, %v7154_v7 }
 0x762   : > { %v3867_v54 = vadd.f32 %v3866_v23, %v3778_v36  ;;  %v3691_v45 = vadd.f32 %v3690_v33, %v3602_v53 }
 0x763   : > { %4352 = vmatpush.bf16.msra.mxu1 %v7157_v25 }
 0x764   : > { %v4683_v40 = vmax.f32 %v3867_v54, 0.0 }
 0x767   : > { %v3779_v61 = vpop.f32.mrf.mxu2  ;;  %v3604_v4 = vpop.f32.mrf.mxu0 }
 0x768   : > { %v3780_v12 = vadd.f32 %v3779_v61, %v3691_v45  ;;  %v3868_v42 = vpop.f32.mrf.mxu3  ;;  %v3605_v59 = vadd.f32 %v3604_v4, %v9554_v8  ;;  %v3693_v28 = vpop.f32.mrf.mxu1 }
 0x76a   : > { %v3869_v32 = vadd.f32 %v3868_v42, %v3780_v12  ;;  %v3694_v20 = vadd.f32 %v3693_v28, %v3605_v59  ;;  %3919 = vmatmul.bf16.gmra.mxu0 %v9043_v48 }
 0x76b   : > { %4008 = vmatmul.bf16.gmra.mxu1 %v9051_v46 }
 0x76c   : > { %v4687_v5 = vmax.f32 %v3869_v32, 0.0  ;;  %4097 = vmatmul.bf16.gmra.mxu2 %v9241_v22 }
 0x76d   : > { %4186 = vmatmul.bf16.gmra.mxu3 %v9249_v3 }
 0x76e   : > { %v9633_v53 = vpack.c.bf16 %v4687_v5, %v4683_v40  ;;  %v7947_v40 = vld [vmem:[#allocation6 + $0x2ac] sm:$0xf]  ;;  %v7266_v5 = vld [vmem:[#allocation6 + $0x2b8] sm:$0xf0] }
 0x76f   : > { %v3782_v25 = vpop.f32.mrf.mxu2  ;;  %v3606_v36 = vpop.f32.mrf.mxu0 }
 0x770   : > { %10528 = vst [vmem:[#allocation96_spill] sm:$0xff] %v9633_v53  ;;  %v3783_v33 = vadd.f32 %v3782_v25, %v3694_v20  ;;  %v3871_v7 = vpop.f32.mrf.mxu3  ;;  %v3607_v23 = vadd.f32 %v3606_v36, %v9554_v8  ;;  %v3695_v42 = vpop.f32.mrf.mxu1  ;;  %v7883_v25 = vld [vmem:[#allocation6 + $0xac] sm:$0xf]  ;;  %v7010_v36 = vld [vmem:[#allocation6 + $0xb8] sm:$0xf0] }
 0x772   : > { %v3872_v19 = vadd.f32 %v3871_v7, %v3783_v33  ;;  %v3696_v51 = vadd.f32 %v3695_v42, %v3607_v23  ;;  %v7269_v7 = vor.u32 %v7947_v40, %v7266_v5  ;;  %v7979_v23 = vld [vmem:[#allocation6 + $0x3ac] sm:$0xf]  ;;  %v7394_v42 = vld [vmem:[#allocation6 + $0x3b8] sm:$0xf0] }
 0x774   : > { %v4691_v28 = vmax.f32 %v3872_v19, 0.0  ;;  %4442 = vmatpush.bf16.msrb.mxu2 %v7269_v7 }
 0x777   : > { %v3784_v60 = vpop.f32.mrf.mxu2  ;;  %v3609_v30 = vpop.f32.mrf.mxu0 }
 0x778   : > { %v3785_v54 = vadd.f32 %v3784_v60, %v3696_v51  ;;  %v3873_v45 = vpop.f32.mrf.mxu3  ;;  %v3610_v61 = vadd.f32 %v3609_v30, %v9554_v8  ;;  %v3698_v12 = vpop.f32.mrf.mxu1 }
 0x77a   : > { %v3874_v4 = vadd.f32 %v3873_v45, %v3785_v54  ;;  %v3699_v59 = vadd.f32 %v3698_v12, %v3610_v61  ;;  %3924 = vmatmul.bf16.gmra.mxu0 %v9055_v55  ;;  %v7013_v54 = vor.u32 %v7883_v25, %v7010_v36  ;;  %v7397_v45 = vor.u32 %v7979_v23, %v7394_v42 }
 0x77b   : > { %4013 = vmatmul.bf16.gmra.mxu1 %v9063_v29 }
 0x77c   : > { %v4695_v32 = vmax.f32 %v3874_v4, 0.0  ;;  %4102 = vmatmul.bf16.gmra.mxu2 %v9253_v16  ;;  %4264 = vmatpush.bf16.msra.mxu0 %v7013_v54 }
 0x77d   : > { %4191 = vmatmul.bf16.gmra.mxu3 %v9261_v41 }
 0x77e   : > { %v9641_v20 = vpack.c.bf16 %v4695_v32, %v4691_v28  ;;  %4531 = vmatpush.bf16.msrb.mxu3 %v7397_v45  ;;  %v7915_v28 = vld [vmem:[#allocation6 + $0x1ac] sm:$0xf]  ;;  %v7138_v32 = vld [vmem:[#allocation6 + $0x1b8] sm:$0xf0] }
 0x77f   : > { %v3787_v33 = vpop.f32.mrf.mxu2  ;;  %v3611_v19 = vpop.f32.mrf.mxu0 }
 0x780   : > { %10529 = vst [vmem:[#allocation97_spill] sm:$0xff] %v9641_v20  ;;  %v3788_v51 = vadd.f32 %v3787_v33, %v3699_v59  ;;  %v3876_v60 = vpop.f32.mrf.mxu3  ;;  %v3612_v30 = vadd.f32 %v3611_v19, %v9554_v8  ;;  %v3700_v61 = vpop.f32.mrf.mxu1  ;;  %v7141_v20 = vor.u32 %v7915_v28, %v7138_v32 }
 0x782   : > { %v3877_v12 = vadd.f32 %v3876_v60, %v3788_v51  ;;  %v3701_v4 = vadd.f32 %v3700_v61, %v3612_v30  ;;  %4353 = vmatpush.bf16.msra.mxu1 %v7141_v20 }
 0x784   : > { %v4699_v7 = vmax.f32 %v3877_v12, 0.0 }
 0x787   : > { %v3789_v40 = vpop.f32.mrf.mxu2  ;;  %v3614_v59 = vpop.f32.mrf.mxu0 }
 0x788   : > { %v3790_v5 = vadd.f32 %v3789_v40, %v3701_v4  ;;  %v3878_v53 = vpop.f32.mrf.mxu3  ;;  %v3615_v33 = vadd.f32 %v3614_v59, %v9554_v8  ;;  %v3703_v25 = vpop.f32.mrf.mxu1 }
 0x78a   : > { %v3879_v36 = vadd.f32 %v3878_v53, %v3790_v5  ;;  %v3704_v23 = vadd.f32 %v3703_v25, %v3615_v33  ;;  %3929 = vmatmul.bf16.gmra.mxu0 %v9067_v0 }
 0x78b   : > { %4018 = vmatmul.bf16.gmra.mxu1 %v10453_v50 }
 0x78c   : > { %v4703_v42 = vmax.f32 %v3879_v36, 0.0  ;;  %4107 = vmatmul.bf16.gmra.mxu2 %v9265_v21 }
 0x78d   : > { %4196 = vmatmul.bf16.gmra.mxu3 %v9273_v47 }
 0x78e   : > { %v9649_v51 = vpack.c.bf16 %v4703_v42, %v4699_v7  ;;  %v7943_v7 = vld [vmem:[#allocation6 + $0x28c] sm:$0xf]  ;;  %v7250_v42 = vld [vmem:[#allocation6 + $0x298] sm:$0xf0] }
 0x78f   : > { %v3792_v20 = vpop.f32.mrf.mxu2  ;;  %v3616_v54 = vpop.f32.mrf.mxu0 }
 0x790   : > { %10530 = vst [vmem:[#allocation98_spill] sm:$0xff] %v9649_v51  ;;  %v3793_v60 = vadd.f32 %v3792_v20, %v3704_v23  ;;  %v3881_v19 = vpop.f32.mrf.mxu3  ;;  %v3617_v45 = vadd.f32 %v3616_v54, %v9554_v8  ;;  %v3705_v53 = vpop.f32.mrf.mxu1  ;;  %v7879_v20 = vld [vmem:[#allocation6 + $0x8c] sm:$0xf]  ;;  %v6994_v54 = vld [vmem:[#allocation6 + $0x98] sm:$0xf0] }
 0x792   : > { %v3882_v30 = vadd.f32 %v3881_v19, %v3793_v60  ;;  %v3706_v61 = vadd.f32 %v3705_v53, %v3617_v45  ;;  %v7253_v19 = vor.u32 %v7943_v7, %v7250_v42  ;;  %v7975_v45 = vld [vmem:[#allocation6 + $0x38c] sm:$0xf]  ;;  %v7378_v53 = vld [vmem:[#allocation6 + $0x398] sm:$0xf0] }
 0x794   : > { %v4707_v25 = vmax.f32 %v3882_v30, 0.0  ;;  %4443 = vmatpush.bf16.msrb.mxu2 %v7253_v19 }
 0x797   : > { %v3794_v4 = vpop.f32.mrf.mxu2  ;;  %v3619_v32 = vpop.f32.mrf.mxu0 }
 0x798   : > { %v3795_v12 = vadd.f32 %v3794_v4, %v3706_v61  ;;  %v3883_v28 = vpop.f32.mrf.mxu3  ;;  %v3620_v40 = vadd.f32 %v3619_v32, %v9554_v8  ;;  %v3708_v5 = vpop.f32.mrf.mxu1 }
 0x79a   : > { %v3884_v59 = vadd.f32 %v3883_v28, %v3795_v12  ;;  %v3709_v33 = vadd.f32 %v3708_v5, %v3620_v40  ;;  %3934 = vmatmul.bf16.gmra.mxu0 %v9079_v58  ;;  %v6997_v12 = vor.u32 %v7879_v20, %v6994_v54  ;;  %v7381_v28 = vor.u32 %v7975_v45, %v7378_v53 }
 0x79b   : > { %4023 = vmatmul.bf16.gmra.mxu1 %v9087_v1 }
 0x79c   : > { %v4711_v36 = vmax.f32 %v3884_v59, 0.0  ;;  %4112 = vmatmul.bf16.gmra.mxu2 %v9277_v26  ;;  %4265 = vmatpush.bf16.msra.mxu0 %v6997_v12 }
 0x79d   : > { %4201 = vmatmul.bf16.gmra.mxu3 %v9285_v43 }
 0x79e   : > { %v9657_v23 = vpack.c.bf16 %v4711_v36, %v4707_v25  ;;  %4532 = vmatpush.bf16.msrb.mxu3 %v7381_v28  ;;  %v7911_v25 = vld [vmem:[#allocation6 + $0x18c] sm:$0xf]  ;;  %v7122_v36 = vld [vmem:[#allocation6 + $0x198] sm:$0xf0] }
 0x79f   : > { %v3797_v60 = vpop.f32.mrf.mxu2  ;;  %v3621_v30 = vpop.f32.mrf.mxu0 }
 0x7a0   : > { %10531 = vst [vmem:[#allocation99_spill] sm:$0xff] %v9657_v23  ;;  %v3798_v61 = vadd.f32 %v3797_v60, %v3709_v33  ;;  %v3886_v4 = vpop.f32.mrf.mxu3  ;;  %v3622_v32 = vadd.f32 %v3621_v30, %v9554_v8  ;;  %v3710_v40 = vpop.f32.mrf.mxu1  ;;  %v7125_v23 = vor.u32 %v7911_v25, %v7122_v36 }
 0x7a2   : > { %v3887_v5 = vadd.f32 %v3886_v4, %v3798_v61  ;;  %v3711_v59 = vadd.f32 %v3710_v40, %v3622_v32  ;;  %4354 = vmatpush.bf16.msra.mxu1 %v7125_v23 }
 0x7a4   : > { %v4715_v19 = vmax.f32 %v3887_v5, 0.0 }
 0x7a7   : > { %v3799_v7 = vpop.f32.mrf.mxu2  ;;  %v3624_v33 = vpop.f32.mrf.mxu0 }
 0x7a8   : > { %v3800_v42 = vadd.f32 %v3799_v7, %v3711_v59  ;;  %v3888_v51 = vpop.f32.mrf.mxu3  ;;  %v3625_v60 = vadd.f32 %v3624_v33, %v9554_v8  ;;  %v3713_v20 = vpop.f32.mrf.mxu1 }
 0x7aa   : > { %v3889_v54 = vadd.f32 %v3888_v51, %v3800_v42  ;;  %v3714_v45 = vadd.f32 %v3713_v20, %v3625_v60  ;;  %3939 = vmatmul.bf16.gmra.mxu0 %v10454_v11 }
 0x7ab   : > { %4028 = vmatmul.bf16.gmra.mxu1 %v10455_v56 }
 0x7ac   : > { %v4719_v53 = vmax.f32 %v3889_v54, 0.0  ;;  %4117 = vmatmul.bf16.gmra.mxu2 %v9289_v34 }
 0x7ad   : > { %4206 = vmatmul.bf16.gmra.mxu3 %v9297_v18 }
 0x7ae   : > { %v9665_v61 = vpack.c.bf16 %v4719_v53, %v4715_v19  ;;  %v7939_v19 = vld [vmem:[#allocation6 + $0x26c] sm:$0xf]  ;;  %v7234_v53 = vld [vmem:[#allocation6 + $0x278] sm:$0xf0] }
 0x7af   : > { %v3802_v23 = vpop.f32.mrf.mxu2  ;;  %v3626_v12 = vpop.f32.mrf.mxu0 }
 0x7b0   : > { %10532 = vst [vmem:[#allocation100_spill] sm:$0xff] %v9665_v61  ;;  %v3803_v4 = vadd.f32 %v3802_v23, %v3714_v45  ;;  %v3891_v30 = vpop.f32.mrf.mxu3  ;;  %v3627_v28 = vadd.f32 %v3626_v12, %v9554_v8  ;;  %v3715_v51 = vpop.f32.mrf.mxu1  ;;  %v7875_v23 = vld [vmem:[#allocation6 + $0x6c] sm:$0xf]  ;;  %v6978_v12 = vld [vmem:[#allocation6 + $0x78] sm:$0xf0] }
 0x7b2   : > { %v3892_v32 = vadd.f32 %v3891_v30, %v3803_v4  ;;  %v3716_v40 = vadd.f32 %v3715_v51, %v3627_v28  ;;  %v7237_v30 = vor.u32 %v7939_v19, %v7234_v53  ;;  %v7971_v28 = vld [vmem:[#allocation6 + $0x36c] sm:$0xf]  ;;  %v7362_v51 = vld [vmem:[#allocation6 + $0x378] sm:$0xf0] }
 0x7b4   : > { %v4723_v20 = vmax.f32 %v3892_v32, 0.0  ;;  %4444 = vmatpush.bf16.msrb.mxu2 %v7237_v30 }
 0x7b7   : > { %v3804_v59 = vpop.f32.mrf.mxu2  ;;  %v3629_v36 = vpop.f32.mrf.mxu0 }
 0x7b8   : > { %v3805_v5 = vadd.f32 %v3804_v59, %v3716_v40  ;;  %v3893_v25 = vpop.f32.mrf.mxu3  ;;  %v3630_v7 = vadd.f32 %v3629_v36, %v9554_v8  ;;  %v3718_v42 = vpop.f32.mrf.mxu1 }
 0x7ba   : > { %v3894_v33 = vadd.f32 %v3893_v25, %v3805_v5  ;;  %v3719_v60 = vadd.f32 %v3718_v42, %v3630_v7  ;;  %3944 = vmatmul.bf16.gmra.mxu0 %v10456_v49  ;;  %v6981_v5 = vor.u32 %v7875_v23, %v6978_v12  ;;  %v7365_v25 = vor.u32 %v7971_v28, %v7362_v51 }
 0x7bb   : > { %4033 = vmatmul.bf16.gmra.mxu1 %v10457_v38 }
 0x7bc   : > { %v4727_v54 = vmax.f32 %v3894_v33, 0.0  ;;  %4122 = vmatmul.bf16.gmra.mxu2 %v9301_v39  ;;  %4266 = vmatpush.bf16.msra.mxu0 %v6981_v5 }
 0x7bd   : > { %4211 = vmatmul.bf16.gmra.mxu3 %v9309_v27 }
 0x7be   : > { %v9673_v45 = vpack.c.bf16 %v4727_v54, %v4723_v20  ;;  %4533 = vmatpush.bf16.msrb.mxu3 %v7365_v25  ;;  %v7907_v20 = vld [vmem:[#allocation6 + $0x16c] sm:$0xf]  ;;  %v7106_v54 = vld [vmem:[#allocation6 + $0x178] sm:$0xf0] }
 0x7bf   : > { %v3807_v4 = vpop.f32.mrf.mxu2  ;;  %v3631_v32 = vpop.f32.mrf.mxu0 }
 0x7c0   : > { %10533 = vst [vmem:[#allocation101_spill] sm:$0xff] %v9673_v45  ;;  %v3808_v40 = vadd.f32 %v3807_v4, %v3719_v60  ;;  %v3896_v59 = vpop.f32.mrf.mxu3  ;;  %v3632_v36 = vadd.f32 %v3631_v32, %v9554_v8  ;;  %v3720_v7 = vpop.f32.mrf.mxu1  ;;  %v7109_v45 = vor.u32 %v7907_v20, %v7106_v54 }
 0x7c2   : > { %v3897_v42 = vadd.f32 %v3896_v59, %v3808_v40  ;;  %v3721_v33 = vadd.f32 %v3720_v7, %v3632_v36  ;;  %4355 = vmatpush.bf16.msra.mxu1 %v7109_v45 }
 0x7c4   : > { %v4731_v30 = vmax.f32 %v3897_v42, 0.0 }
 0x7c7   : > { %v3809_v19 = vpop.f32.mrf.mxu2  ;;  %v3634_v60 = vpop.f32.mrf.mxu0 }
 0x7c8   : > { %v3810_v53 = vadd.f32 %v3809_v19, %v3721_v33  ;;  %v3898_v61 = vpop.f32.mrf.mxu3  ;;  %v3635_v4 = vadd.f32 %v3634_v60, %v9554_v8  ;;  %v3723_v23 = vpop.f32.mrf.mxu1  ;;  %v9684_v33 = vld [vmem:[#allocation7] sm:$0xf] }
 0x7c9   : > { %v9687_v42 = vperm.slane %v9684_v33, 2 }
 0x7ca   : > { %v3899_v12 = vadd.f32 %v3898_v61, %v3810_v53  ;;  %v3724_v28 = vadd.f32 %v3723_v23, %v3635_v4  ;;  %3949 = vmatmul.bf16.gmra.mxu0 %v9115_v14 }
 0x7cb   : > { %4038 = vmatmul.bf16.gmra.mxu1 %v9123_v24 }
 0x7cc   : > { %v4735_v51 = vmax.f32 %v3899_v12, 0.0  ;;  %4127 = vmatmul.bf16.gmra.mxu2 %v9313_v44 }
 0x7cd   : > { %4216 = vmatmul.bf16.gmra.mxu3 %v9317_v17 }
 0x7ce   : > { %v9681_v40 = vpack.c.bf16 %v4735_v51, %v4731_v30  ;;  %v10535_v30 = vld [vmem:[#allocation68_spill] sm:$0xff] }
 0x7cf   : > { %v3812_v45 = vpop.f32.mrf.mxu2  ;;  %v3636_v5 = vpop.f32.mrf.mxu0 }
 0x7d0   : > { %10534 = vst [vmem:[#allocation102_spill] sm:$0xff] %v9681_v40  ;;  %v3813_v59 = vadd.f32 %v3812_v45, %v3724_v28  ;;  %v3901_v32 = vpop.f32.mrf.mxu3  ;;  %v3637_v25 = vadd.f32 %v3636_v5, %v9554_v8  ;;  %v3725_v61 = vpop.f32.mrf.mxu1  ;;  %v7935_v45 = vld [vmem:[#allocation6 + $0x24c] sm:$0xf] }
 0x7d2   : > { %v3902_v36 = vadd.f32 %v3901_v32, %v3813_v59  ;;  %v3726_v7 = vadd.f32 %v3725_v61, %v3637_v25  ;;  %v7218_v59 = vld [vmem:[#allocation6 + $0x258] sm:$0xf0]  ;;  %v7871_v32 = vld [vmem:[#allocation6 + $0x4c] sm:$0xf] }
 0x7d3   : > { %v7221_v25 = vor.u32 %v7935_v45, %v7218_v59  ;;  %v6962_v61 = vld [vmem:[#allocation6 + $0x58] sm:$0xf0] }
 0x7d4   : > { %v4739_v8 = vmax.f32 %v3902_v36, 0.0 }
 0x7d5   : > { %4445 = vmatpush.bf16.msrb.mxu2 %v7221_v25 }
 0x7d7   : > { %v3814_v20 = vpop.f32.mrf.mxu2  ;;  %v3915_v53 = vpop.f32.mrf.mxu0 }
 0x7d8   : > { %v3815_v54 = vadd.f32 %v3814_v20, %v3726_v7  ;;  %v3903_v19 = vpop.f32.mrf.mxu3  ;;  %v3916_v60 = vadd.f32 %v3915_v53, %v9687_v42  ;;  %v4004_v4 = vpop.f32.mrf.mxu1  ;;  %v7967_v7 = vld [vmem:[#allocation6 + $0x34c] sm:$0xf]  ;;  %v7346_v20 = vld [vmem:[#allocation6 + $0x358] sm:$0xf0]  ;;  %v6965_v53 = vor.u32 %v7871_v32, %v6962_v61 }
 0x7da   : > { %v3904_v23 = vadd.f32 %v3903_v19, %v3815_v54  ;;  %v4005_v12 = vadd.f32 %v4004_v4, %v3916_v60  ;;  %3954 = vmatmul.bf16.gmra.mxu0 %v9127_v15  ;;  %v7349_v60 = vor.u32 %v7967_v7, %v7346_v20 }
 0x7db   : > { %4043 = vmatmul.bf16.gmra.mxu1 %v9135_v63  ;;  %4267 = vmatpush.bf16.msra.mxu0 %v6965_v53 }
 0x7dc   : > { %v4743_v28 = vmax.f32 %v3904_v23, 0.0  ;;  %4132 = vmatmul.bf16.gmra.mxu2 %v10495_v6  ;;  %4534 = vmatpush.bf16.msrb.mxu3 %v7349_v60 }
 0x7dd   : > { %4221 = vmatmul.bf16.gmra.mxu3 %v10535_v30 }
 0x7de   : > { %v9694_v51 = vpack.c.bf16 %v4743_v28, %v4739_v8  ;;  %v7903_v28 = vld [vmem:[#allocation6 + $0x14c] sm:$0xf] }
 0x7df   : > { %v4093_v5 = vpop.f32.mrf.mxu2  ;;  %v3917_v36 = vpop.f32.mrf.mxu0 }
 0x7e0   : > { %10536 = vst [vmem:[#allocation103_spill] sm:$0xff] %v9694_v51  ;;  %v4094_v54 = vadd.f32 %v4093_v5, %v4005_v12  ;;  %v4182_v19 = vpop.f32.mrf.mxu3  ;;  %v3918_v4 = vadd.f32 %v3917_v36, %v9687_v42  ;;  %v4006_v23 = vpop.f32.mrf.mxu1  ;;  %v7090_v51 = vld [vmem:[#allocation6 + $0x158] sm:$0xf0] }
 0x7e1   : > { %v7093_v30 = vor.u32 %v7903_v28, %v7090_v51 }
 0x7e2   : > { %v4183_v40 = vadd.f32 %v4182_v19, %v4094_v54  ;;  %v4007_v8 = vadd.f32 %v4006_v23, %v3918_v4 }
 0x7e3   : > { %4356 = vmatpush.bf16.msra.mxu1 %v7093_v30 }
 0x7e4   : > { %v4620_v25 = vmax.f32 %v4183_v40, 0.0 }
 0x7e7   : > { %v4095_v45 = vpop.f32.mrf.mxu2  ;;  %v3920_v12 = vpop.f32.mrf.mxu0 }
 0x7e8   : > { %v4096_v59 = vadd.f32 %v4095_v45, %v4007_v8  ;;  %v4184_v6 = vpop.f32.mrf.mxu3  ;;  %v3921_v5 = vadd.f32 %v3920_v12, %v9687_v42  ;;  %v4009_v32 = vpop.f32.mrf.mxu1 }
 0x7ea   : > { %v4185_v61 = vadd.f32 %v4184_v6, %v4096_v59  ;;  %v4010_v7 = vadd.f32 %v4009_v32, %v3921_v5  ;;  %3959 = vmatmul.bf16.gmra.mxu0 %v9139_v57 }
 0x7eb   : > { %4048 = vmatmul.bf16.gmra.mxu1 %v9147_v9 }
 0x7ec   : > { %v4624_v20 = vmax.f32 %v4185_v61, 0.0  ;;  %4137 = vmatmul.bf16.gmra.mxu2 %v9329_v37 }
 0x7ed   : > { %4226 = vmatmul.bf16.gmra.mxu3 %v9333_v52 }
 0x7ee   : > { %v9702_v51 = vpack.c.bf16 %v4624_v20, %v4620_v25  ;;  %v10539_v25 = vld [vmem:[#allocation70_spill] sm:$0xff] }
 0x7ef   : > { %v4098_v30 = vpop.f32.mrf.mxu2  ;;  %v3922_v36 = vpop.f32.mrf.mxu0 }
 0x7f0   : > { %10537 = vst [vmem:[#allocation104_spill] sm:$0xff] %v9702_v51  ;;  %v4099_v54 = vadd.f32 %v4098_v30, %v4010_v7  ;;  %v4187_v19 = vpop.f32.mrf.mxu3  ;;  %v3923_v53 = vadd.f32 %v3922_v36, %v9687_v42  ;;  %v4011_v6 = vpop.f32.mrf.mxu1  ;;  %v10538_v7 = vld [vmem:[#allocation69_spill] sm:$0xff] }
 0x7f1   : > { %v7931_v30 = vld [vmem:[#allocation6 + $0x22c] sm:$0xf] }
 0x7f2   : > { %v4188_v60 = vadd.f32 %v4187_v19, %v4099_v54  ;;  %v4012_v4 = vadd.f32 %v4011_v6, %v3923_v53  ;;  %v7202_v54 = vld [vmem:[#allocation6 + $0x238] sm:$0xf0]  ;;  %v7867_v19 = vld [vmem:[#allocation6 + $0x2c] sm:$0xf] }
 0x7f3   : > { %v7205_v53 = vor.u32 %v7931_v30, %v7202_v54  ;;  %v6946_v6 = vld [vmem:[#allocation6 + $0x38] sm:$0xf0] }
 0x7f4   : > { %v4628_v32 = vmax.f32 %v4188_v60, 0.0 }
 0x7f5   : > { %4446 = vmatpush.bf16.msrb.mxu2 %v7205_v53 }
 0x7f7   : > { %v4100_v23 = vpop.f32.mrf.mxu2  ;;  %v3925_v28 = vpop.f32.mrf.mxu0 }
 0x7f8   : > { %v4101_v40 = vadd.f32 %v4100_v23, %v4012_v4  ;;  %v4189_v8 = vpop.f32.mrf.mxu3  ;;  %v3926_v45 = vadd.f32 %v3925_v28, %v9687_v42  ;;  %v4014_v59 = vpop.f32.mrf.mxu1  ;;  %v7963_v4 = vld [vmem:[#allocation6 + $0x32c] sm:$0xf]  ;;  %v7330_v23 = vld [vmem:[#allocation6 + $0x338] sm:$0xf0]  ;;  %v6949_v28 = vor.u32 %v7867_v19, %v6946_v6 }
 0x7fa   : > { %v4190_v12 = vadd.f32 %v4189_v8, %v4101_v40  ;;  %v4015_v5 = vadd.f32 %v4014_v59, %v3926_v45  ;;  %3964 = vmatmul.bf16.gmra.mxu0 %v9151_v62  ;;  %v7333_v45 = vor.u32 %v7963_v4, %v7330_v23  ;;  %v10541_v23 = vld [vmem:[#allocation55_spill] sm:$0xff] }
 0x7fb   : > { %4053 = vmatmul.bf16.gmra.mxu1 %v9159_v2  ;;  %4268 = vmatpush.bf16.msra.mxu0 %v6949_v28  ;;  %v10544_v28 = vld [vmem:[#allocation72_spill] sm:$0xff] }
 0x7fc   : > { %v4632_v61 = vmax.f32 %v4190_v12, 0.0  ;;  %4142 = vmatmul.bf16.gmra.mxu2 %v10538_v7  ;;  %4535 = vmatpush.bf16.msrb.mxu3 %v7333_v45 }
 0x7fd   : > { %4231 = vmatmul.bf16.gmra.mxu3 %v10539_v25 }
 0x7fe   : > { %v9710_v20 = vpack.c.bf16 %v4632_v61, %v4628_v32  ;;  %v7899_v61 = vld [vmem:[#allocation6 + $0x12c] sm:$0xf] }
 0x7ff   : > { %v4103_v36 = vpop.f32.mrf.mxu2  ;;  %v3927_v60 = vpop.f32.mrf.mxu0 }
 0x800   : > { %10540 = vst [vmem:[#allocation105_spill] sm:$0xff] %v9710_v20  ;;  %v4104_v40 = vadd.f32 %v4103_v36, %v4015_v5  ;;  %v4192_v8 = vpop.f32.mrf.mxu3  ;;  %v3928_v59 = vadd.f32 %v3927_v60, %v9687_v42  ;;  %v4016_v12 = vpop.f32.mrf.mxu1  ;;  %v7074_v20 = vld [vmem:[#allocation6 + $0x138] sm:$0xf0] }
 0x801   : > { %v7077_v25 = vor.u32 %v7899_v61, %v7074_v20  ;;  %v10543_v60 = vld [vmem:[#allocation71_spill] sm:$0xff] }
 0x802   : > { %v4193_v51 = vadd.f32 %v4192_v8, %v4104_v40  ;;  %v4017_v32 = vadd.f32 %v4016_v12, %v3928_v59  ;;  %v10542_v8 = vld [vmem:[#allocation56_spill] sm:$0xff] }
 0x803   : > { %4357 = vmatpush.bf16.msra.mxu1 %v7077_v25 }
 0x804   : > { %v4636_v53 = vmax.f32 %v4193_v51, 0.0 }
 0x807   : > { %v4105_v30 = vpop.f32.mrf.mxu2  ;;  %v3930_v5 = vpop.f32.mrf.mxu0 }
 0x808   : > { %v4106_v54 = vadd.f32 %v4105_v30, %v4017_v32  ;;  %v4194_v7 = vpop.f32.mrf.mxu3  ;;  %v3931_v36 = vadd.f32 %v3930_v5, %v9687_v42  ;;  %v4019_v19 = vpop.f32.mrf.mxu1 }
 0x80a   : > { %v4195_v6 = vadd.f32 %v4194_v7, %v4106_v54  ;;  %v4020_v4 = vadd.f32 %v4019_v19, %v3931_v36  ;;  %3969 = vmatmul.bf16.gmra.mxu0 %v10541_v23 }
 0x80b   : > { %4058 = vmatmul.bf16.gmra.mxu1 %v10542_v8 }
 0x80c   : > { %v4640_v40 = vmax.f32 %v4195_v6, 0.0  ;;  %4147 = vmatmul.bf16.gmra.mxu2 %v10543_v60 }
 0x80d   : > { %4236 = vmatmul.bf16.gmra.mxu3 %v10544_v28 }
 0x80e   : > { %v9718_v20 = vpack.c.bf16 %v4640_v40, %v4636_v53  ;;  %v10546_v53 = vld [vmem:[#allocation57_spill] sm:$0xff] }
 0x80f   : > { %v4108_v25 = vpop.f32.mrf.mxu2  ;;  %v3932_v12 = vpop.f32.mrf.mxu0 }
 0x810   : > { %10545 = vst [vmem:[#allocation106_spill] sm:$0xff] %v9718_v20  ;;  %v4109_v45 = vadd.f32 %v4108_v25, %v4020_v4  ;;  %v4197_v59 = vpop.f32.mrf.mxu3  ;;  %v3933_v32 = vadd.f32 %v3932_v12, %v9687_v42  ;;  %v4021_v7 = vpop.f32.mrf.mxu1  ;;  %v10547_v25 = vld [vmem:[#allocation58_spill] sm:$0xff]  ;;  %v10548_v20 = vld [vmem:[#allocation73_spill] sm:$0xff] }
 0x811   : > { %v10549_v12 = vld [vmem:[#allocation74_spill] sm:$0xff] }
 0x812   : > { %v4198_v61 = vadd.f32 %v4197_v59, %v4109_v45  ;;  %v4022_v30 = vadd.f32 %v4021_v7, %v3933_v32  ;;  %v7927_v59 = vld [vmem:[#allocation6 + $0x20c] sm:$0xf]  ;;  %v7186_v32 = vld [vmem:[#allocation6 + $0x218] sm:$0xf0] }
 0x813   : > { %v7863_v7 = vld [vmem:[#allocation6 + $0xc] sm:$0xf] }
 0x814   : > { %v4644_v40 = vmax.f32 %v4198_v61, 0.0 }
 0x817   : > { %v4110_v54 = vpop.f32.mrf.mxu2  ;;  %v3935_v36 = vpop.f32.mrf.mxu0 }
 0x818   : > { %v4111_v51 = vadd.f32 %v4110_v54, %v4022_v30  ;;  %v4199_v5 = vpop.f32.mrf.mxu3  ;;  %v3936_v19 = vadd.f32 %v3935_v36, %v9687_v42  ;;  %v4024_v6 = vpop.f32.mrf.mxu1  ;;  %v7189_v54 = vor.u32 %v7927_v59, %v7186_v32  ;;  %v6930_v36 = vld [vmem:[#allocation6 + $0x18] sm:$0xf0] }
 0x81a   : > { %v4200_v60 = vadd.f32 %v4199_v5, %v4111_v51  ;;  %v4025_v28 = vadd.f32 %v4024_v6, %v3936_v19  ;;  %3974 = vmatmul.bf16.gmra.mxu0 %v10546_v53  ;;  %v7959_v51 = vld [vmem:[#allocation6 + $0x30c] sm:$0xf]  ;;  %v7314_v5 = vld [vmem:[#allocation6 + $0x318] sm:$0xf0]  ;;  %4447 = vmatpush.bf16.msrb.mxu2 %v7189_v54 }
 0x81b   : > { %4063 = vmatmul.bf16.gmra.mxu1 %v10547_v25  ;;  %v7317_v53 = vor.u32 %v7959_v51, %v7314_v5  ;;  %v10551_v5 = vld [vmem:[#allocation59_spill] sm:$0xff] }
 0x81c   : > { %v4648_v4 = vmax.f32 %v4200_v60, 0.0  ;;  %4152 = vmatmul.bf16.gmra.mxu2 %v10548_v20  ;;  %v6933_v60 = vor.u32 %v7863_v7, %v6930_v36 }
 0x81d   : > { %4241 = vmatmul.bf16.gmra.mxu3 %v10549_v12 }
 0x81e   : > { %v9726_v45 = vpack.c.bf16 %v4648_v4, %v4644_v40  ;;  %4269 = vmatpush.bf16.msra.mxu0 %v6933_v60  ;;  %4536 = vmatpush.bf16.msrb.mxu3 %v7317_v53  ;;  %v7895_v4 = vld [vmem:[#allocation6 + $0x10c] sm:$0xf] }
 0x81f   : > { %v4113_v30 = vpop.f32.mrf.mxu2  ;;  %v3937_v61 = vpop.f32.mrf.mxu0  ;;  %v10554_v53 = vld [vmem:[#allocation76_spill] sm:$0xff] }
 0x820   : > { %10550 = vst [vmem:[#allocation107_spill] sm:$0xff] %v9726_v45  ;;  %v4114_v19 = vadd.f32 %v4113_v30, %v4025_v28  ;;  %v4202_v6 = vpop.f32.mrf.mxu3  ;;  %v3938_v25 = vadd.f32 %v3937_v61, %v9687_v42  ;;  %v4026_v20 = vpop.f32.mrf.mxu1  ;;  %v7058_v45 = vld [vmem:[#allocation6 + $0x118] sm:$0xf0] }
 0x821   : > { %v7061_v8 = vor.u32 %v7895_v4, %v7058_v45 }
 0x822   : > { %v4203_v12 = vadd.f32 %v4202_v6, %v4114_v19  ;;  %v4027_v40 = vadd.f32 %v4026_v20, %v3938_v25  ;;  %v10552_v6 = vld [vmem:[#allocation60_spill] sm:$0xff]  ;;  %v10553_v20 = vld [vmem:[#allocation75_spill] sm:$0xff] }
 0x823   : > { %4358 = vmatpush.bf16.msra.mxu1 %v7061_v8 }
 0x824   : > { %v4652_v54 = vmax.f32 %v4203_v12, 0.0 }
 0x827   : > { %v4115_v59 = vpop.f32.mrf.mxu2  ;;  %v3940_v28 = vpop.f32.mrf.mxu0 }
 0x828   : > { %v4116_v32 = vadd.f32 %v4115_v59, %v4027_v40  ;;  %v4204_v23 = vpop.f32.mrf.mxu3  ;;  %v3941_v30 = vadd.f32 %v3940_v28, %v9687_v42  ;;  %v4029_v7 = vpop.f32.mrf.mxu1 }
 0x82a   : > { %v4205_v36 = vadd.f32 %v4204_v23, %v4116_v32  ;;  %v4030_v51 = vadd.f32 %v4029_v7, %v3941_v30  ;;  %3979 = vmatmul.bf16.gmra.mxu0 %v10551_v5 }
 0x82b   : > { %4068 = vmatmul.bf16.gmra.mxu1 %v10552_v6 }
 0x82c   : > { %v4656_v19 = vmax.f32 %v4205_v36, 0.0  ;;  %4157 = vmatmul.bf16.gmra.mxu2 %v10553_v20 }
 0x82d   : > { %4246 = vmatmul.bf16.gmra.mxu3 %v10554_v53 }
 0x82e   : > { %v9734_v25 = vpack.c.bf16 %v4656_v19, %v4652_v54  ;;  %v10556_v54 = vld [vmem:[#allocation61_spill] sm:$0xff] }
 0x82f   : > { %v4118_v8 = vpop.f32.mrf.mxu2  ;;  %v3942_v60 = vpop.f32.mrf.mxu0 }
 0x830   : > { %10555 = vst [vmem:[#allocation59_spill] sm:$0xff] %v9734_v25  ;;  %v4119_v45 = vadd.f32 %v4118_v8, %v4030_v51  ;;  %v4207_v61 = vpop.f32.mrf.mxu3  ;;  %v3943_v40 = vadd.f32 %v3942_v60, %v9687_v42  ;;  %v4031_v23 = vpop.f32.mrf.mxu1  ;;  %v10557_v8 = vld [vmem:[#allocation62_spill] sm:$0xff]  ;;  %v10558_v25 = vld [vmem:[#allocation77_spill] sm:$0xff] }
 0x831   : > { %v10559_v60 = vld [vmem:[#allocation78_spill] sm:$0xff] }
 0x832   : > { %v4208_v4 = vadd.f32 %v4207_v61, %v4119_v45  ;;  %v4032_v59 = vadd.f32 %v4031_v23, %v3943_v40 }
 0x834   : > { %v4660_v19 = vmax.f32 %v4208_v4, 0.0 }
 0x837   : > { %v4120_v32 = vpop.f32.mrf.mxu2  ;;  %v3945_v30 = vpop.f32.mrf.mxu0 }
 0x838   : > { %v4121_v12 = vadd.f32 %v4120_v32, %v4032_v59  ;;  %v4209_v28 = vpop.f32.mrf.mxu3  ;;  %v3946_v7 = vadd.f32 %v3945_v30, %v9687_v42  ;;  %v4034_v36 = vpop.f32.mrf.mxu1 }
 0x83a   : > { %v4210_v20 = vadd.f32 %v4209_v28, %v4121_v12  ;;  %v4035_v53 = vadd.f32 %v4034_v36, %v3946_v7  ;;  %3984 = vmatmul.bf16.gmra.mxu0 %v10556_v54 }
 0x83b   : > { %4073 = vmatmul.bf16.gmra.mxu1 %v10557_v8 }
 0x83c   : > { %v4664_v51 = vmax.f32 %v4210_v20, 0.0  ;;  %4162 = vmatmul.bf16.gmra.mxu2 %v10558_v25 }
 0x83d   : > { %4251 = vmatmul.bf16.gmra.mxu3 %v10559_v60 }
 0x83e   : > { %v9742_v45 = vpack.c.bf16 %v4664_v51, %v4660_v19 }
 0x83f   : > { %v4123_v61 = vpop.f32.mrf.mxu2  ;;  %v3947_v59 = vpop.f32.mrf.mxu0 }
 0x840   : > { %10560 = vst [vmem:[#allocation60_spill] sm:$0xff] %v9742_v45  ;;  %v4124_v40 = vadd.f32 %v4123_v61, %v4035_v53  ;;  %v4212_v23 = vpop.f32.mrf.mxu3  ;;  %v3948_v32 = vadd.f32 %v3947_v59, %v9687_v42  ;;  %v4036_v12 = vpop.f32.mrf.mxu1 }
 0x842   : > { %v4213_v28 = vadd.f32 %v4212_v23, %v4124_v40  ;;  %v4037_v30 = vadd.f32 %v4036_v12, %v3948_v32 }
 0x844   : > { %v4668_v19 = vmax.f32 %v4213_v28, 0.0 }
 0x847   : > { %v4125_v7 = vpop.f32.mrf.mxu2  ;;  %v3950_v36 = vpop.f32.mrf.mxu0 }
 0x848   : > { %v4126_v4 = vadd.f32 %v4125_v7, %v4037_v30  ;;  %v4214_v20 = vpop.f32.mrf.mxu3  ;;  %v3951_v8 = vadd.f32 %v3950_v36, %v9687_v42  ;;  %v4039_v25 = vpop.f32.mrf.mxu1 }
 0x84a   : > { %v4215_v54 = vadd.f32 %v4214_v20, %v4126_v4  ;;  %v4040_v60 = vadd.f32 %v4039_v25, %v3951_v8  ;;  %3989 = vmatmul.bf16.gmra.mxu0 %v10482_v10 }
 0x84b   : > { %4078 = vmatmul.bf16.gmra.mxu1 %v10483_v13 }
 0x84c   : > { %v4672_v53 = vmax.f32 %v4215_v54, 0.0  ;;  %4167 = vmatmul.bf16.gmra.mxu2 %v10522_v35 }
 0x84d   : > { %4256 = vmatmul.bf16.gmra.mxu3 %v10523_v31 }
 0x84e   : > { %v9750_v51 = vpack.c.bf16 %v4672_v53, %v4668_v19  ;;  %v10562_v19 = vld [vmem:[#allocation48_spill] sm:$0xff] }
 0x84f   : > { %v4128_v61 = vpop.f32.mrf.mxu2  ;;  %v3952_v59 = vpop.f32.mrf.mxu0 }
 0x850   : > { %10561 = vst [vmem:[#allocation108_spill] sm:$0xff] %v9750_v51  ;;  %v4129_v40 = vadd.f32 %v4128_v61, %v4040_v60  ;;  %v4217_v23 = vpop.f32.mrf.mxu3  ;;  %v3953_v32 = vadd.f32 %v3952_v59, %v9687_v42  ;;  %v4041_v12 = vpop.f32.mrf.mxu1  ;;  %v10563_v61 = vld [vmem:[#allocation49_spill] sm:$0xff]  ;;  %v10565_v59 = vld [vmem:[#allocation66_spill] sm:$0xff] }
 0x851   : > { %v10564_v51 = vld [vmem:[#allocation65_spill] sm:$0xff] }
 0x852   : > { %v4218_v25 = vadd.f32 %v4217_v23, %v4129_v40  ;;  %v4042_v8 = vadd.f32 %v4041_v12, %v3953_v32 }
 0x854   : > { %v4676_v53 = vmax.f32 %v4218_v25, 0.0 }
 0x857   : > { %v4130_v30 = vpop.f32.mrf.mxu2  ;;  %v3955_v7 = vpop.f32.mrf.mxu0 }
 0x858   : > { %v4131_v28 = vadd.f32 %v4130_v30, %v4042_v8  ;;  %v4219_v54 = vpop.f32.mrf.mxu3  ;;  %v3956_v4 = vadd.f32 %v3955_v7, %v9687_v42  ;;  %v4044_v20 = vpop.f32.mrf.mxu1 }
 0x85a   : > { %v4220_v36 = vadd.f32 %v4219_v54, %v4131_v28  ;;  %v4045_v45 = vadd.f32 %v4044_v20, %v3956_v4  ;;  %4270 = vmatmul.bf16.vlgmr.msra.gmra.mxu0 %v10562_v19 }
 0x85b   : > { %4359 = vmatmul.bf16.vlgmr.msra.gmra.mxu1 %v10563_v61 }
 0x85c   : > { %v4680_v60 = vmax.f32 %v4220_v36, 0.0  ;;  %4448 = vmatmul.bf16.vlgmr.msrb.gmra.mxu2 %v10564_v51 }
 0x85d   : > { %4537 = vmatmul.bf16.vlgmr.msrb.gmra.mxu3 %v10565_v59 }
 0x85e   : > { %v9758_v40 = vpack.c.bf16 %v4680_v60, %v4676_v53 }
 0x85f   : > { %v4133_v23 = vpop.f32.mrf.mxu2  ;;  %v3957_v8 = vpop.f32.mrf.mxu0 }
 0x860   : > { %10566 = vst [vmem:[#allocation48_spill] sm:$0xff] %v9758_v40  ;;  %v4134_v32 = vadd.f32 %v4133_v23, %v4045_v45  ;;  %v4222_v12 = vpop.f32.mrf.mxu3  ;;  %v3958_v30 = vadd.f32 %v3957_v8, %v9687_v42  ;;  %v4046_v28 = vpop.f32.mrf.mxu1 }
 0x862   : > { %v4223_v54 = vadd.f32 %v4222_v12, %v4134_v32  ;;  %v4047_v7 = vadd.f32 %v4046_v28, %v3958_v30 }
 0x864   : > { %v4684_v53 = vmax.f32 %v4223_v54, 0.0 }
 0x867   : > { %v4135_v4 = vpop.f32.mrf.mxu2  ;;  %v3960_v36 = vpop.f32.mrf.mxu0 }
 0x868   : > { %v4136_v25 = vadd.f32 %v4135_v4, %v4047_v7  ;;  %v4224_v20 = vpop.f32.mrf.mxu3  ;;  %v3961_v19 = vadd.f32 %v3960_v36, %v9687_v42  ;;  %v4049_v51 = vpop.f32.mrf.mxu1 }
 0x86a   : > { %v4225_v61 = vadd.f32 %v4224_v20, %v4136_v25  ;;  %v4050_v59 = vadd.f32 %v4049_v51, %v3961_v19  ;;  %4275 = vmatmul.bf16.gmra.mxu0 %v9043_v48 }
 0x86b   : > { %4364 = vmatmul.bf16.gmra.mxu1 %v9051_v46 }
 0x86c   : > { %v4688_v45 = vmax.f32 %v4225_v61, 0.0  ;;  %4453 = vmatmul.bf16.gmra.mxu2 %v9241_v22 }
 0x86d   : > { %4542 = vmatmul.bf16.gmra.mxu3 %v9249_v3 }
 0x86e   : > { %v9766_v60 = vpack.c.bf16 %v4688_v45, %v4684_v53 }
 0x86f   : > { %v4138_v23 = vpop.f32.mrf.mxu2  ;;  %v3962_v8 = vpop.f32.mrf.mxu0 }
 0x870   : > { %10567 = vst [vmem:[#allocation49_spill] sm:$0xff] %v9766_v60  ;;  %v4139_v32 = vadd.f32 %v4138_v23, %v4050_v59  ;;  %v4227_v12 = vpop.f32.mrf.mxu3  ;;  %v3963_v30 = vadd.f32 %v3962_v8, %v9687_v42  ;;  %v4051_v28 = vpop.f32.mrf.mxu1 }
 0x872   : > { %v4228_v7 = vadd.f32 %v4227_v12, %v4139_v32  ;;  %v4052_v4 = vadd.f32 %v4051_v28, %v3963_v30 }
 0x874   : > { %v4692_v19 = vmax.f32 %v4228_v7, 0.0 }
 0x877   : > { %v4140_v48 = vpop.f32.mrf.mxu2  ;;  %v3965_v20 = vpop.f32.mrf.mxu0 }
 0x878   : > { %v4141_v54 = vadd.f32 %v4140_v48, %v4052_v4  ;;  %v4229_v25 = vpop.f32.mrf.mxu3  ;;  %v3966_v46 = vadd.f32 %v3965_v20, %v9687_v42  ;;  %v4054_v22 = vpop.f32.mrf.mxu1 }
 0x87a   : > { %v4230_v36 = vadd.f32 %v4229_v25, %v4141_v54  ;;  %v4055_v3 = vadd.f32 %v4054_v22, %v3966_v46  ;;  %4280 = vmatmul.bf16.gmra.mxu0 %v9055_v55 }
 0x87b   : > { %4369 = vmatmul.bf16.gmra.mxu1 %v9063_v29 }
 0x87c   : > { %v4696_v51 = vmax.f32 %v4230_v36, 0.0  ;;  %4458 = vmatmul.bf16.gmra.mxu2 %v9253_v16 }
 0x87d   : > { %4547 = vmatmul.bf16.gmra.mxu3 %v9261_v41 }
 0x87e   : > { %v9774_v61 = vpack.c.bf16 %v4696_v51, %v4692_v19 }
 0x87f   : > { %v4143_v59 = vpop.f32.mrf.mxu2  ;;  %v3967_v23 = vpop.f32.mrf.mxu0 }
 0x880   : > { %v4144_v53 = vadd.f32 %v4143_v59, %v4055_v3  ;;  %v4232_v45 = vpop.f32.mrf.mxu3  ;;  %v3968_v32 = vadd.f32 %v3967_v23, %v9687_v42  ;;  %v4056_v12 = vpop.f32.mrf.mxu1 }
 0x882   : > { %v4233_v8 = vadd.f32 %v4232_v45, %v4144_v53  ;;  %v4057_v30 = vadd.f32 %v4056_v12, %v3968_v32 }
 0x884   : > { %v4700_v54 = vmax.f32 %v4233_v8, 0.0 }
 0x887   : > { %v4145_v55 = vpop.f32.mrf.mxu2  ;;  %v3970_v4 = vpop.f32.mrf.mxu0 }
 0x888   : > { %v4146_v28 = vadd.f32 %v4145_v55, %v4057_v30  ;;  %v4234_v7 = vpop.f32.mrf.mxu3  ;;  %v3971_v29 = vadd.f32 %v3970_v4, %v9687_v42  ;;  %v4059_v16 = vpop.f32.mrf.mxu1 }
 0x88a   : > { %v4235_v48 = vadd.f32 %v4234_v7, %v4146_v28  ;;  %v4060_v41 = vadd.f32 %v4059_v16, %v3971_v29  ;;  %4285 = vmatmul.bf16.gmra.mxu0 %v9067_v0 }
 0x88b   : > { %4374 = vmatmul.bf16.gmra.mxu1 %v10453_v50 }
 0x88c   : > { %v4704_v25 = vmax.f32 %v4235_v48, 0.0  ;;  %4463 = vmatmul.bf16.gmra.mxu2 %v9265_v21 }
 0x88d   : > { %4552 = vmatmul.bf16.gmra.mxu3 %v9273_v47 }
 0x88e   : > { %v9782_v20 = vpack.c.bf16 %v4704_v25, %v4700_v54 }
 0x88f   : > { %v4148_v46 = vpop.f32.mrf.mxu2  ;;  %v3972_v3 = vpop.f32.mrf.mxu0 }
 0x890   : > { %10568 = vst [vmem:[#allocation65_spill] sm:$0xff] %v9782_v20  ;;  %v4149_v22 = vadd.f32 %v4148_v46, %v4060_v41  ;;  %v4237_v36 = vpop.f32.mrf.mxu3  ;;  %v3973_v19 = vadd.f32 %v3972_v3, %v9687_v42  ;;  %v4061_v51 = vpop.f32.mrf.mxu1 }
 0x892   : > { %v4238_v59 = vadd.f32 %v4237_v36, %v4149_v22  ;;  %v4062_v53 = vadd.f32 %v4061_v51, %v3973_v19 }
 0x894   : > { %v4708_v8 = vmax.f32 %v4238_v59, 0.0 }
 0x897   : > { %v4150_v0 = vpop.f32.mrf.mxu2  ;;  %v3975_v32 = vpop.f32.mrf.mxu0 }
 0x898   : > { %v4151_v45 = vadd.f32 %v4150_v0, %v4062_v53  ;;  %v4239_v23 = vpop.f32.mrf.mxu3  ;;  %v3976_v50 = vadd.f32 %v3975_v32, %v9687_v42  ;;  %v4064_v21 = vpop.f32.mrf.mxu1 }
 0x89a   : > { %v4240_v12 = vadd.f32 %v4239_v23, %v4151_v45  ;;  %v4065_v47 = vadd.f32 %v4064_v21, %v3976_v50  ;;  %4290 = vmatmul.bf16.gmra.mxu0 %v9079_v58 }
 0x89b   : > { %4379 = vmatmul.bf16.gmra.mxu1 %v9087_v1 }
 0x89c   : > { %v4712_v30 = vmax.f32 %v4240_v12, 0.0  ;;  %4468 = vmatmul.bf16.gmra.mxu2 %v9277_v26 }
 0x89d   : > { %4557 = vmatmul.bf16.gmra.mxu3 %v9285_v43 }
 0x89e   : > { %v9790_v55 = vpack.c.bf16 %v4712_v30, %v4708_v8 }
 0x89f   : > { %v4153_v28 = vpop.f32.mrf.mxu2  ;;  %v3977_v29 = vpop.f32.mrf.mxu0 }
 0x8a0   : > { %v4154_v7 = vadd.f32 %v4153_v28, %v4065_v47  ;;  %v4242_v4 = vpop.f32.mrf.mxu3  ;;  %v3978_v16 = vadd.f32 %v3977_v29, %v9687_v42  ;;  %v4066_v48 = vpop.f32.mrf.mxu1 }
 0x8a2   : > { %v4243_v41 = vadd.f32 %v4242_v4, %v4154_v7  ;;  %v4067_v54 = vadd.f32 %v4066_v48, %v3978_v16 }
 0x8a4   : > { %v4716_v3 = vmax.f32 %v4243_v41, 0.0 }
 0x8a7   : > { %v4155_v58 = vpop.f32.mrf.mxu2  ;;  %v3980_v22 = vpop.f32.mrf.mxu0 }
 0x8a8   : > { %v4156_v25 = vadd.f32 %v4155_v58, %v4067_v54  ;;  %v4244_v46 = vpop.f32.mrf.mxu3  ;;  %v3981_v1 = vadd.f32 %v3980_v22, %v9687_v42  ;;  %v4069_v26 = vpop.f32.mrf.mxu1 }
 0x8aa   : > { %v4245_v36 = vadd.f32 %v4244_v46, %v4156_v25  ;;  %v4070_v43 = vadd.f32 %v4069_v26, %v3981_v1  ;;  %4295 = vmatmul.bf16.gmra.mxu0 %v10454_v11 }
 0x8ab   : > { %4384 = vmatmul.bf16.gmra.mxu1 %v10455_v56 }
 0x8ac   : > { %v4720_v19 = vmax.f32 %v4245_v36, 0.0  ;;  %4473 = vmatmul.bf16.gmra.mxu2 %v9289_v34 }
 0x8ad   : > { %4562 = vmatmul.bf16.gmra.mxu3 %v9297_v18 }
 0x8ae   : > { %v9798_v51 = vpack.c.bf16 %v4720_v19, %v4716_v3 }
 0x8af   : > { %v4158_v59 = vpop.f32.mrf.mxu2  ;;  %v3982_v45 = vpop.f32.mrf.mxu0 }
 0x8b0   : > { %10569 = vst [vmem:[#allocation66_spill] sm:$0xff] %v9798_v51  ;;  %v4159_v53 = vadd.f32 %v4158_v59, %v4070_v43  ;;  %v4247_v0 = vpop.f32.mrf.mxu3  ;;  %v3983_v23 = vadd.f32 %v3982_v45, %v9687_v42  ;;  %v4071_v32 = vpop.f32.mrf.mxu1 }
 0x8b2   : > { %v4248_v50 = vadd.f32 %v4247_v0, %v4159_v53  ;;  %v4072_v21 = vadd.f32 %v4071_v32, %v3983_v23 }
 0x8b4   : > { %v4724_v28 = vmax.f32 %v4248_v50, 0.0 }
 0x8b7   : > { %v4160_v11 = vpop.f32.mrf.mxu2  ;;  %v3985_v8 = vpop.f32.mrf.mxu0 }
 0x8b8   : > { %v4161_v12 = vadd.f32 %v4160_v11, %v4072_v21  ;;  %v4249_v47 = vpop.f32.mrf.mxu3  ;;  %v3986_v56 = vadd.f32 %v3985_v8, %v9687_v42  ;;  %v4074_v34 = vpop.f32.mrf.mxu1 }
 0x8ba   : > { %v4250_v30 = vadd.f32 %v4249_v47, %v4161_v12  ;;  %v4075_v18 = vadd.f32 %v4074_v34, %v3986_v56  ;;  %4300 = vmatmul.bf16.gmra.mxu0 %v10456_v49 }
 0x8bb   : > { %4389 = vmatmul.bf16.gmra.mxu1 %v10457_v38 }
 0x8bc   : > { %v4728_v7 = vmax.f32 %v4250_v30, 0.0  ;;  %4478 = vmatmul.bf16.gmra.mxu2 %v9301_v39 }
 0x8bd   : > { %4567 = vmatmul.bf16.gmra.mxu3 %v9309_v27 }
 0x8be   : > { %v9806_v4 = vpack.c.bf16 %v4728_v7, %v4724_v28 }
 0x8bf   : > { %v4163_v29 = vpop.f32.mrf.mxu2  ;;  %v3987_v41 = vpop.f32.mrf.mxu0 }
 0x8c0   : > { %v4164_v16 = vadd.f32 %v4163_v29, %v4075_v18  ;;  %v4252_v48 = vpop.f32.mrf.mxu3  ;;  %v3988_v54 = vadd.f32 %v3987_v41, %v9687_v42  ;;  %v4076_v58 = vpop.f32.mrf.mxu1  ;;  %v10572_v18 = vld [vmem:[#allocation68_spill] sm:$0xff] }
 0x8c2   : > { %v4253_v25 = vadd.f32 %v4252_v48, %v4164_v16  ;;  %v4077_v46 = vadd.f32 %v4076_v58, %v3988_v54 }
 0x8c4   : > { %v4732_v43 = vmax.f32 %v4253_v25, 0.0 }
 0x8c7   : > { %v4165_v49 = vpop.f32.mrf.mxu2  ;;  %v3990_v26 = vpop.f32.mrf.mxu0 }
 0x8c8   : > { %v4166_v22 = vadd.f32 %v4165_v49, %v4077_v46  ;;  %v4254_v1 = vpop.f32.mrf.mxu3  ;;  %v3991_v38 = vadd.f32 %v3990_v26, %v9687_v42  ;;  %v4079_v39 = vpop.f32.mrf.mxu1 }
 0x8ca   : > { %v4255_v36 = vadd.f32 %v4254_v1, %v4166_v22  ;;  %v4080_v27 = vadd.f32 %v4079_v39, %v3991_v38  ;;  %4305 = vmatmul.bf16.gmra.mxu0 %v9115_v14  ;;  %v9818_v14 = vperm.slane %v9684_v33, 3 }
 0x8cb   : > { %4394 = vmatmul.bf16.gmra.mxu1 %v9123_v24 }
 0x8cc   : > { %v4736_v3 = vmax.f32 %v4255_v36, 0.0  ;;  %4483 = vmatmul.bf16.gmra.mxu2 %v9313_v44 }
 0x8cd   : > { %4572 = vmatmul.bf16.gmra.mxu3 %v9317_v17 }
 0x8ce   : > { %v9814_v19 = vpack.c.bf16 %v4736_v3, %v4732_v43 }
 0x8cf   : > { %v4168_v59 = vpop.f32.mrf.mxu2  ;;  %v3992_v45 = vpop.f32.mrf.mxu0 }
 0x8d0   : > { %10570 = vst [vmem:[#allocation109_spill] sm:$0xff] %v9814_v19  ;;  %v4169_v53 = vadd.f32 %v4168_v59, %v4080_v27  ;;  %v4257_v0 = vpop.f32.mrf.mxu3  ;;  %v3993_v23 = vadd.f32 %v3992_v45, %v9687_v42  ;;  %v4081_v32 = vpop.f32.mrf.mxu1  ;;  %v10571_v42 = vld [vmem:[#allocation67_spill] sm:$0xff] }
 0x8d2   : > { %v4258_v50 = vadd.f32 %v4257_v0, %v4169_v53  ;;  %v4082_v21 = vadd.f32 %v4081_v32, %v3993_v23 }
 0x8d4   : > { %v4740_v34 = vmax.f32 %v4258_v50, 0.0 }
 0x8d7   : > { %v4170_v11 = vpop.f32.mrf.mxu2  ;;  %v4271_v44 = vpop.f32.mrf.mxu0 }
 0x8d8   : > { %v4171_v24 = vadd.f32 %v4170_v11, %v4082_v21  ;;  %v4259_v12 = vpop.f32.mrf.mxu3  ;;  %v4272_v17 = vadd.f32 %v4271_v44, %v9818_v14  ;;  %v4360_v47 = vpop.f32.mrf.mxu1  ;;  %v10574_v44 = vld [vmem:[#allocation69_spill] sm:$0xff] }
 0x8da   : > { %v4260_v8 = vadd.f32 %v4259_v12, %v4171_v24  ;;  %v4361_v56 = vadd.f32 %v4360_v47, %v4272_v17  ;;  %4310 = vmatmul.bf16.gmra.mxu0 %v9127_v15  ;;  %v10575_v17 = vld [vmem:[#allocation70_spill] sm:$0xff] }
 0x8db   : > { %4399 = vmatmul.bf16.gmra.mxu1 %v9135_v63 }
 0x8dc   : > { %v4744_v30 = vmax.f32 %v4260_v8, 0.0  ;;  %4488 = vmatmul.bf16.gmra.mxu2 %v10571_v42 }
 0x8dd   : > { %4577 = vmatmul.bf16.gmra.mxu3 %v10572_v18 }
 0x8de   : > { %v9825_v33 = vpack.c.bf16 %v4744_v30, %v4740_v34 }
 0x8df   : > { %v4449_v28 = vpop.f32.mrf.mxu2  ;;  %v4273_v16 = vpop.f32.mrf.mxu0 }
 0x8e0   : > { %10573 = vst [vmem:[#allocation67_spill] sm:$0xff] %v9825_v33  ;;  %v4450_v7 = vadd.f32 %v4449_v28, %v4361_v56  ;;  %v4538_v29 = vpop.f32.mrf.mxu3  ;;  %v4274_v48 = vadd.f32 %v4273_v16, %v9818_v14  ;;  %v4362_v41 = vpop.f32.mrf.mxu1 }
 0x8e2   : > { %v4539_v54 = vadd.f32 %v4538_v29, %v4450_v7  ;;  %v4363_v58 = vadd.f32 %v4362_v41, %v4274_v48 }
 0x8e4   : > { %v4621_v38 = vmax.f32 %v4539_v54, 0.0 }
 0x8e7   : > { %v4451_v15 = vpop.f32.mrf.mxu2  ;;  %v4276_v49 = vpop.f32.mrf.mxu0 }
 0x8e8   : > { %v4452_v25 = vadd.f32 %v4451_v15, %v4363_v58  ;;  %v4540_v46 = vpop.f32.mrf.mxu3  ;;  %v4277_v63 = vadd.f32 %v4276_v49, %v9818_v14  ;;  %v4365_v22 = vpop.f32.mrf.mxu1  ;;  %v10576_v15 = vld [vmem:[#allocation55_spill] sm:$0xff]  ;;  %v10577_v49 = vld [vmem:[#allocation56_spill] sm:$0xff] }
 0x8ea   : > { %v4541_v1 = vadd.f32 %v4540_v46, %v4452_v25  ;;  %v4366_v26 = vadd.f32 %v4365_v22, %v4277_v63  ;;  %4315 = vmatmul.bf16.gmra.mxu0 %v9139_v57  ;;  %v10578_v63 = vld [vmem:[#allocation71_spill] sm:$0xff]  ;;  %v10579_v22 = vld [vmem:[#allocation72_spill] sm:$0xff] }
 0x8eb   : > { %4404 = vmatmul.bf16.gmra.mxu1 %v9147_v9 }
 0x8ec   : > { %v4625_v39 = vmax.f32 %v4541_v1, 0.0  ;;  %4493 = vmatmul.bf16.gmra.mxu2 %v9329_v37 }
 0x8ed   : > { %4582 = vmatmul.bf16.gmra.mxu3 %v9333_v52 }
 0x8ee   : > { %v9833_v36 = vpack.c.bf16 %v4625_v39, %v4621_v38 }
 0x8ef   : > { %v4454_v27 = vpop.f32.mrf.mxu2  ;;  %v4278_v59 = vpop.f32.mrf.mxu0 }
 0x8f0   : > { %v4455_v43 = vadd.f32 %v4454_v27, %v4366_v26  ;;  %v4543_v3 = vpop.f32.mrf.mxu3  ;;  %v4279_v53 = vadd.f32 %v4278_v59, %v9818_v14  ;;  %v4367_v0 = vpop.f32.mrf.mxu1 }
 0x8f2   : > { %v4544_v45 = vadd.f32 %v4543_v3, %v4455_v43  ;;  %v4368_v23 = vadd.f32 %v4367_v0, %v4279_v53 }
 0x8f4   : > { %v4629_v24 = vmax.f32 %v4544_v45, 0.0 }
 0x8f7   : > { %v4456_v57 = vpop.f32.mrf.mxu2  ;;  %v4281_v21 = vpop.f32.mrf.mxu0 }
 0x8f8   : > { %v4457_v32 = vadd.f32 %v4456_v57, %v4368_v23  ;;  %v4545_v50 = vpop.f32.mrf.mxu3  ;;  %v4282_v9 = vadd.f32 %v4281_v21, %v9818_v14  ;;  %v4370_v37 = vpop.f32.mrf.mxu1 }
 0x8fa   : > { %v4546_v11 = vadd.f32 %v4545_v50, %v4457_v32  ;;  %v4371_v52 = vadd.f32 %v4370_v37, %v4282_v9  ;;  %4320 = vmatmul.bf16.gmra.mxu0 %v9151_v62  ;;  %v10580_v37 = vld [vmem:[#allocation57_spill] sm:$0xff] }
 0x8fb   : > { %4409 = vmatmul.bf16.gmra.mxu1 %v9159_v2 }
 0x8fc   : > { %v4633_v12 = vmax.f32 %v4546_v11, 0.0  ;;  %4498 = vmatmul.bf16.gmra.mxu2 %v10574_v44  ;;  %v10583_v44 = vld [vmem:[#allocation74_spill] sm:$0xff] }
 0x8fd   : > { %4587 = vmatmul.bf16.gmra.mxu3 %v10575_v17 }
 0x8fe   : > { %v9841_v47 = vpack.c.bf16 %v4633_v12, %v4629_v24  ;;  %v10581_v24 = vld [vmem:[#allocation58_spill] sm:$0xff]  ;;  %v10582_v12 = vld [vmem:[#allocation73_spill] sm:$0xff] }
 0x8ff   : > { %v4459_v8 = vpop.f32.mrf.mxu2  ;;  %v4283_v30 = vpop.f32.mrf.mxu0 }
 0x900   : > { %v4460_v56 = vadd.f32 %v4459_v8, %v4371_v52  ;;  %v4548_v34 = vpop.f32.mrf.mxu3  ;;  %v4284_v42 = vadd.f32 %v4283_v30, %v9818_v14  ;;  %v4372_v18 = vpop.f32.mrf.mxu1 }
 0x902   : > { %v4549_v28 = vadd.f32 %v4548_v34, %v4460_v56  ;;  %v4373_v7 = vadd.f32 %v4372_v18, %v4284_v42 }
 0x904   : > { %v4637_v25 = vmax.f32 %v4549_v28, 0.0 }
 0x907   : > { %v4461_v62 = vpop.f32.mrf.mxu2  ;;  %v4286_v48 = vpop.f32.mrf.mxu0 }
 0x908   : > { %v4462_v29 = vadd.f32 %v4461_v62, %v4373_v7  ;;  %v4550_v16 = vpop.f32.mrf.mxu3  ;;  %v4287_v2 = vadd.f32 %v4286_v48, %v9818_v14  ;;  %v4375_v41 = vpop.f32.mrf.mxu1 }
 0x90a   : > { %v4551_v54 = vadd.f32 %v4550_v16, %v4462_v29  ;;  %v4376_v58 = vadd.f32 %v4375_v41, %v4287_v2  ;;  %4325 = vmatmul.bf16.gmra.mxu0 %v10576_v15 }
 0x90b   : > { %4414 = vmatmul.bf16.gmra.mxu1 %v10577_v49  ;;  %v10585_v49 = vld [vmem:[#allocation76_spill] sm:$0xff] }
 0x90c   : > { %v4641_v46 = vmax.f32 %v4551_v54, 0.0  ;;  %4503 = vmatmul.bf16.gmra.mxu2 %v10578_v63 }
 0x90d   : > { %4592 = vmatmul.bf16.gmra.mxu3 %v10579_v22 }
 0x90e   : > { %v9849_v1 = vpack.c.bf16 %v4641_v46, %v4637_v25  ;;  %v10584_v46 = vld [vmem:[#allocation75_spill] sm:$0xff] }
 0x90f   : > { %v4464_v26 = vpop.f32.mrf.mxu2  ;;  %v4288_v27 = vpop.f32.mrf.mxu0 }
 0x910   : > { %v4465_v38 = vadd.f32 %v4464_v26, %v4376_v58  ;;  %v4553_v39 = vpop.f32.mrf.mxu3  ;;  %v4289_v43 = vadd.f32 %v4288_v27, %v9818_v14  ;;  %v4377_v3 = vpop.f32.mrf.mxu1 }
 0x912   : > { %v4554_v59 = vadd.f32 %v4553_v39, %v4465_v38  ;;  %v4378_v53 = vadd.f32 %v4377_v3, %v4289_v43 }
 0x914   : > { %v4645_v11 = vmax.f32 %v4554_v59, 0.0 }
 0x917   : > { %v4466_v0 = vpop.f32.mrf.mxu2  ;;  %v4291_v57 = vpop.f32.mrf.mxu0 }
 0x918   : > { %v4467_v45 = vadd.f32 %v4466_v0, %v4378_v53  ;;  %v4555_v23 = vpop.f32.mrf.mxu3  ;;  %v4292_v32 = vadd.f32 %v4291_v57, %v9818_v14  ;;  %v4380_v50 = vpop.f32.mrf.mxu1 }
 0x91a   : > { %v4556_v21 = vadd.f32 %v4555_v23, %v4467_v45  ;;  %v4381_v9 = vadd.f32 %v4380_v50, %v4292_v32  ;;  %4330 = vmatmul.bf16.gmra.mxu0 %v10580_v37  ;;  %v10586_v50 = vld [vmem:[#allocation61_spill] sm:$0xff]  ;;  %v10587_v37 = vld [vmem:[#allocation62_spill] sm:$0xff] }
 0x91b   : > { %4419 = vmatmul.bf16.gmra.mxu1 %v10581_v24 }
 0x91c   : > { %v4649_v52 = vmax.f32 %v4556_v21, 0.0  ;;  %4508 = vmatmul.bf16.gmra.mxu2 %v10582_v12 }
 0x91d   : > { %4597 = vmatmul.bf16.gmra.mxu3 %v10583_v44 }
 0x91e   : > { %v9857_v17 = vpack.c.bf16 %v4649_v52, %v4645_v11  ;;  %v10588_v11 = vld [vmem:[#allocation77_spill] sm:$0xff]  ;;  %v10589_v52 = vld [vmem:[#allocation78_spill] sm:$0xff] }
 0x91f   : > { %v4469_v8 = vpop.f32.mrf.mxu2  ;;  %v4293_v30 = vpop.f32.mrf.mxu0 }
 0x920   : > { %v4470_v56 = vadd.f32 %v4469_v8, %v4381_v9  ;;  %v4558_v34 = vpop.f32.mrf.mxu3  ;;  %v4294_v42 = vadd.f32 %v4293_v30, %v9818_v14  ;;  %v4382_v18 = vpop.f32.mrf.mxu1 }
 0x922   : > { %v4559_v28 = vadd.f32 %v4558_v34, %v4470_v56  ;;  %v4383_v7 = vadd.f32 %v4382_v18, %v4294_v42 }
 0x924   : > { %v4653_v15 = vmax.f32 %v4559_v28, 0.0 }
 0x927   : > { %v4471_v62 = vpop.f32.mrf.mxu2  ;;  %v4296_v48 = vpop.f32.mrf.mxu0 }
 0x928   : > { %v4472_v29 = vadd.f32 %v4471_v62, %v4383_v7  ;;  %v4560_v16 = vpop.f32.mrf.mxu3  ;;  %v4297_v2 = vadd.f32 %v4296_v48, %v9818_v14  ;;  %v4385_v41 = vpop.f32.mrf.mxu1 }
 0x92a   : > { %v4561_v54 = vadd.f32 %v4560_v16, %v4472_v29  ;;  %v4386_v58 = vadd.f32 %v4385_v41, %v4297_v2  ;;  %4335 = vmatmul.bf16.gmra.mxu0 %v10551_v5 }
 0x92b   : > { %4424 = vmatmul.bf16.gmra.mxu1 %v10552_v6 }
 0x92c   : > { %v4657_v25 = vmax.f32 %v4561_v54, 0.0  ;;  %4513 = vmatmul.bf16.gmra.mxu2 %v10584_v46 }
 0x92d   : > { %4602 = vmatmul.bf16.gmra.mxu3 %v10585_v49 }
 0x92e   : > { %v9865_v63 = vpack.c.bf16 %v4657_v25, %v4653_v15 }
 0x92f   : > { %v4474_v22 = vpop.f32.mrf.mxu2  ;;  %v4298_v39 = vpop.f32.mrf.mxu0 }
 0x930   : > { %v4475_v26 = vadd.f32 %v4474_v22, %v4386_v58  ;;  %v4563_v38 = vpop.f32.mrf.mxu3  ;;  %v4299_v27 = vadd.f32 %v4298_v39, %v9818_v14  ;;  %v4387_v43 = vpop.f32.mrf.mxu1 }
 0x932   : > { %v4564_v3 = vadd.f32 %v4563_v38, %v4475_v26  ;;  %v4388_v59 = vadd.f32 %v4387_v43, %v4299_v27 }
 0x934   : > { %v4661_v21 = vmax.f32 %v4564_v3, 0.0 }
 0x937   : > { %v4476_v5 = vpop.f32.mrf.mxu2  ;;  %v4301_v45 = vpop.f32.mrf.mxu0 }
 0x938   : > { %v4477_v53 = vadd.f32 %v4476_v5, %v4388_v59  ;;  %v4565_v0 = vpop.f32.mrf.mxu3  ;;  %v4302_v6 = vadd.f32 %v4301_v45, %v9818_v14  ;;  %v4390_v23 = vpop.f32.mrf.mxu1 }
 0x93a   : > { %v4566_v57 = vadd.f32 %v4565_v0, %v4477_v53  ;;  %v4391_v32 = vadd.f32 %v4390_v23, %v4302_v6  ;;  %4340 = vmatmul.bf16.gmra.mxu0 %v10586_v50 }
 0x93b   : > { %4429 = vmatmul.bf16.gmra.mxu1 %v10587_v37 }
 0x93c   : > { %v4665_v9 = vmax.f32 %v4566_v57, 0.0  ;;  %4518 = vmatmul.bf16.gmra.mxu2 %v10588_v11 }
 0x93d   : > { %4607 = vmatmul.bf16.gmra.mxu3 %v10589_v52 }
 0x93e   : > { %v9873_v24 = vpack.c.bf16 %v4665_v9, %v4661_v21 }
 0x93f   : > { %v4479_v12 = vpop.f32.mrf.mxu2  ;;  %v4303_v56 = vpop.f32.mrf.mxu0 }
 0x940   : > { %v4480_v44 = vadd.f32 %v4479_v12, %v4391_v32  ;;  %v4568_v8 = vpop.f32.mrf.mxu3  ;;  %v4304_v34 = vadd.f32 %v4303_v56, %v9818_v14  ;;  %v4392_v30 = vpop.f32.mrf.mxu1 }
 0x942   : > { %v4569_v42 = vadd.f32 %v4568_v8, %v4480_v44  ;;  %v4393_v18 = vadd.f32 %v4392_v30, %v4304_v34 }
 0x944   : > { %v4669_v54 = vmax.f32 %v4569_v42, 0.0 }
 0x947   : > { %v4481_v28 = vpop.f32.mrf.mxu2  ;;  %v4306_v29 = vpop.f32.mrf.mxu0 }
 0x948   : > { %v4482_v7 = vadd.f32 %v4481_v28, %v4393_v18  ;;  %v4570_v62 = vpop.f32.mrf.mxu3  ;;  %v4307_v16 = vadd.f32 %v4306_v29, %v9818_v14  ;;  %v4395_v48 = vpop.f32.mrf.mxu1 }
 0x94a   : > { %v4571_v2 = vadd.f32 %v4570_v62, %v4482_v7  ;;  %v4396_v41 = vadd.f32 %v4395_v48, %v4307_v16  ;;  %4345 = vmatmul.bf16.gmra.mxu0 %v10482_v10 }
 0x94b   : > { %4434 = vmatmul.bf16.gmra.mxu1 %v10483_v13 }
 0x94c   : > { %v4673_v58 = vmax.f32 %v4571_v2, 0.0  ;;  %4523 = vmatmul.bf16.gmra.mxu2 %v10522_v35 }
 0x94d   : > { %4612 = vmatmul.bf16.gmra.mxu3 %v10523_v31 }
 0x94e   : > { %v9881_v15 = vpack.c.bf16 %v4673_v58, %v4669_v54 }
 0x94f   : > { %v4484_v25 = vpop.f32.mrf.mxu2  ;;  %v4308_v22 = vpop.f32.mrf.mxu0 }
 0x950   : > { %10590 = vst [vmem:[#allocation68_spill] sm:$0xff] %v9881_v15  ;;  %v4485_v46 = vadd.f32 %v4484_v25, %v4396_v41  ;;  %v4573_v49 = vpop.f32.mrf.mxu3  ;;  %v4309_v26 = vadd.f32 %v4308_v22, %v9818_v14  ;;  %v4397_v38 = vpop.f32.mrf.mxu1 }
 0x952   : > { %v4574_v39 = vadd.f32 %v4573_v49, %v4485_v46  ;;  %v4398_v27 = vadd.f32 %v4397_v38, %v4309_v26 }
 0x954   : > { %v4677_v53 = vmax.f32 %v4574_v39, 0.0 }
 0x957   : > { %v4486_v10 = vpop.f32.mrf.mxu2  ;;  %v4311_v59 = vpop.f32.mrf.mxu0 }
 0x958   : > { %v4487_v43 = vadd.f32 %v4486_v10, %v4398_v27  ;;  %v4575_v3 = vpop.f32.mrf.mxu3  ;;  %v4312_v13 = vadd.f32 %v4311_v59, %v9818_v14  ;;  %v4400_v35 = vpop.f32.mrf.mxu1 }
 0x95a   : > { %v4576_v5 = vadd.f32 %v4575_v3, %v4487_v43  ;;  %v4401_v31 = vadd.f32 %v4400_v35, %v4312_v13 }
 0x95c   : > { %v4681_v0 = vmax.f32 %v4576_v5, 0.0 }
 0x95e   : > { %v9885_v45 = vpack.c.bf16 %v4681_v0, %v4677_v53 }
 0x95f   : > { %v4489_v6 = vpop.f32.mrf.mxu2  ;;  %v4313_v32 = vpop.f32.mrf.mxu0 }
 0x960   : > { %10591 = vst [vmem:[#allocation69_spill] sm:$0xff] %v9885_v45  ;;  %v4490_v23 = vadd.f32 %v4489_v6, %v4401_v31  ;;  %v4578_v57 = vpop.f32.mrf.mxu3  ;;  %v4314_v50 = vadd.f32 %v4313_v32, %v9818_v14  ;;  %v4402_v21 = vpop.f32.mrf.mxu1 }
 0x962   : > { %v4579_v9 = vadd.f32 %v4578_v57, %v4490_v23  ;;  %v4403_v37 = vadd.f32 %v4402_v21, %v4314_v50 }
 0x964   : > { %v4685_v42 = vmax.f32 %v4579_v9, 0.0 }
 0x967   : > { %v4491_v11 = vpop.f32.mrf.mxu2  ;;  %v4316_v44 = vpop.f32.mrf.mxu0 }
 0x968   : > { %v4492_v52 = vadd.f32 %v4491_v11, %v4403_v37  ;;  %v4580_v12 = vpop.f32.mrf.mxu3  ;;  %v4317_v8 = vadd.f32 %v4316_v44, %v9818_v14  ;;  %v4405_v56 = vpop.f32.mrf.mxu1 }
 0x96a   : > { %v4581_v34 = vadd.f32 %v4580_v12, %v4492_v52  ;;  %v4406_v30 = vadd.f32 %v4405_v56, %v4317_v8 }
 0x96c   : > { %v4689_v18 = vmax.f32 %v4581_v34, 0.0 }
 0x96e   : > { %v9889_v28 = vpack.c.bf16 %v4689_v18, %v4685_v42 }
 0x96f   : > { %v4494_v7 = vpop.f32.mrf.mxu2  ;;  %v4318_v16 = vpop.f32.mrf.mxu0 }
 0x970   : > { %10592 = vst [vmem:[#allocation70_spill] sm:$0xff] %v9889_v28  ;;  %v4495_v62 = vadd.f32 %v4494_v7, %v4406_v30  ;;  %v4583_v29 = vpop.f32.mrf.mxu3  ;;  %v4319_v48 = vadd.f32 %v4318_v16, %v9818_v14  ;;  %v4407_v2 = vpop.f32.mrf.mxu1 }
 0x972   : > { %v4584_v41 = vadd.f32 %v4583_v29, %v4495_v62  ;;  %v4408_v54 = vadd.f32 %v4407_v2, %v4319_v48 }
 0x974   : > { %v4693_v27 = vmax.f32 %v4584_v41, 0.0 }
 0x977   : > { %v4496_v58 = vpop.f32.mrf.mxu2  ;;  %v4321_v49 = vpop.f32.mrf.mxu0 }
 0x978   : > { %v4497_v25 = vadd.f32 %v4496_v58, %v4408_v54  ;;  %v4585_v46 = vpop.f32.mrf.mxu3  ;;  %v4322_v22 = vadd.f32 %v4321_v49, %v9818_v14  ;;  %v4410_v26 = vpop.f32.mrf.mxu1 }
 0x97a   : > { %v4586_v38 = vadd.f32 %v4585_v46, %v4497_v25  ;;  %v4411_v39 = vadd.f32 %v4410_v26, %v4322_v22 }
 0x97c   : > { %v4697_v10 = vmax.f32 %v4586_v38, 0.0 }
 0x97e   : > { %v9893_v43 = vpack.c.bf16 %v4697_v10, %v4693_v27 }
 0x97f   : > { %v4499_v3 = vpop.f32.mrf.mxu2  ;;  %v4323_v35 = vpop.f32.mrf.mxu0 }
 0x980   : > { %v4500_v59 = vadd.f32 %v4499_v3, %v4411_v39  ;;  %v4588_v13 = vpop.f32.mrf.mxu3  ;;  %v4324_v5 = vadd.f32 %v4323_v35, %v9818_v14  ;;  %v4412_v31 = vpop.f32.mrf.mxu1 }
 0x982   : > { %v4589_v53 = vadd.f32 %v4588_v13, %v4500_v59  ;;  %v4413_v0 = vadd.f32 %v4412_v31, %v4324_v5 }
 0x984   : > { %v4701_v11 = vmax.f32 %v4589_v53, 0.0 }
 0x987   : > { %v4501_v6 = vpop.f32.mrf.mxu2  ;;  %v4326_v32 = vpop.f32.mrf.mxu0 }
 0x988   : > { %v4502_v23 = vadd.f32 %v4501_v6, %v4413_v0  ;;  %v4590_v57 = vpop.f32.mrf.mxu3  ;;  %v4327_v50 = vadd.f32 %v4326_v32, %v9818_v14  ;;  %v4415_v21 = vpop.f32.mrf.mxu1 }
 0x98a   : > { %v4591_v9 = vadd.f32 %v4590_v57, %v4502_v23  ;;  %v4416_v37 = vadd.f32 %v4415_v21, %v4327_v50 }
 0x98c   : > { %v4705_v52 = vmax.f32 %v4591_v9, 0.0 }
 0x98e   : > { %v9897_v12 = vpack.c.bf16 %v4705_v52, %v4701_v11 }
 0x98f   : > { %v4504_v44 = vpop.f32.mrf.mxu2  ;;  %v4328_v34 = vpop.f32.mrf.mxu0 }
 0x990   : > { %10593 = vst [vmem:[#allocation55_spill] sm:$0xff] %v9897_v12  ;;  %v4505_v8 = vadd.f32 %v4504_v44, %v4416_v37  ;;  %v4593_v56 = vpop.f32.mrf.mxu3  ;;  %v4329_v30 = vadd.f32 %v4328_v34, %v9818_v14  ;;  %v4417_v42 = vpop.f32.mrf.mxu1 }
 0x992   : > { %v4594_v18 = vadd.f32 %v4593_v56, %v4505_v8  ;;  %v4418_v7 = vadd.f32 %v4417_v42, %v4329_v30 }
 0x994   : > { %v4709_v54 = vmax.f32 %v4594_v18, 0.0 }
 0x997   : > { %v4506_v62 = vpop.f32.mrf.mxu2  ;;  %v4331_v48 = vpop.f32.mrf.mxu0 }
 0x998   : > { %v4507_v29 = vadd.f32 %v4506_v62, %v4418_v7  ;;  %v4595_v16 = vpop.f32.mrf.mxu3  ;;  %v4420_v2 = vpop.f32.mrf.mxu1  ;;  %v4332_v25 = vadd.f32 %v4331_v48, %v9818_v14 }
 0x99a   : > { %v4596_v41 = vadd.f32 %v4595_v16, %v4507_v29  ;;  %v4421_v22 = vadd.f32 %v4420_v2, %v4332_v25 }
 0x99c   : > { %v4713_v58 = vmax.f32 %v4596_v41, 0.0 }
 0x99e   : > { %v9901_v46 = vpack.c.bf16 %v4713_v58, %v4709_v54 }
 0x99f   : > { %v4509_v49 = vpop.f32.mrf.mxu2  ;;  %v4333_v38 = vpop.f32.mrf.mxu0 }
 0x9a0   : > { %v4598_v26 = vpop.f32.mrf.mxu3  ;;  %v4422_v39 = vpop.f32.mrf.mxu1  ;;  %v4334_v27 = vadd.f32 %v4333_v38, %v9818_v14  ;;  %v4510_v10 = vadd.f32 %v4509_v49, %v4421_v22 }
 0x9a2   : > { %v4423_v3 = vadd.f32 %v4422_v39, %v4334_v27  ;;  %v4599_v13 = vadd.f32 %v4598_v26, %v4510_v10 }
 0x9a4   : > { %v4717_v6 = vmax.f32 %v4599_v13, 0.0 }
 0x9a7   : > { %v4511_v59 = vpop.f32.mrf.mxu2  ;;  %v4336_v31 = vpop.f32.mrf.mxu0 }
 0x9a8   : > { %v4512_v35 = vadd.f32 %v4511_v59, %v4423_v3  ;;  %v4600_v5 = vpop.f32.mrf.mxu3  ;;  %v4425_v53 = vpop.f32.mrf.mxu1  ;;  %v4337_v57 = vadd.f32 %v4336_v31, %v9818_v14 }
 0x9aa   : > { %v4601_v0 = vadd.f32 %v4600_v5, %v4512_v35  ;;  %v4426_v21 = vadd.f32 %v4425_v53, %v4337_v57 }
 0x9ac   : > { %v4721_v23 = vmax.f32 %v4601_v0, 0.0 }
 0x9ae   : > { %v9905_v32 = vpack.c.bf16 %v4721_v23, %v4717_v6 }
 0x9af   : > { %v4514_v50 = vpop.f32.mrf.mxu2  ;;  %v4338_v37 = vpop.f32.mrf.mxu0 }
 0x9b0   : > { %10594 = vst [vmem:[#allocation56_spill] sm:$0xff] %v9905_v32  ;;  %v4603_v9 = vpop.f32.mrf.mxu3  ;;  %v4427_v11 = vpop.f32.mrf.mxu1  ;;  %v4339_v52 = vadd.f32 %v4338_v37, %v9818_v14  ;;  %v4515_v44 = vadd.f32 %v4514_v50, %v4426_v21 }
 0x9b2   : > { %v4428_v8 = vadd.f32 %v4427_v11, %v4339_v52  ;;  %v4604_v34 = vadd.f32 %v4603_v9, %v4515_v44 }
 0x9b4   : > { %v4725_v29 = vmax.f32 %v4604_v34, 0.0 }
 0x9b7   : > { %v4516_v56 = vpop.f32.mrf.mxu2  ;;  %v4341_v18 = vpop.f32.mrf.mxu0 }
 0x9b8   : > { %v4517_v30 = vadd.f32 %v4516_v56, %v4428_v8  ;;  %v4605_v42 = vpop.f32.mrf.mxu3  ;;  %v4430_v7 = vpop.f32.mrf.mxu1  ;;  %v4342_v48 = vadd.f32 %v4341_v18, %v9818_v14 }
 0x9ba   : > { %v4606_v62 = vadd.f32 %v4605_v42, %v4517_v30  ;;  %v4431_v54 = vadd.f32 %v4430_v7, %v4342_v48 }
 0x9bc   : > { %v4729_v16 = vmax.f32 %v4606_v62, 0.0 }
 0x9be   : > { %v9909_v2 = vpack.c.bf16 %v4729_v16, %v4725_v29 }
 0x9bf   : > { %v4519_v41 = vpop.f32.mrf.mxu2  ;;  %v4343_v25 = vpop.f32.mrf.mxu0 }
 0x9c0   : > { %v4608_v58 = vpop.f32.mrf.mxu3  ;;  %v4432_v49 = vpop.f32.mrf.mxu1  ;;  %v4344_v22 = vadd.f32 %v4343_v25, %v9818_v14  ;;  %v4520_v26 = vadd.f32 %v4519_v41, %v4431_v54 }
 0x9c2   : > { %v4433_v38 = vadd.f32 %v4432_v49, %v4344_v22  ;;  %v4609_v27 = vadd.f32 %v4608_v58, %v4520_v26 }
 0x9c4   : > { %v4733_v5 = vmax.f32 %v4609_v27, 0.0 }
 0x9c7   : > { %v4521_v39 = vpop.f32.mrf.mxu2  ;;  %v4346_v59 = vpop.f32.mrf.mxu0 }
 0x9c8   : > { %v4522_v10 = vadd.f32 %v4521_v39, %v4433_v38  ;;  %v4610_v3 = vpop.f32.mrf.mxu3  ;;  %v4435_v35 = vpop.f32.mrf.mxu1  ;;  %v4347_v53 = vadd.f32 %v4346_v59, %v9818_v14 }
 0x9ca   : > { %v4611_v13 = vadd.f32 %v4610_v3, %v4522_v10  ;;  %v4436_v23 = vadd.f32 %v4435_v35, %v4347_v53 }
 0x9cc   : > { %v4737_v31 = vmax.f32 %v4611_v13, 0.0 }
 0x9ce   : > { %v9913_v0 = vpack.c.bf16 %v4737_v31, %v4733_v5 }
 0x9cf   : > { %v4524_v6 = vpop.f32.mrf.mxu2  ;;  %v4348_v50 = vpop.f32.mrf.mxu0 }
 0x9d0   : > { %10595 = vst [vmem:[#allocation71_spill] sm:$0xff] %v9913_v0  ;;  %v4613_v57 = vpop.f32.mrf.mxu3  ;;  %v4349_v21 = vadd.f32 %v4348_v50, %v9818_v14  ;;  %v4525_v9 = vadd.f32 %v4524_v6, %v4436_v23  ;;  %v4437_v37 = vpop.f32.mrf.mxu1 }
 0x9d2   : > { %v4438_v11 = vadd.f32 %v4437_v37, %v4349_v21  ;;  %v4614_v44 = vadd.f32 %v4613_v57, %v4525_v9 }
 0x9d4   : > { %v4741_v30 = vmax.f32 %v4614_v44, 0.0 }
 0x9d7   : > { %v4526_v52 = vpop.f32.mrf.mxu2 }
 0x9d8   : > { %v4527_v8 = vadd.f32 %v4526_v52, %v4438_v11  ;;  %v4615_v56 = vpop.f32.mrf.mxu3 }
 0x9da   : > { %v4616_v34 = vadd.f32 %v4615_v56, %v4527_v8 }
 0x9dc   : > { %v4745_v42 = vmax.f32 %v4616_v34, 0.0 }
 0x9de   : > { %v9916_v18 = vpack.c.bf16 %v4745_v42, %v4741_v30 }
 0x9e0   : > { %10596 = vst [vmem:[#allocation72_spill] sm:$0xff] %v9916_v18 }
 0x9e1   : > { %8424 = dma.done.wait (%p45_p5), [#allocation12 + $0x6], 8192 }
 0x9e2   : > { %8426 = vsyncadd (%p45_p5), [#allocation12 + $0x6], 4294959104 }
 0x9e3   : > { %8428 = dma.done.wait (%p45_p5), [#allocation12 + $0x7], 32 }
 0x9e4   : > { %8430 = vsyncadd (%p45_p5), [#allocation12 + $0x7], 4294967264  ;;  %v7489_v14 = vld [vmem:[#allocation8 + $0x70] sm:$0xf]  ;;  %v8005_v7 = vld [vmem:[#allocation8 + $0x74] sm:$0xf0] }
 0x9e5   : > { %v7553_v62 = vld [vmem:[#allocation8 + $0xf0] sm:$0xf]  ;;  %v7490_v29 = vor.u32 %v8005_v7, %v7489_v14  ;;  %v8021_v16 = vld [vmem:[#allocation8 + $0xf4] sm:$0xf0]  ;;  %v7481_v22 = vld [vmem:[#allocation8 + $0x60] sm:$0xf] }
 0x9e6   : > { %v7617_v48 = vld [vmem:[#allocation8 + $0x170] sm:$0xf]  ;;  %v8037_v41 = vld [vmem:[#allocation8 + $0x174] sm:$0xf0]  ;;  %v7554_v54 = vor.u32 %v8021_v16, %v7553_v62  ;;  %v8003_v38 = vld [vmem:[#allocation8 + $0x64] sm:$0xf0] }
 0x9e7   : > { %v7618_v58 = vor.u32 %v8037_v41, %v7617_v48  ;;  %v7681_v25 = vld [vmem:[#allocation8 + $0x1f0] sm:$0xf]  ;;  %v8053_v49 = vld [vmem:[#allocation8 + $0x1f4] sm:$0xf0]  ;;  %5212 = vmatpush.bf16.msrb.mxu0 %v7490_v29  ;;  %v7545_v39 = vld [vmem:[#allocation8 + $0xe0] sm:$0xf]  ;;  %v7482_v10 = vor.u32 %v8003_v38, %v7481_v22 }
 0x9e8   : > { %v7682_v26 = vor.u32 %v8053_v49, %v7681_v25  ;;  %v8019_v27 = vld [vmem:[#allocation8 + $0xe4] sm:$0xf0]  ;;  %5301 = vmatpush.bf16.msrb.mxu1 %v7554_v54  ;;  %v7609_v59 = vld [vmem:[#allocation8 + $0x160] sm:$0xf]  ;;  %v7473_v53 = vld [vmem:[#allocation8 + $0x50] sm:$0xf] }
 0x9e9   : > { %5390 = vmatpush.bf16.msra.mxu2 %v7618_v58  ;;  %v7546_v3 = vor.u32 %v8019_v27, %v7545_v39  ;;  %v8035_v13 = vld [vmem:[#allocation8 + $0x164] sm:$0xf0]  ;;  %v7673_v35 = vld [vmem:[#allocation8 + $0x1e0] sm:$0xf]  ;;  %v8001_v6 = vld [vmem:[#allocation8 + $0x54] sm:$0xf0] }
 0x9ea   : > { %5479 = vmatpush.bf16.msra.mxu3 %v7682_v26  ;;  %v7610_v5 = vor.u32 %v8035_v13, %v7609_v59  ;;  %v8051_v31 = vld [vmem:[#allocation8 + $0x1e4] sm:$0xf0]  ;;  %v7537_v57 = vld [vmem:[#allocation8 + $0xd0] sm:$0xf]  ;;  %v8017_v50 = vld [vmem:[#allocation8 + $0xd4] sm:$0xf0]  ;;  %v7474_v9 = vor.u32 %v8001_v6, %v7473_v53 }
 0x9eb   : > { %v7674_v23 = vor.u32 %v8051_v31, %v7673_v35  ;;  %v7601_v21 = vld [vmem:[#allocation8 + $0x150] sm:$0xf]  ;;  %5213 = vmatpush.bf16.msrb.mxu0 %v7482_v10  ;;  %v8033_v37 = vld [vmem:[#allocation8 + $0x154] sm:$0xf0]  ;;  %v7538_v44 = vor.u32 %v8017_v50, %v7537_v57  ;;  %v7465_v56 = vld [vmem:[#allocation8 + $0x40] sm:$0xf] }
 0x9ec   : > { %v7665_v11 = vld [vmem:[#allocation8 + $0x1d0] sm:$0xf]  ;;  %v8049_v52 = vld [vmem:[#allocation8 + $0x1d4] sm:$0xf0]  ;;  %5302 = vmatpush.bf16.msrb.mxu1 %v7546_v3  ;;  %v7602_v8 = vor.u32 %v8033_v37, %v7601_v21  ;;  %v7999_v34 = vld [vmem:[#allocation8 + $0x44] sm:$0xf0] }
 0x9ed   : > { %5391 = vmatpush.bf16.msra.mxu2 %v7610_v5  ;;  %v7529_v30 = vld [vmem:[#allocation8 + $0xc0] sm:$0xf]  ;;  %v7666_v42 = vor.u32 %v8049_v52, %v7665_v11  ;;  %v8015_v14 = vld [vmem:[#allocation8 + $0xc4] sm:$0xf0]  ;;  %v7466_v48 = vor.u32 %v7999_v34, %v7465_v56  ;;  %v7457_v58 = vld [vmem:[#allocation8 + $0x30] sm:$0xf] }
 0x9ee   : > { %5480 = vmatpush.bf16.msra.mxu3 %v7674_v23  ;;  %v7593_v7 = vld [vmem:[#allocation8 + $0x140] sm:$0xf]  ;;  %v8031_v62 = vld [vmem:[#allocation8 + $0x144] sm:$0xf0]  ;;  %v7530_v41 = vor.u32 %v8015_v14, %v7529_v30  ;;  %v7997_v25 = vld [vmem:[#allocation8 + $0x34] sm:$0xf0] }
 0x9ef   : > { %v7657_v29 = vld [vmem:[#allocation8 + $0x1c0] sm:$0xf]  ;;  %v8047_v16 = vld [vmem:[#allocation8 + $0x1c4] sm:$0xf0]  ;;  %5214 = vmatpush.bf16.msrb.mxu0 %v7474_v9  ;;  %v7594_v54 = vor.u32 %v8031_v62, %v7593_v7  ;;  %v7521_v49 = vld [vmem:[#allocation8 + $0xb0] sm:$0xf]  ;;  %v7458_v3 = vor.u32 %v7997_v25, %v7457_v58 }
 0x9f0   : > { %5303 = vmatpush.bf16.msrb.mxu1 %v7538_v44  ;;  %v7658_v22 = vor.u32 %v8047_v16, %v7657_v29  ;;  %v8013_v26 = vld [vmem:[#allocation8 + $0xb4] sm:$0xf0]  ;;  %v7585_v38 = vld [vmem:[#allocation8 + $0x130] sm:$0xf]  ;;  %v7449_v35 = vld [vmem:[#allocation8 + $0x20] sm:$0xf] }
 0x9f1   : > { %5392 = vmatpush.bf16.msra.mxu2 %v7602_v8  ;;  %v8029_v39 = vld [vmem:[#allocation8 + $0x134] sm:$0xf0]  ;;  %v7649_v27 = vld [vmem:[#allocation8 + $0x1b0] sm:$0xf]  ;;  %v7522_v59 = vor.u32 %v8013_v26, %v7521_v49  ;;  %v7995_v5 = vld [vmem:[#allocation8 + $0x24] sm:$0xf0] }
 0x9f2   : > { %5481 = vmatpush.bf16.msra.mxu3 %v7666_v42  ;;  %v8045_v10 = vld [vmem:[#allocation8 + $0x1b4] sm:$0xf0]  ;;  %v7586_v13 = vor.u32 %v8029_v39, %v7585_v38  ;;  %v7513_v31 = vld [vmem:[#allocation8 + $0xa0] sm:$0xf]  ;;  %v8011_v6 = vld [vmem:[#allocation8 + $0xa4] sm:$0xf0]  ;;  %v7450_v9 = vor.u32 %v7995_v5, %v7449_v35 }
 0x9f3   : > { %5215 = vmatpush.bf16.msrb.mxu0 %v7466_v48  ;;  %v7650_v53 = vor.u32 %v8045_v10, %v7649_v27  ;;  %v7577_v23 = vld [vmem:[#allocation8 + $0x120] sm:$0xf]  ;;  %v8027_v57 = vld [vmem:[#allocation8 + $0x124] sm:$0xf0]  ;;  %v7514_v37 = vor.u32 %v8011_v6, %v7513_v31  ;;  %v7441_v52 = vld [vmem:[#allocation8 + $0x10] sm:$0xf] }
 0x9f4   : > { %5304 = vmatpush.bf16.msrb.mxu1 %v7530_v41  ;;  %v7641_v50 = vld [vmem:[#allocation8 + $0x1a0] sm:$0xf]  ;;  %v8043_v21 = vld [vmem:[#allocation8 + $0x1a4] sm:$0xf0]  ;;  %v7578_v11 = vor.u32 %v8027_v57, %v7577_v23  ;;  %v7993_v44 = vld [vmem:[#allocation8 + $0x14] sm:$0xf0] }
 0x9f5   : > { %5393 = vmatpush.bf16.msra.mxu2 %v7594_v54  ;;  %v7505_v8 = vld [vmem:[#allocation8 + $0x90] sm:$0xf]  ;;  %v7642_v56 = vor.u32 %v8043_v21, %v7641_v50  ;;  %v8009_v34 = vld [vmem:[#allocation8 + $0x94] sm:$0xf0]  ;;  %v7442_v62 = vor.u32 %v7993_v44, %v7441_v52  ;;  %v7433_v29 = vld [vmem:[#allocation8] sm:$0xf] }
 0x9f6   : > { %5482 = vmatpush.bf16.msra.mxu3 %v7658_v22  ;;  %v7569_v30 = vld [vmem:[#allocation8 + $0x110] sm:$0xf]  ;;  %v8025_v42 = vld [vmem:[#allocation8 + $0x114] sm:$0xf0]  ;;  %v7506_v16 = vor.u32 %v8009_v34, %v7505_v8  ;;  %v7991_v41 = vld [vmem:[#allocation8 + $0x4] sm:$0xf0] }
 0x9f7   : > { %5216 = vmatpush.bf16.msrb.mxu0 %v7458_v3  ;;  %v7633_v14 = vld [vmem:[#allocation8 + $0x190] sm:$0xf]  ;;  %v8041_v7 = vld [vmem:[#allocation8 + $0x194] sm:$0xf0]  ;;  %v7570_v48 = vor.u32 %v8025_v42, %v7569_v30  ;;  %v7497_v54 = vld [vmem:[#allocation8 + $0x80] sm:$0xf]  ;;  %v7434_v10 = vor.u32 %v7991_v41, %v7433_v29 }
 0x9f8   : > { %5305 = vmatpush.bf16.msrb.mxu1 %v7522_v59  ;;  %v8007_v58 = vld [vmem:[#allocation8 + $0x84] sm:$0xf0]  ;;  %v7634_v25 = vor.u32 %v8041_v7, %v7633_v14  ;;  %v7561_v49 = vld [vmem:[#allocation8 + $0x100] sm:$0xf]  ;;  %v8036_v39 = vld [vmem:[#allocation8 + $0x174] sm:$0xf] }
 0x9f9   : > { %5394 = vmatpush.bf16.msra.mxu2 %v7586_v13  ;;  %v8023_v22 = vld [vmem:[#allocation8 + $0x104] sm:$0xf0]  ;;  %v7625_v26 = vld [vmem:[#allocation8 + $0x180] sm:$0xf]  ;;  %v7619_v27 = vld [vmem:[#allocation8 + $0x178] sm:$0xf0]  ;;  %v7498_v13 = vor.u32 %v8007_v58, %v7497_v54 }
 0x9fa   : > { %5483 = vmatpush.bf16.msra.mxu3 %v7650_v53  ;;  %v8039_v38 = vld [vmem:[#allocation8 + $0x184] sm:$0xf0]  ;;  %v8052_v3 = vld [vmem:[#allocation8 + $0x1f4] sm:$0xf]  ;;  %v7683_v59 = vld [vmem:[#allocation8 + $0x1f8] sm:$0xf0]  ;;  %v7562_v35 = vor.u32 %v8023_v22, %v7561_v49  ;;  %v7622_v31 = vor.u32 %v8036_v39, %v7619_v27 }
 0x9fb   : > { %5217 = vmatpush.bf16.msrb.mxu0 %v7450_v9  ;;  %v7626_v5 = vor.u32 %v8039_v38, %v7625_v26  ;;  %v8004_v53 = vld [vmem:[#allocation8 + $0x74] sm:$0xf]  ;;  %v7491_v6 = vld [vmem:[#allocation8 + $0x78] sm:$0xf0]  ;;  %v7686_v23 = vor.u32 %v8052_v3, %v7683_v59  ;;  %v10599_v52 = vld [vmem:[#allocation104_spill] sm:$0xff] }
 0x9fc   : > { %5306 = vmatpush.bf16.msrb.mxu1 %v7514_v37  ;;  %v8020_v57 = vld [vmem:[#allocation8 + $0xf4] sm:$0xf]  ;;  %v7555_v50 = vld [vmem:[#allocation8 + $0xf8] sm:$0xf0]  ;;  %v7494_v21 = vor.u32 %v8004_v53, %v7491_v6  ;;  %v8034_v44 = vld [vmem:[#allocation8 + $0x164] sm:$0xf] }
 0x9fd   : > { %5395 = vmatpush.bf16.msra.mxu2 %v7578_v11  ;;  %v7558_v9 = vor.u32 %v8020_v57, %v7555_v50  ;;  %v10597_v37 = vld [vmem:[#allocation50_spill] sm:$0xff]  ;;  %v7611_v8 = vld [vmem:[#allocation8 + $0x168] sm:$0xf0]  ;;  %v8050_v42 = vld [vmem:[#allocation8 + $0x1e4] sm:$0xf] }
 0x9fe   : > { %5484 = vmatpush.bf16.msra.mxu3 %v7642_v56  ;;  %v10598_v11 = vld [vmem:[#allocation90_spill] sm:$0xff]  ;;  %v8002_v56 = vld [vmem:[#allocation8 + $0x64] sm:$0xf]  ;;  %v7614_v34 = vor.u32 %v8034_v44, %v7611_v8  ;;  %v7483_v30 = vld [vmem:[#allocation8 + $0x68] sm:$0xf0] }
 0x9ff   : > { %5218 = vmatpush.bf16.msrb.mxu0 %v7442_v62  ;;  %v7675_v14 = vld [vmem:[#allocation8 + $0x1e8] sm:$0xf0]  ;;  %v7486_v7 = vor.u32 %v8002_v56, %v7483_v30  ;;  %v8018_v29 = vld [vmem:[#allocation8 + $0xe4] sm:$0xf]  ;;  %v10600_v41 = vld [vmem:[#allocation51_spill] sm:$0xff] }
 0xa00   : > { %5307 = vmatpush.bf16.msrb.mxu1 %v7506_v16  ;;  %v7678_v62 = vor.u32 %v8050_v42, %v7675_v14  ;;  %v7547_v16 = vld [vmem:[#allocation8 + $0xe8] sm:$0xf0]  ;;  %v10601_v54 = vld [vmem:[#allocation91_spill] sm:$0xff]  ;;  %v10604_v49 = vld [vmem:[#allocation92_spill] sm:$0xff] }
 0xa01   : > { %5396 = vmatpush.bf16.msra.mxu2 %v7570_v48  ;;  %v7550_v48 = vor.u32 %v8018_v29, %v7547_v16  ;;  %v10602_v58 = vld [vmem:[#allocation105_spill] sm:$0xff]  ;;  %v10605_v22 = vld [vmem:[#allocation106_spill] sm:$0xff]  ;;  %v7603_v38 = vld [vmem:[#allocation8 + $0x158] sm:$0xf0] }
 0xa02   : > { %5485 = vmatpush.bf16.msra.mxu3 %v7634_v25  ;;  %v10603_v25 = vld [vmem:[#allocation52_spill] sm:$0xff]  ;;  %v8032_v26 = vld [vmem:[#allocation8 + $0x154] sm:$0xf]  ;;  %v7667_v59 = vld [vmem:[#allocation8 + $0x1d8] sm:$0xf0] }
 0xa03   : > { %5219 = vmatpush.bf16.msrb.mxu0 %v7434_v10  ;;  %v8000_v39 = vld [vmem:[#allocation8 + $0x54] sm:$0xf]  ;;  %v7606_v27 = vor.u32 %v8032_v26, %v7603_v38  ;;  %v7475_v10 = vld [vmem:[#allocation8 + $0x58] sm:$0xf0]  ;;  %v10606_v6 = vld [vmem:[#allocation53_spill] sm:$0xff] }
 0xa04   : > { %5308 = vmatpush.bf16.msrb.mxu1 %v7498_v13  ;;  %v8048_v3 = vld [vmem:[#allocation8 + $0x1d4] sm:$0xf]  ;;  %v7478_v13 = vor.u32 %v8000_v39, %v7475_v10  ;;  %v10608_v57 = vld [vmem:[#allocation107_spill] sm:$0xff]  ;;  %v8030_v44 = vld [vmem:[#allocation8 + $0x144] sm:$0xf] }
 0xa05   : > { %5397 = vmatpush.bf16.msra.mxu2 %v7562_v35  ;;  %v7670_v35 = vor.u32 %v8048_v3, %v7667_v59  ;;  %v10609_v50 = vld [vmem:[#allocation54_spill] sm:$0xff]  ;;  %v7595_v8 = vld [vmem:[#allocation8 + $0x148] sm:$0xf0]  ;;  %v7998_v56 = vld [vmem:[#allocation8 + $0x44] sm:$0xf] }
 0xa06   : > { %5486 = vmatpush.bf16.msra.mxu3 %v7626_v5  ;;  %5220 = vmatmul.bf16.vlgmr.msrb.gmra.mxu0 %v10597_v37  ;;  %v8016_v5 = vld [vmem:[#allocation8 + $0xd4] sm:$0xf]  ;;  %v7467_v30 = vld [vmem:[#allocation8 + $0x48] sm:$0xf0]  ;;  %v8046_v42 = vld [vmem:[#allocation8 + $0x1c4] sm:$0xf] }
 0xa07   : > { %5309 = vmatmul.bf16.vlgmr.msrb.gmra.mxu1 %v10598_v11  ;;  %5568 = vmatpush.bf16.msra.mxu0 %v7494_v21  ;;  %v10610_v21 = vld [vmem:[#allocation94_spill] sm:$0xff]  ;;  %v7659_v14 = vld [vmem:[#allocation8 + $0x1c8] sm:$0xf0]  ;;  %v8014_v29 = vld [vmem:[#allocation8 + $0xc4] sm:$0xf] }
 0xa08   : > { %5398 = vmatmul.bf16.vlgmr.msra.gmra.mxu2 %v10599_v52  ;;  %5657 = vmatpush.bf16.msra.mxu1 %v7558_v9  ;;  %v10611_v9 = vld [vmem:[#allocation59_spill] sm:$0xff]  ;;  %v7531_v16 = vld [vmem:[#allocation8 + $0xc8] sm:$0xf0]  ;;  %v10614_v39 = vld [vmem:[#allocation60_spill] sm:$0xff] }
 0xa09   : > { %5746 = vmatpush.bf16.msrb.mxu2 %v7622_v31  ;;  %5487 = vmatmul.bf16.vlgmr.msra.gmra.mxu3 %v9833_v36  ;;  %v7539_v31 = vld [vmem:[#allocation8 + $0xd8] sm:$0xf0]  ;;  %v10612_v26 = vld [vmem:[#allocation81_spill] sm:$0xff]  ;;  %v10617_v3 = vld [vmem:[#allocation108_spill] sm:$0xff] }
 0xa0a   : > { %5835 = vmatpush.bf16.msrb.mxu3 %v7686_v23  ;;  %v7542_v53 = vor.u32 %v8016_v5, %v7539_v31  ;;  %v10607_v23 = vld [vmem:[#allocation93_spill] sm:$0xff]  ;;  %v10613_v38 = vld [vmem:[#allocation95_spill] sm:$0xff]  ;;  %v8028_v59 = vld [vmem:[#allocation8 + $0x134] sm:$0xf] }
 0xa0b   : > { %5569 = vmatpush.bf16.msra.mxu0 %v7486_v7  ;;  %v7470_v7 = vor.u32 %v7998_v56, %v7467_v30  ;;  %v10616_v10 = vld [vmem:[#allocation79_spill] sm:$0xff] }
 0xa0c   : > { %5658 = vmatpush.bf16.msra.mxu1 %v7550_v48  ;;  %v7534_v48 = vor.u32 %v8014_v29, %v7531_v16  ;;  %v7459_v31 = vld [vmem:[#allocation8 + $0x38] sm:$0xf0] }
 0xa0d   : > { %5747 = vmatpush.bf16.msrb.mxu2 %v7614_v34  ;;  %v7598_v34 = vor.u32 %v8030_v44, %v7595_v8  ;;  %v7651_v44 = vld [vmem:[#allocation8 + $0x1b8] sm:$0xf0] }
 0xa0e   : > { %5836 = vmatpush.bf16.msrb.mxu3 %v7678_v62  ;;  %v7662_v62 = vor.u32 %v8046_v42, %v7659_v14  ;;  %v7523_v30 = vld [vmem:[#allocation8 + $0xb8] sm:$0xf0]  ;;  %v10618_v14 = vld [vmem:[#allocation64_spill] sm:$0xff] }
 0xa0f   : > { %5570 = vmatpush.bf16.msra.mxu0 %v7478_v13  ;;  %v7587_v13 = vld [vmem:[#allocation8 + $0x138] sm:$0xf0] }
 0xa10   : > { %5659 = vmatpush.bf16.msra.mxu1 %v7542_v53  ;;  %v7590_v5 = vor.u32 %v8028_v59, %v7587_v13  ;;  %v8044_v53 = vld [vmem:[#allocation8 + $0x1b4] sm:$0xf] }
 0xa11   : > { %5748 = vmatpush.bf16.msrb.mxu2 %v7606_v27  ;;  %v10615_v27 = vld [vmem:[#allocation63_spill] sm:$0xff]  ;;  %v7654_v56 = vor.u32 %v8044_v53, %v7651_v44  ;;  %v7579_v53 = vld [vmem:[#allocation8 + $0x128] sm:$0xf0]  ;;  %v7994_v44 = vld [vmem:[#allocation8 + $0x24] sm:$0xf] }
 0xa12   : > { %5837 = vmatpush.bf16.msrb.mxu3 %v7670_v35  ;;  %v7996_v35 = vld [vmem:[#allocation8 + $0x34] sm:$0xf] }
 0xa13   : > { %5571 = vmatpush.bf16.msra.mxu0 %v7470_v7  ;;  %v7462_v8 = vor.u32 %v7996_v35, %v7459_v31  ;;  %v10619_v7 = vld [vmem:[#allocation80_spill] sm:$0xff]  ;;  %v10621_v35 = vld [vmem:[#allocation82_spill] sm:$0xff] }
 0xa14   : > { %5660 = vmatpush.bf16.msra.mxu1 %v7534_v48  ;;  %v8026_v31 = vld [vmem:[#allocation8 + $0x124] sm:$0xf] }
 0xa15   : > { %5749 = vmatpush.bf16.msrb.mxu2 %v7598_v34  ;;  %v8012_v34 = vld [vmem:[#allocation8 + $0xb4] sm:$0xf] }
 0xa16   : > { %5225 = vmatmul.bf16.gmra.mxu0 %v10600_v41  ;;  %5838 = vmatpush.bf16.msrb.mxu3 %v7662_v62  ;;  %v7526_v42 = vor.u32 %v8012_v34, %v7523_v30  ;;  %v9958_v62 = vld [vmem:[#allocation9] sm:$0x3]  ;;  %v7451_v34 = vld [vmem:[#allocation8 + $0x28] sm:$0xf0]  ;;  %v8042_v30 = vld [vmem:[#allocation8 + $0x1a4] sm:$0xf] }
 0xa17   : > { %5314 = vmatmul.bf16.gmra.mxu1 %v10601_v54  ;;  %5572 = vmatpush.bf16.msra.mxu0 %v7462_v8  ;;  %10620 = vst [vmem:[#allocation57_spill] sm:$0xff] %v9958_v62  ;;  %v9961_v29 = vperm.slane %v9958_v62, 0 }
 0xa18   : > { %5403 = vmatmul.bf16.gmra.mxu2 %v10602_v58  ;;  %5661 = vmatpush.bf16.msra.mxu1 %v7526_v42  ;;  %v7643_v42 = vld [vmem:[#allocation8 + $0x1a8] sm:$0xf0] }
 0xa19   : > { %5492 = vmatmul.bf16.gmra.mxu3 %v9841_v47  ;;  %5750 = vmatpush.bf16.msrb.mxu2 %v7590_v5  ;;  %v10622_v5 = vld [vmem:[#allocation96_spill] sm:$0xff] }
 0xa1a   : > { %5839 = vmatpush.bf16.msrb.mxu3 %v7654_v56  ;;  %v7582_v56 = vor.u32 %v8026_v31, %v7579_v53 }
 0xa1d   : > { %5751 = vmatpush.bf16.msrb.mxu2 %v7582_v56 }
 0xa26   : > { %5230 = vmatmul.bf16.gmra.mxu0 %v10603_v25 }
 0xa27   : > { %5319 = vmatmul.bf16.gmra.mxu1 %v10604_v49 }
 0xa28   : > { %5408 = vmatmul.bf16.gmra.mxu2 %v10605_v22 }
 0xa29   : > { %5497 = vmatmul.bf16.gmra.mxu3 %v9849_v1 }
 0xa36   : > { %5235 = vmatmul.bf16.gmra.mxu0 %v10606_v6 }
 0xa37   : > { %5324 = vmatmul.bf16.gmra.mxu1 %v10607_v23 }
 0xa38   : > { %5413 = vmatmul.bf16.gmra.mxu2 %v10608_v57 }
 0xa39   : > { %5502 = vmatmul.bf16.gmra.mxu3 %v9857_v17 }
 0xa46   : > { %5240 = vmatmul.bf16.gmra.mxu0 %v10609_v50 }
 0xa47   : > { %5329 = vmatmul.bf16.gmra.mxu1 %v10610_v21 }
 0xa48   : > { %5418 = vmatmul.bf16.gmra.mxu2 %v10611_v9 }
 0xa49   : > { %5507 = vmatmul.bf16.gmra.mxu3 %v9865_v63 }
 0xa56   : > { %5245 = vmatmul.bf16.gmra.mxu0 %v10612_v26 }
 0xa57   : > { %5334 = vmatmul.bf16.gmra.mxu1 %v10613_v38 }
 0xa58   : > { %5423 = vmatmul.bf16.gmra.mxu2 %v10614_v39 }
 0xa59   : > { %5512 = vmatmul.bf16.gmra.mxu3 %v9873_v24 }
 0xa66   : > { %5250 = vmatmul.bf16.gmra.mxu0 %v10615_v27 }
 0xa67   : > { %5339 = vmatmul.bf16.gmra.mxu1 %v10616_v10 }
 0xa68   : > { %5428 = vmatmul.bf16.gmra.mxu2 %v10617_v3 }
 0xa69   : > { %5517 = vmatmul.bf16.gmra.mxu3 %v9881_v15 }
 0xa76   : > { %5255 = vmatmul.bf16.gmra.mxu0 %v10618_v14 }
 0xa77   : > { %5344 = vmatmul.bf16.gmra.mxu1 %v10619_v7  ;;  %v7515_v7 = vld [vmem:[#allocation8 + $0xa8] sm:$0xf0] }
 0xa78   : > { %5433 = vmatmul.bf16.gmra.mxu2 %v9758_v40  ;;  %v8010_v40 = vld [vmem:[#allocation8 + $0xa4] sm:$0xf] }
 0xa79   : > { %5522 = vmatmul.bf16.gmra.mxu3 %v9885_v45  ;;  %v7518_v14 = vor.u32 %v8010_v40, %v7515_v7 }
 0xa7b   : > { %5662 = vmatpush.bf16.msra.mxu1 %v7518_v14 }
 0xa83   : > { %v5221_v16 = vpop.f32.mrf.mxu0 }
 0xa84   : > { %v5222_v48 = vadd.f32 %v5221_v16, %v9961_v29  ;;  %v5310_v59 = vpop.f32.mrf.mxu1 }
 0xa86   : > { %v5311_v13 = vadd.f32 %v5310_v59, %v5222_v48  ;;  %5260 = vmatmul.bf16.gmra.mxu0 %v10621_v35  ;;  %v7454_v48 = vor.u32 %v7994_v44, %v7451_v34  ;;  %v7646_v59 = vor.u32 %v8042_v30, %v7643_v42  ;;  %v10624_v42 = vld [vmem:[#allocation97_spill] sm:$0xff] }
 0xa87   : > { %5349 = vmatmul.bf16.gmra.mxu1 %v10622_v5 }
 0xa88   : > { %5438 = vmatmul.bf16.gmra.mxu2 %v9766_v60  ;;  %5573 = vmatpush.bf16.msra.mxu0 %v7454_v48 }
 0xa89   : > { %5527 = vmatmul.bf16.gmra.mxu3 %v9889_v28 }
 0xa8a   : > { %5840 = vmatpush.bf16.msrb.mxu3 %v7646_v59 }
 0xa8b   : > { %v5399_v8 = vpop.f32.mrf.mxu2  ;;  %v5223_v45 = vpop.f32.mrf.mxu0 }
 0xa8c   : > { %v5400_v62 = vadd.f32 %v5399_v8, %v5311_v13  ;;  %v5488_v16 = vpop.f32.mrf.mxu3  ;;  %v5224_v35 = vadd.f32 %v5223_v45, %v9961_v29  ;;  %v5312_v5 = vpop.f32.mrf.mxu1  ;;  %v10623_v45 = vld [vmem:[#allocation83_spill] sm:$0xff] }
 0xa8e   : > { %v5489_v60 = vadd.f32 %v5488_v16, %v5400_v62  ;;  %v5313_v28 = vadd.f32 %v5312_v5, %v5224_v35 }
 0xa90   : > { %v5924_v56 = vmax.f32 %v5489_v60, 0.0 }
 0xa93   : > { %v5401_v31 = vpop.f32.mrf.mxu2  ;;  %v5226_v13 = vpop.f32.mrf.mxu0 }
 0xa94   : > { %v5402_v53 = vadd.f32 %v5401_v31, %v5313_v28  ;;  %v5490_v15 = vpop.f32.mrf.mxu3  ;;  %v5227_v8 = vadd.f32 %v5226_v13, %v9961_v29  ;;  %v5315_v44 = vpop.f32.mrf.mxu1 }
 0xa96   : > { %v5491_v34 = vadd.f32 %v5490_v15, %v5402_v53  ;;  %v5316_v30 = vadd.f32 %v5315_v44, %v5227_v8  ;;  %5265 = vmatmul.bf16.gmra.mxu0 %v10623_v45 }
 0xa97   : > { %5354 = vmatmul.bf16.gmra.mxu1 %v10624_v42 }
 0xa98   : > { %v5926_v62 = vmax.f32 %v5491_v34, 0.0  ;;  %5443 = vmatmul.bf16.gmra.mxu2 %v9774_v61 }
 0xa99   : > { %5532 = vmatmul.bf16.gmra.mxu3 %v9893_v43 }
 0xa9a   : > { %v9974_v40 = vpack.c.bf16 %v5926_v62, %v5924_v56  ;;  %v10626_v56 = vld [vmem:[#allocation84_spill] sm:$0xff] }
 0xa9b   : > { %v5404_v28 = vpop.f32.mrf.mxu2  ;;  %v5228_v35 = vpop.f32.mrf.mxu0 }
 0xa9c   : > { %10625 = vst [vmem:[#allocation58_spill] sm:$0xff] %v9974_v40  ;;  %v5405_v14 = vadd.f32 %v5404_v28, %v5316_v30  ;;  %v5493_v7 = vpop.f32.mrf.mxu3  ;;  %v5229_v5 = vadd.f32 %v5228_v35, %v9961_v29  ;;  %v5317_v15 = vpop.f32.mrf.mxu1  ;;  %v10627_v28 = vld [vmem:[#allocation98_spill] sm:$0xff]  ;;  %v7571_v35 = vld [vmem:[#allocation8 + $0x118] sm:$0xf0] }
 0xa9e   : > { %v5494_v16 = vadd.f32 %v5493_v7, %v5405_v14  ;;  %v5318_v48 = vadd.f32 %v5317_v15, %v5229_v5  ;;  %v8024_v7 = vld [vmem:[#allocation8 + $0x114] sm:$0xf] }
 0xa9f   : > { %v7992_v5 = vld [vmem:[#allocation8 + $0x14] sm:$0xf] }
 0xaa0   : > { %v5928_v62 = vmax.f32 %v5494_v16, 0.0 }
 0xaa3   : > { %v5406_v59 = vpop.f32.mrf.mxu2  ;;  %v5231_v53 = vpop.f32.mrf.mxu0 }
 0xaa4   : > { %v5407_v60 = vadd.f32 %v5406_v59, %v5318_v48  ;;  %v5495_v31 = vpop.f32.mrf.mxu3  ;;  %v5232_v13 = vadd.f32 %v5231_v53, %v9961_v29  ;;  %v5320_v8 = vpop.f32.mrf.mxu1  ;;  %v7574_v48 = vor.u32 %v8024_v7, %v7571_v35  ;;  %v7443_v59 = vld [vmem:[#allocation8 + $0x18] sm:$0xf0] }
 0xaa6   : > { %v5496_v44 = vadd.f32 %v5495_v31, %v5407_v60  ;;  %v5321_v34 = vadd.f32 %v5320_v8, %v5232_v13  ;;  %5270 = vmatmul.bf16.gmra.mxu0 %v10626_v56  ;;  %v8040_v60 = vld [vmem:[#allocation8 + $0x194] sm:$0xf]  ;;  %v7635_v31 = vld [vmem:[#allocation8 + $0x198] sm:$0xf0]  ;;  %v7446_v8 = vor.u32 %v7992_v5, %v7443_v59  ;;  %5752 = vmatpush.bf16.msrb.mxu2 %v7574_v48 }
 0xaa7   : > { %5359 = vmatmul.bf16.gmra.mxu1 %v10627_v28 }
 0xaa8   : > { %v5930_v30 = vmax.f32 %v5496_v44, 0.0  ;;  %5448 = vmatmul.bf16.gmra.mxu2 %v9782_v20  ;;  %v7638_v44 = vor.u32 %v8040_v60, %v7635_v31  ;;  %5574 = vmatpush.bf16.msra.mxu0 %v7446_v8  ;;  %v10629_v31 = vld [vmem:[#allocation85_spill] sm:$0xff] }
 0xaa9   : > { %5537 = vmatmul.bf16.gmra.mxu3 %v9897_v12 }
 0xaaa   : > { %v9982_v14 = vpack.c.bf16 %v5930_v30, %v5928_v62  ;;  %5841 = vmatpush.bf16.msrb.mxu3 %v7638_v44  ;;  %v8008_v30 = vld [vmem:[#allocation8 + $0x94] sm:$0xf] }
 0xaab   : > { %v5409_v15 = vpop.f32.mrf.mxu2  ;;  %v5233_v16 = vpop.f32.mrf.mxu0 }
 0xaac   : > { %10628 = vst [vmem:[#allocation73_spill] sm:$0xff] %v9982_v14  ;;  %v5410_v53 = vadd.f32 %v5409_v15, %v5321_v34  ;;  %v5498_v13 = vpop.f32.mrf.mxu3  ;;  %v5234_v40 = vadd.f32 %v5233_v16, %v9961_v29  ;;  %v5322_v20 = vpop.f32.mrf.mxu1  ;;  %v7507_v14 = vld [vmem:[#allocation8 + $0x98] sm:$0xf0] }
 0xaad   : > { %v7510_v28 = vor.u32 %v8008_v30, %v7507_v14 }
 0xaae   : > { %v5499_v12 = vadd.f32 %v5498_v13, %v5410_v53  ;;  %v5323_v62 = vadd.f32 %v5322_v20, %v5234_v40  ;;  %v10630_v13 = vld [vmem:[#allocation99_spill] sm:$0xff] }
 0xaaf   : > { %5663 = vmatpush.bf16.msra.mxu1 %v7510_v28 }
 0xab0   : > { %v5932_v48 = vmax.f32 %v5499_v12, 0.0 }
 0xab3   : > { %v5411_v7 = vpop.f32.mrf.mxu2  ;;  %v5236_v34 = vpop.f32.mrf.mxu0 }
 0xab4   : > { %v5412_v35 = vadd.f32 %v5411_v7, %v5323_v62  ;;  %v5500_v56 = vpop.f32.mrf.mxu3  ;;  %v5237_v15 = vadd.f32 %v5236_v34, %v9961_v29  ;;  %v5325_v5 = vpop.f32.mrf.mxu1 }
 0xab6   : > { %v5501_v59 = vadd.f32 %v5500_v56, %v5412_v35  ;;  %v5326_v60 = vadd.f32 %v5325_v5, %v5237_v15  ;;  %5275 = vmatmul.bf16.gmra.mxu0 %v10629_v31 }
 0xab7   : > { %5364 = vmatmul.bf16.gmra.mxu1 %v10630_v13 }
 0xab8   : > { %v5934_v53 = vmax.f32 %v5501_v59, 0.0  ;;  %5453 = vmatmul.bf16.gmra.mxu2 %v9790_v55 }
 0xab9   : > { %5542 = vmatmul.bf16.gmra.mxu3 %v9901_v46 }
 0xaba   : > { %v9990_v20 = vpack.c.bf16 %v5934_v53, %v5932_v48  ;;  %v10632_v48 = vld [vmem:[#allocation86_spill] sm:$0xff] }
 0xabb   : > { %v5414_v40 = vpop.f32.mrf.mxu2  ;;  %v5238_v16 = vpop.f32.mrf.mxu0 }
 0xabc   : > { %10631 = vst [vmem:[#allocation74_spill] sm:$0xff] %v9990_v20  ;;  %v5415_v28 = vadd.f32 %v5414_v40, %v5326_v60  ;;  %v5503_v14 = vpop.f32.mrf.mxu3  ;;  %v5239_v8 = vadd.f32 %v5238_v16, %v9961_v29  ;;  %v5327_v56 = vpop.f32.mrf.mxu1  ;;  %v10633_v40 = vld [vmem:[#allocation100_spill] sm:$0xff]  ;;  %v7563_v16 = vld [vmem:[#allocation8 + $0x108] sm:$0xf0] }
 0xabe   : > { %v5504_v44 = vadd.f32 %v5503_v14, %v5415_v28  ;;  %v5328_v62 = vadd.f32 %v5327_v56, %v5239_v8  ;;  %v8022_v14 = vld [vmem:[#allocation8 + $0x104] sm:$0xf] }
 0xabf   : > { %v7990_v8 = vld [vmem:[#allocation8 + $0x4] sm:$0xf] }
 0xac0   : > { %v5936_v53 = vmax.f32 %v5504_v44, 0.0 }
 0xac3   : > { %v5416_v30 = vpop.f32.mrf.mxu2  ;;  %v5241_v35 = vpop.f32.mrf.mxu0 }
 0xac4   : > { %v5417_v12 = vadd.f32 %v5416_v30, %v5328_v62  ;;  %v5505_v7 = vpop.f32.mrf.mxu3  ;;  %v5242_v34 = vadd.f32 %v5241_v35, %v9961_v29  ;;  %v5330_v15 = vpop.f32.mrf.mxu1  ;;  %v7566_v62 = vor.u32 %v8022_v14, %v7563_v16  ;;  %v7435_v30 = vld [vmem:[#allocation8 + $0x8] sm:$0xf0] }
 0xac6   : > { %v5506_v5 = vadd.f32 %v5505_v7, %v5417_v12  ;;  %v5331_v59 = vadd.f32 %v5330_v15, %v5242_v34  ;;  %5280 = vmatmul.bf16.gmra.mxu0 %v10632_v48  ;;  %v8038_v12 = vld [vmem:[#allocation8 + $0x184] sm:$0xf]  ;;  %v7627_v7 = vld [vmem:[#allocation8 + $0x188] sm:$0xf0]  ;;  %v7438_v15 = vor.u32 %v7990_v8, %v7435_v30  ;;  %5753 = vmatpush.bf16.msrb.mxu2 %v7566_v62 }
 0xac7   : > { %5369 = vmatmul.bf16.gmra.mxu1 %v10633_v40 }
 0xac8   : > { %v5938_v60 = vmax.f32 %v5506_v5, 0.0  ;;  %5458 = vmatmul.bf16.gmra.mxu2 %v9798_v51  ;;  %v7630_v5 = vor.u32 %v8038_v12, %v7627_v7  ;;  %5575 = vmatpush.bf16.msra.mxu0 %v7438_v15  ;;  %v10635_v7 = vld [vmem:[#allocation87_spill] sm:$0xff] }
 0xac9   : > { %5547 = vmatmul.bf16.gmra.mxu3 %v9905_v32 }
 0xaca   : > { %v9998_v28 = vpack.c.bf16 %v5938_v60, %v5936_v53  ;;  %5842 = vmatpush.bf16.msrb.mxu3 %v7630_v5  ;;  %v8006_v60 = vld [vmem:[#allocation8 + $0x84] sm:$0xf] }
 0xacb   : > { %v5419_v56 = vpop.f32.mrf.mxu2  ;;  %v5243_v44 = vpop.f32.mrf.mxu0 }
 0xacc   : > { %10634 = vst [vmem:[#allocation75_spill] sm:$0xff] %v9998_v28  ;;  %v5420_v35 = vadd.f32 %v5419_v56, %v5331_v59  ;;  %v5508_v34 = vpop.f32.mrf.mxu3  ;;  %v5244_v20 = vadd.f32 %v5243_v44, %v9961_v29  ;;  %v5332_v51 = vpop.f32.mrf.mxu1  ;;  %v7499_v28 = vld [vmem:[#allocation8 + $0x88] sm:$0xf0] }
 0xacd   : > { %v7502_v40 = vor.u32 %v8006_v60, %v7499_v28 }
 0xace   : > { %v5509_v32 = vadd.f32 %v5508_v34, %v5420_v35  ;;  %v5333_v53 = vadd.f32 %v5332_v51, %v5244_v20  ;;  %v10636_v34 = vld [vmem:[#allocation101_spill] sm:$0xff] }
 0xacf   : > { %5664 = vmatpush.bf16.msra.mxu1 %v7502_v40 }
 0xad0   : > { %v5940_v62 = vmax.f32 %v5509_v32, 0.0 }
 0xad3   : > { %v5421_v14 = vpop.f32.mrf.mxu2  ;;  %v5246_v59 = vpop.f32.mrf.mxu0 }
 0xad4   : > { %v5422_v16 = vadd.f32 %v5421_v14, %v5333_v53  ;;  %v5510_v48 = vpop.f32.mrf.mxu3  ;;  %v5247_v56 = vadd.f32 %v5246_v59, %v9961_v29  ;;  %v5335_v8 = vpop.f32.mrf.mxu1 }
 0xad6   : > { %v5511_v30 = vadd.f32 %v5510_v48, %v5422_v16  ;;  %v5336_v12 = vadd.f32 %v5335_v8, %v5247_v56  ;;  %5285 = vmatmul.bf16.gmra.mxu0 %v10635_v7 }
 0xad7   : > { %5374 = vmatmul.bf16.gmra.mxu1 %v10636_v34 }
 0xad8   : > { %v5942_v35 = vmax.f32 %v5511_v30, 0.0  ;;  %5463 = vmatmul.bf16.gmra.mxu2 %v9806_v4 }
 0xad9   : > { %5552 = vmatmul.bf16.gmra.mxu3 %v9909_v2 }
 0xada   : > { %v10006_v51 = vpack.c.bf16 %v5942_v35, %v5940_v62  ;;  %v10638_v62 = vld [vmem:[#allocation88_spill] sm:$0xff] }
 0xadb   : > { %v5424_v20 = vpop.f32.mrf.mxu2  ;;  %v5248_v44 = vpop.f32.mrf.mxu0 }
 0xadc   : > { %10637 = vst [vmem:[#allocation76_spill] sm:$0xff] %v10006_v51  ;;  %v5425_v40 = vadd.f32 %v5424_v20, %v5336_v12  ;;  %v5513_v28 = vpop.f32.mrf.mxu3  ;;  %v5249_v15 = vadd.f32 %v5248_v44, %v9961_v29  ;;  %v5337_v48 = vpop.f32.mrf.mxu1  ;;  %v10639_v20 = vld [vmem:[#allocation102_spill] sm:$0xff] }
 0xade   : > { %v5514_v5 = vadd.f32 %v5513_v28, %v5425_v40  ;;  %v5338_v53 = vadd.f32 %v5337_v48, %v5249_v15 }
 0xae0   : > { %v5944_v35 = vmax.f32 %v5514_v5, 0.0 }
 0xae3   : > { %v5426_v60 = vpop.f32.mrf.mxu2  ;;  %v5251_v16 = vpop.f32.mrf.mxu0 }
 0xae4   : > { %v5427_v32 = vadd.f32 %v5426_v60, %v5338_v53  ;;  %v5515_v14 = vpop.f32.mrf.mxu3  ;;  %v5252_v59 = vadd.f32 %v5251_v16, %v9961_v29  ;;  %v5340_v56 = vpop.f32.mrf.mxu1 }
 0xae6   : > { %v5516_v8 = vadd.f32 %v5515_v14, %v5427_v32  ;;  %v5341_v30 = vadd.f32 %v5340_v56, %v5252_v59  ;;  %5290 = vmatmul.bf16.gmra.mxu0 %v10638_v62 }
 0xae7   : > { %5379 = vmatmul.bf16.gmra.mxu1 %v10639_v20 }
 0xae8   : > { %v5946_v12 = vmax.f32 %v5516_v8, 0.0  ;;  %5468 = vmatmul.bf16.gmra.mxu2 %v9814_v19 }
 0xae9   : > { %5557 = vmatmul.bf16.gmra.mxu3 %v9913_v0 }
 0xaea   : > { %v10014_v40 = vpack.c.bf16 %v5946_v12, %v5944_v35  ;;  %v10641_v35 = vld [vmem:[#allocation89_spill] sm:$0xff] }
 0xaeb   : > { %v5429_v28 = vpop.f32.mrf.mxu2  ;;  %v5253_v48 = vpop.f32.mrf.mxu0 }
 0xaec   : > { %10640 = vst [vmem:[#allocation61_spill] sm:$0xff] %v10014_v40  ;;  %v5430_v44 = vadd.f32 %v5429_v28, %v5341_v30  ;;  %v5518_v15 = vpop.f32.mrf.mxu3  ;;  %v5254_v53 = vadd.f32 %v5253_v48, %v9961_v29  ;;  %v5342_v60 = vpop.f32.mrf.mxu1  ;;  %v10642_v28 = vld [vmem:[#allocation103_spill] sm:$0xff] }
 0xaee   : > { %v5519_v32 = vadd.f32 %v5518_v15, %v5430_v44  ;;  %v5343_v14 = vadd.f32 %v5342_v60, %v5254_v53 }
 0xaf0   : > { %v5948_v12 = vmax.f32 %v5519_v32, 0.0 }
 0xaf3   : > { %v5431_v16 = vpop.f32.mrf.mxu2  ;;  %v5256_v56 = vpop.f32.mrf.mxu0 }
 0xaf4   : > { %v5432_v5 = vadd.f32 %v5431_v16, %v5343_v14  ;;  %v5520_v59 = vpop.f32.mrf.mxu3  ;;  %v5257_v8 = vadd.f32 %v5256_v56, %v9961_v29  ;;  %v5345_v51 = vpop.f32.mrf.mxu1 }
 0xaf6   : > { %v5521_v19 = vadd.f32 %v5520_v59, %v5432_v5  ;;  %v5346_v0 = vadd.f32 %v5345_v51, %v5257_v8  ;;  %5295 = vmatmul.bf16.gmra.mxu0 %v10641_v35 }
 0xaf7   : > { %5384 = vmatmul.bf16.gmra.mxu1 %v10642_v28 }
 0xaf8   : > { %v5950_v30 = vmax.f32 %v5521_v19, 0.0  ;;  %5473 = vmatmul.bf16.gmra.mxu2 %v9825_v33 }
 0xaf9   : > { %5562 = vmatmul.bf16.gmra.mxu3 %v9916_v18 }
 0xafa   : > { %v10022_v44 = vpack.c.bf16 %v5950_v30, %v5948_v12 }
 0xafb   : > { %v5434_v15 = vpop.f32.mrf.mxu2  ;;  %v5258_v60 = vpop.f32.mrf.mxu0 }
 0xafc   : > { %v5435_v48 = vadd.f32 %v5434_v15, %v5346_v0  ;;  %v5523_v53 = vpop.f32.mrf.mxu3  ;;  %v5259_v14 = vadd.f32 %v5258_v60, %v9961_v29  ;;  %v5347_v16 = vpop.f32.mrf.mxu1 }
 0xafe   : > { %v5524_v51 = vadd.f32 %v5523_v53, %v5435_v48  ;;  %v5348_v5 = vadd.f32 %v5347_v16, %v5259_v14 }
 0xb00   : > { %v5952_v12 = vmax.f32 %v5524_v51, 0.0 }
 0xb03   : > { %v5436_v59 = vpop.f32.mrf.mxu2  ;;  %v5261_v56 = vpop.f32.mrf.mxu0 }
 0xb04   : > { %v5437_v32 = vadd.f32 %v5436_v59, %v5348_v5  ;;  %v5525_v19 = vpop.f32.mrf.mxu3  ;;  %v5262_v8 = vadd.f32 %v5261_v56, %v9961_v29  ;;  %v5350_v40 = vpop.f32.mrf.mxu1 }
 0xb06   : > { %v5526_v33 = vadd.f32 %v5525_v19, %v5437_v32  ;;  %v5351_v18 = vadd.f32 %v5350_v40, %v5262_v8  ;;  %5576 = vmatmul.bf16.vlgmr.msra.gmra.mxu0 %v10597_v37 }
 0xb07   : > { %5665 = vmatmul.bf16.vlgmr.msra.gmra.mxu1 %v10598_v11 }
 0xb08   : > { %v5954_v0 = vmax.f32 %v5526_v33, 0.0  ;;  %5754 = vmatmul.bf16.vlgmr.msrb.gmra.mxu2 %v10599_v52 }
 0xb09   : > { %5843 = vmatmul.bf16.vlgmr.msrb.gmra.mxu3 %v9833_v36 }
 0xb0a   : > { %v10030_v30 = vpack.c.bf16 %v5954_v0, %v5952_v12 }
 0xb0b   : > { %v5439_v15 = vpop.f32.mrf.mxu2  ;;  %v5263_v60 = vpop.f32.mrf.mxu0 }
 0xb0c   : > { %v5440_v48 = vadd.f32 %v5439_v15, %v5351_v18  ;;  %v5528_v53 = vpop.f32.mrf.mxu3  ;;  %v5264_v14 = vadd.f32 %v5263_v60, %v9961_v29  ;;  %v5352_v16 = vpop.f32.mrf.mxu1 }
 0xb0e   : > { %v5529_v40 = vadd.f32 %v5528_v53, %v5440_v48  ;;  %v5353_v5 = vadd.f32 %v5352_v16, %v5264_v14 }
 0xb10   : > { %v5956_v19 = vmax.f32 %v5529_v40, 0.0 }
 0xb13   : > { %v5441_v37 = vpop.f32.mrf.mxu2  ;;  %v5266_v59 = vpop.f32.mrf.mxu0 }
 0xb14   : > { %v5442_v51 = vadd.f32 %v5441_v37, %v5353_v5  ;;  %v5530_v33 = vpop.f32.mrf.mxu3  ;;  %v5267_v11 = vadd.f32 %v5266_v59, %v9961_v29  ;;  %v5355_v52 = vpop.f32.mrf.mxu1 }
 0xb16   : > { %v5531_v32 = vadd.f32 %v5530_v33, %v5442_v51  ;;  %v5356_v36 = vadd.f32 %v5355_v52, %v5267_v11  ;;  %5581 = vmatmul.bf16.gmra.mxu0 %v10600_v41 }
 0xb17   : > { %5670 = vmatmul.bf16.gmra.mxu1 %v10601_v54 }
 0xb18   : > { %v5958_v18 = vmax.f32 %v5531_v32, 0.0  ;;  %5759 = vmatmul.bf16.gmra.mxu2 %v10602_v58 }
 0xb19   : > { %5848 = vmatmul.bf16.gmra.mxu3 %v9841_v47 }
 0xb1a   : > { %v10038_v56 = vpack.c.bf16 %v5958_v18, %v5956_v19 }
 0xb1b   : > { %v5444_v8 = vpop.f32.mrf.mxu2  ;;  %v5268_v15 = vpop.f32.mrf.mxu0 }
 0xb1c   : > { %v5445_v12 = vadd.f32 %v5444_v8, %v5356_v36  ;;  %v5533_v0 = vpop.f32.mrf.mxu3  ;;  %v5269_v48 = vadd.f32 %v5268_v15, %v9961_v29  ;;  %v5357_v53 = vpop.f32.mrf.mxu1 }
 0xb1e   : > { %v5534_v60 = vadd.f32 %v5533_v0, %v5445_v12  ;;  %v5358_v14 = vadd.f32 %v5357_v53, %v5269_v48 }
 0xb20   : > { %v5960_v51 = vmax.f32 %v5534_v60, 0.0 }
 0xb23   : > { %v5446_v41 = vpop.f32.mrf.mxu2  ;;  %v5271_v5 = vpop.f32.mrf.mxu0 }
 0xb24   : > { %v5447_v16 = vadd.f32 %v5446_v41, %v5358_v14  ;;  %v5535_v40 = vpop.f32.mrf.mxu3  ;;  %v5272_v54 = vadd.f32 %v5271_v5, %v9961_v29  ;;  %v5360_v58 = vpop.f32.mrf.mxu1 }
 0xb26   : > { %v5536_v37 = vadd.f32 %v5535_v40, %v5447_v16  ;;  %v5361_v47 = vadd.f32 %v5360_v58, %v5272_v54  ;;  %5586 = vmatmul.bf16.gmra.mxu0 %v10603_v25 }
 0xb27   : > { %5675 = vmatmul.bf16.gmra.mxu1 %v10604_v49 }
 0xb28   : > { %v5962_v33 = vmax.f32 %v5536_v37, 0.0  ;;  %5764 = vmatmul.bf16.gmra.mxu2 %v10605_v22 }
 0xb29   : > { %5853 = vmatmul.bf16.gmra.mxu3 %v9849_v1 }
 0xb2a   : > { %v10046_v59 = vpack.c.bf16 %v5962_v33, %v5960_v51 }
 0xb2b   : > { %v5449_v11 = vpop.f32.mrf.mxu2  ;;  %v5273_v36 = vpop.f32.mrf.mxu0 }
 0xb2c   : > { %v5450_v52 = vadd.f32 %v5449_v11, %v5361_v47  ;;  %v5538_v32 = vpop.f32.mrf.mxu3  ;;  %v5274_v19 = vadd.f32 %v5273_v36, %v9961_v29  ;;  %v5362_v18 = vpop.f32.mrf.mxu1 }
 0xb2e   : > { %v5539_v8 = vadd.f32 %v5538_v32, %v5450_v52  ;;  %v5363_v12 = vadd.f32 %v5362_v18, %v5274_v19 }
 0xb30   : > { %v5964_v60 = vmax.f32 %v5539_v8, 0.0 }
 0xb33   : > { %v5451_v25 = vpop.f32.mrf.mxu2  ;;  %v5276_v48 = vpop.f32.mrf.mxu0 }
 0xb34   : > { %v5452_v0 = vadd.f32 %v5451_v25, %v5363_v12  ;;  %v5540_v15 = vpop.f32.mrf.mxu3  ;;  %v5277_v49 = vadd.f32 %v5276_v48, %v9961_v29  ;;  %v5365_v22 = vpop.f32.mrf.mxu1 }
 0xb36   : > { %v5541_v53 = vadd.f32 %v5540_v15, %v5452_v0  ;;  %v5366_v1 = vadd.f32 %v5365_v22, %v5277_v49  ;;  %5591 = vmatmul.bf16.gmra.mxu0 %v10606_v6 }
 0xb37   : > { %5680 = vmatmul.bf16.gmra.mxu1 %v10607_v23 }
 0xb38   : > { %v5966_v14 = vmax.f32 %v5541_v53, 0.0  ;;  %5769 = vmatmul.bf16.gmra.mxu2 %v10608_v57 }
 0xb39   : > { %5858 = vmatmul.bf16.gmra.mxu3 %v9857_v17 }
 0xb3a   : > { %v10054_v41 = vpack.c.bf16 %v5966_v14, %v5964_v60 }
 0xb3b   : > { %v5454_v16 = vpop.f32.mrf.mxu2  ;;  %v5278_v54 = vpop.f32.mrf.mxu0 }
 0xb3c   : > { %v5455_v40 = vadd.f32 %v5454_v16, %v5366_v1  ;;  %v5543_v5 = vpop.f32.mrf.mxu3  ;;  %v5279_v58 = vadd.f32 %v5278_v54, %v9961_v29  ;;  %v5367_v37 = vpop.f32.mrf.mxu1 }
 0xb3e   : > { %v5544_v47 = vadd.f32 %v5543_v5, %v5455_v40  ;;  %v5368_v51 = vadd.f32 %v5367_v37, %v5279_v58 }
 0xb40   : > { %v5968_v36 = vmax.f32 %v5544_v47, 0.0 }
 0xb43   : > { %v5456_v6 = vpop.f32.mrf.mxu2  ;;  %v5281_v52 = vpop.f32.mrf.mxu0 }
 0xb44   : > { %v5457_v33 = vadd.f32 %v5456_v6, %v5368_v51  ;;  %v5545_v11 = vpop.f32.mrf.mxu3  ;;  %v5282_v23 = vadd.f32 %v5281_v52, %v9961_v29  ;;  %v5370_v57 = vpop.f32.mrf.mxu1 }
 0xb46   : > { %v5546_v32 = vadd.f32 %v5545_v11, %v5457_v33  ;;  %v5371_v17 = vadd.f32 %v5370_v57, %v5282_v23  ;;  %5596 = vmatmul.bf16.gmra.mxu0 %v10609_v50 }
 0xb47   : > { %5685 = vmatmul.bf16.gmra.mxu1 %v10610_v21 }
 0xb48   : > { %v5970_v19 = vmax.f32 %v5546_v32, 0.0  ;;  %5774 = vmatmul.bf16.gmra.mxu2 %v10611_v9 }
 0xb49   : > { %5863 = vmatmul.bf16.gmra.mxu3 %v9865_v63 }
 0xb4a   : > { %v10062_v18 = vpack.c.bf16 %v5970_v19, %v5968_v36  ;;  %v10643_v19 = vld [vmem:[#allocation68_spill] sm:$0xff] }
 0xb4b   : > { %v5459_v8 = vpop.f32.mrf.mxu2  ;;  %v5283_v0 = vpop.f32.mrf.mxu0 }
 0xb4c   : > { %v5460_v12 = vadd.f32 %v5459_v8, %v5371_v17  ;;  %v5548_v25 = vpop.f32.mrf.mxu3  ;;  %v5284_v15 = vadd.f32 %v5283_v0, %v9961_v29  ;;  %v5372_v48 = vpop.f32.mrf.mxu1 }
 0xb4e   : > { %v5549_v49 = vadd.f32 %v5548_v25, %v5460_v12  ;;  %v5373_v22 = vadd.f32 %v5372_v48, %v5284_v15 }
 0xb50   : > { %v5972_v16 = vmax.f32 %v5549_v49, 0.0 }
 0xb53   : > { %v5461_v50 = vpop.f32.mrf.mxu2  ;;  %v5286_v60 = vpop.f32.mrf.mxu0 }
 0xb54   : > { %v5462_v53 = vadd.f32 %v5461_v50, %v5373_v22  ;;  %v5550_v1 = vpop.f32.mrf.mxu3  ;;  %v5287_v21 = vadd.f32 %v5286_v60, %v9961_v29  ;;  %v5375_v9 = vpop.f32.mrf.mxu1 }
 0xb56   : > { %v5551_v14 = vadd.f32 %v5550_v1, %v5462_v53  ;;  %v5376_v63 = vadd.f32 %v5375_v9, %v5287_v21  ;;  %5601 = vmatmul.bf16.gmra.mxu0 %v10612_v26 }
 0xb57   : > { %5690 = vmatmul.bf16.gmra.mxu1 %v10613_v38 }
 0xb58   : > { %v5974_v40 = vmax.f32 %v5551_v14, 0.0  ;;  %5779 = vmatmul.bf16.gmra.mxu2 %v10614_v39  ;;  %v10644_v14 = vld [vmem:[#allocation64_spill] sm:$0xff] }
 0xb59   : > { %5868 = vmatmul.bf16.gmra.mxu3 %v9873_v24 }
 0xb5a   : > { %v10070_v5 = vpack.c.bf16 %v5974_v40, %v5972_v16  ;;  %v10645_v40 = vld [vmem:[#allocation80_spill] sm:$0xff] }
 0xb5b   : > { %v5464_v54 = vpop.f32.mrf.mxu2  ;;  %v5288_v47 = vpop.f32.mrf.mxu0 }
 0xb5c   : > { %v5465_v58 = vadd.f32 %v5464_v54, %v5376_v63  ;;  %v5553_v37 = vpop.f32.mrf.mxu3  ;;  %v5289_v51 = vadd.f32 %v5288_v47, %v9961_v29  ;;  %v5377_v6 = vpop.f32.mrf.mxu1  ;;  %v10646_v54 = vld [vmem:[#allocation48_spill] sm:$0xff] }
 0xb5e   : > { %v5554_v33 = vadd.f32 %v5553_v37, %v5465_v58  ;;  %v5378_v11 = vadd.f32 %v5377_v6, %v5289_v51  ;;  %v10647_v58 = vld [vmem:[#allocation69_spill] sm:$0xff] }
 0xb60   : > { %v5976_v17 = vmax.f32 %v5554_v33, 0.0 }
 0xb63   : > { %v5466_v26 = vpop.f32.mrf.mxu2  ;;  %v5291_v57 = vpop.f32.mrf.mxu0 }
 0xb64   : > { %v5467_v52 = vadd.f32 %v5466_v26, %v5378_v11  ;;  %v5555_v23 = vpop.f32.mrf.mxu3  ;;  %v5292_v38 = vadd.f32 %v5291_v57, %v9961_v29  ;;  %v5380_v39 = vpop.f32.mrf.mxu1  ;;  %v10648_v57 = vld [vmem:[#allocation57_spill] sm:$0xff] }
 0xb66   : > { %v5556_v32 = vadd.f32 %v5555_v23, %v5467_v52  ;;  %v5381_v24 = vadd.f32 %v5380_v39, %v5292_v38  ;;  %5606 = vmatmul.bf16.gmra.mxu0 %v10615_v27  ;;  %v10090_v38 = vperm.slane %v10648_v57, 1 }
 0xb67   : > { %5695 = vmatmul.bf16.gmra.mxu1 %v10616_v10 }
 0xb68   : > { %v5978_v36 = vmax.f32 %v5556_v32, 0.0  ;;  %5784 = vmatmul.bf16.gmra.mxu2 %v10617_v3 }
 0xb69   : > { %5873 = vmatmul.bf16.gmra.mxu3 %v10643_v19 }
 0xb6a   : > { %v10078_v8 = vpack.c.bf16 %v5978_v36, %v5976_v17 }
 0xb6b   : > { %v5469_v12 = vpop.f32.mrf.mxu2  ;;  %v5293_v15 = vpop.f32.mrf.mxu0 }
 0xb6c   : > { %v5470_v25 = vadd.f32 %v5469_v12, %v5381_v24  ;;  %v5558_v0 = vpop.f32.mrf.mxu3  ;;  %v5294_v48 = vadd.f32 %v5293_v15, %v9961_v29  ;;  %v5382_v49 = vpop.f32.mrf.mxu1 }
 0xb6e   : > { %v5559_v22 = vadd.f32 %v5558_v0, %v5470_v25  ;;  %v5383_v50 = vadd.f32 %v5382_v49, %v5294_v48  ;;  %v10649_v0 = vld [vmem:[#allocation82_spill] sm:$0xff]  ;;  %v10651_v49 = vld [vmem:[#allocation49_spill] sm:$0xff] }
 0xb70   : > { %v5980_v63 = vmax.f32 %v5559_v22, 0.0  ;;  %v10652_v22 = vld [vmem:[#allocation70_spill] sm:$0xff] }
 0xb73   : > { %v5471_v27 = vpop.f32.mrf.mxu2  ;;  %v5296_v60 = vpop.f32.mrf.mxu0 }
 0xb74   : > { %v5472_v53 = vadd.f32 %v5471_v27, %v5383_v50  ;;  %v5560_v1 = vpop.f32.mrf.mxu3  ;;  %v5297_v10 = vadd.f32 %v5296_v60, %v9961_v29  ;;  %v5385_v3 = vpop.f32.mrf.mxu1 }
 0xb76   : > { %v5561_v21 = vadd.f32 %v5560_v1, %v5472_v53  ;;  %v5386_v9 = vadd.f32 %v5385_v3, %v5297_v10  ;;  %5611 = vmatmul.bf16.gmra.mxu0 %v10644_v14 }
 0xb77   : > { %5700 = vmatmul.bf16.gmra.mxu1 %v10645_v40 }
 0xb78   : > { %v5982_v16 = vmax.f32 %v5561_v21, 0.0  ;;  %5789 = vmatmul.bf16.gmra.mxu2 %v10646_v54 }
 0xb79   : > { %5878 = vmatmul.bf16.gmra.mxu3 %v10647_v58 }
 0xb7a   : > { %v10086_v37 = vpack.c.bf16 %v5982_v16, %v5980_v63 }
 0xb7b   : > { %v5474_v47 = vpop.f32.mrf.mxu2  ;;  %v5298_v33 = vpop.f32.mrf.mxu0 }
 0xb7c   : > { %v5475_v51 = vadd.f32 %v5474_v47, %v5386_v9  ;;  %v5563_v6 = vpop.f32.mrf.mxu3  ;;  %v5299_v11 = vadd.f32 %v5298_v33, %v9961_v29  ;;  %v5387_v26 = vpop.f32.mrf.mxu1  ;;  %v10650_v29 = vld [vmem:[#allocation96_spill] sm:$0xff] }
 0xb7e   : > { %v5564_v52 = vadd.f32 %v5563_v6, %v5475_v51  ;;  %v5388_v23 = vadd.f32 %v5387_v26, %v5299_v11 }
 0xb80   : > { %v5984_v15 = vmax.f32 %v5564_v52, 0.0 }
 0xb83   : > { %v5476_v39 = vpop.f32.mrf.mxu2  ;;  %v5577_v17 = vpop.f32.mrf.mxu0 }
 0xb84   : > { %v5477_v32 = vadd.f32 %v5476_v39, %v5388_v23  ;;  %v5565_v24 = vpop.f32.mrf.mxu3  ;;  %v5578_v36 = vadd.f32 %v5577_v17, %v10090_v38  ;;  %v5666_v19 = vpop.f32.mrf.mxu1 }
 0xb86   : > { %v5566_v12 = vadd.f32 %v5565_v24, %v5477_v32  ;;  %v5667_v25 = vadd.f32 %v5666_v19, %v5578_v36  ;;  %5616 = vmatmul.bf16.gmra.mxu0 %v10649_v0  ;;  %v10653_v0 = vld [vmem:[#allocation84_spill] sm:$0xff] }
 0xb87   : > { %5705 = vmatmul.bf16.gmra.mxu1 %v10650_v29  ;;  %v10654_v29 = vld [vmem:[#allocation98_spill] sm:$0xff] }
 0xb88   : > { %v5986_v48 = vmax.f32 %v5566_v12, 0.0  ;;  %5794 = vmatmul.bf16.gmra.mxu2 %v10651_v49  ;;  %v10655_v49 = vld [vmem:[#allocation65_spill] sm:$0xff] }
 0xb89   : > { %5883 = vmatmul.bf16.gmra.mxu3 %v10652_v22  ;;  %v10656_v22 = vld [vmem:[#allocation55_spill] sm:$0xff] }
 0xb8a   : > { %v10097_v50 = vpack.c.bf16 %v5986_v48, %v5984_v15 }
 0xb8b   : > { %v5755_v27 = vpop.f32.mrf.mxu2  ;;  %v5579_v60 = vpop.f32.mrf.mxu0 }
 0xb8c   : > { %v5756_v53 = vadd.f32 %v5755_v27, %v5667_v25  ;;  %v5844_v1 = vpop.f32.mrf.mxu3  ;;  %v5580_v10 = vadd.f32 %v5579_v60, %v10090_v38  ;;  %v5668_v3 = vpop.f32.mrf.mxu1 }
 0xb8e   : > { %v5845_v21 = vadd.f32 %v5844_v1, %v5756_v53  ;;  %v5669_v9 = vadd.f32 %v5668_v3, %v5580_v10 }
 0xb90   : > { %v5925_v6 = vmax.f32 %v5845_v21, 0.0 }
 0xb93   : > { %v5757_v14 = vpop.f32.mrf.mxu2  ;;  %v5582_v40 = vpop.f32.mrf.mxu0 }
 0xb94   : > { %v5758_v63 = vadd.f32 %v5757_v14, %v5669_v9  ;;  %v5846_v16 = vpop.f32.mrf.mxu3  ;;  %v5583_v54 = vadd.f32 %v5582_v40, %v10090_v38  ;;  %v5671_v58 = vpop.f32.mrf.mxu1 }
 0xb96   : > { %v5847_v47 = vadd.f32 %v5846_v16, %v5758_v63  ;;  %v5672_v51 = vadd.f32 %v5671_v58, %v5583_v54  ;;  %5621 = vmatmul.bf16.gmra.mxu0 %v10623_v45 }
 0xb97   : > { %5710 = vmatmul.bf16.gmra.mxu1 %v10624_v42 }
 0xb98   : > { %v5927_v33 = vmax.f32 %v5847_v47, 0.0  ;;  %5799 = vmatmul.bf16.gmra.mxu2 %v9774_v61 }
 0xb99   : > { %5888 = vmatmul.bf16.gmra.mxu3 %v9893_v43 }
 0xb9a   : > { %v10105_v11 = vpack.c.bf16 %v5927_v33, %v5925_v6 }
 0xb9b   : > { %v5760_v26 = vpop.f32.mrf.mxu2  ;;  %v5584_v57 = vpop.f32.mrf.mxu0 }
 0xb9c   : > { %v5761_v52 = vadd.f32 %v5760_v26, %v5672_v51  ;;  %v5849_v23 = vpop.f32.mrf.mxu3  ;;  %v5585_v39 = vadd.f32 %v5584_v57, %v10090_v38  ;;  %v5673_v32 = vpop.f32.mrf.mxu1 }
 0xb9e   : > { %v5850_v24 = vadd.f32 %v5849_v23, %v5761_v52  ;;  %v5674_v17 = vadd.f32 %v5673_v32, %v5585_v39 }
 0xba0   : > { %v5929_v15 = vmax.f32 %v5850_v24, 0.0 }
 0xba3   : > { %v5762_v45 = vpop.f32.mrf.mxu2  ;;  %v5587_v12 = vpop.f32.mrf.mxu0 }
 0xba4   : > { %v5763_v36 = vadd.f32 %v5762_v45, %v5674_v17  ;;  %v5851_v19 = vpop.f32.mrf.mxu3  ;;  %v5588_v42 = vadd.f32 %v5587_v12, %v10090_v38  ;;  %v5676_v61 = vpop.f32.mrf.mxu1 }
 0xba6   : > { %v5852_v25 = vadd.f32 %v5851_v19, %v5763_v36  ;;  %v5677_v43 = vadd.f32 %v5676_v61, %v5588_v42  ;;  %5626 = vmatmul.bf16.gmra.mxu0 %v10653_v0 }
 0xba7   : > { %5715 = vmatmul.bf16.gmra.mxu1 %v10654_v29  ;;  %v10660_v29 = vld [vmem:[#allocation56_spill] sm:$0xff] }
 0xba8   : > { %v5931_v48 = vmax.f32 %v5852_v25, 0.0  ;;  %5804 = vmatmul.bf16.gmra.mxu2 %v10655_v49  ;;  %v10657_v25 = vld [vmem:[#allocation86_spill] sm:$0xff] }
 0xba9   : > { %5893 = vmatmul.bf16.gmra.mxu3 %v10656_v22 }
 0xbaa   : > { %v10113_v27 = vpack.c.bf16 %v5931_v48, %v5929_v15  ;;  %v10658_v15 = vld [vmem:[#allocation100_spill] sm:$0xff]  ;;  %v10659_v48 = vld [vmem:[#allocation66_spill] sm:$0xff] }
 0xbab   : > { %v5765_v53 = vpop.f32.mrf.mxu2  ;;  %v5589_v10 = vpop.f32.mrf.mxu0 }
 0xbac   : > { %v5766_v1 = vadd.f32 %v5765_v53, %v5677_v43  ;;  %v5854_v60 = vpop.f32.mrf.mxu3  ;;  %v5590_v3 = vadd.f32 %v5589_v10, %v10090_v38  ;;  %v5678_v21 = vpop.f32.mrf.mxu1 }
 0xbae   : > { %v5855_v9 = vadd.f32 %v5854_v60, %v5766_v1  ;;  %v5679_v14 = vadd.f32 %v5678_v21, %v5590_v3 }
 0xbb0   : > { %v5933_v33 = vmax.f32 %v5855_v9, 0.0 }
 0xbb3   : > { %v5767_v63 = vpop.f32.mrf.mxu2  ;;  %v5592_v54 = vpop.f32.mrf.mxu0 }
 0xbb4   : > { %v5768_v16 = vadd.f32 %v5767_v63, %v5679_v14  ;;  %v5856_v40 = vpop.f32.mrf.mxu3  ;;  %v5593_v58 = vadd.f32 %v5592_v54, %v10090_v38  ;;  %v5681_v47 = vpop.f32.mrf.mxu1 }
 0xbb6   : > { %v5857_v51 = vadd.f32 %v5856_v40, %v5768_v16  ;;  %v5682_v6 = vadd.f32 %v5681_v47, %v5593_v58  ;;  %5631 = vmatmul.bf16.gmra.mxu0 %v10629_v31 }
 0xbb7   : > { %5720 = vmatmul.bf16.gmra.mxu1 %v10630_v13 }
 0xbb8   : > { %v5935_v26 = vmax.f32 %v5857_v51, 0.0  ;;  %5809 = vmatmul.bf16.gmra.mxu2 %v9790_v55 }
 0xbb9   : > { %5898 = vmatmul.bf16.gmra.mxu3 %v9901_v46 }
 0xbba   : > { %v10121_v52 = vpack.c.bf16 %v5935_v26, %v5933_v33 }
 0xbbb   : > { %v5770_v23 = vpop.f32.mrf.mxu2  ;;  %v5594_v32 = vpop.f32.mrf.mxu0 }
 0xbbc   : > { %v5771_v57 = vadd.f32 %v5770_v23, %v5682_v6  ;;  %v5859_v39 = vpop.f32.mrf.mxu3  ;;  %v5595_v24 = vadd.f32 %v5594_v32, %v10090_v38  ;;  %v5683_v17 = vpop.f32.mrf.mxu1 }
 0xbbe   : > { %v5860_v45 = vadd.f32 %v5859_v39, %v5771_v57  ;;  %v5684_v36 = vadd.f32 %v5683_v17, %v5595_v24 }
 0xbc0   : > { %v5937_v43 = vmax.f32 %v5860_v45, 0.0 }
 0xbc3   : > { %v5772_v31 = vpop.f32.mrf.mxu2  ;;  %v5597_v42 = vpop.f32.mrf.mxu0 }
 0xbc4   : > { %v5773_v19 = vadd.f32 %v5772_v31, %v5684_v36  ;;  %v5861_v12 = vpop.f32.mrf.mxu3  ;;  %v5598_v13 = vadd.f32 %v5597_v42, %v10090_v38  ;;  %v5686_v55 = vpop.f32.mrf.mxu1 }
 0xbc6   : > { %v5862_v61 = vadd.f32 %v5861_v12, %v5773_v19  ;;  %v5687_v46 = vadd.f32 %v5686_v55, %v5598_v13  ;;  %5636 = vmatmul.bf16.gmra.mxu0 %v10657_v25 }
 0xbc7   : > { %5725 = vmatmul.bf16.gmra.mxu1 %v10658_v15 }
 0xbc8   : > { %v5939_v0 = vmax.f32 %v5862_v61, 0.0  ;;  %5814 = vmatmul.bf16.gmra.mxu2 %v10659_v48  ;;  %v10661_v61 = vld [vmem:[#allocation109_spill] sm:$0xff] }
 0xbc9   : > { %5903 = vmatmul.bf16.gmra.mxu3 %v10660_v29 }
 0xbca   : > { %v10129_v49 = vpack.c.bf16 %v5939_v0, %v5937_v43 }
 0xbcb   : > { %v5775_v22 = vpop.f32.mrf.mxu2  ;;  %v5599_v60 = vpop.f32.mrf.mxu0 }
 0xbcc   : > { %v5776_v53 = vadd.f32 %v5775_v22, %v5687_v46  ;;  %v5864_v1 = vpop.f32.mrf.mxu3  ;;  %v5600_v10 = vadd.f32 %v5599_v60, %v10090_v38  ;;  %v5688_v3 = vpop.f32.mrf.mxu1  ;;  %v10662_v46 = vld [vmem:[#allocation71_spill] sm:$0xff] }
 0xbce   : > { %v5865_v21 = vadd.f32 %v5864_v1, %v5776_v53  ;;  %v5689_v9 = vadd.f32 %v5688_v3, %v5600_v10 }
 0xbd0   : > { %v5941_v6 = vmax.f32 %v5865_v21, 0.0 }
 0xbd3   : > { %v5777_v14 = vpop.f32.mrf.mxu2  ;;  %v5602_v40 = vpop.f32.mrf.mxu0 }
 0xbd4   : > { %v5778_v63 = vadd.f32 %v5777_v14, %v5689_v9  ;;  %v5866_v16 = vpop.f32.mrf.mxu3  ;;  %v5603_v54 = vadd.f32 %v5602_v40, %v10090_v38  ;;  %v5691_v58 = vpop.f32.mrf.mxu1  ;;  %v10663_v40 = vld [vmem:[#allocation67_spill] sm:$0xff] }
 0xbd6   : > { %v5867_v47 = vadd.f32 %v5866_v16, %v5778_v63  ;;  %v5692_v51 = vadd.f32 %v5691_v58, %v5603_v54  ;;  %5641 = vmatmul.bf16.gmra.mxu0 %v10635_v7  ;;  %v10664_v54 = vld [vmem:[#allocation72_spill] sm:$0xff] }
 0xbd7   : > { %5730 = vmatmul.bf16.gmra.mxu1 %v10636_v34 }
 0xbd8   : > { %v5943_v33 = vmax.f32 %v5867_v47, 0.0  ;;  %5819 = vmatmul.bf16.gmra.mxu2 %v9806_v4 }
 0xbd9   : > { %5908 = vmatmul.bf16.gmra.mxu3 %v9909_v2 }
 0xbda   : > { %v10137_v26 = vpack.c.bf16 %v5943_v33, %v5941_v6 }
 0xbdb   : > { %v5780_v23 = vpop.f32.mrf.mxu2  ;;  %v5604_v32 = vpop.f32.mrf.mxu0 }
 0xbdc   : > { %v5781_v57 = vadd.f32 %v5780_v23, %v5692_v51  ;;  %v5869_v39 = vpop.f32.mrf.mxu3  ;;  %v5605_v24 = vadd.f32 %v5604_v32, %v10090_v38  ;;  %v5693_v17 = vpop.f32.mrf.mxu1 }
 0xbde   : > { %v5870_v45 = vadd.f32 %v5869_v39, %v5781_v57  ;;  %v5694_v36 = vadd.f32 %v5693_v17, %v5605_v24 }
 0xbe0   : > { %v5945_v13 = vmax.f32 %v5870_v45, 0.0 }
 0xbe3   : > { %v5782_v7 = vpop.f32.mrf.mxu2  ;;  %v5607_v12 = vpop.f32.mrf.mxu0 }
 0xbe4   : > { %v5783_v31 = vadd.f32 %v5782_v7, %v5694_v36  ;;  %v5871_v19 = vpop.f32.mrf.mxu3  ;;  %v5608_v34 = vadd.f32 %v5607_v12, %v10090_v38  ;;  %v5696_v4 = vpop.f32.mrf.mxu1 }
 0xbe6   : > { %v5872_v42 = vadd.f32 %v5871_v19, %v5783_v31  ;;  %v5697_v2 = vadd.f32 %v5696_v4, %v5608_v34  ;;  %5646 = vmatmul.bf16.gmra.mxu0 %v10638_v62 }
 0xbe7   : > { %5735 = vmatmul.bf16.gmra.mxu1 %v10639_v20 }
 0xbe8   : > { %v5947_v55 = vmax.f32 %v5872_v42, 0.0  ;;  %5824 = vmatmul.bf16.gmra.mxu2 %v10661_v61 }
 0xbe9   : > { %5913 = vmatmul.bf16.gmra.mxu3 %v10662_v46 }
 0xbea   : > { %v10145_v25 = vpack.c.bf16 %v5947_v55, %v5945_v13 }
 0xbeb   : > { %v5785_v43 = vpop.f32.mrf.mxu2  ;;  %v5609_v48 = vpop.f32.mrf.mxu0 }
 0xbec   : > { %v5786_v0 = vadd.f32 %v5785_v43, %v5697_v2  ;;  %v5874_v15 = vpop.f32.mrf.mxu3  ;;  %v5610_v29 = vadd.f32 %v5609_v48, %v10090_v38  ;;  %v5698_v22 = vpop.f32.mrf.mxu1 }
 0xbee   : > { %v5875_v53 = vadd.f32 %v5874_v15, %v5786_v0  ;;  %v5699_v1 = vadd.f32 %v5698_v22, %v5610_v29 }
 0xbf0   : > { %v5949_v63 = vmax.f32 %v5875_v53, 0.0 }
 0xbf3   : > { %v5787_v62 = vpop.f32.mrf.mxu2  ;;  %v5612_v3 = vpop.f32.mrf.mxu0 }
 0xbf4   : > { %v5788_v60 = vadd.f32 %v5787_v62, %v5699_v1  ;;  %v5876_v10 = vpop.f32.mrf.mxu3  ;;  %v5613_v20 = vadd.f32 %v5612_v3, %v10090_v38  ;;  %v5701_v21 = vpop.f32.mrf.mxu1 }
 0xbf6   : > { %v5877_v9 = vadd.f32 %v5876_v10, %v5788_v60  ;;  %v5702_v14 = vadd.f32 %v5701_v21, %v5613_v20  ;;  %5651 = vmatmul.bf16.gmra.mxu0 %v10641_v35 }
 0xbf7   : > { %5740 = vmatmul.bf16.gmra.mxu1 %v10642_v28 }
 0xbf8   : > { %v5951_v16 = vmax.f32 %v5877_v9, 0.0  ;;  %5829 = vmatmul.bf16.gmra.mxu2 %v10663_v40 }
 0xbf9   : > { %5918 = vmatmul.bf16.gmra.mxu3 %v10664_v54 }
 0xbfa   : > { %v10153_v58 = vpack.c.bf16 %v5951_v16, %v5949_v63 }
 0xbfb   : > { %v5790_v47 = vpop.f32.mrf.mxu2  ;;  %v5614_v33 = vpop.f32.mrf.mxu0 }
 0xbfc   : > { %v5791_v51 = vadd.f32 %v5790_v47, %v5702_v14  ;;  %v5879_v6 = vpop.f32.mrf.mxu3  ;;  %v5615_v23 = vadd.f32 %v5614_v33, %v10090_v38  ;;  %v5703_v57 = vpop.f32.mrf.mxu1 }
 0xbfe   : > { %v5880_v39 = vadd.f32 %v5879_v6, %v5791_v51  ;;  %v5704_v32 = vadd.f32 %v5703_v57, %v5615_v23 }
 0xc00   : > { %v5953_v19 = vmax.f32 %v5880_v39, 0.0 }
 0xc03   : > { %v5792_v35 = vpop.f32.mrf.mxu2  ;;  %v5617_v45 = vpop.f32.mrf.mxu0 }
 0xc04   : > { %v5793_v24 = vadd.f32 %v5792_v35, %v5704_v32  ;;  %v5881_v17 = vpop.f32.mrf.mxu3  ;;  %v5618_v28 = vadd.f32 %v5617_v45, %v10090_v38  ;;  %v5706_v36 = vpop.f32.mrf.mxu1 }
 0xc06   : > { %v5882_v7 = vadd.f32 %v5881_v17, %v5793_v24  ;;  %v5707_v31 = vadd.f32 %v5706_v36, %v5618_v28 }
 0xc08   : > { %v5955_v12 = vmax.f32 %v5882_v7, 0.0 }
 0xc0a   : > { %v10157_v34 = vpack.c.bf16 %v5955_v12, %v5953_v19 }
 0xc0b   : > { %v5795_v4 = vpop.f32.mrf.mxu2  ;;  %v5619_v13 = vpop.f32.mrf.mxu0 }
 0xc0c   : > { %v5796_v42 = vadd.f32 %v5795_v4, %v5707_v31  ;;  %v5884_v2 = vpop.f32.mrf.mxu3  ;;  %v5620_v55 = vadd.f32 %v5619_v13, %v10090_v38  ;;  %v5708_v61 = vpop.f32.mrf.mxu1 }
 0xc0e   : > { %v5885_v46 = vadd.f32 %v5884_v2, %v5796_v42  ;;  %v5709_v43 = vadd.f32 %v5708_v61, %v5620_v55 }
 0xc10   : > { %v5957_v60 = vmax.f32 %v5885_v46, 0.0 }
 0xc13   : > { %v5797_v0 = vpop.f32.mrf.mxu2  ;;  %v5622_v29 = vpop.f32.mrf.mxu0 }
 0xc14   : > { %v5798_v15 = vadd.f32 %v5797_v0, %v5709_v43  ;;  %v5886_v48 = vpop.f32.mrf.mxu3  ;;  %v5623_v22 = vadd.f32 %v5622_v29, %v10090_v38  ;;  %v5711_v53 = vpop.f32.mrf.mxu1 }
 0xc16   : > { %v5887_v1 = vadd.f32 %v5886_v48, %v5798_v15  ;;  %v5712_v62 = vadd.f32 %v5711_v53, %v5623_v22 }
 0xc18   : > { %v5959_v10 = vmax.f32 %v5887_v1, 0.0 }
 0xc1a   : > { %v10161_v3 = vpack.c.bf16 %v5959_v10, %v5957_v60 }
 0xc1b   : > { %v5800_v20 = vpop.f32.mrf.mxu2  ;;  %v5624_v14 = vpop.f32.mrf.mxu0 }
 0xc1c   : > { %v5801_v21 = vadd.f32 %v5800_v20, %v5712_v62  ;;  %v5889_v9 = vpop.f32.mrf.mxu3  ;;  %v5625_v63 = vadd.f32 %v5624_v14, %v10090_v38  ;;  %v5713_v16 = vpop.f32.mrf.mxu1 }
 0xc1e   : > { %v5890_v40 = vadd.f32 %v5889_v9, %v5801_v21  ;;  %v5714_v54 = vadd.f32 %v5713_v16, %v5625_v63 }
 0xc20   : > { %v5961_v35 = vmax.f32 %v5890_v40, 0.0 }
 0xc23   : > { %v5802_v47 = vpop.f32.mrf.mxu2  ;;  %v5627_v33 = vpop.f32.mrf.mxu0 }
 0xc24   : > { %v5803_v51 = vadd.f32 %v5802_v47, %v5714_v54  ;;  %v5891_v6 = vpop.f32.mrf.mxu3  ;;  %v5628_v23 = vadd.f32 %v5627_v33, %v10090_v38  ;;  %v5716_v57 = vpop.f32.mrf.mxu1 }
 0xc26   : > { %v5892_v39 = vadd.f32 %v5891_v6, %v5803_v51  ;;  %v5717_v32 = vadd.f32 %v5716_v57, %v5628_v23 }
 0xc28   : > { %v5963_v24 = vmax.f32 %v5892_v39, 0.0 }
 0xc2a   : > { %v10165_v17 = vpack.c.bf16 %v5963_v24, %v5961_v35 }
 0xc2b   : > { %v5805_v45 = vpop.f32.mrf.mxu2  ;;  %v5629_v7 = vpop.f32.mrf.mxu0 }
 0xc2c   : > { %v5806_v28 = vadd.f32 %v5805_v45, %v5717_v32  ;;  %v5894_v36 = vpop.f32.mrf.mxu3  ;;  %v5630_v31 = vadd.f32 %v5629_v7, %v10090_v38  ;;  %v5718_v19 = vpop.f32.mrf.mxu1 }
 0xc2e   : > { %v5895_v12 = vadd.f32 %v5894_v36, %v5806_v28  ;;  %v5719_v4 = vadd.f32 %v5718_v19, %v5630_v31 }
 0xc30   : > { %v5965_v15 = vmax.f32 %v5895_v12, 0.0 }
 0xc33   : > { %v5807_v42 = vpop.f32.mrf.mxu2  ;;  %v5632_v55 = vpop.f32.mrf.mxu0 }
 0xc34   : > { %v5808_v2 = vadd.f32 %v5807_v42, %v5719_v4  ;;  %v5896_v13 = vpop.f32.mrf.mxu3  ;;  %v5633_v61 = vadd.f32 %v5632_v55, %v10090_v38  ;;  %v5721_v46 = vpop.f32.mrf.mxu1 }
 0xc36   : > { %v5897_v43 = vadd.f32 %v5896_v13, %v5808_v2  ;;  %v5722_v0 = vadd.f32 %v5721_v46, %v5633_v61 }
 0xc38   : > { %v5967_v48 = vmax.f32 %v5897_v43, 0.0 }
 0xc3a   : > { %v10169_v29 = vpack.c.bf16 %v5967_v48, %v5965_v15 }
 0xc3b   : > { %v5810_v22 = vpop.f32.mrf.mxu2  ;;  %v5634_v62 = vpop.f32.mrf.mxu0 }
 0xc3c   : > { %v5811_v53 = vadd.f32 %v5810_v22, %v5722_v0  ;;  %v5899_v1 = vpop.f32.mrf.mxu3  ;;  %v5635_v60 = vadd.f32 %v5634_v62, %v10090_v38  ;;  %v5723_v10 = vpop.f32.mrf.mxu1 }
 0xc3e   : > { %v5900_v20 = vadd.f32 %v5899_v1, %v5811_v53  ;;  %v5724_v21 = vadd.f32 %v5723_v10, %v5635_v60 }
 0xc40   : > { %v5969_v47 = vmax.f32 %v5900_v20, 0.0 }
 0xc43   : > { %v5812_v9 = vpop.f32.mrf.mxu2  ;;  %v5637_v16 = vpop.f32.mrf.mxu0 }
 0xc44   : > { %v5813_v14 = vadd.f32 %v5812_v9, %v5724_v21  ;;  %v5901_v63 = vpop.f32.mrf.mxu3  ;;  %v5726_v40 = vpop.f32.mrf.mxu1  ;;  %v5638_v6 = vadd.f32 %v5637_v16, %v10090_v38 }
 0xc46   : > { %v5902_v54 = vadd.f32 %v5901_v63, %v5813_v14  ;;  %v5727_v57 = vadd.f32 %v5726_v40, %v5638_v6 }
 0xc48   : > { %v5971_v51 = vmax.f32 %v5902_v54, 0.0 }
 0xc4a   : > { %v10173_v33 = vpack.c.bf16 %v5971_v51, %v5969_v47 }
 0xc4b   : > { %v5815_v23 = vpop.f32.mrf.mxu2  ;;  %v5639_v32 = vpop.f32.mrf.mxu0 }
 0xc4c   : > { %v5904_v39 = vpop.f32.mrf.mxu3  ;;  %v5728_v35 = vpop.f32.mrf.mxu1  ;;  %v5640_v24 = vadd.f32 %v5639_v32, %v10090_v38  ;;  %v5816_v45 = vadd.f32 %v5815_v23, %v5727_v57 }
 0xc4e   : > { %v5729_v28 = vadd.f32 %v5728_v35, %v5640_v24  ;;  %v5905_v7 = vadd.f32 %v5904_v39, %v5816_v45 }
 0xc50   : > { %v5973_v2 = vmax.f32 %v5905_v7, 0.0 }
 0xc53   : > { %v5817_v36 = vpop.f32.mrf.mxu2  ;;  %v5642_v12 = vpop.f32.mrf.mxu0 }
 0xc54   : > { %v5818_v31 = vadd.f32 %v5817_v36, %v5729_v28  ;;  %v5906_v19 = vpop.f32.mrf.mxu3  ;;  %v5731_v4 = vpop.f32.mrf.mxu1  ;;  %v5643_v55 = vadd.f32 %v5642_v12, %v10090_v38 }
 0xc56   : > { %v5907_v42 = vadd.f32 %v5906_v19, %v5818_v31  ;;  %v5732_v43 = vadd.f32 %v5731_v4, %v5643_v55 }
 0xc58   : > { %v5975_v13 = vmax.f32 %v5907_v42, 0.0 }
 0xc5a   : > { %v10177_v61 = vpack.c.bf16 %v5975_v13, %v5973_v2 }
 0xc5b   : > { %v5820_v46 = vpop.f32.mrf.mxu2  ;;  %v5644_v15 = vpop.f32.mrf.mxu0 }
 0xc5c   : > { %v5909_v0 = vpop.f32.mrf.mxu3  ;;  %v5733_v48 = vpop.f32.mrf.mxu1  ;;  %v5645_v22 = vadd.f32 %v5644_v15, %v10090_v38  ;;  %v5821_v53 = vadd.f32 %v5820_v46, %v5732_v43 }
 0xc5e   : > { %v5734_v1 = vadd.f32 %v5733_v48, %v5645_v22  ;;  %v5910_v60 = vadd.f32 %v5909_v0, %v5821_v53 }
 0xc60   : > { %v5977_v63 = vmax.f32 %v5910_v60, 0.0 }
 0xc63   : > { %v5822_v62 = vpop.f32.mrf.mxu2  ;;  %v5647_v21 = vpop.f32.mrf.mxu0 }
 0xc64   : > { %v5823_v10 = vadd.f32 %v5822_v62, %v5734_v1  ;;  %v5911_v20 = vpop.f32.mrf.mxu3  ;;  %v5736_v9 = vpop.f32.mrf.mxu1  ;;  %v5648_v40 = vadd.f32 %v5647_v21, %v10090_v38 }
 0xc66   : > { %v5912_v14 = vadd.f32 %v5911_v20, %v5823_v10  ;;  %v5737_v51 = vadd.f32 %v5736_v9, %v5648_v40 }
 0xc68   : > { %v5979_v16 = vmax.f32 %v5912_v14, 0.0 }
 0xc6a   : > { %v10181_v54 = vpack.c.bf16 %v5979_v16, %v5977_v63 }
 0xc6b   : > { %v5825_v47 = vpop.f32.mrf.mxu2  ;;  %v5649_v23 = vpop.f32.mrf.mxu0 }
 0xc6c   : > { %v5914_v6 = vpop.f32.mrf.mxu3  ;;  %v5738_v57 = vpop.f32.mrf.mxu1  ;;  %v5650_v39 = vadd.f32 %v5649_v23, %v10090_v38  ;;  %v5826_v32 = vadd.f32 %v5825_v47, %v5737_v51 }
 0xc6e   : > { %v5739_v35 = vadd.f32 %v5738_v57, %v5650_v39  ;;  %v5915_v45 = vadd.f32 %v5914_v6, %v5826_v32 }
 0xc70   : > { %v5981_v12 = vmax.f32 %v5915_v45, 0.0 }
 0xc73   : > { %v5827_v24 = vpop.f32.mrf.mxu2  ;;  %v5652_v7 = vpop.f32.mrf.mxu0 }
 0xc74   : > { %v5828_v28 = vadd.f32 %v5827_v24, %v5739_v35  ;;  %v5916_v36 = vpop.f32.mrf.mxu3  ;;  %v5741_v19 = vpop.f32.mrf.mxu1  ;;  %v5653_v42 = vadd.f32 %v5652_v7, %v10090_v38 }
 0xc76   : > { %v5917_v31 = vadd.f32 %v5916_v36, %v5828_v28  ;;  %v5742_v55 = vadd.f32 %v5741_v19, %v5653_v42 }
 0xc78   : > { %v5983_v4 = vmax.f32 %v5917_v31, 0.0 }
 0xc7a   : > { %v10185_v2 = vpack.c.bf16 %v5983_v4, %v5981_v12 }
 0xc7b   : > { %v5830_v13 = vpop.f32.mrf.mxu2  ;;  %v5654_v43 = vpop.f32.mrf.mxu0 }
 0xc7c   : > { %v5919_v46 = vpop.f32.mrf.mxu3  ;;  %v5655_v0 = vadd.f32 %v5654_v43, %v10090_v38  ;;  %v5831_v15 = vadd.f32 %v5830_v13, %v5742_v55  ;;  %v5743_v48 = vpop.f32.mrf.mxu1 }
 0xc7e   : > { %v5744_v22 = vadd.f32 %v5743_v48, %v5655_v0  ;;  %v5920_v1 = vadd.f32 %v5919_v46, %v5831_v15 }
 0xc80   : > { %v5985_v20 = vmax.f32 %v5920_v1, 0.0 }
 0xc83   : > { %v5832_v53 = vpop.f32.mrf.mxu2 }
 0xc84   : > { %v5833_v62 = vadd.f32 %v5832_v53, %v5744_v22  ;;  %v5921_v60 = vpop.f32.mrf.mxu3 }
 0xc86   : > { %v5922_v10 = vadd.f32 %v5921_v60, %v5833_v62 }
 0xc88   : > { %v5987_v21 = vmax.f32 %v5922_v10, 0.0 }
 0xc8a   : > { %v10188_v9 = vpack.c.bf16 %v5987_v21, %v5985_v20 }
 0xc8b   : > { %8432 = dma.done.wait (%p45_p5), [#allocation12 + $0x8], 2048 }
 0xc8c   : > { %8434 = vsyncadd (%p45_p5), [#allocation12 + $0x8], 4294965248 }
 0xc8d   : > { %8436 = dma.done.wait (%p45_p5), [#allocation12 + $0x9], 16 }
 0xc8e   : > { %8438 = vsyncadd (%p45_p5), [#allocation12 + $0x9], 4294967280  ;;  %v8061_v38 = vld [vmem:[#allocation10 + $0x38] sm:$0xff]  ;;  %v8060_v63 = vld [vmem:[#allocation10 + $0x30] sm:$0xff] }
 0xc8f   : > { %v8069_v14 = vld [vmem:[#allocation10 + $0x78] sm:$0xff]  ;;  %6164 = vmatpush.bf16.msrb.mxu0 %v8061_v38  ;;  %v8068_v16 = vld [vmem:[#allocation10 + $0x70] sm:$0xff]  ;;  %v8059_v40 = vld [vmem:[#allocation10 + $0x28] sm:$0xff] }
 0xc90   : > { %6253 = vmatpush.bf16.msrb.mxu1 %v8069_v14  ;;  %v8067_v47 = vld [vmem:[#allocation10 + $0x68] sm:$0xff]  ;;  %v8058_v51 = vld [vmem:[#allocation10 + $0x20] sm:$0xff]  ;;  %v8057_v23 = vld [vmem:[#allocation10 + $0x18] sm:$0xff] }
 0xc91   : > { %v8066_v6 = vld [vmem:[#allocation10 + $0x60] sm:$0xff]  ;;  %v8065_v57 = vld [vmem:[#allocation10 + $0x58] sm:$0xff]  ;;  %v8056_v39 = vld [vmem:[#allocation10 + $0x10] sm:$0xff] }
 0xc92   : > { %v8064_v32 = vld [vmem:[#allocation10 + $0x50] sm:$0xff]  ;;  %v8055_v35 = vld [vmem:[#allocation10 + $0x8] sm:$0xff]  ;;  %v8054_v45 = vld [vmem:[#allocation10] sm:$0xff] }
 0xc93   : > { %6165 = vmatpush.bf16.msrb.mxu0 %v8060_v63  ;;  %v8063_v24 = vld [vmem:[#allocation10 + $0x48] sm:$0xff]  ;;  %v8062_v28 = vld [vmem:[#allocation10 + $0x40] sm:$0xff]  ;;  %v10665_v36 = vld [vmem:[#allocation58_spill] sm:$0xff] }
 0xc94   : > { %6254 = vmatpush.bf16.msrb.mxu1 %v8068_v16  ;;  %v10666_v7 = vld [vmem:[#allocation73_spill] sm:$0xff]  ;;  %v10667_v31 = vld [vmem:[#allocation74_spill] sm:$0xff]  ;;  %v10668_v19 = vld [vmem:[#allocation75_spill] sm:$0xff] }
 0xc95   : > { %v10669_v12 = vld [vmem:[#allocation76_spill] sm:$0xff]  ;;  %v10670_v4 = vld [vmem:[#allocation61_spill] sm:$0xff] }
 0xc97   : > { %6166 = vmatpush.bf16.msrb.mxu0 %v8059_v40 }
 0xc98   : > { %6255 = vmatpush.bf16.msrb.mxu1 %v8067_v47 }
 0xc9b   : > { %6167 = vmatpush.bf16.msrb.mxu0 %v8058_v51 }
 0xc9c   : > { %6256 = vmatpush.bf16.msrb.mxu1 %v8066_v6 }
 0xc9f   : > { %6168 = vmatpush.bf16.msrb.mxu0 %v8057_v23 }
 0xca0   : > { %6257 = vmatpush.bf16.msrb.mxu1 %v8065_v57 }
 0xca3   : > { %6169 = vmatpush.bf16.msrb.mxu0 %v8056_v39 }
 0xca4   : > { %6258 = vmatpush.bf16.msrb.mxu1 %v8064_v32 }
 0xca7   : > { %6170 = vmatpush.bf16.msrb.mxu0 %v8055_v35 }
 0xca8   : > { %6259 = vmatpush.bf16.msrb.mxu1 %v8063_v24 }
 0xcab   : > { %6171 = vmatpush.bf16.msrb.mxu0 %v8054_v45 }
 0xcac   : > { %6260 = vmatpush.bf16.msrb.mxu1 %v8062_v28 }
 0xcae   : > { %6172 = vmatmul.bf16.vlgmr.msrb.gmra.mxu0 %v10665_v36 }
 0xcaf   : > { %6261 = vmatmul.bf16.vlgmr.msrb.gmra.mxu1 %v10105_v11  ;;  %v10214_v11 = vld [vmem:[#allocation11] ss:$0 sm:$0xff] }
 0xcbe   : > { %6177 = vmatmul.bf16.gmra.mxu0 %v10666_v7 }
 0xcbf   : > { %6266 = vmatmul.bf16.gmra.mxu1 %v10113_v27 }
 0xcce   : > { %6182 = vmatmul.bf16.gmra.mxu0 %v10667_v31 }
 0xccf   : > { %6271 = vmatmul.bf16.gmra.mxu1 %v10121_v52 }
 0xcde   : > { %6187 = vmatmul.bf16.gmra.mxu0 %v10668_v19 }
 0xcdf   : > { %6276 = vmatmul.bf16.gmra.mxu1 %v10129_v49 }
 0xcee   : > { %6192 = vmatmul.bf16.gmra.mxu0 %v10669_v12 }
 0xcef   : > { %6281 = vmatmul.bf16.gmra.mxu1 %v10137_v26 }
 0xcfe   : > { %6197 = vmatmul.bf16.gmra.mxu0 %v10670_v4 }
 0xcff   : > { %6286 = vmatmul.bf16.gmra.mxu1 %v10145_v25 }
 0xd0e   : > { %6202 = vmatmul.bf16.gmra.mxu0 %v10022_v44 }
 0xd0f   : > { %6291 = vmatmul.bf16.gmra.mxu1 %v10153_v58 }
 0xd1e   : > { %6207 = vmatmul.bf16.gmra.mxu0 %v10030_v30 }
 0xd1f   : > { %6296 = vmatmul.bf16.gmra.mxu1 %v10157_v34 }
 0xd2b   : > { %v6173_v27 = vpop.f32.mrf.mxu0 }
 0xd2c   : > { %v6262_v52 = vpop.f32.mrf.mxu1  ;;  %v6174_v49 = vadd.f32 %v10214_v11, %v6173_v27 }
 0xd2e   : > { %v6263_v26 = vadd.f32 %v6262_v52, %v6174_v49  ;;  %6212 = vmatmul.bf16.gmra.mxu0 %v10038_v56 }
 0xd2f   : > { %6301 = vmatmul.bf16.gmra.mxu1 %v10161_v3 }
 0xd30   : > { %6342 = vst [vmem:[%s8607_s23] sm:$0xff] %v6263_v26 }
 0xd33   : > { %v6175_v44 = vpop.f32.mrf.mxu0 }
 0xd34   : > { %v6264_v25 = vpop.f32.mrf.mxu1  ;;  %v6176_v30 = vadd.f32 %v10214_v11, %v6175_v44 }
 0xd36   : > { %v6265_v58 = vadd.f32 %v6264_v25, %v6176_v30 }
 0xd38   : > { %6343 = vst [vmem:[%s8607_s23 + $0x8] sm:$0xff] %v6265_v58 }
 0xd3b   : > { %v6178_v34 = vpop.f32.mrf.mxu0 }
 0xd3c   : > { %v6267_v42 = vpop.f32.mrf.mxu1  ;;  %v6179_v13 = vadd.f32 %v10214_v11, %v6178_v34 }
 0xd3e   : > { %v6268_v55 = vadd.f32 %v6267_v42, %v6179_v13  ;;  %6217 = vmatmul.bf16.gmra.mxu0 %v10046_v59 }
 0xd3f   : > { %6306 = vmatmul.bf16.gmra.mxu1 %v10165_v17 }
 0xd40   : > { %6344 = vst [vmem:[%s8607_s23 + $0x10] sm:$0xff] %v6268_v55 }
 0xd43   : > { %v6180_v56 = vpop.f32.mrf.mxu0 }
 0xd44   : > { %v6269_v3 = vpop.f32.mrf.mxu1  ;;  %v6181_v46 = vadd.f32 %v10214_v11, %v6180_v56 }
 0xd46   : > { %v6270_v43 = vadd.f32 %v6269_v3, %v6181_v46 }
 0xd48   : > { %6345 = vst [vmem:[%s8607_s23 + $0x18] sm:$0xff] %v6270_v43 }
 0xd4b   : > { %v6183_v0 = vpop.f32.mrf.mxu0 }
 0xd4c   : > { %v6272_v15 = vpop.f32.mrf.mxu1  ;;  %v6184_v48 = vadd.f32 %v10214_v11, %v6183_v0 }
 0xd4e   : > { %v6273_v22 = vadd.f32 %v6272_v15, %v6184_v48  ;;  %6222 = vmatmul.bf16.gmra.mxu0 %v10054_v41 }
 0xd4f   : > { %6311 = vmatmul.bf16.gmra.mxu1 %v10169_v29 }
 0xd50   : > { %6346 = vst [vmem:[%s8607_s23 + $0x20] sm:$0xff] %v6273_v22 }
 0xd53   : > { %v6185_v59 = vpop.f32.mrf.mxu0 }
 0xd54   : > { %v6274_v17 = vpop.f32.mrf.mxu1  ;;  %v6186_v53 = vadd.f32 %v10214_v11, %v6185_v59 }
 0xd56   : > { %v6275_v1 = vadd.f32 %v6274_v17, %v6186_v53 }
 0xd58   : > { %6347 = vst [vmem:[%s8607_s23 + $0x28] sm:$0xff] %v6275_v1 }
 0xd5b   : > { %v6188_v62 = vpop.f32.mrf.mxu0 }
 0xd5c   : > { %v6277_v60 = vpop.f32.mrf.mxu1  ;;  %v6189_v10 = vadd.f32 %v10214_v11, %v6188_v62 }
 0xd5e   : > { %v6278_v20 = vadd.f32 %v6277_v60, %v6189_v10  ;;  %6227 = vmatmul.bf16.gmra.mxu0 %v10062_v18 }
 0xd5f   : > { %6316 = vmatmul.bf16.gmra.mxu1 %v10173_v33 }
 0xd60   : > { %6348 = vst [vmem:[%s8607_s23 + $0x30] sm:$0xff] %v6278_v20 }
 0xd63   : > { %v6190_v41 = vpop.f32.mrf.mxu0 }
 0xd64   : > { %v6279_v29 = vpop.f32.mrf.mxu1  ;;  %v6191_v21 = vadd.f32 %v10214_v11, %v6190_v41 }
 0xd66   : > { %v6280_v38 = vadd.f32 %v6279_v29, %v6191_v21 }
 0xd68   : > { %6349 = vst [vmem:[%s8607_s23 + $0x38] sm:$0xff] %v6280_v38 }
 0xd6b   : > { %v6193_v14 = vpop.f32.mrf.mxu0 }
 0xd6c   : > { %v6282_v63 = vpop.f32.mrf.mxu1  ;;  %v6194_v16 = vadd.f32 %v10214_v11, %v6193_v14 }
 0xd6e   : > { %v6283_v40 = vadd.f32 %v6282_v63, %v6194_v16  ;;  %6232 = vmatmul.bf16.gmra.mxu0 %v10070_v5 }
 0xd6f   : > { %6321 = vmatmul.bf16.gmra.mxu1 %v10177_v61 }
 0xd70   : > { %6350 = vst [vmem:[%s8607_s23 + $0x40] sm:$0xff] %v6283_v40 }
 0xd73   : > { %v6195_v18 = vpop.f32.mrf.mxu0 }
 0xd74   : > { %v6284_v33 = vpop.f32.mrf.mxu1  ;;  %v6196_v47 = vadd.f32 %v10214_v11, %v6195_v18 }
 0xd76   : > { %v6285_v51 = vadd.f32 %v6284_v33, %v6196_v47 }
 0xd78   : > { %6351 = vst [vmem:[%s8607_s23 + $0x48] sm:$0xff] %v6285_v51 }
 0xd7b   : > { %v6198_v6 = vpop.f32.mrf.mxu0 }
 0xd7c   : > { %v6287_v23 = vpop.f32.mrf.mxu1  ;;  %v6199_v57 = vadd.f32 %v10214_v11, %v6198_v6 }
 0xd7e   : > { %v6288_v39 = vadd.f32 %v6287_v23, %v6199_v57  ;;  %6237 = vmatmul.bf16.gmra.mxu0 %v10078_v8 }
 0xd7f   : > { %6326 = vmatmul.bf16.gmra.mxu1 %v10181_v54 }
 0xd80   : > { %6352 = vst [vmem:[%s8607_s23 + $0x50] sm:$0xff] %v6288_v39 }
 0xd83   : > { %v6200_v5 = vpop.f32.mrf.mxu0 }
 0xd84   : > { %v6289_v61 = vpop.f32.mrf.mxu1  ;;  %v6201_v32 = vadd.f32 %v10214_v11, %v6200_v5 }
 0xd86   : > { %v6290_v35 = vadd.f32 %v6289_v61, %v6201_v32 }
 0xd88   : > { %6353 = vst [vmem:[%s8607_s23 + $0x58] sm:$0xff] %v6290_v35 }
 0xd8b   : > { %v6203_v24 = vpop.f32.mrf.mxu0 }
 0xd8c   : > { %v6292_v45 = vpop.f32.mrf.mxu1  ;;  %v6204_v28 = vadd.f32 %v10214_v11, %v6203_v24 }
 0xd8e   : > { %v6293_v36 = vadd.f32 %v6292_v45, %v6204_v28  ;;  %6242 = vmatmul.bf16.gmra.mxu0 %v10086_v37 }
 0xd8f   : > { %6331 = vmatmul.bf16.gmra.mxu1 %v10185_v2 }
 0xd90   : > { %6354 = vst [vmem:[%s8607_s23 + $0x60] sm:$0xff] %v6293_v36 }
 0xd93   : > { %v6205_v8 = vpop.f32.mrf.mxu0 }
 0xd94   : > { %v6294_v54 = vpop.f32.mrf.mxu1  ;;  %v6206_v7 = vadd.f32 %v10214_v11, %v6205_v8 }
 0xd96   : > { %v6295_v31 = vadd.f32 %v6294_v54, %v6206_v7 }
 0xd98   : > { %6355 = vst [vmem:[%s8607_s23 + $0x68] sm:$0xff] %v6295_v31 }
 0xd9b   : > { %v6208_v19 = vpop.f32.mrf.mxu0 }
 0xd9c   : > { %v6297_v12 = vpop.f32.mrf.mxu1  ;;  %v6209_v4 = vadd.f32 %v10214_v11, %v6208_v19 }
 0xd9e   : > { %v6298_v27 = vadd.f32 %v6297_v12, %v6209_v4  ;;  %6247 = vmatmul.bf16.gmra.mxu0 %v10097_v50 }
 0xd9f   : > { %6336 = vmatmul.bf16.gmra.mxu1 %v10188_v9 }
 0xda0   : > { %6356 = vst [vmem:[%s8607_s23 + $0x70] sm:$0xff] %v6298_v27 }
 0xda3   : > { %v6210_v37 = vpop.f32.mrf.mxu0 }
 0xda4   : > { %v6299_v2 = vpop.f32.mrf.mxu1  ;;  %v6211_v52 = vadd.f32 %v10214_v11, %v6210_v37 }
 0xda6   : > { %v6300_v49 = vadd.f32 %v6299_v2, %v6211_v52 }
 0xda8   : > { %6357 = vst [vmem:[%s8607_s23 + $0x78] sm:$0xff] %v6300_v49 }
 0xdab   : > { %v6213_v26 = vpop.f32.mrf.mxu0 }
 0xdac   : > { %v6302_v44 = vpop.f32.mrf.mxu1  ;;  %v6214_v25 = vadd.f32 %v10214_v11, %v6213_v26 }
 0xdae   : > { %v6303_v30 = vadd.f32 %v6302_v44, %v6214_v25 }
 0xdb0   : > { %6358 = vst [vmem:[%s8607_s23 + $0x80] sm:$0xff] %v6303_v30 }
 0xdb3   : > { %v6215_v58 = vpop.f32.mrf.mxu0 }
 0xdb4   : > { %v6304_v50 = vpop.f32.mrf.mxu1  ;;  %v6216_v9 = vadd.f32 %v10214_v11, %v6215_v58 }
 0xdb6   : > { %v6305_v34 = vadd.f32 %v6304_v50, %v6216_v9 }
 0xdb8   : > { %6359 = vst [vmem:[%s8607_s23 + $0x88] sm:$0xff] %v6305_v34 }
 0xdbb   : > { %v6218_v42 = vpop.f32.mrf.mxu0 }
 0xdbc   : > { %v6307_v13 = vpop.f32.mrf.mxu1  ;;  %v6219_v55 = vadd.f32 %v10214_v11, %v6218_v42 }
 0xdbe   : > { %v6308_v56 = vadd.f32 %v6307_v13, %v6219_v55 }
 0xdc0   : > { %6360 = vst [vmem:[%s8607_s23 + $0x90] sm:$0xff] %v6308_v56 }
 0xdc3   : > { %v6220_v3 = vpop.f32.mrf.mxu0 }
 0xdc4   : > { %v6309_v46 = vpop.f32.mrf.mxu1  ;;  %v6221_v43 = vadd.f32 %v10214_v11, %v6220_v3 }
 0xdc6   : > { %v6310_v0 = vadd.f32 %v6309_v46, %v6221_v43 }
 0xdc8   : > { %6361 = vst [vmem:[%s8607_s23 + $0x98] sm:$0xff] %v6310_v0 }
 0xdcb   : > { %v6223_v15 = vpop.f32.mrf.mxu0 }
 0xdcc   : > { %v6312_v48 = vpop.f32.mrf.mxu1  ;;  %v6224_v22 = vadd.f32 %v10214_v11, %v6223_v15 }
 0xdce   : > { %v6313_v59 = vadd.f32 %v6312_v48, %v6224_v22 }
 0xdd0   : > { %6362 = vst [vmem:[%s8607_s23 + $0xa0] sm:$0xff] %v6313_v59 }
 0xdd3   : > { %v6225_v17 = vpop.f32.mrf.mxu0 }
 0xdd4   : > { %v6314_v53 = vpop.f32.mrf.mxu1  ;;  %v6226_v1 = vadd.f32 %v10214_v11, %v6225_v17 }
 0xdd6   : > { %v6315_v62 = vadd.f32 %v6314_v53, %v6226_v1 }
 0xdd8   : > { %6363 = vst [vmem:[%s8607_s23 + $0xa8] sm:$0xff] %v6315_v62 }
 0xddb   : > { %v6228_v60 = vpop.f32.mrf.mxu0 }
 0xddc   : > { %v6317_v10 = vpop.f32.mrf.mxu1  ;;  %v6229_v20 = vadd.f32 %v10214_v11, %v6228_v60 }
 0xdde   : > { %v6318_v41 = vadd.f32 %v6317_v10, %v6229_v20 }
 0xde0   : > { %6364 = vst [vmem:[%s8607_s23 + $0xb0] sm:$0xff] %v6318_v41 }
 0xde3   : > { %v6230_v29 = vpop.f32.mrf.mxu0 }
 0xde4   : > { %v6319_v21 = vpop.f32.mrf.mxu1  ;;  %v6231_v38 = vadd.f32 %v10214_v11, %v6230_v29 }
 0xde6   : > { %v6320_v14 = vadd.f32 %v6319_v21, %v6231_v38 }
 0xde8   : > { %6365 = vst [vmem:[%s8607_s23 + $0xb8] sm:$0xff] %v6320_v14 }
 0xdeb   : > { %v6233_v63 = vpop.f32.mrf.mxu0 }
 0xdec   : > { %v6322_v16 = vpop.f32.mrf.mxu1  ;;  %v6234_v40 = vadd.f32 %v10214_v11, %v6233_v63 }
 0xdee   : > { %v6323_v18 = vadd.f32 %v6322_v16, %v6234_v40 }
 0xdf0   : > { %6366 = vst [vmem:[%s8607_s23 + $0xc0] sm:$0xff] %v6323_v18 }
 0xdf3   : > { %v6235_v33 = vpop.f32.mrf.mxu0 }
 0xdf4   : > { %v6324_v47 = vpop.f32.mrf.mxu1  ;;  %v6236_v51 = vadd.f32 %v10214_v11, %v6235_v33 }
 0xdf6   : > { %v6325_v6 = vadd.f32 %v6324_v47, %v6236_v51 }
 0xdf8   : > { %6367 = vst [vmem:[%s8607_s23 + $0xc8] sm:$0xff] %v6325_v6 }
 0xdfb   : > { %v6238_v23 = vpop.f32.mrf.mxu0 }
 0xdfc   : > { %v6327_v57 = vpop.f32.mrf.mxu1  ;;  %v6239_v39 = vadd.f32 %v10214_v11, %v6238_v23 }
 0xdfe   : > { %v6328_v5 = vadd.f32 %v6327_v57, %v6239_v39 }
 0xe00   : > { %6368 = vst [vmem:[%s8607_s23 + $0xd0] sm:$0xff] %v6328_v5 }
 0xe03   : > { %v6240_v61 = vpop.f32.mrf.mxu0 }
 0xe04   : > { %v6329_v32 = vpop.f32.mrf.mxu1  ;;  %v6241_v35 = vadd.f32 %v10214_v11, %v6240_v61 }
 0xe06   : > { %v6330_v24 = vadd.f32 %v6329_v32, %v6241_v35 }
 0xe08   : > { %6369 = vst [vmem:[%s8607_s23 + $0xd8] sm:$0xff] %v6330_v24 }
 0xe0b   : > { %v6243_v45 = vpop.f32.mrf.mxu0 }
 0xe0c   : > { %v6332_v28 = vpop.f32.mrf.mxu1  ;;  %v6244_v36 = vadd.f32 %v10214_v11, %v6243_v45 }
 0xe0e   : > { %v6333_v8 = vadd.f32 %v6332_v28, %v6244_v36 }
 0xe10   : > { %6370 = vst [vmem:[%s8607_s23 + $0xe0] sm:$0xff] %v6333_v8 }
 0xe13   : > { %v6245_v54 = vpop.f32.mrf.mxu0 }
 0xe14   : > { %v6334_v7 = vpop.f32.mrf.mxu1  ;;  %v6246_v31 = vadd.f32 %v10214_v11, %v6245_v54 }
 0xe16   : > { %v6335_v19 = vadd.f32 %v6334_v7, %v6246_v31 }
 0xe18   : > { %6371 = vst [vmem:[%s8607_s23 + $0xe8] sm:$0xff] %v6335_v19 }
 0xe1b   : > { %v6248_v12 = vpop.f32.mrf.mxu0 }
 0xe1c   : > { %v6337_v4 = vpop.f32.mrf.mxu1  ;;  %v6249_v27 = vadd.f32 %v10214_v11, %v6248_v12 }
 0xe1e   : > { %v6338_v37 = vadd.f32 %v6337_v4, %v6249_v27 }
 0xe20   : > { %6372 = vst [vmem:[%s8607_s23 + $0xf0] sm:$0xff] %v6338_v37 }
 0xe23   : > { %v6250_v2 = vpop.f32.mrf.mxu0 }
 0xe24   : > { %v6251_v52 = vadd.f32 %v10214_v11, %v6250_v2  ;;  %v6339_v49 = vpop.f32.mrf.mxu1 }
 0xe26   : > { %v6340_v26 = vadd.f32 %v6339_v49, %v6251_v52 }
 0xe28   : > { %6373 = vst [vmem:[%s8607_s23 + $0xf8] sm:$0xff] %v6340_v26 }
 0xe29 PF: > { %s10671_s21 = sld [smem:[#allocation46_spill]]  ;;  %p21_p5 = scmp.ge.s32.totalorder %s8547_s22, 4  }
 0xe2a   : > { %s10672_s19 = sld [smem:[#allocation47_spill]]  ;;  %s10673_s17 = smov %s8445_s18 }
 0xe2b   : > { %s10675_s20 = smov %s8547_s22  ;;  %23 = sbr.rel (!%p21_p5) target bundleno = 5 (0x5), region = 215 }
 0xe2f   : > { %s10674_s18 = smov %s10671_s21 }
 0xe30   :  { %6396 = vsyncpa [#allocation14], 1 }
 0xe31   :  { %6398 = vsyncpa [#allocation14 + $0x1], 1 }
 0xe32   :  { %6399 = vsyncmov [#allocation12] }
 0xe35   :  { %s6400_s23 = vpop.sfrf %6399 }
 0xe36   :  { %p7754_p7 = scmp.ne.s32.totalorder %s6400_s23, 0 }
 0xe38   :  { %6404 = shalt.err (%p7754_p7)  }
 0xe39   :  { %6406 = vsyncmov [#allocation12 + $0x1] }
 0xe3c   :  { %s6407_s16 = vpop.sfrf %6406 }
 0xe3d   :  { %p7755_p9 = scmp.ne.s32.totalorder %s6407_s16, 0 }
 0xe3f   :  { %6411 = shalt.err (%p7755_p9)  }
 0xe40   :  { %6413 = vsyncmov [#allocation12 + $0x2] }
 0xe43   :  { %s6414_s13 = vpop.sfrf %6413 }
 0xe44   :  { %p7756_p11 = scmp.ne.s32.totalorder %s6414_s13, 0 }
 0xe46   :  { %6418 = shalt.err (%p7756_p11)  }
 0xe47   :  { %6420 = vsyncmov [#allocation12 + $0x3] }
 0xe4a   :  { %s6421_s0 = vpop.sfrf %6420 }
 0xe4b   :  { %p7757_p12 = scmp.ne.s32.totalorder %s6421_s0, 0 }
 0xe4d   :  { %6425 = shalt.err (%p7757_p12)  }
 0xe4e   :  { %6427 = vsyncmov [#allocation12 + $0x4] }
 0xe51   :  { %s6428_s22 = vpop.sfrf %6427 }
 0xe52   :  { %p7758_p13 = scmp.ne.s32.totalorder %s6428_s22, 0 }
 0xe54   :  { %6432 = shalt.err (%p7758_p13)  }
 0xe55   :  { %6434 = vsyncmov [#allocation12 + $0x5] }
 0xe58   :  { %s6435_s1 = vpop.sfrf %6434 }
 0xe59   :  { %p7759_p0 = scmp.ne.s32.totalorder %s6435_s1, 0 }
 0xe5b   :  { %6439 = shalt.err (%p7759_p0)  }
 0xe5c   :  { %6441 = vsyncmov [#allocation12 + $0x6] }
 0xe5f   :  { %s6442_s2 = vpop.sfrf %6441 }
 0xe60   :  { %p7760_p1 = scmp.ne.s32.totalorder %s6442_s2, 0 }
 0xe62   :  { %6446 = shalt.err (%p7760_p1)  }
 0xe63   :  { %6448 = vsyncmov [#allocation12 + $0x7] }
 0xe66   :  { %s6449_s3 = vpop.sfrf %6448 }
 0xe67   :  { %p7761_p2 = scmp.ne.s32.totalorder %s6449_s3, 0 }
 0xe69   :  { %6453 = shalt.err (%p7761_p2)  }
 0xe6a   :  { %6455 = vsyncmov [#allocation12 + $0x8] }
 0xe6d   :  { %s6456_s4 = vpop.sfrf %6455 }
 0xe6e   :  { %p7762_p3 = scmp.ne.s32.totalorder %s6456_s4, 0 }
 0xe70   :  { %6460 = shalt.err (%p7762_p3)  }
 0xe71   :  { %6462 = vsyncmov [#allocation12 + $0x9] }
 0xe74   :  { %s6463_s5 = vpop.sfrf %6462 }
 0xe75   :  { %p7763_p4 = scmp.ne.s32.totalorder %s6463_s5, 0 }
 0xe77   :  { %6467 = shalt.err (%p7763_p4)  }

</bundles_post_ra>
